<compile_context>
chip_gen: v5e
topology: v5e:2x2
jax: 0.10.0
libtpu: 0.0.40
codegen_flags: <defaults>
</compile_context>

<pallas_src>
import functools
import math

import jax
import jax.numpy as jnp
from jax.experimental import pallas as pl
from jax.experimental.pallas import tpu as pltpu


# ----------------------------- in-kernel helpers ---------------------------

def _ln(h, g, b, eps):
    # LayerNorm with torch semantics of the reference module:
    # unbiased std (torch.Tensor.std default), divide by (std + eps).
    mean = jnp.mean(h, axis=-1, keepdims=True)
    d = h - mean
    n = h.shape[-1]
    var_unbiased = jnp.sum(d * d, axis=-1, keepdims=True) * (1.0 / (n - 1))
    std = jnp.sqrt(var_unbiased)
    return g * d / (std + eps) + b


def _mh_attention(q, k, v, bias, wm, bm, H, Dh, scale):
    # q:(Sq,D)  k,v:(Sk,D)  bias:(1,Sk) additive (-1e9 on masked)  wm:(D,D) bm:(1,D)
    # Returns merge-projected attention output (Sq, D) including the merge bias.
    Sq, D = q.shape
    out = jnp.zeros((Sq, D), jnp.float32) + bm
    for h in range(H):           # H is small & static -> unrolled
        lo = h * Dh
        qh = q[:, lo:lo + Dh]
        kh = k[:, lo:lo + Dh]
        vh = v[:, lo:lo + Dh]
        s = jnp.dot(qh, kh.T, preferred_element_type=jnp.float32) * scale
        s = s + bias                                   # additive mask bias
        s = s - jnp.max(s, axis=-1, keepdims=True)
        p = jnp.exp(s)
        p = p * pl.reciprocal(jnp.sum(p, axis=-1, keepdims=True), approx=True)
        oh = jnp.dot(p, vh, preferred_element_type=jnp.float32)       # (Sq, Dh)
        # fold merge linear: concat_h(oh) @ Wm == sum_h oh @ Wm[h*Dh:(h+1)*Dh]
        out = out + jnp.dot(oh, wm[lo:lo + Dh, :],
                            preferred_element_type=jnp.float32)
    return out


def _ffn(h, w1, bf1, w2, bf2):
    f = jnp.dot(h, w1, preferred_element_type=jnp.float32) + bf1
    f = jnp.maximum(f, 0.0)                       # ReLU (dropout = identity)
    return jnp.dot(f, w2, preferred_element_type=jnp.float32) + bf2


# ----------------------------- fused block kernels --------------------------

def _sa_kernel(x_ref, bias_ref,
               wqkv_ref, bqkv_ref, wm_ref, bm_ref,
               g1_ref, be1_ref,
               w1_ref, bf1_ref, w2_ref, bf2_ref,
               g2_ref, be2_ref,
               o_ref, *, H, Dh, eps, scale):
    x = x_ref[0].astype(jnp.float32)               # (S, D)
    D = x.shape[-1]
    bias = bias_ref[0]                             # (1, S)

    qkv = jnp.dot(x, wqkv_ref[...], preferred_element_type=jnp.float32) + bqkv_ref[...]
    q = qkv[:, :D]
    k = qkv[:, D:2 * D]
    v = qkv[:, 2 * D:]

    att = _mh_attention(q, k, v, bias, wm_ref[...], bm_ref[...], H, Dh, scale)
    h1 = _ln(x + att, g1_ref[...], be1_ref[...], eps)

    f = _ffn(h1, w1_ref[...], bf1_ref[...], w2_ref[...], bf2_ref[...])
    h2 = _ln(h1 + f, g2_ref[...], be2_ref[...], eps)

    o_ref[0] = h2.astype(o_ref.dtype)


def _ca_kernel(x_ref, y_ref, xbias_ref, ybias_ref,
               wqkv1_ref, bqkv1_ref, wm1_ref, bm1_ref, g1_ref, be1_ref,
               wq2_ref, bq2_ref, wkv2_ref, bkv2_ref, wm2_ref, bm2_ref,
               g2_ref, be2_ref,
               w1_ref, bf1_ref, w2_ref, bf2_ref, g3_ref, be3_ref,
               o_ref, *, H, Dh, eps, scale):
    x = x_ref[0].astype(jnp.float32)               # (Sx, D)
    y = y_ref[0].astype(jnp.float32)               # (Sy, D)
    D = x.shape[-1]
    xbias = xbias_ref[0]                           # (1, Sx)
    ybias = ybias_ref[0]                           # (1, Sy)

    # --- self-attention on x (mhatt1) ---
    qkv = jnp.dot(x, wqkv1_ref[...], preferred_element_type=jnp.float32) + bqkv1_ref[...]
    q = qkv[:, :D]
    k = qkv[:, D:2 * D]
    v = qkv[:, 2 * D:]
    att1 = _mh_attention(q, k, v, xbias, wm1_ref[...], bm1_ref[...], H, Dh, scale)
    h1 = _ln(x + att1, g1_ref[...], be1_ref[...], eps)

    # --- cross-attention: queries from x, keys/values from y (mhatt2) ---
    q2 = jnp.dot(h1, wq2_ref[...], preferred_element_type=jnp.float32) + bq2_ref[...]
    kv2 = jnp.dot(y, wkv2_ref[...], preferred_element_type=jnp.float32) + bkv2_ref[...]
    k2 = kv2[:, :D]
    v2 = kv2[:, D:]
    att2 = _mh_attention(q2, k2, v2, ybias, wm2_ref[...], bm2_ref[...], H, Dh, scale)
    h2 = _ln(h1 + att2, g2_ref[...], be2_ref[...], eps)

    # --- FFN ---
    f = _ffn(h2, w1_ref[...], bf1_ref[...], w2_ref[...], bf2_ref[...])
    h3 = _ln(h2 + f, g3_ref[...], be3_ref[...], eps)

    o_ref[0] = h3.astype(o_ref.dtype)


# ----------------------------- wrappers -------------------------------------

def _rep_spec(arr):
    # full-array block, same block every grid step (stays resident in VMEM)
    nd = arr.ndim
    return pl.BlockSpec(arr.shape, lambda b, _nd=nd: (0,) * _nd)


def sa_block(p, x, x_bias, H, Dh, eps=1e-6):
    B, S, D = x.shape
    scale = 1.0 / math.sqrt(Dh)
    kern = functools.partial(_sa_kernel, H=H, Dh=Dh, eps=eps, scale=scale)
    weights = [p['wqkv'], p['bqkv'], p['wm'], p['bm'],
               p['g1'], p['be1'],
               p['w1'], p['bf1'], p['w2'], p['bf2'],
               p['g2'], p['be2']]
    in_specs = ([pl.BlockSpec((1, S, D), lambda b: (b, 0, 0)),
                 pl.BlockSpec((1, 1, S), lambda b: (b, 0, 0))]
                + [_rep_spec(w) for w in weights])
    return pl.pallas_call(
        kern,
        out_shape=jax.ShapeDtypeStruct((B, S, D), x.dtype),
        grid=(B,),
        in_specs=in_specs,
        out_specs=pl.BlockSpec((1, S, D), lambda b: (b, 0, 0)),
        compiler_params=pltpu.CompilerParams(
            dimension_semantics=("parallel",)),
    )(x, x_bias, *weights)


def ca_block(p, x, y, x_bias, y_bias, H, Dh, eps=1e-6):
    B, Sx, D = x.shape
    Sy = y.shape[1]
    scale = 1.0 / math.sqrt(Dh)
    kern = functools.partial(_ca_kernel, H=H, Dh=Dh, eps=eps, scale=scale)
    weights = [p['wqkv1'], p['bqkv1'], p['wm1'], p['bm1'], p['g1'], p['be1'],
               p['wq2'], p['bq2'], p['wkv2'], p['bkv2'], p['wm2'], p['bm2'],
               p['g2'], p['be2'],
               p['w1'], p['bf1'], p['w2'], p['bf2'], p['g3'], p['be3']]
    in_specs = ([pl.BlockSpec((1, Sx, D), lambda b: (b, 0, 0)),
                 pl.BlockSpec((1, Sy, D), lambda b: (b, 0, 0)),
                 pl.BlockSpec((1, 1, Sx), lambda b: (b, 0, 0)),
                 pl.BlockSpec((1, 1, Sy), lambda b: (b, 0, 0))]
                + [_rep_spec(w) for w in weights])
    return pl.pallas_call(
        kern,
        out_shape=jax.ShapeDtypeStruct((B, Sx, D), x.dtype),
        grid=(B,),
        in_specs=in_specs,
        out_specs=pl.BlockSpec((1, Sx, D), lambda b: (b, 0, 0)),
        compiler_params=pltpu.CompilerParams(
            dimension_semantics=("parallel",)),
    )(x, y, x_bias, y_bias, *weights)


def cme_forward(params, x, y, x_bias, y_bias, H, Dh):
    x1 = sa_block(params['SA1'], x, x_bias, H, Dh)
    y1 = sa_block(params['SA2'], y, y_bias, H, Dh)
    x_res = ca_block(params['CA1'], x1, y1, x_bias, y_bias, H, Dh)
    y_res = ca_block(params['CA2'], y1, x1, y_bias, x_bias, H, Dh)
    return x_res, y_res


# ----------------------------- parameter init -------------------------------

def init_linear(key, din, dout):
    k1, k2 = jax.random.split(key)
    bound = 1.0 / math.sqrt(din)
    w = jax.random.uniform(k1, (din, dout), jnp.float32, -bound, bound)
    b = jax.random.uniform(k2, (1, dout), jnp.float32, -bound, bound)
    return w, b


def init_mhatt(key, D):
    ks = jax.random.split(key, 4)
    wq, bq = init_linear(ks[0], D, D)
    wk, bk = init_linear(ks[1], D, D)
    wv, bv = init_linear(ks[2], D, D)
    wm, bm = init_linear(ks[3], D, D)
    return dict(wq=wq, bq=bq, wk=wk, bk=bk, wv=wv, bv=bv, wm=wm, bm=bm)


def init_ffn(key, D, F):
    k1, k2 = jax.random.split(key)
    w1, bf1 = init_linear(k1, D, F)
    w2, bf2 = init_linear(k2, F, D)
    return w1, bf1, w2, bf2


def _ln_params(D):
    return jnp.ones((1, D), jnp.float32), jnp.zeros((1, D), jnp.float32)


def init_sa(key, D, F):
    k1, k2 = jax.random.split(key)
    m = init_mhatt(k1, D)
    w1, bf1, w2, bf2 = init_ffn(k2, D, F)
    g1, be1 = _ln_params(D)
    g2, be2 = _ln_params(D)
    return dict(
        wqkv=jnp.concatenate([m['wq'], m['wk'], m['wv']], axis=1),
        bqkv=jnp.concatenate([m['bq'], m['bk'], m['bv']], axis=1),
        wm=m['wm'], bm=m['bm'],
        g1=g1, be1=be1,
        w1=w1, bf1=bf1, w2=w2, bf2=bf2,
        g2=g2, be2=be2,
    )


def init_ca(key, D, F):
    k1, k2, k3 = jax.random.split(key, 3)
    m1 = init_mhatt(k1, D)
    m2 = init_mhatt(k2, D)
    w1, bf1, w2, bf2 = init_ffn(k3, D, F)
    g1, be1 = _ln_params(D)
    g2, be2 = _ln_params(D)
    g3, be3 = _ln_params(D)
    return dict(
        wqkv1=jnp.concatenate([m1['wq'], m1['wk'], m1['wv']], axis=1),
        bqkv1=jnp.concatenate([m1['bq'], m1['bk'], m1['bv']], axis=1),
        wm1=m1['wm'], bm1=m1['bm'],
        g1=g1, be1=be1,
        wq2=m2['wq'], bq2=m2['bq'],
        wkv2=jnp.concatenate([m2['wk'], m2['wv']], axis=1),
        bkv2=jnp.concatenate([m2['bk'], m2['bv']], axis=1),
        wm2=m2['wm'], bm2=m2['bm'],
        g2=g2, be2=be2,
        w1=w1, bf1=bf1, w2=w2, bf2=bf2,
        g3=g3, be3=be3,
    )


def init_cme(key, D, F):
    k1, k2, k3, k4 = jax.random.split(key, 4)
    return dict(SA1=init_sa(k1, D, F), SA2=init_sa(k2, D, F),
                CA1=init_ca(k3, D, F), CA2=init_ca(k4, D, F))


# --------------------------------- main --------------------------------------

if __name__ == "__main__":
    # Config (C): HIDDEN_SIZE=32, FF_SIZE=64, MULTI_HEAD=4, HIDDEN_SIZE_HEAD=8,
    #             DROPOUT_R=0 (eval mode -> dropout is identity).
    D, FF, H = 32, 64, 4
    Dh = D // H
    B, Sx, Sy = 2, 8, 12

    root = jax.random.PRNGKey(0)
    kp, kx, ky = jax.random.split(root, 3)

    params = init_cme(kp, D, FF)
    x = jax.random.normal(kx, (B, Sx, D), jnp.float32)
    y = jax.random.normal(ky, (B, Sy, D), jnp.float32)

    # torch masked_fill convention: True (1.0) == masked-out position.
    # Precompute additive bias (mask * -1e9), shape (B, 1, S), broadcast over
    # heads / query positions inside the kernel.
    x_len = jnp.array([Sx, Sx - 2])
    y_len = jnp.array([Sy - 3, Sy])
    x_mask = (jnp.arange(Sx)[None, :] >= x_len[:, None]).astype(jnp.float32).reshape(B, 1, Sx)
    y_mask = (jnp.arange(Sy)[None, :] >= y_len[:, None]).astype(jnp.float32).reshape(B, 1, Sy)
    x_bias = x_mask * (-1.0e9)
    y_bias = y_mask * (-1.0e9)

    fwd = jax.jit(functools.partial(cme_forward, H=H, Dh=Dh))
    x_res, y_res = fwd(params, x, y, x_bias, y_bias)
    jax.block_until_ready((x_res, y_res))

    assert x_res.shape == (B, Sx, D) and y_res.shape == (B, Sy, D)
    assert jnp.all(jnp.isfinite(x_res)) and jnp.all(jnp.isfinite(y_res))
    print("KERNEL_OK")
</pallas_src>

<mosaic_0001>
module attributes {stable_mosaic.version = 11 : i64} {
  func.func @_sa_kernel(%arg0: i32, %arg1: memref<1x8x32xf32, #tpu.memory_space<vmem>>, %arg2: memref<1x1x8xf32, #tpu.memory_space<vmem>>, %arg3: memref<32x96xf32, #tpu.memory_space<vmem>>, %arg4: memref<1x96xf32, #tpu.memory_space<vmem>>, %arg5: memref<32x32xf32, #tpu.memory_space<vmem>>, %arg6: memref<1x32xf32, #tpu.memory_space<vmem>>, %arg7: memref<1x32xf32, #tpu.memory_space<vmem>>, %arg8: memref<1x32xf32, #tpu.memory_space<vmem>>, %arg9: memref<32x64xf32, #tpu.memory_space<vmem>>, %arg10: memref<1x64xf32, #tpu.memory_space<vmem>>, %arg11: memref<64x32xf32, #tpu.memory_space<vmem>>, %arg12: memref<1x32xf32, #tpu.memory_space<vmem>>, %arg13: memref<1x32xf32, #tpu.memory_space<vmem>>, %arg14: memref<1x32xf32, #tpu.memory_space<vmem>>, %arg15: memref<1x8x32xf32, #tpu.memory_space<vmem>>) attributes {dimension_semantics = [#tpu.dimension_semantics<parallel>], iteration_bounds = array<i64: 2>, scalar_prefetch = 0 : i64, scratch_operands = 0 : i64, tpu.core_type = #tpu.core_type<tc>, window_params = [{transform_indices = @transform_0, window_bounds = array<i64: 1, 8, 32>}, {transform_indices = @transform_1, window_bounds = array<i64: 1, 1, 8>}, {pipeline_mode = #tpu.pipeline_mode<synchronous>, transform_indices = @transform_2, window_bounds = array<i64: 32, 96>}, {pipeline_mode = #tpu.pipeline_mode<synchronous>, transform_indices = @transform_3, window_bounds = array<i64: 1, 96>}, {pipeline_mode = #tpu.pipeline_mode<synchronous>, transform_indices = @transform_4, window_bounds = array<i64: 32, 32>}, {pipeline_mode = #tpu.pipeline_mode<synchronous>, transform_indices = @transform_5, window_bounds = array<i64: 1, 32>}, {pipeline_mode = #tpu.pipeline_mode<synchronous>, transform_indices = @transform_6, window_bounds = array<i64: 1, 32>}, {pipeline_mode = #tpu.pipeline_mode<synchronous>, transform_indices = @transform_7, window_bounds = array<i64: 1, 32>}, {pipeline_mode = #tpu.pipeline_mode<synchronous>, transform_indices = @transform_8, window_bounds = array<i64: 32, 64>}, {pipeline_mode = #tpu.pipeline_mode<synchronous>, transform_indices = @transform_9, window_bounds = array<i64: 1, 64>}, {pipeline_mode = #tpu.pipeline_mode<synchronous>, transform_indices = @transform_10, window_bounds = array<i64: 64, 32>}, {pipeline_mode = #tpu.pipeline_mode<synchronous>, transform_indices = @transform_11, window_bounds = array<i64: 1, 32>}, {pipeline_mode = #tpu.pipeline_mode<synchronous>, transform_indices = @transform_12, window_bounds = array<i64: 1, 32>}, {pipeline_mode = #tpu.pipeline_mode<synchronous>, transform_indices = @transform_13, window_bounds = array<i64: 1, 32>}, {transform_indices = @transform_14, window_bounds = array<i64: 1, 8, 32>}]} {
    %c0 = arith.constant 0 : index
    %c0_0 = arith.constant 0 : index
    %c0_1 = arith.constant 0 : index
    %0 = vector.load %arg1[%c0, %c0_0, %c0_1] : memref<1x8x32xf32, #tpu.memory_space<vmem>>, vector<1x8x32xf32>
    %1 = vector.shape_cast %0 : vector<1x8x32xf32> to vector<8x32xf32>
    %c0_2 = arith.constant 0 : index
    %c0_3 = arith.constant 0 : index
    %c0_4 = arith.constant 0 : index
    %2 = vector.load %arg2[%c0_2, %c0_3, %c0_4] : memref<1x1x8xf32, #tpu.memory_space<vmem>>, vector<1x1x8xf32>
    %3 = vector.shape_cast %2 : vector<1x1x8xf32> to vector<1x8xf32>
    %c0_5 = arith.constant 0 : index
    %c0_6 = arith.constant 0 : index
    %4 = vector.load %arg3[%c0_5, %c0_6] : memref<32x96xf32, #tpu.memory_space<vmem>>, vector<32x96xf32>
    %cst = arith.constant dense<0.000000e+00> : vector<8x96xf32>
    %5 = tpu.matmul %1, %4, %cst {dimension_numbers = #tpu.dot_dimension_numbers<[1], [0], [0], [1], [0, 0, 1, 1], [], []>} : vector<8x32xf32>, vector<32x96xf32>, vector<8x96xf32> -> vector<8x96xf32>
    %c0_7 = arith.constant 0 : index
    %c0_8 = arith.constant 0 : index
    %6 = vector.load %arg4[%c0_7, %c0_8] : memref<1x96xf32, #tpu.memory_space<vmem>>, vector<1x96xf32>
    %7 = vector.broadcast %6 : vector<1x96xf32> to vector<8x96xf32>
    %8 = arith.addf %5, %7 : vector<8x96xf32>
    %9 = vector.extract_strided_slice %8 {offsets = [0, 0], sizes = [8, 32], strides = [1, 1]} : vector<8x96xf32> to vector<8x32xf32>
    %10 = vector.extract_strided_slice %8 {offsets = [0, 32], sizes = [8, 32], strides = [1, 1]} : vector<8x96xf32> to vector<8x32xf32>
    %11 = vector.extract_strided_slice %8 {offsets = [0, 64], sizes = [8, 32], strides = [1, 1]} : vector<8x96xf32> to vector<8x32xf32>
    %c0_9 = arith.constant 0 : index
    %c0_10 = arith.constant 0 : index
    %12 = vector.load %arg5[%c0_9, %c0_10] : memref<32x32xf32, #tpu.memory_space<vmem>>, vector<32x32xf32>
    %c0_11 = arith.constant 0 : index
    %c0_12 = arith.constant 0 : index
    %13 = vector.load %arg6[%c0_11, %c0_12] : memref<1x32xf32, #tpu.memory_space<vmem>>, vector<1x32xf32>
    %cst_13 = arith.constant 0.000000e+00 : f32
    %14 = vector.broadcast %cst_13 : f32 to vector<8x32xf32>
    %15 = vector.broadcast %13 : vector<1x32xf32> to vector<8x32xf32>
    %16 = arith.addf %14, %15 : vector<8x32xf32>
    %17 = vector.extract_strided_slice %9 {offsets = [0, 0], sizes = [8, 8], strides = [1, 1]} : vector<8x32xf32> to vector<8x8xf32>
    %18 = vector.extract_strided_slice %10 {offsets = [0, 0], sizes = [8, 8], strides = [1, 1]} : vector<8x32xf32> to vector<8x8xf32>
    %19 = vector.extract_strided_slice %11 {offsets = [0, 0], sizes = [8, 8], strides = [1, 1]} : vector<8x32xf32> to vector<8x8xf32>
    %20 = tpu.transpose %18, [1, 0] : vector<8x8xf32> -> vector<8x8xf32>
    %cst_14 = arith.constant dense<0.000000e+00> : vector<8x8xf32>
    %21 = tpu.matmul %17, %20, %cst_14 {dimension_numbers = #tpu.dot_dimension_numbers<[1], [0], [0], [1], [0, 0, 1, 1], [], []>} : vector<8x8xf32>, vector<8x8xf32>, vector<8x8xf32> -> vector<8x8xf32>
    %cst_15 = arith.constant 0.353553385 : f32
    %22 = vector.broadcast %cst_15 : f32 to vector<8x8xf32>
    %23 = arith.mulf %21, %22 : vector<8x8xf32>
    %24 = vector.broadcast %3 : vector<1x8xf32> to vector<8x8xf32>
    %25 = arith.addf %23, %24 : vector<8x8xf32>
    %cst_16 = arith.constant dense<0xFF800000> : vector<8xf32>
    %26 = vector.multi_reduction <maximumf>, %25, %cst_16 [1] : vector<8x8xf32> to vector<8xf32>
    %27 = vector.shape_cast %26 : vector<8xf32> to vector<8x1xf32>
    %28 = vector.broadcast %27 : vector<8x1xf32> to vector<8x8xf32>
    %29 = arith.subf %25, %28 : vector<8x8xf32>
    %30 = math.exp %29 : vector<8x8xf32>
    %cst_17 = arith.constant dense<0.000000e+00> : vector<8xf32>
    %31 = vector.multi_reduction <add>, %30, %cst_17 [1] : vector<8x8xf32> to vector<8xf32>
    %32 = vector.shape_cast %31 : vector<8xf32> to vector<8x1xf32>
    %33 = tpu.reciprocal %32 {approx = true} : vector<8x1xf32> -> vector<8x1xf32>
    %34 = vector.broadcast %33 : vector<8x1xf32> to vector<8x8xf32>
    %35 = arith.mulf %30, %34 : vector<8x8xf32>
    %cst_18 = arith.constant dense<0.000000e+00> : vector<8x8xf32>
    %36 = tpu.matmul %35, %19, %cst_18 {dimension_numbers = #tpu.dot_dimension_numbers<[1], [0], [0], [1], [0, 0, 1, 1], [], []>} : vector<8x8xf32>, vector<8x8xf32>, vector<8x8xf32> -> vector<8x8xf32>
    %37 = vector.extract_strided_slice %12 {offsets = [0, 0], sizes = [8, 32], strides = [1, 1]} : vector<32x32xf32> to vector<8x32xf32>
    %cst_19 = arith.constant dense<0.000000e+00> : vector<8x32xf32>
    %38 = tpu.matmul %36, %37, %cst_19 {dimension_numbers = #tpu.dot_dimension_numbers<[1], [0], [0], [1], [0, 0, 1, 1], [], []>} : vector<8x8xf32>, vector<8x32xf32>, vector<8x32xf32> -> vector<8x32xf32>
    %39 = arith.addf %16, %38 : vector<8x32xf32>
    %40 = vector.extract_strided_slice %9 {offsets = [0, 8], sizes = [8, 8], strides = [1, 1]} : vector<8x32xf32> to vector<8x8xf32>
    %41 = vector.extract_strided_slice %10 {offsets = [0, 8], sizes = [8, 8], strides = [1, 1]} : vector<8x32xf32> to vector<8x8xf32>
    %42 = vector.extract_strided_slice %11 {offsets = [0, 8], sizes = [8, 8], strides = [1, 1]} : vector<8x32xf32> to vector<8x8xf32>
    %43 = tpu.transpose %41, [1, 0] : vector<8x8xf32> -> vector<8x8xf32>
    %cst_20 = arith.constant dense<0.000000e+00> : vector<8x8xf32>
    %44 = tpu.matmul %40, %43, %cst_20 {dimension_numbers = #tpu.dot_dimension_numbers<[1], [0], [0], [1], [0, 0, 1, 1], [], []>} : vector<8x8xf32>, vector<8x8xf32>, vector<8x8xf32> -> vector<8x8xf32>
    %cst_21 = arith.constant 0.353553385 : f32
    %45 = vector.broadcast %cst_21 : f32 to vector<8x8xf32>
    %46 = arith.mulf %44, %45 : vector<8x8xf32>
    %47 = vector.broadcast %3 : vector<1x8xf32> to vector<8x8xf32>
    %48 = arith.addf %46, %47 : vector<8x8xf32>
    %cst_22 = arith.constant dense<0xFF800000> : vector<8xf32>
    %49 = vector.multi_reduction <maximumf>, %48, %cst_22 [1] : vector<8x8xf32> to vector<8xf32>
    %50 = vector.shape_cast %49 : vector<8xf32> to vector<8x1xf32>
    %51 = vector.broadcast %50 : vector<8x1xf32> to vector<8x8xf32>
    %52 = arith.subf %48, %51 : vector<8x8xf32>
    %53 = math.exp %52 : vector<8x8xf32>
    %cst_23 = arith.constant dense<0.000000e+00> : vector<8xf32>
    %54 = vector.multi_reduction <add>, %53, %cst_23 [1] : vector<8x8xf32> to vector<8xf32>
    %55 = vector.shape_cast %54 : vector<8xf32> to vector<8x1xf32>
    %56 = tpu.reciprocal %55 {approx = true} : vector<8x1xf32> -> vector<8x1xf32>
    %57 = vector.broadcast %56 : vector<8x1xf32> to vector<8x8xf32>
    %58 = arith.mulf %53, %57 : vector<8x8xf32>
    %cst_24 = arith.constant dense<0.000000e+00> : vector<8x8xf32>
    %59 = tpu.matmul %58, %42, %cst_24 {dimension_numbers = #tpu.dot_dimension_numbers<[1], [0], [0], [1], [0, 0, 1, 1], [], []>} : vector<8x8xf32>, vector<8x8xf32>, vector<8x8xf32> -> vector<8x8xf32>
    %60 = vector.extract_strided_slice %12 {offsets = [8, 0], sizes = [8, 32], strides = [1, 1]} : vector<32x32xf32> to vector<8x32xf32>
    %cst_25 = arith.constant dense<0.000000e+00> : vector<8x32xf32>
    %61 = tpu.matmul %59, %60, %cst_25 {dimension_numbers = #tpu.dot_dimension_numbers<[1], [0], [0], [1], [0, 0, 1, 1], [], []>} : vector<8x8xf32>, vector<8x32xf32>, vector<8x32xf32> -> vector<8x32xf32>
    %62 = arith.addf %39, %61 : vector<8x32xf32>
    %63 = vector.extract_strided_slice %9 {offsets = [0, 16], sizes = [8, 8], strides = [1, 1]} : vector<8x32xf32> to vector<8x8xf32>
    %64 = vector.extract_strided_slice %10 {offsets = [0, 16], sizes = [8, 8], strides = [1, 1]} : vector<8x32xf32> to vector<8x8xf32>
    %65 = vector.extract_strided_slice %11 {offsets = [0, 16], sizes = [8, 8], strides = [1, 1]} : vector<8x32xf32> to vector<8x8xf32>
    %66 = tpu.transpose %64, [1, 0] : vector<8x8xf32> -> vector<8x8xf32>
    %cst_26 = arith.constant dense<0.000000e+00> : vector<8x8xf32>
    %67 = tpu.matmul %63, %66, %cst_26 {dimension_numbers = #tpu.dot_dimension_numbers<[1], [0], [0], [1], [0, 0, 1, 1], [], []>} : vector<8x8xf32>, vector<8x8xf32>, vector<8x8xf32> -> vector<8x8xf32>
    %cst_27 = arith.constant 0.353553385 : f32
    %68 = vector.broadcast %cst_27 : f32 to vector<8x8xf32>
    %69 = arith.mulf %67, %68 : vector<8x8xf32>
    %70 = vector.broadcast %3 : vector<1x8xf32> to vector<8x8xf32>
    %71 = arith.addf %69, %70 : vector<8x8xf32>
    %cst_28 = arith.constant dense<0xFF800000> : vector<8xf32>
    %72 = vector.multi_reduction <maximumf>, %71, %cst_28 [1] : vector<8x8xf32> to vector<8xf32>
    %73 = vector.shape_cast %72 : vector<8xf32> to vector<8x1xf32>
    %74 = vector.broadcast %73 : vector<8x1xf32> to vector<8x8xf32>
    %75 = arith.subf %71, %74 : vector<8x8xf32>
    %76 = math.exp %75 : vector<8x8xf32>
    %cst_29 = arith.constant dense<0.000000e+00> : vector<8xf32>
    %77 = vector.multi_reduction <add>, %76, %cst_29 [1] : vector<8x8xf32> to vector<8xf32>
    %78 = vector.shape_cast %77 : vector<8xf32> to vector<8x1xf32>
    %79 = tpu.reciprocal %78 {approx = true} : vector<8x1xf32> -> vector<8x1xf32>
    %80 = vector.broadcast %79 : vector<8x1xf32> to vector<8x8xf32>
    %81 = arith.mulf %76, %80 : vector<8x8xf32>
    %cst_30 = arith.constant dense<0.000000e+00> : vector<8x8xf32>
    %82 = tpu.matmul %81, %65, %cst_30 {dimension_numbers = #tpu.dot_dimension_numbers<[1], [0], [0], [1], [0, 0, 1, 1], [], []>} : vector<8x8xf32>, vector<8x8xf32>, vector<8x8xf32> -> vector<8x8xf32>
    %83 = vector.extract_strided_slice %12 {offsets = [16, 0], sizes = [8, 32], strides = [1, 1]} : vector<32x32xf32> to vector<8x32xf32>
    %cst_31 = arith.constant dense<0.000000e+00> : vector<8x32xf32>
    %84 = tpu.matmul %82, %83, %cst_31 {dimension_numbers = #tpu.dot_dimension_numbers<[1], [0], [0], [1], [0, 0, 1, 1], [], []>} : vector<8x8xf32>, vector<8x32xf32>, vector<8x32xf32> -> vector<8x32xf32>
    %85 = arith.addf %62, %84 : vector<8x32xf32>
    %86 = vector.extract_strided_slice %9 {offsets = [0, 24], sizes = [8, 8], strides = [1, 1]} : vector<8x32xf32> to vector<8x8xf32>
    %87 = vector.extract_strided_slice %10 {offsets = [0, 24], sizes = [8, 8], strides = [1, 1]} : vector<8x32xf32> to vector<8x8xf32>
    %88 = vector.extract_strided_slice %11 {offsets = [0, 24], sizes = [8, 8], strides = [1, 1]} : vector<8x32xf32> to vector<8x8xf32>
    %89 = tpu.transpose %87, [1, 0] : vector<8x8xf32> -> vector<8x8xf32>
    %cst_32 = arith.constant dense<0.000000e+00> : vector<8x8xf32>
    %90 = tpu.matmul %86, %89, %cst_32 {dimension_numbers = #tpu.dot_dimension_numbers<[1], [0], [0], [1], [0, 0, 1, 1], [], []>} : vector<8x8xf32>, vector<8x8xf32>, vector<8x8xf32> -> vector<8x8xf32>
    %cst_33 = arith.constant 0.353553385 : f32
    %91 = vector.broadcast %cst_33 : f32 to vector<8x8xf32>
    %92 = arith.mulf %90, %91 : vector<8x8xf32>
    %93 = vector.broadcast %3 : vector<1x8xf32> to vector<8x8xf32>
    %94 = arith.addf %92, %93 : vector<8x8xf32>
    %cst_34 = arith.constant dense<0xFF800000> : vector<8xf32>
    %95 = vector.multi_reduction <maximumf>, %94, %cst_34 [1] : vector<8x8xf32> to vector<8xf32>
    %96 = vector.shape_cast %95 : vector<8xf32> to vector<8x1xf32>
    %97 = vector.broadcast %96 : vector<8x1xf32> to vector<8x8xf32>
    %98 = arith.subf %94, %97 : vector<8x8xf32>
    %99 = math.exp %98 : vector<8x8xf32>
    %cst_35 = arith.constant dense<0.000000e+00> : vector<8xf32>
    %100 = vector.multi_reduction <add>, %99, %cst_35 [1] : vector<8x8xf32> to vector<8xf32>
    %101 = vector.shape_cast %100 : vector<8xf32> to vector<8x1xf32>
    %102 = tpu.reciprocal %101 {approx = true} : vector<8x1xf32> -> vector<8x1xf32>
    %103 = vector.broadcast %102 : vector<8x1xf32> to vector<8x8xf32>
    %104 = arith.mulf %99, %103 : vector<8x8xf32>
    %cst_36 = arith.constant dense<0.000000e+00> : vector<8x8xf32>
    %105 = tpu.matmul %104, %88, %cst_36 {dimension_numbers = #tpu.dot_dimension_numbers<[1], [0], [0], [1], [0, 0, 1, 1], [], []>} : vector<8x8xf32>, vector<8x8xf32>, vector<8x8xf32> -> vector<8x8xf32>
    %106 = vector.extract_strided_slice %12 {offsets = [24, 0], sizes = [8, 32], strides = [1, 1]} : vector<32x32xf32> to vector<8x32xf32>
    %cst_37 = arith.constant dense<0.000000e+00> : vector<8x32xf32>
    %107 = tpu.matmul %105, %106, %cst_37 {dimension_numbers = #tpu.dot_dimension_numbers<[1], [0], [0], [1], [0, 0, 1, 1], [], []>} : vector<8x8xf32>, vector<8x32xf32>, vector<8x32xf32> -> vector<8x32xf32>
    %108 = arith.addf %85, %107 : vector<8x32xf32>
    %109 = arith.addf %1, %108 : vector<8x32xf32>
    %c0_38 = arith.constant 0 : index
    %c0_39 = arith.constant 0 : index
    %110 = vector.load %arg7[%c0_38, %c0_39] : memref<1x32xf32, #tpu.memory_space<vmem>>, vector<1x32xf32>
    %c0_40 = arith.constant 0 : index
    %c0_41 = arith.constant 0 : index
    %111 = vector.load %arg8[%c0_40, %c0_41] : memref<1x32xf32, #tpu.memory_space<vmem>>, vector<1x32xf32>
    %cst_42 = arith.constant dense<0.000000e+00> : vector<8xf32>
    %112 = vector.multi_reduction <add>, %109, %cst_42 [1] : vector<8x32xf32> to vector<8xf32>
    %113 = vector.shape_cast %112 : vector<8xf32> to vector<8x1xf32>
    %cst_43 = arith.constant 3.200000e+01 : f32
    %114 = vector.broadcast %cst_43 : f32 to vector<8x1xf32>
    %115 = arith.divf %113, %114 : vector<8x1xf32>
    %116 = vector.broadcast %115 : vector<8x1xf32> to vector<8x32xf32>
    %117 = arith.subf %109, %116 : vector<8x32xf32>
    %118 = arith.mulf %117, %117 : vector<8x32xf32>
    %cst_44 = arith.constant dense<0.000000e+00> : vector<8xf32>
    %119 = vector.multi_reduction <add>, %118, %cst_44 [1] : vector<8x32xf32> to vector<8xf32>
    %120 = vector.shape_cast %119 : vector<8xf32> to vector<8x1xf32>
    %cst_45 = arith.constant 0.0322580636 : f32
    %121 = vector.broadcast %cst_45 : f32 to vector<8x1xf32>
    %122 = arith.mulf %120, %121 : vector<8x1xf32>
    %123 = math.sqrt %122 : vector<8x1xf32>
    %124 = vector.broadcast %110 : vector<1x32xf32> to vector<8x32xf32>
    %125 = arith.mulf %124, %117 : vector<8x32xf32>
    %cst_46 = arith.constant 9.99999997E-7 : f32
    %126 = vector.broadcast %cst_46 : f32 to vector<8x1xf32>
    %127 = arith.addf %123, %126 : vector<8x1xf32>
    %128 = vector.broadcast %127 : vector<8x1xf32> to vector<8x32xf32>
    %129 = arith.divf %125, %128 : vector<8x32xf32>
    %130 = vector.broadcast %111 : vector<1x32xf32> to vector<8x32xf32>
    %131 = arith.addf %129, %130 : vector<8x32xf32>
    %c0_47 = arith.constant 0 : index
    %c0_48 = arith.constant 0 : index
    %132 = vector.load %arg9[%c0_47, %c0_48] : memref<32x64xf32, #tpu.memory_space<vmem>>, vector<32x64xf32>
    %c0_49 = arith.constant 0 : index
    %c0_50 = arith.constant 0 : index
    %133 = vector.load %arg10[%c0_49, %c0_50] : memref<1x64xf32, #tpu.memory_space<vmem>>, vector<1x64xf32>
    %c0_51 = arith.constant 0 : index
    %c0_52 = arith.constant 0 : index
    %134 = vector.load %arg11[%c0_51, %c0_52] : memref<64x32xf32, #tpu.memory_space<vmem>>, vector<64x32xf32>
    %c0_53 = arith.constant 0 : index
    %c0_54 = arith.constant 0 : index
    %135 = vector.load %arg12[%c0_53, %c0_54] : memref<1x32xf32, #tpu.memory_space<vmem>>, vector<1x32xf32>
    %cst_55 = arith.constant dense<0.000000e+00> : vector<8x64xf32>
    %136 = tpu.matmul %131, %132, %cst_55 {dimension_numbers = #tpu.dot_dimension_numbers<[1], [0], [0], [1], [0, 0, 1, 1], [], []>} : vector<8x32xf32>, vector<32x64xf32>, vector<8x64xf32> -> vector<8x64xf32>
    %137 = vector.broadcast %133 : vector<1x64xf32> to vector<8x64xf32>
    %138 = arith.addf %136, %137 : vector<8x64xf32>
    %cst_56 = arith.constant 0.000000e+00 : f32
    %139 = vector.broadcast %cst_56 : f32 to vector<8x64xf32>
    %140 = arith.maximumf %138, %139 : vector<8x64xf32>
    %cst_57 = arith.constant dense<0.000000e+00> : vector<8x32xf32>
    %141 = tpu.matmul %140, %134, %cst_57 {dimension_numbers = #tpu.dot_dimension_numbers<[1], [0], [0], [1], [0, 0, 1, 1], [], []>} : vector<8x64xf32>, vector<64x32xf32>, vector<8x32xf32> -> vector<8x32xf32>
    %142 = vector.broadcast %135 : vector<1x32xf32> to vector<8x32xf32>
    %143 = arith.addf %141, %142 : vector<8x32xf32>
    %144 = arith.addf %131, %143 : vector<8x32xf32>
    %c0_58 = arith.constant 0 : index
    %c0_59 = arith.constant 0 : index
    %145 = vector.load %arg13[%c0_58, %c0_59] : memref<1x32xf32, #tpu.memory_space<vmem>>, vector<1x32xf32>
    %c0_60 = arith.constant 0 : index
    %c0_61 = arith.constant 0 : index
    %146 = vector.load %arg14[%c0_60, %c0_61] : memref<1x32xf32, #tpu.memory_space<vmem>>, vector<1x32xf32>
    %cst_62 = arith.constant dense<0.000000e+00> : vector<8xf32>
    %147 = vector.multi_reduction <add>, %144, %cst_62 [1] : vector<8x32xf32> to vector<8xf32>
    %148 = vector.shape_cast %147 : vector<8xf32> to vector<8x1xf32>
    %cst_63 = arith.constant 3.200000e+01 : f32
    %149 = vector.broadcast %cst_63 : f32 to vector<8x1xf32>
    %150 = arith.divf %148, %149 : vector<8x1xf32>
    %151 = vector.broadcast %150 : vector<8x1xf32> to vector<8x32xf32>
    %152 = arith.subf %144, %151 : vector<8x32xf32>
    %153 = arith.mulf %152, %152 : vector<8x32xf32>
    %cst_64 = arith.constant dense<0.000000e+00> : vector<8xf32>
    %154 = vector.multi_reduction <add>, %153, %cst_64 [1] : vector<8x32xf32> to vector<8xf32>
    %155 = vector.shape_cast %154 : vector<8xf32> to vector<8x1xf32>
    %cst_65 = arith.constant 0.0322580636 : f32
    %156 = vector.broadcast %cst_65 : f32 to vector<8x1xf32>
    %157 = arith.mulf %155, %156 : vector<8x1xf32>
    %158 = math.sqrt %157 : vector<8x1xf32>
    %159 = vector.broadcast %145 : vector<1x32xf32> to vector<8x32xf32>
    %160 = arith.mulf %159, %152 : vector<8x32xf32>
    %cst_66 = arith.constant 9.99999997E-7 : f32
    %161 = vector.broadcast %cst_66 : f32 to vector<8x1xf32>
    %162 = arith.addf %158, %161 : vector<8x1xf32>
    %163 = vector.broadcast %162 : vector<8x1xf32> to vector<8x32xf32>
    %164 = arith.divf %160, %163 : vector<8x32xf32>
    %165 = vector.broadcast %146 : vector<1x32xf32> to vector<8x32xf32>
    %166 = arith.addf %164, %165 : vector<8x32xf32>
    %c0_67 = arith.constant 0 : index
    %c0_68 = arith.constant 0 : index
    %c0_69 = arith.constant 0 : index
    %167 = vector.load %arg15[%c0_67, %c0_68, %c0_69] : memref<1x8x32xf32, #tpu.memory_space<vmem>>, vector<1x8x32xf32>
    %168 = vector.shape_cast %167 : vector<1x8x32xf32> to vector<8x32xf32>
    %169 = vector.shape_cast %166 : vector<8x32xf32> to vector<1x8x32xf32>
    tpu.vector_store %arg15[%c0_67, %c0_68, %c0_69], %169 {strides = array<i32>} : memref<1x8x32xf32, #tpu.memory_space<vmem>>, vector<1x8x32xf32>,
    return
  }
  func.func @transform_0(%arg0: i32) -> (i32, i32, i32) {
    %c0_i32 = arith.constant 0 : i32
    %c0_i32_0 = arith.constant 0 : i32
    %c0_i32_1 = arith.constant 0 : i32
    return %arg0, %c0_i32, %c0_i32_0 : i32, i32, i32
  }
  func.func @transform_1(%arg0: i32) -> (i32, i32, i32) {
    %c0_i32 = arith.constant 0 : i32
    %c0_i32_0 = arith.constant 0 : i32
    %c0_i32_1 = arith.constant 0 : i32
    return %arg0, %c0_i32, %c0_i32_0 : i32, i32, i32
  }
  func.func @transform_2(%arg0: i32) -> (i32, i32) {
    %c0_i32 = arith.constant 0 : i32
    %c0_i32_0 = arith.constant 0 : i32
    %c0_i32_1 = arith.constant 0 : i32
    return %c0_i32, %c0_i32_0 : i32, i32
  }
  func.func @transform_3(%arg0: i32) -> (i32, i32) {
    %c0_i32 = arith.constant 0 : i32
    %c0_i32_0 = arith.constant 0 : i32
    %c0_i32_1 = arith.constant 0 : i32
    return %c0_i32, %c0_i32_0 : i32, i32
  }
  func.func @transform_4(%arg0: i32) -> (i32, i32) {
    %c0_i32 = arith.constant 0 : i32
    %c0_i32_0 = arith.constant 0 : i32
    %c0_i32_1 = arith.constant 0 : i32
    return %c0_i32, %c0_i32_0 : i32, i32
  }
  func.func @transform_5(%arg0: i32) -> (i32, i32) {
    %c0_i32 = arith.constant 0 : i32
    %c0_i32_0 = arith.constant 0 : i32
    %c0_i32_1 = arith.constant 0 : i32
    return %c0_i32, %c0_i32_0 : i32, i32
  }
  func.func @transform_6(%arg0: i32) -> (i32, i32) {
    %c0_i32 = arith.constant 0 : i32
    %c0_i32_0 = arith.constant 0 : i32
    %c0_i32_1 = arith.constant 0 : i32
    return %c0_i32, %c0_i32_0 : i32, i32
  }
  func.func @transform_7(%arg0: i32) -> (i32, i32) {
    %c0_i32 = arith.constant 0 : i32
    %c0_i32_0 = arith.constant 0 : i32
    %c0_i32_1 = arith.constant 0 : i32
    return %c0_i32, %c0_i32_0 : i32, i32
  }
  func.func @transform_8(%arg0: i32) -> (i32, i32) {
    %c0_i32 = arith.constant 0 : i32
    %c0_i32_0 = arith.constant 0 : i32
    %c0_i32_1 = arith.constant 0 : i32
    return %c0_i32, %c0_i32_0 : i32, i32
  }
  func.func @transform_9(%arg0: i32) -> (i32, i32) {
    %c0_i32 = arith.constant 0 : i32
    %c0_i32_0 = arith.constant 0 : i32
    %c0_i32_1 = arith.constant 0 : i32
    return %c0_i32, %c0_i32_0 : i32, i32
  }
  func.func @transform_10(%arg0: i32) -> (i32, i32) {
    %c0_i32 = arith.constant 0 : i32
    %c0_i32_0 = arith.constant 0 : i32
    %c0_i32_1 = arith.constant 0 : i32
    return %c0_i32, %c0_i32_0 : i32, i32
  }
  func.func @transform_11(%arg0: i32) -> (i32, i32) {
    %c0_i32 = arith.constant 0 : i32
    %c0_i32_0 = arith.constant 0 : i32
    %c0_i32_1 = arith.constant 0 : i32
    return %c0_i32, %c0_i32_0 : i32, i32
  }
  func.func @transform_12(%arg0: i32) -> (i32, i32) {
    %c0_i32 = arith.constant 0 : i32
    %c0_i32_0 = arith.constant 0 : i32
    %c0_i32_1 = arith.constant 0 : i32
    return %c0_i32, %c0_i32_0 : i32, i32
  }
  func.func @transform_13(%arg0: i32) -> (i32, i32) {
    %c0_i32 = arith.constant 0 : i32
    %c0_i32_0 = arith.constant 0 : i32
    %c0_i32_1 = arith.constant 0 : i32
    return %c0_i32, %c0_i32_0 : i32, i32
  }
  func.func @transform_14(%arg0: i32) -> (i32, i32, i32) {
    %c0_i32 = arith.constant 0 : i32
    %c0_i32_0 = arith.constant 0 : i32
    %c0_i32_1 = arith.constant 0 : i32
    return %arg0, %c0_i32, %c0_i32_0 : i32, i32, i32
  }
}

module attributes {stable_mosaic.version = 11 : i64} {
  func.func @_sa_kernel(%arg0: i32, %arg1: memref<1x12x32xf32, #tpu.memory_space<vmem>>, %arg2: memref<1x1x12xf32, #tpu.memory_space<vmem>>, %arg3: memref<32x96xf32, #tpu.memory_space<vmem>>, %arg4: memref<1x96xf32, #tpu.memory_space<vmem>>, %arg5: memref<32x32xf32, #tpu.memory_space<vmem>>, %arg6: memref<1x32xf32, #tpu.memory_space<vmem>>, %arg7: memref<1x32xf32, #tpu.memory_space<vmem>>, %arg8: memref<1x32xf32, #tpu.memory_space<vmem>>, %arg9: memref<32x64xf32, #tpu.memory_space<vmem>>, %arg10: memref<1x64xf32, #tpu.memory_space<vmem>>, %arg11: memref<64x32xf32, #tpu.memory_space<vmem>>, %arg12: memref<1x32xf32, #tpu.memory_space<vmem>>, %arg13: memref<1x32xf32, #tpu.memory_space<vmem>>, %arg14: memref<1x32xf32, #tpu.memory_space<vmem>>, %arg15: memref<1x12x32xf32, #tpu.memory_space<vmem>>) attributes {dimension_semantics = [#tpu.dimension_semantics<parallel>], iteration_bounds = array<i64: 2>, scalar_prefetch = 0 : i64, scratch_operands = 0 : i64, tpu.core_type = #tpu.core_type<tc>, window_params = [{transform_indices = @transform_0, window_bounds = array<i64: 1, 12, 32>}, {transform_indices = @transform_1, window_bounds = array<i64: 1, 1, 12>}, {pipeline_mode = #tpu.pipeline_mode<synchronous>, transform_indices = @transform_2, window_bounds = array<i64: 32, 96>}, {pipeline_mode = #tpu.pipeline_mode<synchronous>, transform_indices = @transform_3, window_bounds = array<i64: 1, 96>}, {pipeline_mode = #tpu.pipeline_mode<synchronous>, transform_indices = @transform_4, window_bounds = array<i64: 32, 32>}, {pipeline_mode = #tpu.pipeline_mode<synchronous>, transform_indices = @transform_5, window_bounds = array<i64: 1, 32>}, {pipeline_mode = #tpu.pipeline_mode<synchronous>, transform_indices = @transform_6, window_bounds = array<i64: 1, 32>}, {pipeline_mode = #tpu.pipeline_mode<synchronous>, transform_indices = @transform_7, window_bounds = array<i64: 1, 32>}, {pipeline_mode = #tpu.pipeline_mode<synchronous>, transform_indices = @transform_8, window_bounds = array<i64: 32, 64>}, {pipeline_mode = #tpu.pipeline_mode<synchronous>, transform_indices = @transform_9, window_bounds = array<i64: 1, 64>}, {pipeline_mode = #tpu.pipeline_mode<synchronous>, transform_indices = @transform_10, window_bounds = array<i64: 64, 32>}, {pipeline_mode = #tpu.pipeline_mode<synchronous>, transform_indices = @transform_11, window_bounds = array<i64: 1, 32>}, {pipeline_mode = #tpu.pipeline_mode<synchronous>, transform_indices = @transform_12, window_bounds = array<i64: 1, 32>}, {pipeline_mode = #tpu.pipeline_mode<synchronous>, transform_indices = @transform_13, window_bounds = array<i64: 1, 32>}, {transform_indices = @transform_14, window_bounds = array<i64: 1, 12, 32>}]} {
    %c0 = arith.constant 0 : index
    %c0_0 = arith.constant 0 : index
    %c0_1 = arith.constant 0 : index
    %0 = vector.load %arg1[%c0, %c0_0, %c0_1] : memref<1x12x32xf32, #tpu.memory_space<vmem>>, vector<1x12x32xf32>
    %1 = vector.shape_cast %0 : vector<1x12x32xf32> to vector<12x32xf32>
    %c0_2 = arith.constant 0 : index
    %c0_3 = arith.constant 0 : index
    %c0_4 = arith.constant 0 : index
    %2 = vector.load %arg2[%c0_2, %c0_3, %c0_4] : memref<1x1x12xf32, #tpu.memory_space<vmem>>, vector<1x1x12xf32>
    %3 = vector.shape_cast %2 : vector<1x1x12xf32> to vector<1x12xf32>
    %c0_5 = arith.constant 0 : index
    %c0_6 = arith.constant 0 : index
    %4 = vector.load %arg3[%c0_5, %c0_6] : memref<32x96xf32, #tpu.memory_space<vmem>>, vector<32x96xf32>
    %cst = arith.constant dense<0.000000e+00> : vector<12x96xf32>
    %5 = tpu.matmul %1, %4, %cst {dimension_numbers = #tpu.dot_dimension_numbers<[1], [0], [0], [1], [0, 0, 1, 1], [], []>} : vector<12x32xf32>, vector<32x96xf32>, vector<12x96xf32> -> vector<12x96xf32>
    %c0_7 = arith.constant 0 : index
    %c0_8 = arith.constant 0 : index
    %6 = vector.load %arg4[%c0_7, %c0_8] : memref<1x96xf32, #tpu.memory_space<vmem>>, vector<1x96xf32>
    %7 = vector.broadcast %6 : vector<1x96xf32> to vector<12x96xf32>
    %8 = arith.addf %5, %7 : vector<12x96xf32>
    %9 = vector.extract_strided_slice %8 {offsets = [0, 0], sizes = [12, 32], strides = [1, 1]} : vector<12x96xf32> to vector<12x32xf32>
    %10 = vector.extract_strided_slice %8 {offsets = [0, 32], sizes = [12, 32], strides = [1, 1]} : vector<12x96xf32> to vector<12x32xf32>
    %11 = vector.extract_strided_slice %8 {offsets = [0, 64], sizes = [12, 32], strides = [1, 1]} : vector<12x96xf32> to vector<12x32xf32>
    %c0_9 = arith.constant 0 : index
    %c0_10 = arith.constant 0 : index
    %12 = vector.load %arg5[%c0_9, %c0_10] : memref<32x32xf32, #tpu.memory_space<vmem>>, vector<32x32xf32>
    %c0_11 = arith.constant 0 : index
    %c0_12 = arith.constant 0 : index
    %13 = vector.load %arg6[%c0_11, %c0_12] : memref<1x32xf32, #tpu.memory_space<vmem>>, vector<1x32xf32>
    %cst_13 = arith.constant 0.000000e+00 : f32
    %14 = vector.broadcast %cst_13 : f32 to vector<12x32xf32>
    %15 = vector.broadcast %13 : vector<1x32xf32> to vector<12x32xf32>
    %16 = arith.addf %14, %15 : vector<12x32xf32>
    %17 = vector.extract_strided_slice %9 {offsets = [0, 0], sizes = [12, 8], strides = [1, 1]} : vector<12x32xf32> to vector<12x8xf32>
    %18 = vector.extract_strided_slice %10 {offsets = [0, 0], sizes = [12, 8], strides = [1, 1]} : vector<12x32xf32> to vector<12x8xf32>
    %19 = vector.extract_strided_slice %11 {offsets = [0, 0], sizes = [12, 8], strides = [1, 1]} : vector<12x32xf32> to vector<12x8xf32>
    %20 = tpu.transpose %18, [1, 0] : vector<12x8xf32> -> vector<8x12xf32>
    %cst_14 = arith.constant dense<0.000000e+00> : vector<12x12xf32>
    %21 = tpu.matmul %17, %20, %cst_14 {dimension_numbers = #tpu.dot_dimension_numbers<[1], [0], [0], [1], [0, 0, 1, 1], [], []>} : vector<12x8xf32>, vector<8x12xf32>, vector<12x12xf32> -> vector<12x12xf32>
    %cst_15 = arith.constant 0.353553385 : f32
    %22 = vector.broadcast %cst_15 : f32 to vector<12x12xf32>
    %23 = arith.mulf %21, %22 : vector<12x12xf32>
    %24 = vector.broadcast %3 : vector<1x12xf32> to vector<12x12xf32>
    %25 = arith.addf %23, %24 : vector<12x12xf32>
    %cst_16 = arith.constant dense<0xFF800000> : vector<12xf32>
    %26 = vector.multi_reduction <maximumf>, %25, %cst_16 [1] : vector<12x12xf32> to vector<12xf32>
    %27 = vector.shape_cast %26 : vector<12xf32> to vector<12x1xf32>
    %28 = vector.broadcast %27 : vector<12x1xf32> to vector<12x12xf32>
    %29 = arith.subf %25, %28 : vector<12x12xf32>
    %30 = math.exp %29 : vector<12x12xf32>
    %cst_17 = arith.constant dense<0.000000e+00> : vector<12xf32>
    %31 = vector.multi_reduction <add>, %30, %cst_17 [1] : vector<12x12xf32> to vector<12xf32>
    %32 = vector.shape_cast %31 : vector<12xf32> to vector<12x1xf32>
    %33 = tpu.reciprocal %32 {approx = true} : vector<12x1xf32> -> vector<12x1xf32>
    %34 = vector.broadcast %33 : vector<12x1xf32> to vector<12x12xf32>
    %35 = arith.mulf %30, %34 : vector<12x12xf32>
    %cst_18 = arith.constant dense<0.000000e+00> : vector<12x8xf32>
    %36 = tpu.matmul %35, %19, %cst_18 {dimension_numbers = #tpu.dot_dimension_numbers<[1], [0], [0], [1], [0, 0, 1, 1], [], []>} : vector<12x12xf32>, vector<12x8xf32>, vector<12x8xf32> -> vector<12x8xf32>
    %37 = vector.extract_strided_slice %12 {offsets = [0, 0], sizes = [8, 32], strides = [1, 1]} : vector<32x32xf32> to vector<8x32xf32>
    %cst_19 = arith.constant dense<0.000000e+00> : vector<12x32xf32>
    %38 = tpu.matmul %36, %37, %cst_19 {dimension_numbers = #tpu.dot_dimension_numbers<[1], [0], [0], [1], [0, 0, 1, 1], [], []>} : vector<12x8xf32>, vector<8x32xf32>, vector<12x32xf32> -> vector<12x32xf32>
    %39 = arith.addf %16, %38 : vector<12x32xf32>
    %40 = vector.extract_strided_slice %9 {offsets = [0, 8], sizes = [12, 8], strides = [1, 1]} : vector<12x32xf32> to vector<12x8xf32>
    %41 = vector.extract_strided_slice %10 {offsets = [0, 8], sizes = [12, 8], strides = [1, 1]} : vector<12x32xf32> to vector<12x8xf32>
    %42 = vector.extract_strided_slice %11 {offsets = [0, 8], sizes = [12, 8], strides = [1, 1]} : vector<12x32xf32> to vector<12x8xf32>
    %43 = tpu.transpose %41, [1, 0] : vector<12x8xf32> -> vector<8x12xf32>
    %cst_20 = arith.constant dense<0.000000e+00> : vector<12x12xf32>
    %44 = tpu.matmul %40, %43, %cst_20 {dimension_numbers = #tpu.dot_dimension_numbers<[1], [0], [0], [1], [0, 0, 1, 1], [], []>} : vector<12x8xf32>, vector<8x12xf32>, vector<12x12xf32> -> vector<12x12xf32>
    %cst_21 = arith.constant 0.353553385 : f32
    %45 = vector.broadcast %cst_21 : f32 to vector<12x12xf32>
    %46 = arith.mulf %44, %45 : vector<12x12xf32>
    %47 = vector.broadcast %3 : vector<1x12xf32> to vector<12x12xf32>
    %48 = arith.addf %46, %47 : vector<12x12xf32>
    %cst_22 = arith.constant dense<0xFF800000> : vector<12xf32>
    %49 = vector.multi_reduction <maximumf>, %48, %cst_22 [1] : vector<12x12xf32> to vector<12xf32>
    %50 = vector.shape_cast %49 : vector<12xf32> to vector<12x1xf32>
    %51 = vector.broadcast %50 : vector<12x1xf32> to vector<12x12xf32>
    %52 = arith.subf %48, %51 : vector<12x12xf32>
    %53 = math.exp %52 : vector<12x12xf32>
    %cst_23 = arith.constant dense<0.000000e+00> : vector<12xf32>
    %54 = vector.multi_reduction <add>, %53, %cst_23 [1] : vector<12x12xf32> to vector<12xf32>
    %55 = vector.shape_cast %54 : vector<12xf32> to vector<12x1xf32>
    %56 = tpu.reciprocal %55 {approx = true} : vector<12x1xf32> -> vector<12x1xf32>
    %57 = vector.broadcast %56 : vector<12x1xf32> to vector<12x12xf32>
    %58 = arith.mulf %53, %57 : vector<12x12xf32>
    %cst_24 = arith.constant dense<0.000000e+00> : vector<12x8xf32>
    %59 = tpu.matmul %58, %42, %cst_24 {dimension_numbers = #tpu.dot_dimension_numbers<[1], [0], [0], [1], [0, 0, 1, 1], [], []>} : vector<12x12xf32>, vector<12x8xf32>, vector<12x8xf32> -> vector<12x8xf32>
    %60 = vector.extract_strided_slice %12 {offsets = [8, 0], sizes = [8, 32], strides = [1, 1]} : vector<32x32xf32> to vector<8x32xf32>
    %cst_25 = arith.constant dense<0.000000e+00> : vector<12x32xf32>
    %61 = tpu.matmul %59, %60, %cst_25 {dimension_numbers = #tpu.dot_dimension_numbers<[1], [0], [0], [1], [0, 0, 1, 1], [], []>} : vector<12x8xf32>, vector<8x32xf32>, vector<12x32xf32> -> vector<12x32xf32>
    %62 = arith.addf %39, %61 : vector<12x32xf32>
    %63 = vector.extract_strided_slice %9 {offsets = [0, 16], sizes = [12, 8], strides = [1, 1]} : vector<12x32xf32> to vector<12x8xf32>
    %64 = vector.extract_strided_slice %10 {offsets = [0, 16], sizes = [12, 8], strides = [1, 1]} : vector<12x32xf32> to vector<12x8xf32>
    %65 = vector.extract_strided_slice %11 {offsets = [0, 16], sizes = [12, 8], strides = [1, 1]} : vector<12x32xf32> to vector<12x8xf32>
    %66 = tpu.transpose %64, [1, 0] : vector<12x8xf32> -> vector<8x12xf32>
    %cst_26 = arith.constant dense<0.000000e+00> : vector<12x12xf32>
    %67 = tpu.matmul %63, %66, %cst_26 {dimension_numbers = #tpu.dot_dimension_numbers<[1], [0], [0], [1], [0, 0, 1, 1], [], []>} : vector<12x8xf32>, vector<8x12xf32>, vector<12x12xf32> -> vector<12x12xf32>
    %cst_27 = arith.constant 0.353553385 : f32
    %68 = vector.broadcast %cst_27 : f32 to vector<12x12xf32>
    %69 = arith.mulf %67, %68 : vector<12x12xf32>
    %70 = vector.broadcast %3 : vector<1x12xf32> to vector<12x12xf32>
    %71 = arith.addf %69, %70 : vector<12x12xf32>
    %cst_28 = arith.constant dense<0xFF800000> : vector<12xf32>
    %72 = vector.multi_reduction <maximumf>, %71, %cst_28 [1] : vector<12x12xf32> to vector<12xf32>
    %73 = vector.shape_cast %72 : vector<12xf32> to vector<12x1xf32>
    %74 = vector.broadcast %73 : vector<12x1xf32> to vector<12x12xf32>
    %75 = arith.subf %71, %74 : vector<12x12xf32>
    %76 = math.exp %75 : vector<12x12xf32>
    %cst_29 = arith.constant dense<0.000000e+00> : vector<12xf32>
    %77 = vector.multi_reduction <add>, %76, %cst_29 [1] : vector<12x12xf32> to vector<12xf32>
    %78 = vector.shape_cast %77 : vector<12xf32> to vector<12x1xf32>
    %79 = tpu.reciprocal %78 {approx = true} : vector<12x1xf32> -> vector<12x1xf32>
    %80 = vector.broadcast %79 : vector<12x1xf32> to vector<12x12xf32>
    %81 = arith.mulf %76, %80 : vector<12x12xf32>
    %cst_30 = arith.constant dense<0.000000e+00> : vector<12x8xf32>
    %82 = tpu.matmul %81, %65, %cst_30 {dimension_numbers = #tpu.dot_dimension_numbers<[1], [0], [0], [1], [0, 0, 1, 1], [], []>} : vector<12x12xf32>, vector<12x8xf32>, vector<12x8xf32> -> vector<12x8xf32>
    %83 = vector.extract_strided_slice %12 {offsets = [16, 0], sizes = [8, 32], strides = [1, 1]} : vector<32x32xf32> to vector<8x32xf32>
    %cst_31 = arith.constant dense<0.000000e+00> : vector<12x32xf32>
    %84 = tpu.matmul %82, %83, %cst_31 {dimension_numbers = #tpu.dot_dimension_numbers<[1], [0], [0], [1], [0, 0, 1, 1], [], []>} : vector<12x8xf32>, vector<8x32xf32>, vector<12x32xf32> -> vector<12x32xf32>
    %85 = arith.addf %62, %84 : vector<12x32xf32>
    %86 = vector.extract_strided_slice %9 {offsets = [0, 24], sizes = [12, 8], strides = [1, 1]} : vector<12x32xf32> to vector<12x8xf32>
    %87 = vector.extract_strided_slice %10 {offsets = [0, 24], sizes = [12, 8], strides = [1, 1]} : vector<12x32xf32> to vector<12x8xf32>
    %88 = vector.extract_strided_slice %11 {offsets = [0, 24], sizes = [12, 8], strides = [1, 1]} : vector<12x32xf32> to vector<12x8xf32>
    %89 = tpu.transpose %87, [1, 0] : vector<12x8xf32> -> vector<8x12xf32>
    %cst_32 = arith.constant dense<0.000000e+00> : vector<12x12xf32>
    %90 = tpu.matmul %86, %89, %cst_32 {dimension_numbers = #tpu.dot_dimension_numbers<[1], [0], [0], [1], [0, 0, 1, 1], [], []>} : vector<12x8xf32>, vector<8x12xf32>, vector<12x12xf32> -> vector<12x12xf32>
    %cst_33 = arith.constant 0.353553385 : f32
    %91 = vector.broadcast %cst_33 : f32 to vector<12x12xf32>
    %92 = arith.mulf %90, %91 : vector<12x12xf32>
    %93 = vector.broadcast %3 : vector<1x12xf32> to vector<12x12xf32>
    %94 = arith.addf %92, %93 : vector<12x12xf32>
    %cst_34 = arith.constant dense<0xFF800000> : vector<12xf32>
    %95 = vector.multi_reduction <maximumf>, %94, %cst_34 [1] : vector<12x12xf32> to vector<12xf32>
    %96 = vector.shape_cast %95 : vector<12xf32> to vector<12x1xf32>
    %97 = vector.broadcast %96 : vector<12x1xf32> to vector<12x12xf32>
    %98 = arith.subf %94, %97 : vector<12x12xf32>
    %99 = math.exp %98 : vector<12x12xf32>
    %cst_35 = arith.constant dense<0.000000e+00> : vector<12xf32>
    %100 = vector.multi_reduction <add>, %99, %cst_35 [1] : vector<12x12xf32> to vector<12xf32>
    %101 = vector.shape_cast %100 : vector<12xf32> to vector<12x1xf32>
    %102 = tpu.reciprocal %101 {approx = true} : vector<12x1xf32> -> vector<12x1xf32>
    %103 = vector.broadcast %102 : vector<12x1xf32> to vector<12x12xf32>
    %104 = arith.mulf %99, %103 : vector<12x12xf32>
    %cst_36 = arith.constant dense<0.000000e+00> : vector<12x8xf32>
    %105 = tpu.matmul %104, %88, %cst_36 {dimension_numbers = #tpu.dot_dimension_numbers<[1], [0], [0], [1], [0, 0, 1, 1], [], []>} : vector<12x12xf32>, vector<12x8xf32>, vector<12x8xf32> -> vector<12x8xf32>
    %106 = vector.extract_strided_slice %12 {offsets = [24, 0], sizes = [8, 32], strides = [1, 1]} : vector<32x32xf32> to vector<8x32xf32>
    %cst_37 = arith.constant dense<0.000000e+00> : vector<12x32xf32>
    %107 = tpu.matmul %105, %106, %cst_37 {dimension_numbers = #tpu.dot_dimension_numbers<[1], [0], [0], [1], [0, 0, 1, 1], [], []>} : vector<12x8xf32>, vector<8x32xf32>, vector<12x32xf32> -> vector<12x32xf32>
    %108 = arith.addf %85, %107 : vector<12x32xf32>
    %109 = arith.addf %1, %108 : vector<12x32xf32>
    %c0_38 = arith.constant 0 : index
    %c0_39 = arith.constant 0 : index
    %110 = vector.load %arg7[%c0_38, %c0_39] : memref<1x32xf32, #tpu.memory_space<vmem>>, vector<1x32xf32>
    %c0_40 = arith.constant 0 : index
    %c0_41 = arith.constant 0 : index
    %111 = vector.load %arg8[%c0_40, %c0_41] : memref<1x32xf32, #tpu.memory_space<vmem>>, vector<1x32xf32>
    %cst_42 = arith.constant dense<0.000000e+00> : vector<12xf32>
    %112 = vector.multi_reduction <add>, %109, %cst_42 [1] : vector<12x32xf32> to vector<12xf32>
    %113 = vector.shape_cast %112 : vector<12xf32> to vector<12x1xf32>
    %cst_43 = arith.constant 3.200000e+01 : f32
    %114 = vector.broadcast %cst_43 : f32 to vector<12x1xf32>
    %115 = arith.divf %113, %114 : vector<12x1xf32>
    %116 = vector.broadcast %115 : vector<12x1xf32> to vector<12x32xf32>
    %117 = arith.subf %109, %116 : vector<12x32xf32>
    %118 = arith.mulf %117, %117 : vector<12x32xf32>
    %cst_44 = arith.constant dense<0.000000e+00> : vector<12xf32>
    %119 = vector.multi_reduction <add>, %118, %cst_44 [1] : vector<12x32xf32> to vector<12xf32>
    %120 = vector.shape_cast %119 : vector<12xf32> to vector<12x1xf32>
    %cst_45 = arith.constant 0.0322580636 : f32
    %121 = vector.broadcast %cst_45 : f32 to vector<12x1xf32>
    %122 = arith.mulf %120, %121 : vector<12x1xf32>
    %123 = math.sqrt %122 : vector<12x1xf32>
    %124 = vector.broadcast %110 : vector<1x32xf32> to vector<12x32xf32>
    %125 = arith.mulf %124, %117 : vector<12x32xf32>
    %cst_46 = arith.constant 9.99999997E-7 : f32
    %126 = vector.broadcast %cst_46 : f32 to vector<12x1xf32>
    %127 = arith.addf %123, %126 : vector<12x1xf32>
    %128 = vector.broadcast %127 : vector<12x1xf32> to vector<12x32xf32>
    %129 = arith.divf %125, %128 : vector<12x32xf32>
    %130 = vector.broadcast %111 : vector<1x32xf32> to vector<12x32xf32>
    %131 = arith.addf %129, %130 : vector<12x32xf32>
    %c0_47 = arith.constant 0 : index
    %c0_48 = arith.constant 0 : index
    %132 = vector.load %arg9[%c0_47, %c0_48] : memref<32x64xf32, #tpu.memory_space<vmem>>, vector<32x64xf32>
    %c0_49 = arith.constant 0 : index
    %c0_50 = arith.constant 0 : index
    %133 = vector.load %arg10[%c0_49, %c0_50] : memref<1x64xf32, #tpu.memory_space<vmem>>, vector<1x64xf32>
    %c0_51 = arith.constant 0 : index
    %c0_52 = arith.constant 0 : index
    %134 = vector.load %arg11[%c0_51, %c0_52] : memref<64x32xf32, #tpu.memory_space<vmem>>, vector<64x32xf32>
    %c0_53 = arith.constant 0 : index
    %c0_54 = arith.constant 0 : index
    %135 = vector.load %arg12[%c0_53, %c0_54] : memref<1x32xf32, #tpu.memory_space<vmem>>, vector<1x32xf32>
    %cst_55 = arith.constant dense<0.000000e+00> : vector<12x64xf32>
    %136 = tpu.matmul %131, %132, %cst_55 {dimension_numbers = #tpu.dot_dimension_numbers<[1], [0], [0], [1], [0, 0, 1, 1], [], []>} : vector<12x32xf32>, vector<32x64xf32>, vector<12x64xf32> -> vector<12x64xf32>
    %137 = vector.broadcast %133 : vector<1x64xf32> to vector<12x64xf32>
    %138 = arith.addf %136, %137 : vector<12x64xf32>
    %cst_56 = arith.constant 0.000000e+00 : f32
    %139 = vector.broadcast %cst_56 : f32 to vector<12x64xf32>
    %140 = arith.maximumf %138, %139 : vector<12x64xf32>
    %cst_57 = arith.constant dense<0.000000e+00> : vector<12x32xf32>
    %141 = tpu.matmul %140, %134, %cst_57 {dimension_numbers = #tpu.dot_dimension_numbers<[1], [0], [0], [1], [0, 0, 1, 1], [], []>} : vector<12x64xf32>, vector<64x32xf32>, vector<12x32xf32> -> vector<12x32xf32>
    %142 = vector.broadcast %135 : vector<1x32xf32> to vector<12x32xf32>
    %143 = arith.addf %141, %142 : vector<12x32xf32>
    %144 = arith.addf %131, %143 : vector<12x32xf32>
    %c0_58 = arith.constant 0 : index
    %c0_59 = arith.constant 0 : index
    %145 = vector.load %arg13[%c0_58, %c0_59] : memref<1x32xf32, #tpu.memory_space<vmem>>, vector<1x32xf32>
    %c0_60 = arith.constant 0 : index
    %c0_61 = arith.constant 0 : index
    %146 = vector.load %arg14[%c0_60, %c0_61] : memref<1x32xf32, #tpu.memory_space<vmem>>, vector<1x32xf32>
    %cst_62 = arith.constant dense<0.000000e+00> : vector<12xf32>
    %147 = vector.multi_reduction <add>, %144, %cst_62 [1] : vector<12x32xf32> to vector<12xf32>
    %148 = vector.shape_cast %147 : vector<12xf32> to vector<12x1xf32>
    %cst_63 = arith.constant 3.200000e+01 : f32
    %149 = vector.broadcast %cst_63 : f32 to vector<12x1xf32>
    %150 = arith.divf %148, %149 : vector<12x1xf32>
    %151 = vector.broadcast %150 : vector<12x1xf32> to vector<12x32xf32>
    %152 = arith.subf %144, %151 : vector<12x32xf32>
    %153 = arith.mulf %152, %152 : vector<12x32xf32>
    %cst_64 = arith.constant dense<0.000000e+00> : vector<12xf32>
    %154 = vector.multi_reduction <add>, %153, %cst_64 [1] : vector<12x32xf32> to vector<12xf32>
    %155 = vector.shape_cast %154 : vector<12xf32> to vector<12x1xf32>
    %cst_65 = arith.constant 0.0322580636 : f32
    %156 = vector.broadcast %cst_65 : f32 to vector<12x1xf32>
    %157 = arith.mulf %155, %156 : vector<12x1xf32>
    %158 = math.sqrt %157 : vector<12x1xf32>
    %159 = vector.broadcast %145 : vector<1x32xf32> to vector<12x32xf32>
    %160 = arith.mulf %159, %152 : vector<12x32xf32>
    %cst_66 = arith.constant 9.99999997E-7 : f32
    %161 = vector.broadcast %cst_66 : f32 to vector<12x1xf32>
    %162 = arith.addf %158, %161 : vector<12x1xf32>
    %163 = vector.broadcast %162 : vector<12x1xf32> to vector<12x32xf32>
    %164 = arith.divf %160, %163 : vector<12x32xf32>
    %165 = vector.broadcast %146 : vector<1x32xf32> to vector<12x32xf32>
    %166 = arith.addf %164, %165 : vector<12x32xf32>
    %c0_67 = arith.constant 0 : index
    %c0_68 = arith.constant 0 : index
    %c0_69 = arith.constant 0 : index
    %167 = vector.load %arg15[%c0_67, %c0_68, %c0_69] : memref<1x12x32xf32, #tpu.memory_space<vmem>>, vector<1x12x32xf32>
    %168 = vector.shape_cast %167 : vector<1x12x32xf32> to vector<12x32xf32>
    %169 = vector.shape_cast %166 : vector<12x32xf32> to vector<1x12x32xf32>
    tpu.vector_store %arg15[%c0_67, %c0_68, %c0_69], %169 {strides = array<i32>} : memref<1x12x32xf32, #tpu.memory_space<vmem>>, vector<1x12x32xf32>,
    return
  }
  func.func @transform_0(%arg0: i32) -> (i32, i32, i32) {
    %c0_i32 = arith.constant 0 : i32
    %c0_i32_0 = arith.constant 0 : i32
    %c0_i32_1 = arith.constant 0 : i32
    return %arg0, %c0_i32, %c0_i32_0 : i32, i32, i32
  }
  func.func @transform_1(%arg0: i32) -> (i32, i32, i32) {
    %c0_i32 = arith.constant 0 : i32
    %c0_i32_0 = arith.constant 0 : i32
    %c0_i32_1 = arith.constant 0 : i32
    return %arg0, %c0_i32, %c0_i32_0 : i32, i32, i32
  }
  func.func @transform_2(%arg0: i32) -> (i32, i32) {
    %c0_i32 = arith.constant 0 : i32
    %c0_i32_0 = arith.constant 0 : i32
    %c0_i32_1 = arith.constant 0 : i32
    return %c0_i32, %c0_i32_0 : i32, i32
  }
  func.func @transform_3(%arg0: i32) -> (i32, i32) {
    %c0_i32 = arith.constant 0 : i32
    %c0_i32_0 = arith.constant 0 : i32
    %c0_i32_1 = arith.constant 0 : i32
    return %c0_i32, %c0_i32_0 : i32, i32
  }
  func.func @transform_4(%arg0: i32) -> (i32, i32) {
    %c0_i32 = arith.constant 0 : i32
    %c0_i32_0 = arith.constant 0 : i32
    %c0_i32_1 = arith.constant 0 : i32
    return %c0_i32, %c0_i32_0 : i32, i32
  }
  func.func @transform_5(%arg0: i32) -> (i32, i32) {
    %c0_i32 = arith.constant 0 : i32
    %c0_i32_0 = arith.constant 0 : i32
    %c0_i32_1 = arith.constant 0 : i32
    return %c0_i32, %c0_i32_0 : i32, i32
  }
  func.func @transform_6(%arg0: i32) -> (i32, i32) {
    %c0_i32 = arith.constant 0 : i32
    %c0_i32_0 = arith.constant 0 : i32
    %c0_i32_1 = arith.constant 0 : i32
    return %c0_i32, %c0_i32_0 : i32, i32
  }
  func.func @transform_7(%arg0: i32) -> (i32, i32) {
    %c0_i32 = arith.constant 0 : i32
    %c0_i32_0 = arith.constant 0 : i32
    %c0_i32_1 = arith.constant 0 : i32
    return %c0_i32, %c0_i32_0 : i32, i32
  }
  func.func @transform_8(%arg0: i32) -> (i32, i32) {
    %c0_i32 = arith.constant 0 : i32
    %c0_i32_0 = arith.constant 0 : i32
    %c0_i32_1 = arith.constant 0 : i32
    return %c0_i32, %c0_i32_0 : i32, i32
  }
  func.func @transform_9(%arg0: i32) -> (i32, i32) {
    %c0_i32 = arith.constant 0 : i32
    %c0_i32_0 = arith.constant 0 : i32
    %c0_i32_1 = arith.constant 0 : i32
    return %c0_i32, %c0_i32_0 : i32, i32
  }
  func.func @transform_10(%arg0: i32) -> (i32, i32) {
    %c0_i32 = arith.constant 0 : i32
    %c0_i32_0 = arith.constant 0 : i32
    %c0_i32_1 = arith.constant 0 : i32
    return %c0_i32, %c0_i32_0 : i32, i32
  }
  func.func @transform_11(%arg0: i32) -> (i32, i32) {
    %c0_i32 = arith.constant 0 : i32
    %c0_i32_0 = arith.constant 0 : i32
    %c0_i32_1 = arith.constant 0 : i32
    return %c0_i32, %c0_i32_0 : i32, i32
  }
  func.func @transform_12(%arg0: i32) -> (i32, i32) {
    %c0_i32 = arith.constant 0 : i32
    %c0_i32_0 = arith.constant 0 : i32
    %c0_i32_1 = arith.constant 0 : i32
    return %c0_i32, %c0_i32_0 : i32, i32
  }
  func.func @transform_13(%arg0: i32) -> (i32, i32) {
    %c0_i32 = arith.constant 0 : i32
    %c0_i32_0 = arith.constant 0 : i32
    %c0_i32_1 = arith.constant 0 : i32
    return %c0_i32, %c0_i32_0 : i32, i32
  }
  func.func @transform_14(%arg0: i32) -> (i32, i32, i32) {
    %c0_i32 = arith.constant 0 : i32
    %c0_i32_0 = arith.constant 0 : i32
    %c0_i32_1 = arith.constant 0 : i32
    return %arg0, %c0_i32, %c0_i32_0 : i32, i32, i32
  }
}

module attributes {stable_mosaic.version = 11 : i64} {
  func.func @_ca_kernel(%arg0: i32, %arg1: memref<1x12x32xf32, #tpu.memory_space<vmem>>, %arg2: memref<1x8x32xf32, #tpu.memory_space<vmem>>, %arg3: memref<1x1x12xf32, #tpu.memory_space<vmem>>, %arg4: memref<1x1x8xf32, #tpu.memory_space<vmem>>, %arg5: memref<32x96xf32, #tpu.memory_space<vmem>>, %arg6: memref<1x96xf32, #tpu.memory_space<vmem>>, %arg7: memref<32x32xf32, #tpu.memory_space<vmem>>, %arg8: memref<1x32xf32, #tpu.memory_space<vmem>>, %arg9: memref<1x32xf32, #tpu.memory_space<vmem>>, %arg10: memref<1x32xf32, #tpu.memory_space<vmem>>, %arg11: memref<32x32xf32, #tpu.memory_space<vmem>>, %arg12: memref<1x32xf32, #tpu.memory_space<vmem>>, %arg13: memref<32x64xf32, #tpu.memory_space<vmem>>, %arg14: memref<1x64xf32, #tpu.memory_space<vmem>>, %arg15: memref<32x32xf32, #tpu.memory_space<vmem>>, %arg16: memref<1x32xf32, #tpu.memory_space<vmem>>, %arg17: memref<1x32xf32, #tpu.memory_space<vmem>>, %arg18: memref<1x32xf32, #tpu.memory_space<vmem>>, %arg19: memref<32x64xf32, #tpu.memory_space<vmem>>, %arg20: memref<1x64xf32, #tpu.memory_space<vmem>>, %arg21: memref<64x32xf32, #tpu.memory_space<vmem>>, %arg22: memref<1x32xf32, #tpu.memory_space<vmem>>, %arg23: memref<1x32xf32, #tpu.memory_space<vmem>>, %arg24: memref<1x32xf32, #tpu.memory_space<vmem>>, %arg25: memref<1x12x32xf32, #tpu.memory_space<vmem>>) attributes {dimension_semantics = [#tpu.dimension_semantics<parallel>], iteration_bounds = array<i64: 2>, scalar_prefetch = 0 : i64, scratch_operands = 0 : i64, tpu.core_type = #tpu.core_type<tc>, window_params = [{transform_indices = @transform_0, window_bounds = array<i64: 1, 12, 32>}, {transform_indices = @transform_1, window_bounds = array<i64: 1, 8, 32>}, {transform_indices = @transform_2, window_bounds = array<i64: 1, 1, 12>}, {transform_indices = @transform_3, window_bounds = array<i64: 1, 1, 8>}, {pipeline_mode = #tpu.pipeline_mode<synchronous>, transform_indices = @transform_4, window_bounds = array<i64: 32, 96>}, {pipeline_mode = #tpu.pipeline_mode<synchronous>, transform_indices = @transform_5, window_bounds = array<i64: 1, 96>}, {pipeline_mode = #tpu.pipeline_mode<synchronous>, transform_indices = @transform_6, window_bounds = array<i64: 32, 32>}, {pipeline_mode = #tpu.pipeline_mode<synchronous>, transform_indices = @transform_7, window_bounds = array<i64: 1, 32>}, {pipeline_mode = #tpu.pipeline_mode<synchronous>, transform_indices = @transform_8, window_bounds = array<i64: 1, 32>}, {pipeline_mode = #tpu.pipeline_mode<synchronous>, transform_indices = @transform_9, window_bounds = array<i64: 1, 32>}, {pipeline_mode = #tpu.pipeline_mode<synchronous>, transform_indices = @transform_10, window_bounds = array<i64: 32, 32>}, {pipeline_mode = #tpu.pipeline_mode<synchronous>, transform_indices = @transform_11, window_bounds = array<i64: 1, 32>}, {pipeline_mode = #tpu.pipeline_mode<synchronous>, transform_indices = @transform_12, window_bounds = array<i64: 32, 64>}, {pipeline_mode = #tpu.pipeline_mode<synchronous>, transform_indices = @transform_13, window_bounds = array<i64: 1, 64>}, {pipeline_mode = #tpu.pipeline_mode<synchronous>, transform_indices = @transform_14, window_bounds = array<i64: 32, 32>}, {pipeline_mode = #tpu.pipeline_mode<synchronous>, transform_indices = @transform_15, window_bounds = array<i64: 1, 32>}, {pipeline_mode = #tpu.pipeline_mode<synchronous>, transform_indices = @transform_16, window_bounds = array<i64: 1, 32>}, {pipeline_mode = #tpu.pipeline_mode<synchronous>, transform_indices = @transform_17, window_bounds = array<i64: 1, 32>}, {pipeline_mode = #tpu.pipeline_mode<synchronous>, transform_indices = @transform_18, window_bounds = array<i64: 32, 64>}, {pipeline_mode = #tpu.pipeline_mode<synchronous>, transform_indices = @transform_19, window_bounds = array<i64: 1, 64>}, {pipeline_mode = #tpu.pipeline_mode<synchronous>, transform_indices = @transform_20, window_bounds = array<i64: 64, 32>}, {pipeline_mode = #tpu.pipeline_mode<synchronous>, transform_indices = @transform_21, window_bounds = array<i64: 1, 32>}, {pipeline_mode = #tpu.pipeline_mode<synchronous>, transform_indices = @transform_22, window_bounds = array<i64: 1, 32>}, {pipeline_mode = #tpu.pipeline_mode<synchronous>, transform_indices = @transform_23, window_bounds = array<i64: 1, 32>}, {transform_indices = @transform_24, window_bounds = array<i64: 1, 12, 32>}]} {
    %c0 = arith.constant 0 : index
    %c0_0 = arith.constant 0 : index
    %c0_1 = arith.constant 0 : index
    %0 = vector.load %arg1[%c0, %c0_0, %c0_1] : memref<1x12x32xf32, #tpu.memory_space<vmem>>, vector<1x12x32xf32>
    %1 = vector.shape_cast %0 : vector<1x12x32xf32> to vector<12x32xf32>
    %c0_2 = arith.constant 0 : index
    %c0_3 = arith.constant 0 : index
    %c0_4 = arith.constant 0 : index
    %2 = vector.load %arg2[%c0_2, %c0_3, %c0_4] : memref<1x8x32xf32, #tpu.memory_space<vmem>>, vector<1x8x32xf32>
    %3 = vector.shape_cast %2 : vector<1x8x32xf32> to vector<8x32xf32>
    %c0_5 = arith.constant 0 : index
    %c0_6 = arith.constant 0 : index
    %c0_7 = arith.constant 0 : index
    %4 = vector.load %arg3[%c0_5, %c0_6, %c0_7] : memref<1x1x12xf32, #tpu.memory_space<vmem>>, vector<1x1x12xf32>
    %5 = vector.shape_cast %4 : vector<1x1x12xf32> to vector<1x12xf32>
    %c0_8 = arith.constant 0 : index
    %c0_9 = arith.constant 0 : index
    %c0_10 = arith.constant 0 : index
    %6 = vector.load %arg4[%c0_8, %c0_9, %c0_10] : memref<1x1x8xf32, #tpu.memory_space<vmem>>, vector<1x1x8xf32>
    %7 = vector.shape_cast %6 : vector<1x1x8xf32> to vector<1x8xf32>
    %c0_11 = arith.constant 0 : index
    %c0_12 = arith.constant 0 : index
    %8 = vector.load %arg5[%c0_11, %c0_12] : memref<32x96xf32, #tpu.memory_space<vmem>>, vector<32x96xf32>
    %cst = arith.constant dense<0.000000e+00> : vector<12x96xf32>
    %9 = tpu.matmul %1, %8, %cst {dimension_numbers = #tpu.dot_dimension_numbers<[1], [0], [0], [1], [0, 0, 1, 1], [], []>} : vector<12x32xf32>, vector<32x96xf32>, vector<12x96xf32> -> vector<12x96xf32>
    %c0_13 = arith.constant 0 : index
    %c0_14 = arith.constant 0 : index
    %10 = vector.load %arg6[%c0_13, %c0_14] : memref<1x96xf32, #tpu.memory_space<vmem>>, vector<1x96xf32>
    %11 = vector.broadcast %10 : vector<1x96xf32> to vector<12x96xf32>
    %12 = arith.addf %9, %11 : vector<12x96xf32>
    %13 = vector.extract_strided_slice %12 {offsets = [0, 0], sizes = [12, 32], strides = [1, 1]} : vector<12x96xf32> to vector<12x32xf32>
    %14 = vector.extract_strided_slice %12 {offsets = [0, 32], sizes = [12, 32], strides = [1, 1]} : vector<12x96xf32> to vector<12x32xf32>
    %15 = vector.extract_strided_slice %12 {offsets = [0, 64], sizes = [12, 32], strides = [1, 1]} : vector<12x96xf32> to vector<12x32xf32>
    %c0_15 = arith.constant 0 : index
    %c0_16 = arith.constant 0 : index
    %16 = vector.load %arg7[%c0_15, %c0_16] : memref<32x32xf32, #tpu.memory_space<vmem>>, vector<32x32xf32>
    %c0_17 = arith.constant 0 : index
    %c0_18 = arith.constant 0 : index
    %17 = vector.load %arg8[%c0_17, %c0_18] : memref<1x32xf32, #tpu.memory_space<vmem>>, vector<1x32xf32>
    %cst_19 = arith.constant 0.000000e+00 : f32
    %18 = vector.broadcast %cst_19 : f32 to vector<12x32xf32>
    %19 = vector.broadcast %17 : vector<1x32xf32> to vector<12x32xf32>
    %20 = arith.addf %18, %19 : vector<12x32xf32>
    %21 = vector.extract_strided_slice %13 {offsets = [0, 0], sizes = [12, 8], strides = [1, 1]} : vector<12x32xf32> to vector<12x8xf32>
    %22 = vector.extract_strided_slice %14 {offsets = [0, 0], sizes = [12, 8], strides = [1, 1]} : vector<12x32xf32> to vector<12x8xf32>
    %23 = vector.extract_strided_slice %15 {offsets = [0, 0], sizes = [12, 8], strides = [1, 1]} : vector<12x32xf32> to vector<12x8xf32>
    %24 = tpu.transpose %22, [1, 0] : vector<12x8xf32> -> vector<8x12xf32>
    %cst_20 = arith.constant dense<0.000000e+00> : vector<12x12xf32>
    %25 = tpu.matmul %21, %24, %cst_20 {dimension_numbers = #tpu.dot_dimension_numbers<[1], [0], [0], [1], [0, 0, 1, 1], [], []>} : vector<12x8xf32>, vector<8x12xf32>, vector<12x12xf32> -> vector<12x12xf32>
    %cst_21 = arith.constant 0.353553385 : f32
    %26 = vector.broadcast %cst_21 : f32 to vector<12x12xf32>
    %27 = arith.mulf %25, %26 : vector<12x12xf32>
    %28 = vector.broadcast %5 : vector<1x12xf32> to vector<12x12xf32>
    %29 = arith.addf %27, %28 : vector<12x12xf32>
    %cst_22 = arith.constant dense<0xFF800000> : vector<12xf32>
    %30 = vector.multi_reduction <maximumf>, %29, %cst_22 [1] : vector<12x12xf32> to vector<12xf32>
    %31 = vector.shape_cast %30 : vector<12xf32> to vector<12x1xf32>
    %32 = vector.broadcast %31 : vector<12x1xf32> to vector<12x12xf32>
    %33 = arith.subf %29, %32 : vector<12x12xf32>
    %34 = math.exp %33 : vector<12x12xf32>
    %cst_23 = arith.constant dense<0.000000e+00> : vector<12xf32>
    %35 = vector.multi_reduction <add>, %34, %cst_23 [1] : vector<12x12xf32> to vector<12xf32>
    %36 = vector.shape_cast %35 : vector<12xf32> to vector<12x1xf32>
    %37 = tpu.reciprocal %36 {approx = true} : vector<12x1xf32> -> vector<12x1xf32>
    %38 = vector.broadcast %37 : vector<12x1xf32> to vector<12x12xf32>
    %39 = arith.mulf %34, %38 : vector<12x12xf32>
    %cst_24 = arith.constant dense<0.000000e+00> : vector<12x8xf32>
    %40 = tpu.matmul %39, %23, %cst_24 {dimension_numbers = #tpu.dot_dimension_numbers<[1], [0], [0], [1], [0, 0, 1, 1], [], []>} : vector<12x12xf32>, vector<12x8xf32>, vector<12x8xf32> -> vector<12x8xf32>
    %41 = vector.extract_strided_slice %16 {offsets = [0, 0], sizes = [8, 32], strides = [1, 1]} : vector<32x32xf32> to vector<8x32xf32>
    %cst_25 = arith.constant dense<0.000000e+00> : vector<12x32xf32>
    %42 = tpu.matmul %40, %41, %cst_25 {dimension_numbers = #tpu.dot_dimension_numbers<[1], [0], [0], [1], [0, 0, 1, 1], [], []>} : vector<12x8xf32>, vector<8x32xf32>, vector<12x32xf32> -> vector<12x32xf32>
    %43 = arith.addf %20, %42 : vector<12x32xf32>
    %44 = vector.extract_strided_slice %13 {offsets = [0, 8], sizes = [12, 8], strides = [1, 1]} : vector<12x32xf32> to vector<12x8xf32>
    %45 = vector.extract_strided_slice %14 {offsets = [0, 8], sizes = [12, 8], strides = [1, 1]} : vector<12x32xf32> to vector<12x8xf32>
    %46 = vector.extract_strided_slice %15 {offsets = [0, 8], sizes = [12, 8], strides = [1, 1]} : vector<12x32xf32> to vector<12x8xf32>
    %47 = tpu.transpose %45, [1, 0] : vector<12x8xf32> -> vector<8x12xf32>
    %cst_26 = arith.constant dense<0.000000e+00> : vector<12x12xf32>
    %48 = tpu.matmul %44, %47, %cst_26 {dimension_numbers = #tpu.dot_dimension_numbers<[1], [0], [0], [1], [0, 0, 1, 1], [], []>} : vector<12x8xf32>, vector<8x12xf32>, vector<12x12xf32> -> vector<12x12xf32>
    %cst_27 = arith.constant 0.353553385 : f32
    %49 = vector.broadcast %cst_27 : f32 to vector<12x12xf32>
    %50 = arith.mulf %48, %49 : vector<12x12xf32>
    %51 = vector.broadcast %5 : vector<1x12xf32> to vector<12x12xf32>
    %52 = arith.addf %50, %51 : vector<12x12xf32>
    %cst_28 = arith.constant dense<0xFF800000> : vector<12xf32>
    %53 = vector.multi_reduction <maximumf>, %52, %cst_28 [1] : vector<12x12xf32> to vector<12xf32>
    %54 = vector.shape_cast %53 : vector<12xf32> to vector<12x1xf32>
    %55 = vector.broadcast %54 : vector<12x1xf32> to vector<12x12xf32>
    %56 = arith.subf %52, %55 : vector<12x12xf32>
    %57 = math.exp %56 : vector<12x12xf32>
    %cst_29 = arith.constant dense<0.000000e+00> : vector<12xf32>
    %58 = vector.multi_reduction <add>, %57, %cst_29 [1] : vector<12x12xf32> to vector<12xf32>
    %59 = vector.shape_cast %58 : vector<12xf32> to vector<12x1xf32>
    %60 = tpu.reciprocal %59 {approx = true} : vector<12x1xf32> -> vector<12x1xf32>
    %61 = vector.broadcast %60 : vector<12x1xf32> to vector<12x12xf32>
    %62 = arith.mulf %57, %61 : vector<12x12xf32>
    %cst_30 = arith.constant dense<0.000000e+00> : vector<12x8xf32>
    %63 = tpu.matmul %62, %46, %cst_30 {dimension_numbers = #tpu.dot_dimension_numbers<[1], [0], [0], [1], [0, 0, 1, 1], [], []>} : vector<12x12xf32>, vector<12x8xf32>, vector<12x8xf32> -> vector<12x8xf32>
    %64 = vector.extract_strided_slice %16 {offsets = [8, 0], sizes = [8, 32], strides = [1, 1]} : vector<32x32xf32> to vector<8x32xf32>
    %cst_31 = arith.constant dense<0.000000e+00> : vector<12x32xf32>
    %65 = tpu.matmul %63, %64, %cst_31 {dimension_numbers = #tpu.dot_dimension_numbers<[1], [0], [0], [1], [0, 0, 1, 1], [], []>} : vector<12x8xf32>, vector<8x32xf32>, vector<12x32xf32> -> vector<12x32xf32>
    %66 = arith.addf %43, %65 : vector<12x32xf32>
    %67 = vector.extract_strided_slice %13 {offsets = [0, 16], sizes = [12, 8], strides = [1, 1]} : vector<12x32xf32> to vector<12x8xf32>
    %68 = vector.extract_strided_slice %14 {offsets = [0, 16], sizes = [12, 8], strides = [1, 1]} : vector<12x32xf32> to vector<12x8xf32>
    %69 = vector.extract_strided_slice %15 {offsets = [0, 16], sizes = [12, 8], strides = [1, 1]} : vector<12x32xf32> to vector<12x8xf32>
    %70 = tpu.transpose %68, [1, 0] : vector<12x8xf32> -> vector<8x12xf32>
    %cst_32 = arith.constant dense<0.000000e+00> : vector<12x12xf32>
    %71 = tpu.matmul %67, %70, %cst_32 {dimension_numbers = #tpu.dot_dimension_numbers<[1], [0], [0], [1], [0, 0, 1, 1], [], []>} : vector<12x8xf32>, vector<8x12xf32>, vector<12x12xf32> -> vector<12x12xf32>
    %cst_33 = arith.constant 0.353553385 : f32
    %72 = vector.broadcast %cst_33 : f32 to vector<12x12xf32>
    %73 = arith.mulf %71, %72 : vector<12x12xf32>
    %74 = vector.broadcast %5 : vector<1x12xf32> to vector<12x12xf32>
    %75 = arith.addf %73, %74 : vector<12x12xf32>
    %cst_34 = arith.constant dense<0xFF800000> : vector<12xf32>
    %76 = vector.multi_reduction <maximumf>, %75, %cst_34 [1] : vector<12x12xf32> to vector<12xf32>
    %77 = vector.shape_cast %76 : vector<12xf32> to vector<12x1xf32>
    %78 = vector.broadcast %77 : vector<12x1xf32> to vector<12x12xf32>
    %79 = arith.subf %75, %78 : vector<12x12xf32>
    %80 = math.exp %79 : vector<12x12xf32>
    %cst_35 = arith.constant dense<0.000000e+00> : vector<12xf32>
    %81 = vector.multi_reduction <add>, %80, %cst_35 [1] : vector<12x12xf32> to vector<12xf32>
    %82 = vector.shape_cast %81 : vector<12xf32> to vector<12x1xf32>
    %83 = tpu.reciprocal %82 {approx = true} : vector<12x1xf32> -> vector<12x1xf32>
    %84 = vector.broadcast %83 : vector<12x1xf32> to vector<12x12xf32>
    %85 = arith.mulf %80, %84 : vector<12x12xf32>
    %cst_36 = arith.constant dense<0.000000e+00> : vector<12x8xf32>
    %86 = tpu.matmul %85, %69, %cst_36 {dimension_numbers = #tpu.dot_dimension_numbers<[1], [0], [0], [1], [0, 0, 1, 1], [], []>} : vector<12x12xf32>, vector<12x8xf32>, vector<12x8xf32> -> vector<12x8xf32>
    %87 = vector.extract_strided_slice %16 {offsets = [16, 0], sizes = [8, 32], strides = [1, 1]} : vector<32x32xf32> to vector<8x32xf32>
    %cst_37 = arith.constant dense<0.000000e+00> : vector<12x32xf32>
    %88 = tpu.matmul %86, %87, %cst_37 {dimension_numbers = #tpu.dot_dimension_numbers<[1], [0], [0], [1], [0, 0, 1, 1], [], []>} : vector<12x8xf32>, vector<8x32xf32>, vector<12x32xf32> -> vector<12x32xf32>
    %89 = arith.addf %66, %88 : vector<12x32xf32>
    %90 = vector.extract_strided_slice %13 {offsets = [0, 24], sizes = [12, 8], strides = [1, 1]} : vector<12x32xf32> to vector<12x8xf32>
    %91 = vector.extract_strided_slice %14 {offsets = [0, 24], sizes = [12, 8], strides = [1, 1]} : vector<12x32xf32> to vector<12x8xf32>
    %92 = vector.extract_strided_slice %15 {offsets = [0, 24], sizes = [12, 8], strides = [1, 1]} : vector<12x32xf32> to vector<12x8xf32>
    %93 = tpu.transpose %91, [1, 0] : vector<12x8xf32> -> vector<8x12xf32>
    %cst_38 = arith.constant dense<0.000000e+00> : vector<12x12xf32>
    %94 = tpu.matmul %90, %93, %cst_38 {dimension_numbers = #tpu.dot_dimension_numbers<[1], [0], [0], [1], [0, 0, 1, 1], [], []>} : vector<12x8xf32>, vector<8x12xf32>, vector<12x12xf32> -> vector<12x12xf32>
    %cst_39 = arith.constant 0.353553385 : f32
    %95 = vector.broadcast %cst_39 : f32 to vector<12x12xf32>
    %96 = arith.mulf %94, %95 : vector<12x12xf32>
    %97 = vector.broadcast %5 : vector<1x12xf32> to vector<12x12xf32>
    %98 = arith.addf %96, %97 : vector<12x12xf32>
    %cst_40 = arith.constant dense<0xFF800000> : vector<12xf32>
    %99 = vector.multi_reduction <maximumf>, %98, %cst_40 [1] : vector<12x12xf32> to vector<12xf32>
    %100 = vector.shape_cast %99 : vector<12xf32> to vector<12x1xf32>
    %101 = vector.broadcast %100 : vector<12x1xf32> to vector<12x12xf32>
    %102 = arith.subf %98, %101 : vector<12x12xf32>
    %103 = math.exp %102 : vector<12x12xf32>
    %cst_41 = arith.constant dense<0.000000e+00> : vector<12xf32>
    %104 = vector.multi_reduction <add>, %103, %cst_41 [1] : vector<12x12xf32> to vector<12xf32>
    %105 = vector.shape_cast %104 : vector<12xf32> to vector<12x1xf32>
    %106 = tpu.reciprocal %105 {approx = true} : vector<12x1xf32> -> vector<12x1xf32>
    %107 = vector.broadcast %106 : vector<12x1xf32> to vector<12x12xf32>
    %108 = arith.mulf %103, %107 : vector<12x12xf32>
    %cst_42 = arith.constant dense<0.000000e+00> : vector<12x8xf32>
    %109 = tpu.matmul %108, %92, %cst_42 {dimension_numbers = #tpu.dot_dimension_numbers<[1], [0], [0], [1], [0, 0, 1, 1], [], []>} : vector<12x12xf32>, vector<12x8xf32>, vector<12x8xf32> -> vector<12x8xf32>
    %110 = vector.extract_strided_slice %16 {offsets = [24, 0], sizes = [8, 32], strides = [1, 1]} : vector<32x32xf32> to vector<8x32xf32>
    %cst_43 = arith.constant dense<0.000000e+00> : vector<12x32xf32>
    %111 = tpu.matmul %109, %110, %cst_43 {dimension_numbers = #tpu.dot_dimension_numbers<[1], [0], [0], [1], [0, 0, 1, 1], [], []>} : vector<12x8xf32>, vector<8x32xf32>, vector<12x32xf32> -> vector<12x32xf32>
    %112 = arith.addf %89, %111 : vector<12x32xf32>
    %113 = arith.addf %1, %112 : vector<12x32xf32>
    %c0_44 = arith.constant 0 : index
    %c0_45 = arith.constant 0 : index
    %114 = vector.load %arg9[%c0_44, %c0_45] : memref<1x32xf32, #tpu.memory_space<vmem>>, vector<1x32xf32>
    %c0_46 = arith.constant 0 : index
    %c0_47 = arith.constant 0 : index
    %115 = vector.load %arg10[%c0_46, %c0_47] : memref<1x32xf32, #tpu.memory_space<vmem>>, vector<1x32xf32>
    %cst_48 = arith.constant dense<0.000000e+00> : vector<12xf32>
    %116 = vector.multi_reduction <add>, %113, %cst_48 [1] : vector<12x32xf32> to vector<12xf32>
    %117 = vector.shape_cast %116 : vector<12xf32> to vector<12x1xf32>
    %cst_49 = arith.constant 3.200000e+01 : f32
    %118 = vector.broadcast %cst_49 : f32 to vector<12x1xf32>
    %119 = arith.divf %117, %118 : vector<12x1xf32>
    %120 = vector.broadcast %119 : vector<12x1xf32> to vector<12x32xf32>
    %121 = arith.subf %113, %120 : vector<12x32xf32>
    %122 = arith.mulf %121, %121 : vector<12x32xf32>
    %cst_50 = arith.constant dense<0.000000e+00> : vector<12xf32>
    %123 = vector.multi_reduction <add>, %122, %cst_50 [1] : vector<12x32xf32> to vector<12xf32>
    %124 = vector.shape_cast %123 : vector<12xf32> to vector<12x1xf32>
    %cst_51 = arith.constant 0.0322580636 : f32
    %125 = vector.broadcast %cst_51 : f32 to vector<12x1xf32>
    %126 = arith.mulf %124, %125 : vector<12x1xf32>
    %127 = math.sqrt %126 : vector<12x1xf32>
    %128 = vector.broadcast %114 : vector<1x32xf32> to vector<12x32xf32>
    %129 = arith.mulf %128, %121 : vector<12x32xf32>
    %cst_52 = arith.constant 9.99999997E-7 : f32
    %130 = vector.broadcast %cst_52 : f32 to vector<12x1xf32>
    %131 = arith.addf %127, %130 : vector<12x1xf32>
    %132 = vector.broadcast %131 : vector<12x1xf32> to vector<12x32xf32>
    %133 = arith.divf %129, %132 : vector<12x32xf32>
    %134 = vector.broadcast %115 : vector<1x32xf32> to vector<12x32xf32>
    %135 = arith.addf %133, %134 : vector<12x32xf32>
    %c0_53 = arith.constant 0 : index
    %c0_54 = arith.constant 0 : index
    %136 = vector.load %arg11[%c0_53, %c0_54] : memref<32x32xf32, #tpu.memory_space<vmem>>, vector<32x32xf32>
    %cst_55 = arith.constant dense<0.000000e+00> : vector<12x32xf32>
    %137 = tpu.matmul %135, %136, %cst_55 {dimension_numbers = #tpu.dot_dimension_numbers<[1], [0], [0], [1], [0, 0, 1, 1], [], []>} : vector<12x32xf32>, vector<32x32xf32>, vector<12x32xf32> -> vector<12x32xf32>
    %c0_56 = arith.constant 0 : index
    %c0_57 = arith.constant 0 : index
    %138 = vector.load %arg12[%c0_56, %c0_57] : memref<1x32xf32, #tpu.memory_space<vmem>>, vector<1x32xf32>
    %139 = vector.broadcast %138 : vector<1x32xf32> to vector<12x32xf32>
    %140 = arith.addf %137, %139 : vector<12x32xf32>
    %c0_58 = arith.constant 0 : index
    %c0_59 = arith.constant 0 : index
    %141 = vector.load %arg13[%c0_58, %c0_59] : memref<32x64xf32, #tpu.memory_space<vmem>>, vector<32x64xf32>
    %cst_60 = arith.constant dense<0.000000e+00> : vector<8x64xf32>
    %142 = tpu.matmul %3, %141, %cst_60 {dimension_numbers = #tpu.dot_dimension_numbers<[1], [0], [0], [1], [0, 0, 1, 1], [], []>} : vector<8x32xf32>, vector<32x64xf32>, vector<8x64xf32> -> vector<8x64xf32>
    %c0_61 = arith.constant 0 : index
    %c0_62 = arith.constant 0 : index
    %143 = vector.load %arg14[%c0_61, %c0_62] : memref<1x64xf32, #tpu.memory_space<vmem>>, vector<1x64xf32>
    %144 = vector.broadcast %143 : vector<1x64xf32> to vector<8x64xf32>
    %145 = arith.addf %142, %144 : vector<8x64xf32>
    %146 = vector.extract_strided_slice %145 {offsets = [0, 0], sizes = [8, 32], strides = [1, 1]} : vector<8x64xf32> to vector<8x32xf32>
    %147 = vector.extract_strided_slice %145 {offsets = [0, 32], sizes = [8, 32], strides = [1, 1]} : vector<8x64xf32> to vector<8x32xf32>
    %c0_63 = arith.constant 0 : index
    %c0_64 = arith.constant 0 : index
    %148 = vector.load %arg15[%c0_63, %c0_64] : memref<32x32xf32, #tpu.memory_space<vmem>>, vector<32x32xf32>
    %c0_65 = arith.constant 0 : index
    %c0_66 = arith.constant 0 : index
    %149 = vector.load %arg16[%c0_65, %c0_66] : memref<1x32xf32, #tpu.memory_space<vmem>>, vector<1x32xf32>
    %cst_67 = arith.constant 0.000000e+00 : f32
    %150 = vector.broadcast %cst_67 : f32 to vector<12x32xf32>
    %151 = vector.broadcast %149 : vector<1x32xf32> to vector<12x32xf32>
    %152 = arith.addf %150, %151 : vector<12x32xf32>
    %153 = vector.extract_strided_slice %140 {offsets = [0, 0], sizes = [12, 8], strides = [1, 1]} : vector<12x32xf32> to vector<12x8xf32>
    %154 = vector.extract_strided_slice %146 {offsets = [0, 0], sizes = [8, 8], strides = [1, 1]} : vector<8x32xf32> to vector<8x8xf32>
    %155 = vector.extract_strided_slice %147 {offsets = [0, 0], sizes = [8, 8], strides = [1, 1]} : vector<8x32xf32> to vector<8x8xf32>
    %156 = tpu.transpose %154, [1, 0] : vector<8x8xf32> -> vector<8x8xf32>
    %cst_68 = arith.constant dense<0.000000e+00> : vector<12x8xf32>
    %157 = tpu.matmul %153, %156, %cst_68 {dimension_numbers = #tpu.dot_dimension_numbers<[1], [0], [0], [1], [0, 0, 1, 1], [], []>} : vector<12x8xf32>, vector<8x8xf32>, vector<12x8xf32> -> vector<12x8xf32>
    %cst_69 = arith.constant 0.353553385 : f32
    %158 = vector.broadcast %cst_69 : f32 to vector<12x8xf32>
    %159 = arith.mulf %157, %158 : vector<12x8xf32>
    %160 = vector.broadcast %7 : vector<1x8xf32> to vector<12x8xf32>
    %161 = arith.addf %159, %160 : vector<12x8xf32>
    %cst_70 = arith.constant dense<0xFF800000> : vector<12xf32>
    %162 = vector.multi_reduction <maximumf>, %161, %cst_70 [1] : vector<12x8xf32> to vector<12xf32>
    %163 = vector.shape_cast %162 : vector<12xf32> to vector<12x1xf32>
    %164 = vector.broadcast %163 : vector<12x1xf32> to vector<12x8xf32>
    %165 = arith.subf %161, %164 : vector<12x8xf32>
    %166 = math.exp %165 : vector<12x8xf32>
    %cst_71 = arith.constant dense<0.000000e+00> : vector<12xf32>
    %167 = vector.multi_reduction <add>, %166, %cst_71 [1] : vector<12x8xf32> to vector<12xf32>
    %168 = vector.shape_cast %167 : vector<12xf32> to vector<12x1xf32>
    %169 = tpu.reciprocal %168 {approx = true} : vector<12x1xf32> -> vector<12x1xf32>
    %170 = vector.broadcast %169 : vector<12x1xf32> to vector<12x8xf32>
    %171 = arith.mulf %166, %170 : vector<12x8xf32>
    %cst_72 = arith.constant dense<0.000000e+00> : vector<12x8xf32>
    %172 = tpu.matmul %171, %155, %cst_72 {dimension_numbers = #tpu.dot_dimension_numbers<[1], [0], [0], [1], [0, 0, 1, 1], [], []>} : vector<12x8xf32>, vector<8x8xf32>, vector<12x8xf32> -> vector<12x8xf32>
    %173 = vector.extract_strided_slice %148 {offsets = [0, 0], sizes = [8, 32], strides = [1, 1]} : vector<32x32xf32> to vector<8x32xf32>
    %cst_73 = arith.constant dense<0.000000e+00> : vector<12x32xf32>
    %174 = tpu.matmul %172, %173, %cst_73 {dimension_numbers = #tpu.dot_dimension_numbers<[1], [0], [0], [1], [0, 0, 1, 1], [], []>} : vector<12x8xf32>, vector<8x32xf32>, vector<12x32xf32> -> vector<12x32xf32>
    %175 = arith.addf %152, %174 : vector<12x32xf32>
    %176 = vector.extract_strided_slice %140 {offsets = [0, 8], sizes = [12, 8], strides = [1, 1]} : vector<12x32xf32> to vector<12x8xf32>
    %177 = vector.extract_strided_slice %146 {offsets = [0, 8], sizes = [8, 8], strides = [1, 1]} : vector<8x32xf32> to vector<8x8xf32>
    %178 = vector.extract_strided_slice %147 {offsets = [0, 8], sizes = [8, 8], strides = [1, 1]} : vector<8x32xf32> to vector<8x8xf32>
    %179 = tpu.transpose %177, [1, 0] : vector<8x8xf32> -> vector<8x8xf32>
    %cst_74 = arith.constant dense<0.000000e+00> : vector<12x8xf32>
    %180 = tpu.matmul %176, %179, %cst_74 {dimension_numbers = #tpu.dot_dimension_numbers<[1], [0], [0], [1], [0, 0, 1, 1], [], []>} : vector<12x8xf32>, vector<8x8xf32>, vector<12x8xf32> -> vector<12x8xf32>
    %cst_75 = arith.constant 0.353553385 : f32
    %181 = vector.broadcast %cst_75 : f32 to vector<12x8xf32>
    %182 = arith.mulf %180, %181 : vector<12x8xf32>
    %183 = vector.broadcast %7 : vector<1x8xf32> to vector<12x8xf32>
    %184 = arith.addf %182, %183 : vector<12x8xf32>
    %cst_76 = arith.constant dense<0xFF800000> : vector<12xf32>
    %185 = vector.multi_reduction <maximumf>, %184, %cst_76 [1] : vector<12x8xf32> to vector<12xf32>
    %186 = vector.shape_cast %185 : vector<12xf32> to vector<12x1xf32>
    %187 = vector.broadcast %186 : vector<12x1xf32> to vector<12x8xf32>
    %188 = arith.subf %184, %187 : vector<12x8xf32>
    %189 = math.exp %188 : vector<12x8xf32>
    %cst_77 = arith.constant dense<0.000000e+00> : vector<12xf32>
    %190 = vector.multi_reduction <add>, %189, %cst_77 [1] : vector<12x8xf32> to vector<12xf32>
    %191 = vector.shape_cast %190 : vector<12xf32> to vector<12x1xf32>
    %192 = tpu.reciprocal %191 {approx = true} : vector<12x1xf32> -> vector<12x1xf32>
    %193 = vector.broadcast %192 : vector<12x1xf32> to vector<12x8xf32>
    %194 = arith.mulf %189, %193 : vector<12x8xf32>
    %cst_78 = arith.constant dense<0.000000e+00> : vector<12x8xf32>
    %195 = tpu.matmul %194, %178, %cst_78 {dimension_numbers = #tpu.dot_dimension_numbers<[1], [0], [0], [1], [0, 0, 1, 1], [], []>} : vector<12x8xf32>, vector<8x8xf32>, vector<12x8xf32> -> vector<12x8xf32>
    %196 = vector.extract_strided_slice %148 {offsets = [8, 0], sizes = [8, 32], strides = [1, 1]} : vector<32x32xf32> to vector<8x32xf32>
    %cst_79 = arith.constant dense<0.000000e+00> : vector<12x32xf32>
    %197 = tpu.matmul %195, %196, %cst_79 {dimension_numbers = #tpu.dot_dimension_numbers<[1], [0], [0], [1], [0, 0, 1, 1], [], []>} : vector<12x8xf32>, vector<8x32xf32>, vector<12x32xf32> -> vector<12x32xf32>
    %198 = arith.addf %175, %197 : vector<12x32xf32>
    %199 = vector.extract_strided_slice %140 {offsets = [0, 16], sizes = [12, 8], strides = [1, 1]} : vector<12x32xf32> to vector<12x8xf32>
    %200 = vector.extract_strided_slice %146 {offsets = [0, 16], sizes = [8, 8], strides = [1, 1]} : vector<8x32xf32> to vector<8x8xf32>
    %201 = vector.extract_strided_slice %147 {offsets = [0, 16], sizes = [8, 8], strides = [1, 1]} : vector<8x32xf32> to vector<8x8xf32>
    %202 = tpu.transpose %200, [1, 0] : vector<8x8xf32> -> vector<8x8xf32>
    %cst_80 = arith.constant dense<0.000000e+00> : vector<12x8xf32>
    %203 = tpu.matmul %199, %202, %cst_80 {dimension_numbers = #tpu.dot_dimension_numbers<[1], [0], [0], [1], [0, 0, 1, 1], [], []>} : vector<12x8xf32>, vector<8x8xf32>, vector<12x8xf32> -> vector<12x8xf32>
    %cst_81 = arith.constant 0.353553385 : f32
    %204 = vector.broadcast %cst_81 : f32 to vector<12x8xf32>
    %205 = arith.mulf %203, %204 : vector<12x8xf32>
    %206 = vector.broadcast %7 : vector<1x8xf32> to vector<12x8xf32>
    %207 = arith.addf %205, %206 : vector<12x8xf32>
    %cst_82 = arith.constant dense<0xFF800000> : vector<12xf32>
    %208 = vector.multi_reduction <maximumf>, %207, %cst_82 [1] : vector<12x8xf32> to vector<12xf32>
    %209 = vector.shape_cast %208 : vector<12xf32> to vector<12x1xf32>
    %210 = vector.broadcast %209 : vector<12x1xf32> to vector<12x8xf32>
    %211 = arith.subf %207, %210 : vector<12x8xf32>
    %212 = math.exp %211 : vector<12x8xf32>
    %cst_83 = arith.constant dense<0.000000e+00> : vector<12xf32>
    %213 = vector.multi_reduction <add>, %212, %cst_83 [1] : vector<12x8xf32> to vector<12xf32>
    %214 = vector.shape_cast %213 : vector<12xf32> to vector<12x1xf32>
    %215 = tpu.reciprocal %214 {approx = true} : vector<12x1xf32> -> vector<12x1xf32>
    %216 = vector.broadcast %215 : vector<12x1xf32> to vector<12x8xf32>
    %217 = arith.mulf %212, %216 : vector<12x8xf32>
    %cst_84 = arith.constant dense<0.000000e+00> : vector<12x8xf32>
    %218 = tpu.matmul %217, %201, %cst_84 {dimension_numbers = #tpu.dot_dimension_numbers<[1], [0], [0], [1], [0, 0, 1, 1], [], []>} : vector<12x8xf32>, vector<8x8xf32>, vector<12x8xf32> -> vector<12x8xf32>
    %219 = vector.extract_strided_slice %148 {offsets = [16, 0], sizes = [8, 32], strides = [1, 1]} : vector<32x32xf32> to vector<8x32xf32>
    %cst_85 = arith.constant dense<0.000000e+00> : vector<12x32xf32>
    %220 = tpu.matmul %218, %219, %cst_85 {dimension_numbers = #tpu.dot_dimension_numbers<[1], [0], [0], [1], [0, 0, 1, 1], [], []>} : vector<12x8xf32>, vector<8x32xf32>, vector<12x32xf32> -> vector<12x32xf32>
    %221 = arith.addf %198, %220 : vector<12x32xf32>
    %222 = vector.extract_strided_slice %140 {offsets = [0, 24], sizes = [12, 8], strides = [1, 1]} : vector<12x32xf32> to vector<12x8xf32>
    %223 = vector.extract_strided_slice %146 {offsets = [0, 24], sizes = [8, 8], strides = [1, 1]} : vector<8x32xf32> to vector<8x8xf32>
    %224 = vector.extract_strided_slice %147 {offsets = [0, 24], sizes = [8, 8], strides = [1, 1]} : vector<8x32xf32> to vector<8x8xf32>
    %225 = tpu.transpose %223, [1, 0] : vector<8x8xf32> -> vector<8x8xf32>
    %cst_86 = arith.constant dense<0.000000e+00> : vector<12x8xf32>
    %226 = tpu.matmul %222, %225, %cst_86 {dimension_numbers = #tpu.dot_dimension_numbers<[1], [0], [0], [1], [0, 0, 1, 1], [], []>} : vector<12x8xf32>, vector<8x8xf32>, vector<12x8xf32> -> vector<12x8xf32>
    %cst_87 = arith.constant 0.353553385 : f32
    %227 = vector.broadcast %cst_87 : f32 to vector<12x8xf32>
    %228 = arith.mulf %226, %227 : vector<12x8xf32>
    %229 = vector.broadcast %7 : vector<1x8xf32> to vector<12x8xf32>
    %230 = arith.addf %228, %229 : vector<12x8xf32>
    %cst_88 = arith.constant dense<0xFF800000> : vector<12xf32>
    %231 = vector.multi_reduction <maximumf>, %230, %cst_88 [1] : vector<12x8xf32> to vector<12xf32>
    %232 = vector.shape_cast %231 : vector<12xf32> to vector<12x1xf32>
    %233 = vector.broadcast %232 : vector<12x1xf32> to vector<12x8xf32>
    %234 = arith.subf %230, %233 : vector<12x8xf32>
    %235 = math.exp %234 : vector<12x8xf32>
    %cst_89 = arith.constant dense<0.000000e+00> : vector<12xf32>
    %236 = vector.multi_reduction <add>, %235, %cst_89 [1] : vector<12x8xf32> to vector<12xf32>
    %237 = vector.shape_cast %236 : vector<12xf32> to vector<12x1xf32>
    %238 = tpu.reciprocal %237 {approx = true} : vector<12x1xf32> -> vector<12x1xf32>
    %239 = vector.broadcast %238 : vector<12x1xf32> to vector<12x8xf32>
    %240 = arith.mulf %235, %239 : vector<12x8xf32>
    %cst_90 = arith.constant dense<0.000000e+00> : vector<12x8xf32>
    %241 = tpu.matmul %240, %224, %cst_90 {dimension_numbers = #tpu.dot_dimension_numbers<[1], [0], [0], [1], [0, 0, 1, 1], [], []>} : vector<12x8xf32>, vector<8x8xf32>, vector<12x8xf32> -> vector<12x8xf32>
    %242 = vector.extract_strided_slice %148 {offsets = [24, 0], sizes = [8, 32], strides = [1, 1]} : vector<32x32xf32> to vector<8x32xf32>
    %cst_91 = arith.constant dense<0.000000e+00> : vector<12x32xf32>
    %243 = tpu.matmul %241, %242, %cst_91 {dimension_numbers = #tpu.dot_dimension_numbers<[1], [0], [0], [1], [0, 0, 1, 1], [], []>} : vector<12x8xf32>, vector<8x32xf32>, vector<12x32xf32> -> vector<12x32xf32>
    %244 = arith.addf %221, %243 : vector<12x32xf32>
    %245 = arith.addf %135, %244 : vector<12x32xf32>
    %c0_92 = arith.constant 0 : index
    %c0_93 = arith.constant 0 : index
    %246 = vector.load %arg17[%c0_92, %c0_93] : memref<1x32xf32, #tpu.memory_space<vmem>>, vector<1x32xf32>
    %c0_94 = arith.constant 0 : index
    %c0_95 = arith.constant 0 : index
    %247 = vector.load %arg18[%c0_94, %c0_95] : memref<1x32xf32, #tpu.memory_space<vmem>>, vector<1x32xf32>
    %cst_96 = arith.constant dense<0.000000e+00> : vector<12xf32>
    %248 = vector.multi_reduction <add>, %245, %cst_96 [1] : vector<12x32xf32> to vector<12xf32>
    %249 = vector.shape_cast %248 : vector<12xf32> to vector<12x1xf32>
    %cst_97 = arith.constant 3.200000e+01 : f32
    %250 = vector.broadcast %cst_97 : f32 to vector<12x1xf32>
    %251 = arith.divf %249, %250 : vector<12x1xf32>
    %252 = vector.broadcast %251 : vector<12x1xf32> to vector<12x32xf32>
    %253 = arith.subf %245, %252 : vector<12x32xf32>
    %254 = arith.mulf %253, %253 : vector<12x32xf32>
    %cst_98 = arith.constant dense<0.000000e+00> : vector<12xf32>
    %255 = vector.multi_reduction <add>, %254, %cst_98 [1] : vector<12x32xf32> to vector<12xf32>
    %256 = vector.shape_cast %255 : vector<12xf32> to vector<12x1xf32>
    %cst_99 = arith.constant 0.0322580636 : f32
    %257 = vector.broadcast %cst_99 : f32 to vector<12x1xf32>
    %258 = arith.mulf %256, %257 : vector<12x1xf32>
    %259 = math.sqrt %258 : vector<12x1xf32>
    %260 = vector.broadcast %246 : vector<1x32xf32> to vector<12x32xf32>
    %261 = arith.mulf %260, %253 : vector<12x32xf32>
    %cst_100 = arith.constant 9.99999997E-7 : f32
    %262 = vector.broadcast %cst_100 : f32 to vector<12x1xf32>
    %263 = arith.addf %259, %262 : vector<12x1xf32>
    %264 = vector.broadcast %263 : vector<12x1xf32> to vector<12x32xf32>
    %265 = arith.divf %261, %264 : vector<12x32xf32>
    %266 = vector.broadcast %247 : vector<1x32xf32> to vector<12x32xf32>
    %267 = arith.addf %265, %266 : vector<12x32xf32>
    %c0_101 = arith.constant 0 : index
    %c0_102 = arith.constant 0 : index
    %268 = vector.load %arg19[%c0_101, %c0_102] : memref<32x64xf32, #tpu.memory_space<vmem>>, vector<32x64xf32>
    %c0_103 = arith.constant 0 : index
    %c0_104 = arith.constant 0 : index
    %269 = vector.load %arg20[%c0_103, %c0_104] : memref<1x64xf32, #tpu.memory_space<vmem>>, vector<1x64xf32>
    %c0_105 = arith.constant 0 : index
    %c0_106 = arith.constant 0 : index
    %270 = vector.load %arg21[%c0_105, %c0_106] : memref<64x32xf32, #tpu.memory_space<vmem>>, vector<64x32xf32>
    %c0_107 = arith.constant 0 : index
    %c0_108 = arith.constant 0 : index
    %271 = vector.load %arg22[%c0_107, %c0_108] : memref<1x32xf32, #tpu.memory_space<vmem>>, vector<1x32xf32>
    %cst_109 = arith.constant dense<0.000000e+00> : vector<12x64xf32>
    %272 = tpu.matmul %267, %268, %cst_109 {dimension_numbers = #tpu.dot_dimension_numbers<[1], [0], [0], [1], [0, 0, 1, 1], [], []>} : vector<12x32xf32>, vector<32x64xf32>, vector<12x64xf32> -> vector<12x64xf32>
    %273 = vector.broadcast %269 : vector<1x64xf32> to vector<12x64xf32>
    %274 = arith.addf %272, %273 : vector<12x64xf32>
    %cst_110 = arith.constant 0.000000e+00 : f32
    %275 = vector.broadcast %cst_110 : f32 to vector<12x64xf32>
    %276 = arith.maximumf %274, %275 : vector<12x64xf32>
    %cst_111 = arith.constant dense<0.000000e+00> : vector<12x32xf32>
    %277 = tpu.matmul %276, %270, %cst_111 {dimension_numbers = #tpu.dot_dimension_numbers<[1], [0], [0], [1], [0, 0, 1, 1], [], []>} : vector<12x64xf32>, vector<64x32xf32>, vector<12x32xf32> -> vector<12x32xf32>
    %278 = vector.broadcast %271 : vector<1x32xf32> to vector<12x32xf32>
    %279 = arith.addf %277, %278 : vector<12x32xf32>
    %280 = arith.addf %267, %279 : vector<12x32xf32>
    %c0_112 = arith.constant 0 : index
    %c0_113 = arith.constant 0 : index
    %281 = vector.load %arg23[%c0_112, %c0_113] : memref<1x32xf32, #tpu.memory_space<vmem>>, vector<1x32xf32>
    %c0_114 = arith.constant 0 : index
    %c0_115 = arith.constant 0 : index
    %282 = vector.load %arg24[%c0_114, %c0_115] : memref<1x32xf32, #tpu.memory_space<vmem>>, vector<1x32xf32>
    %cst_116 = arith.constant dense<0.000000e+00> : vector<12xf32>
    %283 = vector.multi_reduction <add>, %280, %cst_116 [1] : vector<12x32xf32> to vector<12xf32>
    %284 = vector.shape_cast %283 : vector<12xf32> to vector<12x1xf32>
    %cst_117 = arith.constant 3.200000e+01 : f32
    %285 = vector.broadcast %cst_117 : f32 to vector<12x1xf32>
    %286 = arith.divf %284, %285 : vector<12x1xf32>
    %287 = vector.broadcast %286 : vector<12x1xf32> to vector<12x32xf32>
    %288 = arith.subf %280, %287 : vector<12x32xf32>
    %289 = arith.mulf %288, %288 : vector<12x32xf32>
    %cst_118 = arith.constant dense<0.000000e+00> : vector<12xf32>
    %290 = vector.multi_reduction <add>, %289, %cst_118 [1] : vector<12x32xf32> to vector<12xf32>
    %291 = vector.shape_cast %290 : vector<12xf32> to vector<12x1xf32>
    %cst_119 = arith.constant 0.0322580636 : f32
    %292 = vector.broadcast %cst_119 : f32 to vector<12x1xf32>
    %293 = arith.mulf %291, %292 : vector<12x1xf32>
    %294 = math.sqrt %293 : vector<12x1xf32>
    %295 = vector.broadcast %281 : vector<1x32xf32> to vector<12x32xf32>
    %296 = arith.mulf %295, %288 : vector<12x32xf32>
    %cst_120 = arith.constant 9.99999997E-7 : f32
    %297 = vector.broadcast %cst_120 : f32 to vector<12x1xf32>
    %298 = arith.addf %294, %297 : vector<12x1xf32>
    %299 = vector.broadcast %298 : vector<12x1xf32> to vector<12x32xf32>
    %300 = arith.divf %296, %299 : vector<12x32xf32>
    %301 = vector.broadcast %282 : vector<1x32xf32> to vector<12x32xf32>
    %302 = arith.addf %300, %301 : vector<12x32xf32>
    %c0_121 = arith.constant 0 : index
    %c0_122 = arith.constant 0 : index
    %c0_123 = arith.constant 0 : index
    %303 = vector.load %arg25[%c0_121, %c0_122, %c0_123] : memref<1x12x32xf32, #tpu.memory_space<vmem>>, vector<1x12x32xf32>
    %304 = vector.shape_cast %303 : vector<1x12x32xf32> to vector<12x32xf32>
    %305 = vector.shape_cast %302 : vector<12x32xf32> to vector<1x12x32xf32>
    tpu.vector_store %arg25[%c0_121, %c0_122, %c0_123], %305 {strides = array<i32>} : memref<1x12x32xf32, #tpu.memory_space<vmem>>, vector<1x12x32xf32>,
    return
  }
  func.func @transform_0(%arg0: i32) -> (i32, i32, i32) {
    %c0_i32 = arith.constant 0 : i32
    %c0_i32_0 = arith.constant 0 : i32
    %c0_i32_1 = arith.constant 0 : i32
    return %arg0, %c0_i32, %c0_i32_0 : i32, i32, i32
  }
  func.func @transform_1(%arg0: i32) -> (i32, i32, i32) {
    %c0_i32 = arith.constant 0 : i32
    %c0_i32_0 = arith.constant 0 : i32
    %c0_i32_1 = arith.constant 0 : i32
    return %arg0, %c0_i32, %c0_i32_0 : i32, i32, i32
  }
  func.func @transform_2(%arg0: i32) -> (i32, i32, i32) {
    %c0_i32 = arith.constant 0 : i32
    %c0_i32_0 = arith.constant 0 : i32
    %c0_i32_1 = arith.constant 0 : i32
    return %arg0, %c0_i32, %c0_i32_0 : i32, i32, i32
  }
  func.func @transform_3(%arg0: i32) -> (i32, i32, i32) {
    %c0_i32 = arith.constant 0 : i32
    %c0_i32_0 = arith.constant 0 : i32
    %c0_i32_1 = arith.constant 0 : i32
    return %arg0, %c0_i32, %c0_i32_0 : i32, i32, i32
  }
  func.func @transform_4(%arg0: i32) -> (i32, i32) {
    %c0_i32 = arith.constant 0 : i32
    %c0_i32_0 = arith.constant 0 : i32
    %c0_i32_1 = arith.constant 0 : i32
    return %c0_i32, %c0_i32_0 : i32, i32
  }
  func.func @transform_5(%arg0: i32) -> (i32, i32) {
    %c0_i32 = arith.constant 0 : i32
    %c0_i32_0 = arith.constant 0 : i32
    %c0_i32_1 = arith.constant 0 : i32
    return %c0_i32, %c0_i32_0 : i32, i32
  }
  func.func @transform_6(%arg0: i32) -> (i32, i32) {
    %c0_i32 = arith.constant 0 : i32
    %c0_i32_0 = arith.constant 0 : i32
    %c0_i32_1 = arith.constant 0 : i32
    return %c0_i32, %c0_i32_0 : i32, i32
  }
  func.func @transform_7(%arg0: i32) -> (i32, i32) {
    %c0_i32 = arith.constant 0 : i32
    %c0_i32_0 = arith.constant 0 : i32
    %c0_i32_1 = arith.constant 0 : i32
    return %c0_i32, %c0_i32_0 : i32, i32
  }
  func.func @transform_8(%arg0: i32) -> (i32, i32) {
    %c0_i32 = arith.constant 0 : i32
    %c0_i32_0 = arith.constant 0 : i32
    %c0_i32_1 = arith.constant 0 : i32
    return %c0_i32, %c0_i32_0 : i32, i32
  }
  func.func @transform_9(%arg0: i32) -> (i32, i32) {
    %c0_i32 = arith.constant 0 : i32
    %c0_i32_0 = arith.constant 0 : i32
    %c0_i32_1 = arith.constant 0 : i32
    return %c0_i32, %c0_i32_0 : i32, i32
  }
  func.func @transform_10(%arg0: i32) -> (i32, i32) {
    %c0_i32 = arith.constant 0 : i32
    %c0_i32_0 = arith.constant 0 : i32
    %c0_i32_1 = arith.constant 0 : i32
    return %c0_i32, %c0_i32_0 : i32, i32
  }
  func.func @transform_11(%arg0: i32) -> (i32, i32) {
    %c0_i32 = arith.constant 0 : i32
    %c0_i32_0 = arith.constant 0 : i32
    %c0_i32_1 = arith.constant 0 : i32
    return %c0_i32, %c0_i32_0 : i32, i32
  }
  func.func @transform_12(%arg0: i32) -> (i32, i32) {
    %c0_i32 = arith.constant 0 : i32
    %c0_i32_0 = arith.constant 0 : i32
    %c0_i32_1 = arith.constant 0 : i32
    return %c0_i32, %c0_i32_0 : i32, i32
  }
  func.func @transform_13(%arg0: i32) -> (i32, i32) {
    %c0_i32 = arith.constant 0 : i32
    %c0_i32_0 = arith.constant 0 : i32
    %c0_i32_1 = arith.constant 0 : i32
    return %c0_i32, %c0_i32_0 : i32, i32
  }
  func.func @transform_14(%arg0: i32) -> (i32, i32) {
    %c0_i32 = arith.constant 0 : i32
    %c0_i32_0 = arith.constant 0 : i32
    %c0_i32_1 = arith.constant 0 : i32
    return %c0_i32, %c0_i32_0 : i32, i32
  }
  func.func @transform_15(%arg0: i32) -> (i32, i32) {
    %c0_i32 = arith.constant 0 : i32
    %c0_i32_0 = arith.constant 0 : i32
    %c0_i32_1 = arith.constant 0 : i32
    return %c0_i32, %c0_i32_0 : i32, i32
  }
  func.func @transform_16(%arg0: i32) -> (i32, i32) {
    %c0_i32 = arith.constant 0 : i32
    %c0_i32_0 = arith.constant 0 : i32
    %c0_i32_1 = arith.constant 0 : i32
    return %c0_i32, %c0_i32_0 : i32, i32
  }
  func.func @transform_17(%arg0: i32) -> (i32, i32) {
    %c0_i32 = arith.constant 0 : i32
    %c0_i32_0 = arith.constant 0 : i32
    %c0_i32_1 = arith.constant 0 : i32
    return %c0_i32, %c0_i32_0 : i32, i32
  }
  func.func @transform_18(%arg0: i32) -> (i32, i32) {
    %c0_i32 = arith.constant 0 : i32
    %c0_i32_0 = arith.constant 0 : i32
    %c0_i32_1 = arith.constant 0 : i32
    return %c0_i32, %c0_i32_0 : i32, i32
  }
  func.func @transform_19(%arg0: i32) -> (i32, i32) {
    %c0_i32 = arith.constant 0 : i32
    %c0_i32_0 = arith.constant 0 : i32
    %c0_i32_1 = arith.constant 0 : i32
    return %c0_i32, %c0_i32_0 : i32, i32
  }
  func.func @transform_20(%arg0: i32) -> (i32, i32) {
    %c0_i32 = arith.constant 0 : i32
    %c0_i32_0 = arith.constant 0 : i32
    %c0_i32_1 = arith.constant 0 : i32
    return %c0_i32, %c0_i32_0 : i32, i32
  }
  func.func @transform_21(%arg0: i32) -> (i32, i32) {
    %c0_i32 = arith.constant 0 : i32
    %c0_i32_0 = arith.constant 0 : i32
    %c0_i32_1 = arith.constant 0 : i32
    return %c0_i32, %c0_i32_0 : i32, i32
  }
  func.func @transform_22(%arg0: i32) -> (i32, i32) {
    %c0_i32 = arith.constant 0 : i32
    %c0_i32_0 = arith.constant 0 : i32
    %c0_i32_1 = arith.constant 0 : i32
    return %c0_i32, %c0_i32_0 : i32, i32
  }
  func.func @transform_23(%arg0: i32) -> (i32, i32) {
    %c0_i32 = arith.constant 0 : i32
    %c0_i32_0 = arith.constant 0 : i32
    %c0_i32_1 = arith.constant 0 : i32
    return %c0_i32, %c0_i32_0 : i32, i32
  }
  func.func @transform_24(%arg0: i32) -> (i32, i32, i32) {
    %c0_i32 = arith.constant 0 : i32
    %c0_i32_0 = arith.constant 0 : i32
    %c0_i32_1 = arith.constant 0 : i32
    return %arg0, %c0_i32, %c0_i32_0 : i32, i32, i32
  }
}

module attributes {stable_mosaic.version = 11 : i64} {
  func.func @_ca_kernel(%arg0: i32, %arg1: memref<1x8x32xf32, #tpu.memory_space<vmem>>, %arg2: memref<1x12x32xf32, #tpu.memory_space<vmem>>, %arg3: memref<1x1x8xf32, #tpu.memory_space<vmem>>, %arg4: memref<1x1x12xf32, #tpu.memory_space<vmem>>, %arg5: memref<32x96xf32, #tpu.memory_space<vmem>>, %arg6: memref<1x96xf32, #tpu.memory_space<vmem>>, %arg7: memref<32x32xf32, #tpu.memory_space<vmem>>, %arg8: memref<1x32xf32, #tpu.memory_space<vmem>>, %arg9: memref<1x32xf32, #tpu.memory_space<vmem>>, %arg10: memref<1x32xf32, #tpu.memory_space<vmem>>, %arg11: memref<32x32xf32, #tpu.memory_space<vmem>>, %arg12: memref<1x32xf32, #tpu.memory_space<vmem>>, %arg13: memref<32x64xf32, #tpu.memory_space<vmem>>, %arg14: memref<1x64xf32, #tpu.memory_space<vmem>>, %arg15: memref<32x32xf32, #tpu.memory_space<vmem>>, %arg16: memref<1x32xf32, #tpu.memory_space<vmem>>, %arg17: memref<1x32xf32, #tpu.memory_space<vmem>>, %arg18: memref<1x32xf32, #tpu.memory_space<vmem>>, %arg19: memref<32x64xf32, #tpu.memory_space<vmem>>, %arg20: memref<1x64xf32, #tpu.memory_space<vmem>>, %arg21: memref<64x32xf32, #tpu.memory_space<vmem>>, %arg22: memref<1x32xf32, #tpu.memory_space<vmem>>, %arg23: memref<1x32xf32, #tpu.memory_space<vmem>>, %arg24: memref<1x32xf32, #tpu.memory_space<vmem>>, %arg25: memref<1x8x32xf32, #tpu.memory_space<vmem>>) attributes {dimension_semantics = [#tpu.dimension_semantics<parallel>], iteration_bounds = array<i64: 2>, scalar_prefetch = 0 : i64, scratch_operands = 0 : i64, tpu.core_type = #tpu.core_type<tc>, window_params = [{transform_indices = @transform_0, window_bounds = array<i64: 1, 8, 32>}, {transform_indices = @transform_1, window_bounds = array<i64: 1, 12, 32>}, {transform_indices = @transform_2, window_bounds = array<i64: 1, 1, 8>}, {transform_indices = @transform_3, window_bounds = array<i64: 1, 1, 12>}, {pipeline_mode = #tpu.pipeline_mode<synchronous>, transform_indices = @transform_4, window_bounds = array<i64: 32, 96>}, {pipeline_mode = #tpu.pipeline_mode<synchronous>, transform_indices = @transform_5, window_bounds = array<i64: 1, 96>}, {pipeline_mode = #tpu.pipeline_mode<synchronous>, transform_indices = @transform_6, window_bounds = array<i64: 32, 32>}, {pipeline_mode = #tpu.pipeline_mode<synchronous>, transform_indices = @transform_7, window_bounds = array<i64: 1, 32>}, {pipeline_mode = #tpu.pipeline_mode<synchronous>, transform_indices = @transform_8, window_bounds = array<i64: 1, 32>}, {pipeline_mode = #tpu.pipeline_mode<synchronous>, transform_indices = @transform_9, window_bounds = array<i64: 1, 32>}, {pipeline_mode = #tpu.pipeline_mode<synchronous>, transform_indices = @transform_10, window_bounds = array<i64: 32, 32>}, {pipeline_mode = #tpu.pipeline_mode<synchronous>, transform_indices = @transform_11, window_bounds = array<i64: 1, 32>}, {pipeline_mode = #tpu.pipeline_mode<synchronous>, transform_indices = @transform_12, window_bounds = array<i64: 32, 64>}, {pipeline_mode = #tpu.pipeline_mode<synchronous>, transform_indices = @transform_13, window_bounds = array<i64: 1, 64>}, {pipeline_mode = #tpu.pipeline_mode<synchronous>, transform_indices = @transform_14, window_bounds = array<i64: 32, 32>}, {pipeline_mode = #tpu.pipeline_mode<synchronous>, transform_indices = @transform_15, window_bounds = array<i64: 1, 32>}, {pipeline_mode = #tpu.pipeline_mode<synchronous>, transform_indices = @transform_16, window_bounds = array<i64: 1, 32>}, {pipeline_mode = #tpu.pipeline_mode<synchronous>, transform_indices = @transform_17, window_bounds = array<i64: 1, 32>}, {pipeline_mode = #tpu.pipeline_mode<synchronous>, transform_indices = @transform_18, window_bounds = array<i64: 32, 64>}, {pipeline_mode = #tpu.pipeline_mode<synchronous>, transform_indices = @transform_19, window_bounds = array<i64: 1, 64>}, {pipeline_mode = #tpu.pipeline_mode<synchronous>, transform_indices = @transform_20, window_bounds = array<i64: 64, 32>}, {pipeline_mode = #tpu.pipeline_mode<synchronous>, transform_indices = @transform_21, window_bounds = array<i64: 1, 32>}, {pipeline_mode = #tpu.pipeline_mode<synchronous>, transform_indices = @transform_22, window_bounds = array<i64: 1, 32>}, {pipeline_mode = #tpu.pipeline_mode<synchronous>, transform_indices = @transform_23, window_bounds = array<i64: 1, 32>}, {transform_indices = @transform_24, window_bounds = array<i64: 1, 8, 32>}]} {
    %c0 = arith.constant 0 : index
    %c0_0 = arith.constant 0 : index
    %c0_1 = arith.constant 0 : index
    %0 = vector.load %arg1[%c0, %c0_0, %c0_1] : memref<1x8x32xf32, #tpu.memory_space<vmem>>, vector<1x8x32xf32>
    %1 = vector.shape_cast %0 : vector<1x8x32xf32> to vector<8x32xf32>
    %c0_2 = arith.constant 0 : index
    %c0_3 = arith.constant 0 : index
    %c0_4 = arith.constant 0 : index
    %2 = vector.load %arg2[%c0_2, %c0_3, %c0_4] : memref<1x12x32xf32, #tpu.memory_space<vmem>>, vector<1x12x32xf32>
    %3 = vector.shape_cast %2 : vector<1x12x32xf32> to vector<12x32xf32>
    %c0_5 = arith.constant 0 : index
    %c0_6 = arith.constant 0 : index
    %c0_7 = arith.constant 0 : index
    %4 = vector.load %arg3[%c0_5, %c0_6, %c0_7] : memref<1x1x8xf32, #tpu.memory_space<vmem>>, vector<1x1x8xf32>
    %5 = vector.shape_cast %4 : vector<1x1x8xf32> to vector<1x8xf32>
    %c0_8 = arith.constant 0 : index
    %c0_9 = arith.constant 0 : index
    %c0_10 = arith.constant 0 : index
    %6 = vector.load %arg4[%c0_8, %c0_9, %c0_10] : memref<1x1x12xf32, #tpu.memory_space<vmem>>, vector<1x1x12xf32>
    %7 = vector.shape_cast %6 : vector<1x1x12xf32> to vector<1x12xf32>
    %c0_11 = arith.constant 0 : index
    %c0_12 = arith.constant 0 : index
    %8 = vector.load %arg5[%c0_11, %c0_12] : memref<32x96xf32, #tpu.memory_space<vmem>>, vector<32x96xf32>
    %cst = arith.constant dense<0.000000e+00> : vector<8x96xf32>
    %9 = tpu.matmul %1, %8, %cst {dimension_numbers = #tpu.dot_dimension_numbers<[1], [0], [0], [1], [0, 0, 1, 1], [], []>} : vector<8x32xf32>, vector<32x96xf32>, vector<8x96xf32> -> vector<8x96xf32>
    %c0_13 = arith.constant 0 : index
    %c0_14 = arith.constant 0 : index
    %10 = vector.load %arg6[%c0_13, %c0_14] : memref<1x96xf32, #tpu.memory_space<vmem>>, vector<1x96xf32>
    %11 = vector.broadcast %10 : vector<1x96xf32> to vector<8x96xf32>
    %12 = arith.addf %9, %11 : vector<8x96xf32>
    %13 = vector.extract_strided_slice %12 {offsets = [0, 0], sizes = [8, 32], strides = [1, 1]} : vector<8x96xf32> to vector<8x32xf32>
    %14 = vector.extract_strided_slice %12 {offsets = [0, 32], sizes = [8, 32], strides = [1, 1]} : vector<8x96xf32> to vector<8x32xf32>
    %15 = vector.extract_strided_slice %12 {offsets = [0, 64], sizes = [8, 32], strides = [1, 1]} : vector<8x96xf32> to vector<8x32xf32>
    %c0_15 = arith.constant 0 : index
    %c0_16 = arith.constant 0 : index
    %16 = vector.load %arg7[%c0_15, %c0_16] : memref<32x32xf32, #tpu.memory_space<vmem>>, vector<32x32xf32>
    %c0_17 = arith.constant 0 : index
    %c0_18 = arith.constant 0 : index
    %17 = vector.load %arg8[%c0_17, %c0_18] : memref<1x32xf32, #tpu.memory_space<vmem>>, vector<1x32xf32>
    %cst_19 = arith.constant 0.000000e+00 : f32
    %18 = vector.broadcast %cst_19 : f32 to vector<8x32xf32>
    %19 = vector.broadcast %17 : vector<1x32xf32> to vector<8x32xf32>
    %20 = arith.addf %18, %19 : vector<8x32xf32>
    %21 = vector.extract_strided_slice %13 {offsets = [0, 0], sizes = [8, 8], strides = [1, 1]} : vector<8x32xf32> to vector<8x8xf32>
    %22 = vector.extract_strided_slice %14 {offsets = [0, 0], sizes = [8, 8], strides = [1, 1]} : vector<8x32xf32> to vector<8x8xf32>
    %23 = vector.extract_strided_slice %15 {offsets = [0, 0], sizes = [8, 8], strides = [1, 1]} : vector<8x32xf32> to vector<8x8xf32>
    %24 = tpu.transpose %22, [1, 0] : vector<8x8xf32> -> vector<8x8xf32>
    %cst_20 = arith.constant dense<0.000000e+00> : vector<8x8xf32>
    %25 = tpu.matmul %21, %24, %cst_20 {dimension_numbers = #tpu.dot_dimension_numbers<[1], [0], [0], [1], [0, 0, 1, 1], [], []>} : vector<8x8xf32>, vector<8x8xf32>, vector<8x8xf32> -> vector<8x8xf32>
    %cst_21 = arith.constant 0.353553385 : f32
    %26 = vector.broadcast %cst_21 : f32 to vector<8x8xf32>
    %27 = arith.mulf %25, %26 : vector<8x8xf32>
    %28 = vector.broadcast %5 : vector<1x8xf32> to vector<8x8xf32>
    %29 = arith.addf %27, %28 : vector<8x8xf32>
    %cst_22 = arith.constant dense<0xFF800000> : vector<8xf32>
    %30 = vector.multi_reduction <maximumf>, %29, %cst_22 [1] : vector<8x8xf32> to vector<8xf32>
    %31 = vector.shape_cast %30 : vector<8xf32> to vector<8x1xf32>
    %32 = vector.broadcast %31 : vector<8x1xf32> to vector<8x8xf32>
    %33 = arith.subf %29, %32 : vector<8x8xf32>
    %34 = math.exp %33 : vector<8x8xf32>
    %cst_23 = arith.constant dense<0.000000e+00> : vector<8xf32>
    %35 = vector.multi_reduction <add>, %34, %cst_23 [1] : vector<8x8xf32> to vector<8xf32>
    %36 = vector.shape_cast %35 : vector<8xf32> to vector<8x1xf32>
    %37 = tpu.reciprocal %36 {approx = true} : vector<8x1xf32> -> vector<8x1xf32>
    %38 = vector.broadcast %37 : vector<8x1xf32> to vector<8x8xf32>
    %39 = arith.mulf %34, %38 : vector<8x8xf32>
    %cst_24 = arith.constant dense<0.000000e+00> : vector<8x8xf32>
    %40 = tpu.matmul %39, %23, %cst_24 {dimension_numbers = #tpu.dot_dimension_numbers<[1], [0], [0], [1], [0, 0, 1, 1], [], []>} : vector<8x8xf32>, vector<8x8xf32>, vector<8x8xf32> -> vector<8x8xf32>
    %41 = vector.extract_strided_slice %16 {offsets = [0, 0], sizes = [8, 32], strides = [1, 1]} : vector<32x32xf32> to vector<8x32xf32>
    %cst_25 = arith.constant dense<0.000000e+00> : vector<8x32xf32>
    %42 = tpu.matmul %40, %41, %cst_25 {dimension_numbers = #tpu.dot_dimension_numbers<[1], [0], [0], [1], [0, 0, 1, 1], [], []>} : vector<8x8xf32>, vector<8x32xf32>, vector<8x32xf32> -> vector<8x32xf32>
    %43 = arith.addf %20, %42 : vector<8x32xf32>
    %44 = vector.extract_strided_slice %13 {offsets = [0, 8], sizes = [8, 8], strides = [1, 1]} : vector<8x32xf32> to vector<8x8xf32>
    %45 = vector.extract_strided_slice %14 {offsets = [0, 8], sizes = [8, 8], strides = [1, 1]} : vector<8x32xf32> to vector<8x8xf32>
    %46 = vector.extract_strided_slice %15 {offsets = [0, 8], sizes = [8, 8], strides = [1, 1]} : vector<8x32xf32> to vector<8x8xf32>
    %47 = tpu.transpose %45, [1, 0] : vector<8x8xf32> -> vector<8x8xf32>
    %cst_26 = arith.constant dense<0.000000e+00> : vector<8x8xf32>
    %48 = tpu.matmul %44, %47, %cst_26 {dimension_numbers = #tpu.dot_dimension_numbers<[1], [0], [0], [1], [0, 0, 1, 1], [], []>} : vector<8x8xf32>, vector<8x8xf32>, vector<8x8xf32> -> vector<8x8xf32>
    %cst_27 = arith.constant 0.353553385 : f32
    %49 = vector.broadcast %cst_27 : f32 to vector<8x8xf32>
    %50 = arith.mulf %48, %49 : vector<8x8xf32>
    %51 = vector.broadcast %5 : vector<1x8xf32> to vector<8x8xf32>
    %52 = arith.addf %50, %51 : vector<8x8xf32>
    %cst_28 = arith.constant dense<0xFF800000> : vector<8xf32>
    %53 = vector.multi_reduction <maximumf>, %52, %cst_28 [1] : vector<8x8xf32> to vector<8xf32>
    %54 = vector.shape_cast %53 : vector<8xf32> to vector<8x1xf32>
    %55 = vector.broadcast %54 : vector<8x1xf32> to vector<8x8xf32>
    %56 = arith.subf %52, %55 : vector<8x8xf32>
    %57 = math.exp %56 : vector<8x8xf32>
    %cst_29 = arith.constant dense<0.000000e+00> : vector<8xf32>
    %58 = vector.multi_reduction <add>, %57, %cst_29 [1] : vector<8x8xf32> to vector<8xf32>
    %59 = vector.shape_cast %58 : vector<8xf32> to vector<8x1xf32>
    %60 = tpu.reciprocal %59 {approx = true} : vector<8x1xf32> -> vector<8x1xf32>
    %61 = vector.broadcast %60 : vector<8x1xf32> to vector<8x8xf32>
    %62 = arith.mulf %57, %61 : vector<8x8xf32>
    %cst_30 = arith.constant dense<0.000000e+00> : vector<8x8xf32>
    %63 = tpu.matmul %62, %46, %cst_30 {dimension_numbers = #tpu.dot_dimension_numbers<[1], [0], [0], [1], [0, 0, 1, 1], [], []>} : vector<8x8xf32>, vector<8x8xf32>, vector<8x8xf32> -> vector<8x8xf32>
    %64 = vector.extract_strided_slice %16 {offsets = [8, 0], sizes = [8, 32], strides = [1, 1]} : vector<32x32xf32> to vector<8x32xf32>
    %cst_31 = arith.constant dense<0.000000e+00> : vector<8x32xf32>
    %65 = tpu.matmul %63, %64, %cst_31 {dimension_numbers = #tpu.dot_dimension_numbers<[1], [0], [0], [1], [0, 0, 1, 1], [], []>} : vector<8x8xf32>, vector<8x32xf32>, vector<8x32xf32> -> vector<8x32xf32>
    %66 = arith.addf %43, %65 : vector<8x32xf32>
    %67 = vector.extract_strided_slice %13 {offsets = [0, 16], sizes = [8, 8], strides = [1, 1]} : vector<8x32xf32> to vector<8x8xf32>
    %68 = vector.extract_strided_slice %14 {offsets = [0, 16], sizes = [8, 8], strides = [1, 1]} : vector<8x32xf32> to vector<8x8xf32>
    %69 = vector.extract_strided_slice %15 {offsets = [0, 16], sizes = [8, 8], strides = [1, 1]} : vector<8x32xf32> to vector<8x8xf32>
    %70 = tpu.transpose %68, [1, 0] : vector<8x8xf32> -> vector<8x8xf32>
    %cst_32 = arith.constant dense<0.000000e+00> : vector<8x8xf32>
    %71 = tpu.matmul %67, %70, %cst_32 {dimension_numbers = #tpu.dot_dimension_numbers<[1], [0], [0], [1], [0, 0, 1, 1], [], []>} : vector<8x8xf32>, vector<8x8xf32>, vector<8x8xf32> -> vector<8x8xf32>
    %cst_33 = arith.constant 0.353553385 : f32
    %72 = vector.broadcast %cst_33 : f32 to vector<8x8xf32>
    %73 = arith.mulf %71, %72 : vector<8x8xf32>
    %74 = vector.broadcast %5 : vector<1x8xf32> to vector<8x8xf32>
    %75 = arith.addf %73, %74 : vector<8x8xf32>
    %cst_34 = arith.constant dense<0xFF800000> : vector<8xf32>
    %76 = vector.multi_reduction <maximumf>, %75, %cst_34 [1] : vector<8x8xf32> to vector<8xf32>
    %77 = vector.shape_cast %76 : vector<8xf32> to vector<8x1xf32>
    %78 = vector.broadcast %77 : vector<8x1xf32> to vector<8x8xf32>
    %79 = arith.subf %75, %78 : vector<8x8xf32>
    %80 = math.exp %79 : vector<8x8xf32>
    %cst_35 = arith.constant dense<0.000000e+00> : vector<8xf32>
    %81 = vector.multi_reduction <add>, %80, %cst_35 [1] : vector<8x8xf32> to vector<8xf32>
    %82 = vector.shape_cast %81 : vector<8xf32> to vector<8x1xf32>
    %83 = tpu.reciprocal %82 {approx = true} : vector<8x1xf32> -> vector<8x1xf32>
    %84 = vector.broadcast %83 : vector<8x1xf32> to vector<8x8xf32>
    %85 = arith.mulf %80, %84 : vector<8x8xf32>
    %cst_36 = arith.constant dense<0.000000e+00> : vector<8x8xf32>
    %86 = tpu.matmul %85, %69, %cst_36 {dimension_numbers = #tpu.dot_dimension_numbers<[1], [0], [0], [1], [0, 0, 1, 1], [], []>} : vector<8x8xf32>, vector<8x8xf32>, vector<8x8xf32> -> vector<8x8xf32>
    %87 = vector.extract_strided_slice %16 {offsets = [16, 0], sizes = [8, 32], strides = [1, 1]} : vector<32x32xf32> to vector<8x32xf32>
    %cst_37 = arith.constant dense<0.000000e+00> : vector<8x32xf32>
    %88 = tpu.matmul %86, %87, %cst_37 {dimension_numbers = #tpu.dot_dimension_numbers<[1], [0], [0], [1], [0, 0, 1, 1], [], []>} : vector<8x8xf32>, vector<8x32xf32>, vector<8x32xf32> -> vector<8x32xf32>
    %89 = arith.addf %66, %88 : vector<8x32xf32>
    %90 = vector.extract_strided_slice %13 {offsets = [0, 24], sizes = [8, 8], strides = [1, 1]} : vector<8x32xf32> to vector<8x8xf32>
    %91 = vector.extract_strided_slice %14 {offsets = [0, 24], sizes = [8, 8], strides = [1, 1]} : vector<8x32xf32> to vector<8x8xf32>
    %92 = vector.extract_strided_slice %15 {offsets = [0, 24], sizes = [8, 8], strides = [1, 1]} : vector<8x32xf32> to vector<8x8xf32>
    %93 = tpu.transpose %91, [1, 0] : vector<8x8xf32> -> vector<8x8xf32>
    %cst_38 = arith.constant dense<0.000000e+00> : vector<8x8xf32>
    %94 = tpu.matmul %90, %93, %cst_38 {dimension_numbers = #tpu.dot_dimension_numbers<[1], [0], [0], [1], [0, 0, 1, 1], [], []>} : vector<8x8xf32>, vector<8x8xf32>, vector<8x8xf32> -> vector<8x8xf32>
    %cst_39 = arith.constant 0.353553385 : f32
    %95 = vector.broadcast %cst_39 : f32 to vector<8x8xf32>
    %96 = arith.mulf %94, %95 : vector<8x8xf32>
    %97 = vector.broadcast %5 : vector<1x8xf32> to vector<8x8xf32>
    %98 = arith.addf %96, %97 : vector<8x8xf32>
    %cst_40 = arith.constant dense<0xFF800000> : vector<8xf32>
    %99 = vector.multi_reduction <maximumf>, %98, %cst_40 [1] : vector<8x8xf32> to vector<8xf32>
    %100 = vector.shape_cast %99 : vector<8xf32> to vector<8x1xf32>
    %101 = vector.broadcast %100 : vector<8x1xf32> to vector<8x8xf32>
    %102 = arith.subf %98, %101 : vector<8x8xf32>
    %103 = math.exp %102 : vector<8x8xf32>
    %cst_41 = arith.constant dense<0.000000e+00> : vector<8xf32>
    %104 = vector.multi_reduction <add>, %103, %cst_41 [1] : vector<8x8xf32> to vector<8xf32>
    %105 = vector.shape_cast %104 : vector<8xf32> to vector<8x1xf32>
    %106 = tpu.reciprocal %105 {approx = true} : vector<8x1xf32> -> vector<8x1xf32>
    %107 = vector.broadcast %106 : vector<8x1xf32> to vector<8x8xf32>
    %108 = arith.mulf %103, %107 : vector<8x8xf32>
    %cst_42 = arith.constant dense<0.000000e+00> : vector<8x8xf32>
    %109 = tpu.matmul %108, %92, %cst_42 {dimension_numbers = #tpu.dot_dimension_numbers<[1], [0], [0], [1], [0, 0, 1, 1], [], []>} : vector<8x8xf32>, vector<8x8xf32>, vector<8x8xf32> -> vector<8x8xf32>
    %110 = vector.extract_strided_slice %16 {offsets = [24, 0], sizes = [8, 32], strides = [1, 1]} : vector<32x32xf32> to vector<8x32xf32>
    %cst_43 = arith.constant dense<0.000000e+00> : vector<8x32xf32>
    %111 = tpu.matmul %109, %110, %cst_43 {dimension_numbers = #tpu.dot_dimension_numbers<[1], [0], [0], [1], [0, 0, 1, 1], [], []>} : vector<8x8xf32>, vector<8x32xf32>, vector<8x32xf32> -> vector<8x32xf32>
    %112 = arith.addf %89, %111 : vector<8x32xf32>
    %113 = arith.addf %1, %112 : vector<8x32xf32>
    %c0_44 = arith.constant 0 : index
    %c0_45 = arith.constant 0 : index
    %114 = vector.load %arg9[%c0_44, %c0_45] : memref<1x32xf32, #tpu.memory_space<vmem>>, vector<1x32xf32>
    %c0_46 = arith.constant 0 : index
    %c0_47 = arith.constant 0 : index
    %115 = vector.load %arg10[%c0_46, %c0_47] : memref<1x32xf32, #tpu.memory_space<vmem>>, vector<1x32xf32>
    %cst_48 = arith.constant dense<0.000000e+00> : vector<8xf32>
    %116 = vector.multi_reduction <add>, %113, %cst_48 [1] : vector<8x32xf32> to vector<8xf32>
    %117 = vector.shape_cast %116 : vector<8xf32> to vector<8x1xf32>
    %cst_49 = arith.constant 3.200000e+01 : f32
    %118 = vector.broadcast %cst_49 : f32 to vector<8x1xf32>
    %119 = arith.divf %117, %118 : vector<8x1xf32>
    %120 = vector.broadcast %119 : vector<8x1xf32> to vector<8x32xf32>
    %121 = arith.subf %113, %120 : vector<8x32xf32>
    %122 = arith.mulf %121, %121 : vector<8x32xf32>
    %cst_50 = arith.constant dense<0.000000e+00> : vector<8xf32>
    %123 = vector.multi_reduction <add>, %122, %cst_50 [1] : vector<8x32xf32> to vector<8xf32>
    %124 = vector.shape_cast %123 : vector<8xf32> to vector<8x1xf32>
    %cst_51 = arith.constant 0.0322580636 : f32
    %125 = vector.broadcast %cst_51 : f32 to vector<8x1xf32>
    %126 = arith.mulf %124, %125 : vector<8x1xf32>
    %127 = math.sqrt %126 : vector<8x1xf32>
    %128 = vector.broadcast %114 : vector<1x32xf32> to vector<8x32xf32>
    %129 = arith.mulf %128, %121 : vector<8x32xf32>
    %cst_52 = arith.constant 9.99999997E-7 : f32
    %130 = vector.broadcast %cst_52 : f32 to vector<8x1xf32>
    %131 = arith.addf %127, %130 : vector<8x1xf32>
    %132 = vector.broadcast %131 : vector<8x1xf32> to vector<8x32xf32>
    %133 = arith.divf %129, %132 : vector<8x32xf32>
    %134 = vector.broadcast %115 : vector<1x32xf32> to vector<8x32xf32>
    %135 = arith.addf %133, %134 : vector<8x32xf32>
    %c0_53 = arith.constant 0 : index
    %c0_54 = arith.constant 0 : index
    %136 = vector.load %arg11[%c0_53, %c0_54] : memref<32x32xf32, #tpu.memory_space<vmem>>, vector<32x32xf32>
    %cst_55 = arith.constant dense<0.000000e+00> : vector<8x32xf32>
    %137 = tpu.matmul %135, %136, %cst_55 {dimension_numbers = #tpu.dot_dimension_numbers<[1], [0], [0], [1], [0, 0, 1, 1], [], []>} : vector<8x32xf32>, vector<32x32xf32>, vector<8x32xf32> -> vector<8x32xf32>
    %c0_56 = arith.constant 0 : index
    %c0_57 = arith.constant 0 : index
    %138 = vector.load %arg12[%c0_56, %c0_57] : memref<1x32xf32, #tpu.memory_space<vmem>>, vector<1x32xf32>
    %139 = vector.broadcast %138 : vector<1x32xf32> to vector<8x32xf32>
    %140 = arith.addf %137, %139 : vector<8x32xf32>
    %c0_58 = arith.constant 0 : index
    %c0_59 = arith.constant 0 : index
    %141 = vector.load %arg13[%c0_58, %c0_59] : memref<32x64xf32, #tpu.memory_space<vmem>>, vector<32x64xf32>
    %cst_60 = arith.constant dense<0.000000e+00> : vector<12x64xf32>
    %142 = tpu.matmul %3, %141, %cst_60 {dimension_numbers = #tpu.dot_dimension_numbers<[1], [0], [0], [1], [0, 0, 1, 1], [], []>} : vector<12x32xf32>, vector<32x64xf32>, vector<12x64xf32> -> vector<12x64xf32>
    %c0_61 = arith.constant 0 : index
    %c0_62 = arith.constant 0 : index
    %143 = vector.load %arg14[%c0_61, %c0_62] : memref<1x64xf32, #tpu.memory_space<vmem>>, vector<1x64xf32>
    %144 = vector.broadcast %143 : vector<1x64xf32> to vector<12x64xf32>
    %145 = arith.addf %142, %144 : vector<12x64xf32>
    %146 = vector.extract_strided_slice %145 {offsets = [0, 0], sizes = [12, 32], strides = [1, 1]} : vector<12x64xf32> to vector<12x32xf32>
    %147 = vector.extract_strided_slice %145 {offsets = [0, 32], sizes = [12, 32], strides = [1, 1]} : vector<12x64xf32> to vector<12x32xf32>
    %c0_63 = arith.constant 0 : index
    %c0_64 = arith.constant 0 : index
    %148 = vector.load %arg15[%c0_63, %c0_64] : memref<32x32xf32, #tpu.memory_space<vmem>>, vector<32x32xf32>
    %c0_65 = arith.constant 0 : index
    %c0_66 = arith.constant 0 : index
    %149 = vector.load %arg16[%c0_65, %c0_66] : memref<1x32xf32, #tpu.memory_space<vmem>>, vector<1x32xf32>
    %cst_67 = arith.constant 0.000000e+00 : f32
    %150 = vector.broadcast %cst_67 : f32 to vector<8x32xf32>
    %151 = vector.broadcast %149 : vector<1x32xf32> to vector<8x32xf32>
    %152 = arith.addf %150, %151 : vector<8x32xf32>
    %153 = vector.extract_strided_slice %140 {offsets = [0, 0], sizes = [8, 8], strides = [1, 1]} : vector<8x32xf32> to vector<8x8xf32>
    %154 = vector.extract_strided_slice %146 {offsets = [0, 0], sizes = [12, 8], strides = [1, 1]} : vector<12x32xf32> to vector<12x8xf32>
    %155 = vector.extract_strided_slice %147 {offsets = [0, 0], sizes = [12, 8], strides = [1, 1]} : vector<12x32xf32> to vector<12x8xf32>
    %156 = tpu.transpose %154, [1, 0] : vector<12x8xf32> -> vector<8x12xf32>
    %cst_68 = arith.constant dense<0.000000e+00> : vector<8x12xf32>
    %157 = tpu.matmul %153, %156, %cst_68 {dimension_numbers = #tpu.dot_dimension_numbers<[1], [0], [0], [1], [0, 0, 1, 1], [], []>} : vector<8x8xf32>, vector<8x12xf32>, vector<8x12xf32> -> vector<8x12xf32>
    %cst_69 = arith.constant 0.353553385 : f32
    %158 = vector.broadcast %cst_69 : f32 to vector<8x12xf32>
    %159 = arith.mulf %157, %158 : vector<8x12xf32>
    %160 = vector.broadcast %7 : vector<1x12xf32> to vector<8x12xf32>
    %161 = arith.addf %159, %160 : vector<8x12xf32>
    %cst_70 = arith.constant dense<0xFF800000> : vector<8xf32>
    %162 = vector.multi_reduction <maximumf>, %161, %cst_70 [1] : vector<8x12xf32> to vector<8xf32>
    %163 = vector.shape_cast %162 : vector<8xf32> to vector<8x1xf32>
    %164 = vector.broadcast %163 : vector<8x1xf32> to vector<8x12xf32>
    %165 = arith.subf %161, %164 : vector<8x12xf32>
    %166 = math.exp %165 : vector<8x12xf32>
    %cst_71 = arith.constant dense<0.000000e+00> : vector<8xf32>
    %167 = vector.multi_reduction <add>, %166, %cst_71 [1] : vector<8x12xf32> to vector<8xf32>
    %168 = vector.shape_cast %167 : vector<8xf32> to vector<8x1xf32>
    %169 = tpu.reciprocal %168 {approx = true} : vector<8x1xf32> -> vector<8x1xf32>
    %170 = vector.broadcast %169 : vector<8x1xf32> to vector<8x12xf32>
    %171 = arith.mulf %166, %170 : vector<8x12xf32>
    %cst_72 = arith.constant dense<0.000000e+00> : vector<8x8xf32>
    %172 = tpu.matmul %171, %155, %cst_72 {dimension_numbers = #tpu.dot_dimension_numbers<[1], [0], [0], [1], [0, 0, 1, 1], [], []>} : vector<8x12xf32>, vector<12x8xf32>, vector<8x8xf32> -> vector<8x8xf32>
    %173 = vector.extract_strided_slice %148 {offsets = [0, 0], sizes = [8, 32], strides = [1, 1]} : vector<32x32xf32> to vector<8x32xf32>
    %cst_73 = arith.constant dense<0.000000e+00> : vector<8x32xf32>
    %174 = tpu.matmul %172, %173, %cst_73 {dimension_numbers = #tpu.dot_dimension_numbers<[1], [0], [0], [1], [0, 0, 1, 1], [], []>} : vector<8x8xf32>, vector<8x32xf32>, vector<8x32xf32> -> vector<8x32xf32>
    %175 = arith.addf %152, %174 : vector<8x32xf32>
    %176 = vector.extract_strided_slice %140 {offsets = [0, 8], sizes = [8, 8], strides = [1, 1]} : vector<8x32xf32> to vector<8x8xf32>
    %177 = vector.extract_strided_slice %146 {offsets = [0, 8], sizes = [12, 8], strides = [1, 1]} : vector<12x32xf32> to vector<12x8xf32>
    %178 = vector.extract_strided_slice %147 {offsets = [0, 8], sizes = [12, 8], strides = [1, 1]} : vector<12x32xf32> to vector<12x8xf32>
    %179 = tpu.transpose %177, [1, 0] : vector<12x8xf32> -> vector<8x12xf32>
    %cst_74 = arith.constant dense<0.000000e+00> : vector<8x12xf32>
    %180 = tpu.matmul %176, %179, %cst_74 {dimension_numbers = #tpu.dot_dimension_numbers<[1], [0], [0], [1], [0, 0, 1, 1], [], []>} : vector<8x8xf32>, vector<8x12xf32>, vector<8x12xf32> -> vector<8x12xf32>
    %cst_75 = arith.constant 0.353553385 : f32
    %181 = vector.broadcast %cst_75 : f32 to vector<8x12xf32>
    %182 = arith.mulf %180, %181 : vector<8x12xf32>
    %183 = vector.broadcast %7 : vector<1x12xf32> to vector<8x12xf32>
    %184 = arith.addf %182, %183 : vector<8x12xf32>
    %cst_76 = arith.constant dense<0xFF800000> : vector<8xf32>
    %185 = vector.multi_reduction <maximumf>, %184, %cst_76 [1] : vector<8x12xf32> to vector<8xf32>
    %186 = vector.shape_cast %185 : vector<8xf32> to vector<8x1xf32>
    %187 = vector.broadcast %186 : vector<8x1xf32> to vector<8x12xf32>
    %188 = arith.subf %184, %187 : vector<8x12xf32>
    %189 = math.exp %188 : vector<8x12xf32>
    %cst_77 = arith.constant dense<0.000000e+00> : vector<8xf32>
    %190 = vector.multi_reduction <add>, %189, %cst_77 [1] : vector<8x12xf32> to vector<8xf32>
    %191 = vector.shape_cast %190 : vector<8xf32> to vector<8x1xf32>
    %192 = tpu.reciprocal %191 {approx = true} : vector<8x1xf32> -> vector<8x1xf32>
    %193 = vector.broadcast %192 : vector<8x1xf32> to vector<8x12xf32>
    %194 = arith.mulf %189, %193 : vector<8x12xf32>
    %cst_78 = arith.constant dense<0.000000e+00> : vector<8x8xf32>
    %195 = tpu.matmul %194, %178, %cst_78 {dimension_numbers = #tpu.dot_dimension_numbers<[1], [0], [0], [1], [0, 0, 1, 1], [], []>} : vector<8x12xf32>, vector<12x8xf32>, vector<8x8xf32> -> vector<8x8xf32>
    %196 = vector.extract_strided_slice %148 {offsets = [8, 0], sizes = [8, 32], strides = [1, 1]} : vector<32x32xf32> to vector<8x32xf32>
    %cst_79 = arith.constant dense<0.000000e+00> : vector<8x32xf32>
    %197 = tpu.matmul %195, %196, %cst_79 {dimension_numbers = #tpu.dot_dimension_numbers<[1], [0], [0], [1], [0, 0, 1, 1], [], []>} : vector<8x8xf32>, vector<8x32xf32>, vector<8x32xf32> -> vector<8x32xf32>
    %198 = arith.addf %175, %197 : vector<8x32xf32>
    %199 = vector.extract_strided_slice %140 {offsets = [0, 16], sizes = [8, 8], strides = [1, 1]} : vector<8x32xf32> to vector<8x8xf32>
    %200 = vector.extract_strided_slice %146 {offsets = [0, 16], sizes = [12, 8], strides = [1, 1]} : vector<12x32xf32> to vector<12x8xf32>
    %201 = vector.extract_strided_slice %147 {offsets = [0, 16], sizes = [12, 8], strides = [1, 1]} : vector<12x32xf32> to vector<12x8xf32>
    %202 = tpu.transpose %200, [1, 0] : vector<12x8xf32> -> vector<8x12xf32>
    %cst_80 = arith.constant dense<0.000000e+00> : vector<8x12xf32>
    %203 = tpu.matmul %199, %202, %cst_80 {dimension_numbers = #tpu.dot_dimension_numbers<[1], [0], [0], [1], [0, 0, 1, 1], [], []>} : vector<8x8xf32>, vector<8x12xf32>, vector<8x12xf32> -> vector<8x12xf32>
    %cst_81 = arith.constant 0.353553385 : f32
    %204 = vector.broadcast %cst_81 : f32 to vector<8x12xf32>
    %205 = arith.mulf %203, %204 : vector<8x12xf32>
    %206 = vector.broadcast %7 : vector<1x12xf32> to vector<8x12xf32>
    %207 = arith.addf %205, %206 : vector<8x12xf32>
    %cst_82 = arith.constant dense<0xFF800000> : vector<8xf32>
    %208 = vector.multi_reduction <maximumf>, %207, %cst_82 [1] : vector<8x12xf32> to vector<8xf32>
    %209 = vector.shape_cast %208 : vector<8xf32> to vector<8x1xf32>
    %210 = vector.broadcast %209 : vector<8x1xf32> to vector<8x12xf32>
    %211 = arith.subf %207, %210 : vector<8x12xf32>
    %212 = math.exp %211 : vector<8x12xf32>
    %cst_83 = arith.constant dense<0.000000e+00> : vector<8xf32>
    %213 = vector.multi_reduction <add>, %212, %cst_83 [1] : vector<8x12xf32> to vector<8xf32>
    %214 = vector.shape_cast %213 : vector<8xf32> to vector<8x1xf32>
    %215 = tpu.reciprocal %214 {approx = true} : vector<8x1xf32> -> vector<8x1xf32>
    %216 = vector.broadcast %215 : vector<8x1xf32> to vector<8x12xf32>
    %217 = arith.mulf %212, %216 : vector<8x12xf32>
    %cst_84 = arith.constant dense<0.000000e+00> : vector<8x8xf32>
    %218 = tpu.matmul %217, %201, %cst_84 {dimension_numbers = #tpu.dot_dimension_numbers<[1], [0], [0], [1], [0, 0, 1, 1], [], []>} : vector<8x12xf32>, vector<12x8xf32>, vector<8x8xf32> -> vector<8x8xf32>
    %219 = vector.extract_strided_slice %148 {offsets = [16, 0], sizes = [8, 32], strides = [1, 1]} : vector<32x32xf32> to vector<8x32xf32>
    %cst_85 = arith.constant dense<0.000000e+00> : vector<8x32xf32>
    %220 = tpu.matmul %218, %219, %cst_85 {dimension_numbers = #tpu.dot_dimension_numbers<[1], [0], [0], [1], [0, 0, 1, 1], [], []>} : vector<8x8xf32>, vector<8x32xf32>, vector<8x32xf32> -> vector<8x32xf32>
    %221 = arith.addf %198, %220 : vector<8x32xf32>
    %222 = vector.extract_strided_slice %140 {offsets = [0, 24], sizes = [8, 8], strides = [1, 1]} : vector<8x32xf32> to vector<8x8xf32>
    %223 = vector.extract_strided_slice %146 {offsets = [0, 24], sizes = [12, 8], strides = [1, 1]} : vector<12x32xf32> to vector<12x8xf32>
    %224 = vector.extract_strided_slice %147 {offsets = [0, 24], sizes = [12, 8], strides = [1, 1]} : vector<12x32xf32> to vector<12x8xf32>
    %225 = tpu.transpose %223, [1, 0] : vector<12x8xf32> -> vector<8x12xf32>
    %cst_86 = arith.constant dense<0.000000e+00> : vector<8x12xf32>
    %226 = tpu.matmul %222, %225, %cst_86 {dimension_numbers = #tpu.dot_dimension_numbers<[1], [0], [0], [1], [0, 0, 1, 1], [], []>} : vector<8x8xf32>, vector<8x12xf32>, vector<8x12xf32> -> vector<8x12xf32>
    %cst_87 = arith.constant 0.353553385 : f32
    %227 = vector.broadcast %cst_87 : f32 to vector<8x12xf32>
    %228 = arith.mulf %226, %227 : vector<8x12xf32>
    %229 = vector.broadcast %7 : vector<1x12xf32> to vector<8x12xf32>
    %230 = arith.addf %228, %229 : vector<8x12xf32>
    %cst_88 = arith.constant dense<0xFF800000> : vector<8xf32>
    %231 = vector.multi_reduction <maximumf>, %230, %cst_88 [1] : vector<8x12xf32> to vector<8xf32>
    %232 = vector.shape_cast %231 : vector<8xf32> to vector<8x1xf32>
    %233 = vector.broadcast %232 : vector<8x1xf32> to vector<8x12xf32>
    %234 = arith.subf %230, %233 : vector<8x12xf32>
    %235 = math.exp %234 : vector<8x12xf32>
    %cst_89 = arith.constant dense<0.000000e+00> : vector<8xf32>
    %236 = vector.multi_reduction <add>, %235, %cst_89 [1] : vector<8x12xf32> to vector<8xf32>
    %237 = vector.shape_cast %236 : vector<8xf32> to vector<8x1xf32>
    %238 = tpu.reciprocal %237 {approx = true} : vector<8x1xf32> -> vector<8x1xf32>
    %239 = vector.broadcast %238 : vector<8x1xf32> to vector<8x12xf32>
    %240 = arith.mulf %235, %239 : vector<8x12xf32>
    %cst_90 = arith.constant dense<0.000000e+00> : vector<8x8xf32>
    %241 = tpu.matmul %240, %224, %cst_90 {dimension_numbers = #tpu.dot_dimension_numbers<[1], [0], [0], [1], [0, 0, 1, 1], [], []>} : vector<8x12xf32>, vector<12x8xf32>, vector<8x8xf32> -> vector<8x8xf32>
    %242 = vector.extract_strided_slice %148 {offsets = [24, 0], sizes = [8, 32], strides = [1, 1]} : vector<32x32xf32> to vector<8x32xf32>
    %cst_91 = arith.constant dense<0.000000e+00> : vector<8x32xf32>
    %243 = tpu.matmul %241, %242, %cst_91 {dimension_numbers = #tpu.dot_dimension_numbers<[1], [0], [0], [1], [0, 0, 1, 1], [], []>} : vector<8x8xf32>, vector<8x32xf32>, vector<8x32xf32> -> vector<8x32xf32>
    %244 = arith.addf %221, %243 : vector<8x32xf32>
    %245 = arith.addf %135, %244 : vector<8x32xf32>
    %c0_92 = arith.constant 0 : index
    %c0_93 = arith.constant 0 : index
    %246 = vector.load %arg17[%c0_92, %c0_93] : memref<1x32xf32, #tpu.memory_space<vmem>>, vector<1x32xf32>
    %c0_94 = arith.constant 0 : index
    %c0_95 = arith.constant 0 : index
    %247 = vector.load %arg18[%c0_94, %c0_95] : memref<1x32xf32, #tpu.memory_space<vmem>>, vector<1x32xf32>
    %cst_96 = arith.constant dense<0.000000e+00> : vector<8xf32>
    %248 = vector.multi_reduction <add>, %245, %cst_96 [1] : vector<8x32xf32> to vector<8xf32>
    %249 = vector.shape_cast %248 : vector<8xf32> to vector<8x1xf32>
    %cst_97 = arith.constant 3.200000e+01 : f32
    %250 = vector.broadcast %cst_97 : f32 to vector<8x1xf32>
    %251 = arith.divf %249, %250 : vector<8x1xf32>
    %252 = vector.broadcast %251 : vector<8x1xf32> to vector<8x32xf32>
    %253 = arith.subf %245, %252 : vector<8x32xf32>
    %254 = arith.mulf %253, %253 : vector<8x32xf32>
    %cst_98 = arith.constant dense<0.000000e+00> : vector<8xf32>
    %255 = vector.multi_reduction <add>, %254, %cst_98 [1] : vector<8x32xf32> to vector<8xf32>
    %256 = vector.shape_cast %255 : vector<8xf32> to vector<8x1xf32>
    %cst_99 = arith.constant 0.0322580636 : f32
    %257 = vector.broadcast %cst_99 : f32 to vector<8x1xf32>
    %258 = arith.mulf %256, %257 : vector<8x1xf32>
    %259 = math.sqrt %258 : vector<8x1xf32>
    %260 = vector.broadcast %246 : vector<1x32xf32> to vector<8x32xf32>
    %261 = arith.mulf %260, %253 : vector<8x32xf32>
    %cst_100 = arith.constant 9.99999997E-7 : f32
    %262 = vector.broadcast %cst_100 : f32 to vector<8x1xf32>
    %263 = arith.addf %259, %262 : vector<8x1xf32>
    %264 = vector.broadcast %263 : vector<8x1xf32> to vector<8x32xf32>
    %265 = arith.divf %261, %264 : vector<8x32xf32>
    %266 = vector.broadcast %247 : vector<1x32xf32> to vector<8x32xf32>
    %267 = arith.addf %265, %266 : vector<8x32xf32>
    %c0_101 = arith.constant 0 : index
    %c0_102 = arith.constant 0 : index
    %268 = vector.load %arg19[%c0_101, %c0_102] : memref<32x64xf32, #tpu.memory_space<vmem>>, vector<32x64xf32>
    %c0_103 = arith.constant 0 : index
    %c0_104 = arith.constant 0 : index
    %269 = vector.load %arg20[%c0_103, %c0_104] : memref<1x64xf32, #tpu.memory_space<vmem>>, vector<1x64xf32>
    %c0_105 = arith.constant 0 : index
    %c0_106 = arith.constant 0 : index
    %270 = vector.load %arg21[%c0_105, %c0_106] : memref<64x32xf32, #tpu.memory_space<vmem>>, vector<64x32xf32>
    %c0_107 = arith.constant 0 : index
    %c0_108 = arith.constant 0 : index
    %271 = vector.load %arg22[%c0_107, %c0_108] : memref<1x32xf32, #tpu.memory_space<vmem>>, vector<1x32xf32>
    %cst_109 = arith.constant dense<0.000000e+00> : vector<8x64xf32>
    %272 = tpu.matmul %267, %268, %cst_109 {dimension_numbers = #tpu.dot_dimension_numbers<[1], [0], [0], [1], [0, 0, 1, 1], [], []>} : vector<8x32xf32>, vector<32x64xf32>, vector<8x64xf32> -> vector<8x64xf32>
    %273 = vector.broadcast %269 : vector<1x64xf32> to vector<8x64xf32>
    %274 = arith.addf %272, %273 : vector<8x64xf32>
    %cst_110 = arith.constant 0.000000e+00 : f32
    %275 = vector.broadcast %cst_110 : f32 to vector<8x64xf32>
    %276 = arith.maximumf %274, %275 : vector<8x64xf32>
    %cst_111 = arith.constant dense<0.000000e+00> : vector<8x32xf32>
    %277 = tpu.matmul %276, %270, %cst_111 {dimension_numbers = #tpu.dot_dimension_numbers<[1], [0], [0], [1], [0, 0, 1, 1], [], []>} : vector<8x64xf32>, vector<64x32xf32>, vector<8x32xf32> -> vector<8x32xf32>
    %278 = vector.broadcast %271 : vector<1x32xf32> to vector<8x32xf32>
    %279 = arith.addf %277, %278 : vector<8x32xf32>
    %280 = arith.addf %267, %279 : vector<8x32xf32>
    %c0_112 = arith.constant 0 : index
    %c0_113 = arith.constant 0 : index
    %281 = vector.load %arg23[%c0_112, %c0_113] : memref<1x32xf32, #tpu.memory_space<vmem>>, vector<1x32xf32>
    %c0_114 = arith.constant 0 : index
    %c0_115 = arith.constant 0 : index
    %282 = vector.load %arg24[%c0_114, %c0_115] : memref<1x32xf32, #tpu.memory_space<vmem>>, vector<1x32xf32>
    %cst_116 = arith.constant dense<0.000000e+00> : vector<8xf32>
    %283 = vector.multi_reduction <add>, %280, %cst_116 [1] : vector<8x32xf32> to vector<8xf32>
    %284 = vector.shape_cast %283 : vector<8xf32> to vector<8x1xf32>
    %cst_117 = arith.constant 3.200000e+01 : f32
    %285 = vector.broadcast %cst_117 : f32 to vector<8x1xf32>
    %286 = arith.divf %284, %285 : vector<8x1xf32>
    %287 = vector.broadcast %286 : vector<8x1xf32> to vector<8x32xf32>
    %288 = arith.subf %280, %287 : vector<8x32xf32>
    %289 = arith.mulf %288, %288 : vector<8x32xf32>
    %cst_118 = arith.constant dense<0.000000e+00> : vector<8xf32>
    %290 = vector.multi_reduction <add>, %289, %cst_118 [1] : vector<8x32xf32> to vector<8xf32>
    %291 = vector.shape_cast %290 : vector<8xf32> to vector<8x1xf32>
    %cst_119 = arith.constant 0.0322580636 : f32
    %292 = vector.broadcast %cst_119 : f32 to vector<8x1xf32>
    %293 = arith.mulf %291, %292 : vector<8x1xf32>
    %294 = math.sqrt %293 : vector<8x1xf32>
    %295 = vector.broadcast %281 : vector<1x32xf32> to vector<8x32xf32>
    %296 = arith.mulf %295, %288 : vector<8x32xf32>
    %cst_120 = arith.constant 9.99999997E-7 : f32
    %297 = vector.broadcast %cst_120 : f32 to vector<8x1xf32>
    %298 = arith.addf %294, %297 : vector<8x1xf32>
    %299 = vector.broadcast %298 : vector<8x1xf32> to vector<8x32xf32>
    %300 = arith.divf %296, %299 : vector<8x32xf32>
    %301 = vector.broadcast %282 : vector<1x32xf32> to vector<8x32xf32>
    %302 = arith.addf %300, %301 : vector<8x32xf32>
    %c0_121 = arith.constant 0 : index
    %c0_122 = arith.constant 0 : index
    %c0_123 = arith.constant 0 : index
    %303 = vector.load %arg25[%c0_121, %c0_122, %c0_123] : memref<1x8x32xf32, #tpu.memory_space<vmem>>, vector<1x8x32xf32>
    %304 = vector.shape_cast %303 : vector<1x8x32xf32> to vector<8x32xf32>
    %305 = vector.shape_cast %302 : vector<8x32xf32> to vector<1x8x32xf32>
    tpu.vector_store %arg25[%c0_121, %c0_122, %c0_123], %305 {strides = array<i32>} : memref<1x8x32xf32, #tpu.memory_space<vmem>>, vector<1x8x32xf32>,
    return
  }
  func.func @transform_0(%arg0: i32) -> (i32, i32, i32) {
    %c0_i32 = arith.constant 0 : i32
    %c0_i32_0 = arith.constant 0 : i32
    %c0_i32_1 = arith.constant 0 : i32
    return %arg0, %c0_i32, %c0_i32_0 : i32, i32, i32
  }
  func.func @transform_1(%arg0: i32) -> (i32, i32, i32) {
    %c0_i32 = arith.constant 0 : i32
    %c0_i32_0 = arith.constant 0 : i32
    %c0_i32_1 = arith.constant 0 : i32
    return %arg0, %c0_i32, %c0_i32_0 : i32, i32, i32
  }
  func.func @transform_2(%arg0: i32) -> (i32, i32, i32) {
    %c0_i32 = arith.constant 0 : i32
    %c0_i32_0 = arith.constant 0 : i32
    %c0_i32_1 = arith.constant 0 : i32
    return %arg0, %c0_i32, %c0_i32_0 : i32, i32, i32
  }
  func.func @transform_3(%arg0: i32) -> (i32, i32, i32) {
    %c0_i32 = arith.constant 0 : i32
    %c0_i32_0 = arith.constant 0 : i32
    %c0_i32_1 = arith.constant 0 : i32
    return %arg0, %c0_i32, %c0_i32_0 : i32, i32, i32
  }
  func.func @transform_4(%arg0: i32) -> (i32, i32) {
    %c0_i32 = arith.constant 0 : i32
    %c0_i32_0 = arith.constant 0 : i32
    %c0_i32_1 = arith.constant 0 : i32
    return %c0_i32, %c0_i32_0 : i32, i32
  }
  func.func @transform_5(%arg0: i32) -> (i32, i32) {
    %c0_i32 = arith.constant 0 : i32
    %c0_i32_0 = arith.constant 0 : i32
    %c0_i32_1 = arith.constant 0 : i32
    return %c0_i32, %c0_i32_0 : i32, i32
  }
  func.func @transform_6(%arg0: i32) -> (i32, i32) {
    %c0_i32 = arith.constant 0 : i32
    %c0_i32_0 = arith.constant 0 : i32
    %c0_i32_1 = arith.constant 0 : i32
    return %c0_i32, %c0_i32_0 : i32, i32
  }
  func.func @transform_7(%arg0: i32) -> (i32, i32) {
    %c0_i32 = arith.constant 0 : i32
    %c0_i32_0 = arith.constant 0 : i32
    %c0_i32_1 = arith.constant 0 : i32
    return %c0_i32, %c0_i32_0 : i32, i32
  }
  func.func @transform_8(%arg0: i32) -> (i32, i32) {
    %c0_i32 = arith.constant 0 : i32
    %c0_i32_0 = arith.constant 0 : i32
    %c0_i32_1 = arith.constant 0 : i32
    return %c0_i32, %c0_i32_0 : i32, i32
  }
  func.func @transform_9(%arg0: i32) -> (i32, i32) {
    %c0_i32 = arith.constant 0 : i32
    %c0_i32_0 = arith.constant 0 : i32
    %c0_i32_1 = arith.constant 0 : i32
    return %c0_i32, %c0_i32_0 : i32, i32
  }
  func.func @transform_10(%arg0: i32) -> (i32, i32) {
    %c0_i32 = arith.constant 0 : i32
    %c0_i32_0 = arith.constant 0 : i32
    %c0_i32_1 = arith.constant 0 : i32
    return %c0_i32, %c0_i32_0 : i32, i32
  }
  func.func @transform_11(%arg0: i32) -> (i32, i32) {
    %c0_i32 = arith.constant 0 : i32
    %c0_i32_0 = arith.constant 0 : i32
    %c0_i32_1 = arith.constant 0 : i32
    return %c0_i32, %c0_i32_0 : i32, i32
  }
  func.func @transform_12(%arg0: i32) -> (i32, i32) {
    %c0_i32 = arith.constant 0 : i32
    %c0_i32_0 = arith.constant 0 : i32
    %c0_i32_1 = arith.constant 0 : i32
    return %c0_i32, %c0_i32_0 : i32, i32
  }
  func.func @transform_13(%arg0: i32) -> (i32, i32) {
    %c0_i32 = arith.constant 0 : i32
    %c0_i32_0 = arith.constant 0 : i32
    %c0_i32_1 = arith.constant 0 : i32
    return %c0_i32, %c0_i32_0 : i32, i32
  }
  func.func @transform_14(%arg0: i32) -> (i32, i32) {
    %c0_i32 = arith.constant 0 : i32
    %c0_i32_0 = arith.constant 0 : i32
    %c0_i32_1 = arith.constant 0 : i32
    return %c0_i32, %c0_i32_0 : i32, i32
  }
  func.func @transform_15(%arg0: i32) -> (i32, i32) {
    %c0_i32 = arith.constant 0 : i32
    %c0_i32_0 = arith.constant 0 : i32
    %c0_i32_1 = arith.constant 0 : i32
    return %c0_i32, %c0_i32_0 : i32, i32
  }
  func.func @transform_16(%arg0: i32) -> (i32, i32) {
    %c0_i32 = arith.constant 0 : i32
    %c0_i32_0 = arith.constant 0 : i32
    %c0_i32_1 = arith.constant 0 : i32
    return %c0_i32, %c0_i32_0 : i32, i32
  }
  func.func @transform_17(%arg0: i32) -> (i32, i32) {
    %c0_i32 = arith.constant 0 : i32
    %c0_i32_0 = arith.constant 0 : i32
    %c0_i32_1 = arith.constant 0 : i32
    return %c0_i32, %c0_i32_0 : i32, i32
  }
  func.func @transform_18(%arg0: i32) -> (i32, i32) {
    %c0_i32 = arith.constant 0 : i32
    %c0_i32_0 = arith.constant 0 : i32
    %c0_i32_1 = arith.constant 0 : i32
    return %c0_i32, %c0_i32_0 : i32, i32
  }
  func.func @transform_19(%arg0: i32) -> (i32, i32) {
    %c0_i32 = arith.constant 0 : i32
    %c0_i32_0 = arith.constant 0 : i32
    %c0_i32_1 = arith.constant 0 : i32
    return %c0_i32, %c0_i32_0 : i32, i32
  }
  func.func @transform_20(%arg0: i32) -> (i32, i32) {
    %c0_i32 = arith.constant 0 : i32
    %c0_i32_0 = arith.constant 0 : i32
    %c0_i32_1 = arith.constant 0 : i32
    return %c0_i32, %c0_i32_0 : i32, i32
  }
  func.func @transform_21(%arg0: i32) -> (i32, i32) {
    %c0_i32 = arith.constant 0 : i32
    %c0_i32_0 = arith.constant 0 : i32
    %c0_i32_1 = arith.constant 0 : i32
    return %c0_i32, %c0_i32_0 : i32, i32
  }
  func.func @transform_22(%arg0: i32) -> (i32, i32) {
    %c0_i32 = arith.constant 0 : i32
    %c0_i32_0 = arith.constant 0 : i32
    %c0_i32_1 = arith.constant 0 : i32
    return %c0_i32, %c0_i32_0 : i32, i32
  }
  func.func @transform_23(%arg0: i32) -> (i32, i32) {
    %c0_i32 = arith.constant 0 : i32
    %c0_i32_0 = arith.constant 0 : i32
    %c0_i32_1 = arith.constant 0 : i32
    return %c0_i32, %c0_i32_0 : i32, i32
  }
  func.func @transform_24(%arg0: i32) -> (i32, i32, i32) {
    %c0_i32 = arith.constant 0 : i32
    %c0_i32_0 = arith.constant 0 : i32
    %c0_i32_1 = arith.constant 0 : i32
    return %arg0, %c0_i32, %c0_i32_0 : i32, i32, i32
  }
}

</mosaic_0001>

<bundles_post_ra>
// kernel: cme_forward.4
= control target key start
LH: loop header
LB: loop body
LE: loop exit
PB: predicated region body
PF: predicated region fallthrough
CT: control target
= control target key end

     0   :  { %s2372_s0 = inlined_call_operand.hbm [shape: f32[2,8,32], index: 0, kind: input, shape index: {}]   ;;  %s2373_s1 = inlined_call_operand.hbm [shape: f32[2,1,8], index: 1, kind: input, shape index: {}]   ;;  %s2374_s2 = inlined_call_operand.vmem [shape: f32[32,96], index: 2, kind: input, shape index: {}]   ;;  %s2375_s3 = inlined_call_operand.hbm [shape: f32[1,96], index: 3, kind: input, shape index: {}]   ;;  %s2376_s4 = inlined_call_operand.vmem [shape: f32[32,32], index: 4, kind: input, shape index: {}]   ;;  %s2377_s5 = inlined_call_operand.hbm [shape: f32[1,32], index: 5, kind: input, shape index: {}]   ;;  %s2378_s6 = inlined_call_operand.hbm [shape: f32[1,32], index: 6, kind: input, shape index: {}]   ;;  %s2379_s7 = inlined_call_operand.hbm [shape: f32[1,32], index: 7, kind: input, shape index: {}]   ;;  %s2380_s8 = inlined_call_operand.vmem [shape: f32[32,64], index: 8, kind: input, shape index: {}]   ;;  %s2381_s9 = inlined_call_operand.hbm [shape: f32[1,64], index: 9, kind: input, shape index: {}]   ;;  %s2382_s10 = inlined_call_operand.vmem [shape: f32[64,32], index: 10, kind: input, shape index: {}]   ;;  %s2383_s11 = inlined_call_operand.hbm [shape: f32[1,32], index: 11, kind: input, shape index: {}]   ;;  %s2384_s12 = inlined_call_operand.hbm [shape: f32[1,32], index: 12, kind: input, shape index: {}]   ;;  %s2385_s13 = inlined_call_operand.hbm [shape: f32[1,32], index: 13, kind: input, shape index: {}]   ;;  %s2386_s14 = inlined_call_operand.vmem [shape: f32[2,8,32], index: 14, kind: output, shape index: {}]  }
   0x1   :  { %2388 = sst [smem:[#allocation25_spill]] %s2375_s3 }
   0x2   :  { %2389 = sst [smem:[#allocation26_spill]] %s2377_s5 }
   0x3   :  { %2390 = sst [smem:[#allocation27_spill]] %s2378_s6 }
   0x4   :  { %2391 = sst [smem:[#allocation28_spill]] %s2379_s7 }
   0x5   :  { %2392 = sst [smem:[#allocation29_spill]] %s2381_s9 }
   0x6   :  { %2393 = sst [smem:[#allocation30_spill]] %s2382_s10 }
   0x7   :  { %2394 = sst [smem:[#allocation31_spill]] %s2383_s11 }
   0x8   :  { %2395 = sst [smem:[#allocation32_spill]] %s2384_s12 }
   0x9   :  { %2396 = sst [smem:[#allocation33_spill]] %s2386_s14 }
   0xa   :  { %19 = vsyncpa [#allocation3], 0 }
   0xb   :  { %21 = vsyncpa [#allocation3 + $0x1], 0 }
   0xc   :  { %22 = vsyncpa [#allocation5], 0 }
   0xd   :  { %24 = vsyncpa [#allocation5 + $0x1], 0 }
   0xe   :  { %25 = vsyncpa [#allocation8], 0 }
   0xf   :  { %26 = vsyncpa [#allocation11], 0 }
  0x10   :  { %27 = vsyncpa [#allocation14], 0 }
  0x11   :  { %28 = vsyncpa [#allocation17], 0  ;;  %s2052_s29 = smov 0   ;;  %s2054_s30 = smov 0  }
  0x12   :  { %s2056_s15 = smov 0   ;;  %s2058_s16 = smov 0  }
  0x13 LB: > { %s2397_s3 = sld [smem:[#allocation25_spill]]  ;;  %s2076_s20 = sadd.s32 4294967295, %s1955_s16   ;;  %s1955_s16 = sphi %s2058_s16, %s2413_s16   ;;  %s1951_s15 = sphi %s2056_s15, %s2412_s15   ;;  %s1947_s30 = sphi %s2054_s30, %s2411_s30   ;;  %s1943_s29 = sphi %s2052_s29, %s2410_s29  }
  0x14   : > { %p1381_p0 = scmp.ge.s32.totalorder %s1955_s16, 1  ;;  %p55_p1 = scmp.eq.s32.totalorder %s2076_s20, 0 }
  0x15   : > { %p369_p2 = scmp.lt.s32.totalorder %s1955_s16, 3  ;;  %s1957_s22 = smov [#allocation6]  }
  0x16   : > { %s386_s23 = sshll.u32 %s1957_s22, 4  ;;  %s2399_s5 = sld [smem:[#allocation26_spill]]  ;;  %s387_s23 = int_to_ptr.vmem [resolvable:$true] %s386_s23 }
  0x17   : > { %p2081_p3 = pnand %p1381_p0, %p369_p2  ;;  %s1958_s28 = smov [#allocation7]  }
  0x18   : > { %s401_s17 = sshll.u32 %s1958_s28, 4  ;;  %s2401_s7 = sld [smem:[#allocation28_spill]]  ;;  %s402_s17 = int_to_ptr.vmem [resolvable:$true] %s401_s17 }
  0x19   : > { %s384_s19 = sshll.u32 %s2397_s3, 4  ;;  %p1461_p4 = pneg %p2081_p3  ;;  %s385_s19 = int_to_ptr.hbm [resolvable:$true] %s384_s19 }
  0x1a   : > { %s2402_s11 = sld [smem:[#allocation31_spill]]  ;;  %s1959_s14 = smov [#allocation10]  }
  0x1b   : > { %p2092_p5 = pnand %p1461_p4, %p55_p1  ;;  %s425_s10 = sshll.u32 %s1959_s14, 4  ;;  %s426_s10 = int_to_ptr.vmem [resolvable:$true] %s425_s10 }
  0x1c   : > { %s399_s26 = sshll.u32 %s2399_s5, 4  ;;  %s1960_s28 = smov [#allocation13]   ;;  %s400_s26 = int_to_ptr.hbm [resolvable:$true] %s399_s26 }
  0x1d   : > { %1464 = dma.hbm_to_vmem [thread:$0]  (!%p2092_p5), %s385_s19, 16, %s387_s23, [#allocation5]  }
  0x1e   : > { %s423_s3 = sshll.u32 %s2401_s7, 4  ;;  %s455_s18 = sshll.u32 %s1960_s28, 4  ;;  %s424_s3 = int_to_ptr.hbm [resolvable:$true] %s423_s3  ;;  %s456_s18 = int_to_ptr.vmem [resolvable:$true] %s455_s18 }
  0x1f   : > { %1467 = dma.hbm_to_vmem [thread:$0]  (!%p2092_p5), %s400_s26, 16, %s402_s17, [#allocation8]  }
  0x20   : > { %s453_s5 = sshll.u32 %s2402_s11, 4  ;;  %s2403_s6 = sld [smem:[#allocation27_spill]]  ;;  %s454_s5 = int_to_ptr.hbm [resolvable:$true] %s453_s5 }
  0x21   : > { %1473 = dma.hbm_to_vmem [thread:$0]  (!%p2092_p5), %s424_s3, 16, %s426_s10, [#allocation11]  }
  0x22   : > { %1479 = dma.hbm_to_vmem [thread:$0]  (!%p2092_p5), %s454_s5, 16, %s456_s18, [#allocation14]  }
  0x23   : > { %s2404_s9 = sld [smem:[#allocation29_spill]]  ;;  %s1961_s14 = smov [#allocation9]  }
  0x24   : > { %s413_s24 = sshll.u32 %s1961_s14, 4  ;;  %s1962_s3 = smov [#allocation12]   ;;  %s414_s24 = int_to_ptr.vmem [resolvable:$true] %s413_s24 }
  0x25   : > { %s440_s7 = sshll.u32 %s1962_s3, 4  ;;  %s2405_s12 = sld [smem:[#allocation32_spill]]  ;;  %s441_s7 = int_to_ptr.vmem [resolvable:$true] %s440_s7 }
  0x26   : > { %s411_s19 = sshll.u32 %s2403_s6, 4  ;;  %s477_s22 = sshll.u32 %s2385_s13, 4  ;;  %s412_s19 = int_to_ptr.hbm [resolvable:$true] %s411_s19  ;;  %s478_s22 = int_to_ptr.hbm [resolvable:$true] %s477_s22 }
  0x27   : > { %1470 = dma.hbm_to_vmem [thread:$0]  (!%p2092_p5), %s412_s19, 16, %s414_s24, [#allocation8]  }
  0x28   : > { %s1963_s19 = smov [#allocation15]   ;;  %s1964_s26 = smov [#allocation16]  }
  0x29   : > { %s438_s17 = sshll.u32 %s2404_s9, 4  ;;  %s467_s23 = sshll.u32 %s1963_s19, 4  ;;  %s439_s17 = int_to_ptr.hbm [resolvable:$true] %s438_s17  ;;  %s468_s23 = int_to_ptr.vmem [resolvable:$true] %s467_s23 }
  0x2a   : > { %1476 = dma.hbm_to_vmem [thread:$0]  (!%p2092_p5), %s439_s17, 16, %s441_s7, [#allocation11]  }
  0x2b   : > { %s465_s5 = sshll.u32 %s2405_s12, 4  ;;  %s479_s17 = sshll.u32 %s1964_s26, 4  ;;  %s466_s5 = int_to_ptr.hbm [resolvable:$true] %s465_s5  ;;  %s480_s17 = int_to_ptr.vmem [resolvable:$true] %s479_s17 }
  0x2c   : > { %1482 = dma.hbm_to_vmem [thread:$0]  (!%p2092_p5), %s466_s5, 16, %s468_s23, [#allocation14]  }
  0x2d   : > { %1485 = dma.hbm_to_vmem [thread:$0]  (!%p2092_p5), %s478_s22, 16, %s480_s17, [#allocation17]  }
  0x2e   : > { %s2131_s14 = sadd.s32 1, %s1955_s16   ;;  %s41_s24 = sadd.s32 1, %s1951_s15 }
  0x2f   : > { %s38_s3 = ssub.s32 %s1955_s16, %s2131_s14  ;;  %p48_p6 = scmp.ne.s32.totalorder %s1951_s15, %s1947_s30 }
  0x30   : > { %p39_p7 = scmp.eq.s32.totalorder %s38_s3, 0  ;;  %p49_p8 = scmp.eq.s32.totalorder %s1955_s16, 0 }
  0x31   : > { %p54_p9 = scmp.ne.s32.totalorder %s1947_s30, %s1943_s29  ;;  %p1501_p10 = scmp.lt.s32.totalorder %s1955_s16, 2 }
  0x32   : > { %s2143_s7 = scalar_select %p39_p7, %s1951_s15, %s41_s24  }
  0x33   : > { %p50_p11 = por %p49_p8, %p48_p6  ;;  %p2147_p12 = por %p55_p1, %p54_p9 }
  0x34   : > { %s2152_s10 = sand.u32 1, %s1951_s15   ;;  %s1392_s25 = sshll.u32 %s1955_s16, 3 }
  0x35   : > { %s1391_s5 = sshll.u32 %s2152_s10, 3  ;;  %s498_s29 = scalar_lea.hbm %s2372_s0, %s1392_s25 }
  0x36   : > { %s500_s22 = sshll.u32 %s498_s29, 4  ;;  %s494_s19 = scalar_lea.vmem [#allocation2], %s1391_s5  ;;  %s501_s22 = int_to_ptr.hbm [resolvable:$true] %s500_s22 }
  0x37   : > { %s502_s23 = sshll.u32 %s494_s19, 4  ;;  %p2161_p13 = pnand %p1501_p10, %p50_p11  ;;  %s503_s23 = int_to_ptr.vmem [resolvable:$true] %s502_s23 }
  0x38   : > { %s509_s17 = sand.u32 1, %s1955_s16   ;;  %s515_s6 = scalar_lea.hbm %s2373_s1, %s1955_s16 }
  0x39   : > { %s491_s9 = scalar_lea.sflag [#allocation3], %s2152_s10  ;;  %s1837_s28 = sshra.s32 %s501_s22, 4  ;;  %s1838_s28 = int_to_ptr.hbm [resolvable:$true] %s1837_s28 }
  0x3a   : > { %s1839_s25 = scalar_lea.hbm %s1838_s28, 8  ;;  %p1841_p2 = pneg %p2161_p13 }
  0x3b   : > { %p1840_p0 = scmp.ne.s32.totalorder %s1838_s28, %s1839_s25  ;;  %s1844_s29 = scalar_lea.hbm %s2372_s0, 16 }
  0x3c   : > { %p1845_p6 = scmp.lt.s32.totalorder %s1838_s28, %s2372_s0  ;;  %p1846_p7 = scmp.lt.s32.totalorder %s1844_s29, %s1839_s25 }
  0x3d   : > { %p1842_p4 = pnand %p1841_p2, %p1840_p0 }
  0x3e   : > { %p1847_p8 = por %p1846_p7, %p1845_p6 }
  0x3f   : > { %p1843_p5 = pneg %p1842_p4 }
  0x41   : > { %p1848_p9 = pnand %p1847_p8, %p1843_p5 }
  0x43   : > { %1851 = shalt.err (!%p1848_p9)
}
  0x44   : > { %1489 = dma.hbm_to_vmem [thread:$0]  (!%p2161_p13), %s501_s22, 128, %s503_s23, %s491_s9  }
  0x45   : > { %s517_s16 = sshll.u32 %s515_s6, 4  ;;  %s512_s24 = scalar_lea.vmem [#allocation4], %s2152_s10  ;;  %s518_s16 = int_to_ptr.hbm [resolvable:$true] %s517_s16 }
  0x46   : > { %s519_s3 = sshll.u32 %s512_s24, 4  ;;  %s510_s5 = scalar_lea.sflag [#allocation5], %s509_s17  ;;  %s520_s3 = int_to_ptr.vmem [resolvable:$true] %s519_s3 }
  0x47   : > { %s1867_s18 = sshra.s32 %s518_s16, 4  ;;  %s1874_s25 = scalar_lea.hbm %s2373_s1, 2  ;;  %s1868_s18 = int_to_ptr.hbm [resolvable:$true] %s1867_s18 }
  0x48   : > { %s1869_s12 = scalar_lea.hbm %s1868_s18, 1  ;;  %p1875_p4 = scmp.lt.s32.totalorder %s1868_s18, %s2373_s1 }
  0x49   : > { %p1870_p10 = scmp.ne.s32.totalorder %s1868_s18, %s1869_s12  ;;  %p1876_p5 = scmp.lt.s32.totalorder %s1874_s25, %s1869_s12 }
  0x4b   : > { %p1872_p11 = pnand %p1870_p10, %p1841_p2  ;;  %p1877_p6 = por %p1876_p5, %p1875_p4 }
  0x4d   : > { %p1873_p0 = pneg %p1872_p11 }
  0x4f   : > { %p1878_p7 = pnand %p1877_p6, %p1873_p0 }
  0x51   : > { %1881 = shalt.err (!%p1878_p7)
}
  0x52   : > { %1492 = dma.hbm_to_vmem [thread:$0]  (!%p2161_p13), %s518_s16, 16, %s520_s3, %s510_s5  }
  0x53   : > { %528 = sbr.rel (%p2081_p3) target bundleno = 2779 (0xadb), region = 76  ;;  %s2199_s6 = sand.u32 (!%p2081_p3), 1, %s1947_s30  }
  0x54   : > { %s1394_s10 = sshll.u32 (!%p2081_p3), %s2199_s6, 3  ;;  %s531_s22 = scalar_lea.sflag (!%p2081_p3), [#allocation3], %s2199_s6 }
  0x55   : > { %s534_s23 = scalar_lea.vmem (!%p2081_p3), [#allocation2], %s1394_s10 }
  0x58   : > { %1914 = dma.done.wait (%p2147_p12), %s531_s22, 128  }
  0x59   : > { %1916 = vsyncadd (%p2147_p12), %s531_s22, 4294967168  ;;  %s540_s12 = sand.u32 1, %s2076_s20   ;;  %s543_s26 = scalar_lea.vmem [#allocation4], %s2199_s6 }
  0x5a   : > { %s541_s21 = scalar_lea.sflag [#allocation5], %s540_s12 }
  0x5b   : > { %1918 = dma.done.wait (%p2147_p12), %s541_s21, 16  }
  0x5c   : > { %1920 = vsyncadd (%p2147_p12), %s541_s21, 4294967280 }
  0x5d   : > { %1922 = dma.done.wait (%p55_p1), [#allocation5], 16  }
  0x5e   : > { %1924 = vsyncadd (%p55_p1), [#allocation5], 4294967280 }
  0x5f   : > { %1926 = dma.done.wait (%p55_p1), [#allocation8], 32  }
  0x60   : > { %1928 = vsyncadd (%p55_p1), [#allocation8], 4294967264 }
  0x61   : > { %1930 = dma.done.wait (%p55_p1), [#allocation11], 32  }
  0x62   : > { %1932 = vsyncadd (%p55_p1), [#allocation11], 4294967264 }
  0x63   : > { %1934 = dma.done.wait (%p55_p1), [#allocation14], 32  }
  0x64   : > { %1936 = vsyncadd (%p55_p1), [#allocation14], 4294967264 }
  0x65   : > { %1938 = dma.done.wait (%p55_p1), [#allocation17], 16  }
  0x66   : > { %1940 = vsyncadd (%p55_p1), [#allocation17], 4294967280  ;;  %v641_v0 = vld [vmem:[%s2374_s2 + $0x18] sm:$0xff]  ;;  %v640_v1 = vld [vmem:[%s2374_s2 + $0x10] sm:$0xff]  ;;  %vm646_vm0 = vcmask 261120   ;;  %s1965_s11 = smov 88  }
  0x67   : > { %662 = vmatpush.msra.mxu0 %v641_v0  ;;  %v639_v2 = vld [vmem:[%s2374_s2 + $0x8] sm:$0xff]  ;;  %v638_v3 = vld [vmem:[%s2374_s2] sm:$0xff]  ;;  %v1562_v5 = vld [vmem:[#allocation6] ss:$0 sm:$0xff]  ;;  %s1966_s28 = smov 96   ;;  %s1967_s25 = smov 120  }
  0x68   : > { %v2245_v4 = vld [vmem:[%s534_s23] sm:$0xff]  ;;  %vm682_vm1 = vcmask 64512   ;;  %s1968_s29 = smov 56   ;;  %s1969_s9 = smov 112   ;;  %vm1146_vm9 = vcmask 523264  }
  0x69   : > { %663 = vmatpush.msra.mxu0 %v640_v1  ;;  %v2259_v9 = vld [vmem:[%s543_s26] ss:$0 sm:$0xff]  ;;  %s1970_s10 = smov 104   ;;  %s1971_s23 = smov 64   ;;  %v671_v39 = vld [vmem:[%s2376_s4 + $0x8] sm:$0xff] }
  0x6a   : > { %v670_v14 = vld [vmem:[%s2376_s4] sm:$0xff]  ;;  %s1972_s12 = smov 80   ;;  %s1973_s21 = smov 72   ;;  %858 = vmatpush.msra.mxu1 %v671_v39 }
  0x6b   : > { %664 = vmatpush.msra.mxu0 %v639_v2  ;;  %767 = vmatpush.msra.mxu3 %v670_v14  ;;  %s1974_s17 = smov 48   ;;  %s1975_s19 = smov 40  }
  0x6c   : > { %p632_p1 = scmp.lt.s32.totalorder %s2076_s20, 1  ;;  %s2409_s6 = sld [smem:[#allocation33_spill]] }
  0x6d   : > { %665 = vmatpush.msra.mxu0 %v638_v3 }
  0x6e   : > { %1404 = vmatmul.msk.f32.vlgmr.msra.gmra.mxu0 %vm646_vm0, %v2245_v4  ;;  %s2415_s20 = smov (!%p632_p1, %s2076_s20), 1 }
  0xeb   : > { %v667_v6 = vpop.f32.mrf.mxu0 }
  0xec   : > { %v2249_v7 = vadd.f32 %v1562_v5, %v667_v6 }
  0xee   : > { %775 = vrot.lane.b32.xlu2 %v2249_v7, %s1965_s11  ;;  %680 = vrot.lane.b32.xlu0 %v2249_v7, %s1966_s28 }
  0xf6   : > { %773 = vrot.lane.b32.xlu2 %v2249_v7, %s1967_s25 }
 0x148   : > { %v776_v23 = vpop.permute.xlu2 %775 }
 0x150   : > { %v774_v26 = vpop.permute.xlu2 %773 }
 0x160   : > { %v681_v8 = vpop.permute.xlu0 %680 }
 0x161   : > { %1405 = vmatpush.xpose.msk.msrb.mxu0 %vm682_vm1, %v681_v8  ;;  %v672_v8 = vld [vmem:[%s2376_s4 + $0x10] sm:$0xff] }
 0x164   : > { %1406 = vmatmul.msk.f32.vlgmr.msrb.gmra.mxu0 %vm682_vm1, %v2249_v7 }
 0x1e1   : > { %v704_v10 = vpop.f32.mrf.mxu0 }
 0x1e2   : > { %v707_v11 = vmul.f32 0.35355338, %v704_v10 }
 0x1e4   : > { %v711_v12 = vadd.f32 %v2259_v9, %v707_v11 }
 0x1e6   : > { %v712_v13 = vsel %vm682_vm1, %v711_v12, -inf }
 0x1e7   : > { %713 = vmax.xlane.f32.xlu0 %v712_v13 }
 0x1fb   : > { %814 = vrot.lane.b32.xlu0 %v2249_v7, %s1968_s29 }
 0x203   : > { %864 = vrot.lane.b32.xlu0 %v2249_v7, %s1969_s9  ;;  %s1403_s9 = sshll.u32 %s2415_s20, 3 }
 0x20b   : > { %955 = vrot.lane.b32.xlu0 %v2249_v7, %s1970_s10 }
 0x25a   : > { %v714_v15 = vpop.xlane.xlu0 %713 }
 0x25b   : > { %v715_v16 = vsub.f32 %v711_v12, %v714_v15  ;;  %v1564_v15 = vld [vmem:[#allocation7] ss:$0 sm:$0xff] }
 0x25d   : > { %v716_v17 = vmul.f32 1.442695, %v715_v16 }
 0x25f   : > { %1571 = vpow2.f32 %v716_v17 }
 0x265   : > { %v1572_v18 = vpop.eup %1571 }
 0x266   : > { %v718_v19 = vsel %vm682_vm1, %v1572_v18, 0.0 }
 0x267   : > { %719 = vadd.xlane.f32.xlu1 %v718_v19 }
 0x26d   : > { %v815_v20 = vpop.permute.xlu0 %814 }
 0x26e   : > { %835 = vmatpush.msrb.mxu3 %v815_v20 }
 0x275   : > { %v865_v37 = vpop.permute.xlu0 %864 }
 0x27d   : > { %v956_v55 = vpop.permute.xlu0 %955 }
 0x280   : > { %723 = vrot.lane.b32.xlu1 %v2249_v7, %s1971_s23  ;;  %s635_s23 = scalar_lea.vmem %s2409_s6, %s1403_s9 }
 0x2da   : > { %v720_v21 = vpop.xlane.xlu1 %719 }
 0x2db   : > { %1573 = vrcp.f32 %v720_v21 }
 0x2e1   : > { %v1574_v22 = vpop.eup %1573 }
 0x2e2   : > { %v722_v25 = vmul.f32 %v1574_v22, %v1572_v18 }
 0x2f2   : > { %v724_v24 = vpop.permute.xlu1 %723 }
 0x2f3   : > { %744 = vmatpush.msra.mxu2 %v724_v24  ;;  %v1976_v24 = vmov 32.0  }
 0x2f4   : > { %1407 = vmatmul.msk.f32.vlgmr.msra.gmra.mxu2 %vm682_vm1, %v722_v25 }
 0x2f5   : > { %1409 = vmatpush.xpose.msk.msrb.mxu2 %vm682_vm1, %v776_v23 }
 0x2fc   : > { %1410 = vmatmul.msk.f32.vlgmr.msrb.gmra.mxu2 %vm682_vm1, %v774_v26 }
 0x377   : > { %v746_v27 = vpop.f32.mrf.mxu2 }
 0x378   : > { %1408 = vmatmul.msk.f32.vlgmr.msra.gmra.mxu3 %vm682_vm1, %v746_v27 }
 0x379   : > { %949 = vmatpush.msra.mxu3 %v672_v8 }
 0x37f   : > { %v798_v28 = vpop.f32.mrf.mxu2 }
 0x380   : > { %v801_v29 = vmul.f32 0.35355338, %v798_v28 }
 0x382   : > { %v802_v30 = vadd.f32 %v2259_v9, %v801_v29 }
 0x384   : > { %v803_v31 = vsel %vm682_vm1, %v802_v30, -inf }
 0x385   : > { %804 = vmax.xlane.f32.xlu2 %v803_v31 }
 0x39d   : > { %866 = vrot.lane.b32.xlu2 %v2249_v7, %s1972_s12  ;;  %s2408_s12 = sld [smem:[#allocation30_spill]] }
 0x3f8   : > { %v805_v32 = vpop.xlane.xlu2 %804 }
 0x3f9   : > { %v806_v33 = vsub.f32 %v802_v30, %v805_v32 }
 0x3fb   : > { %v807_v34 = vmul.f32 1.442695, %v806_v33  ;;  %v769_v50 = vpop.f32.mrf.mxu3 }
 0x3fc   : > { %v772_v16 = vadd.f32 %v1564_v15, %v769_v50  ;;  %v1111_v50 = vld [vmem:[%s2408_s12 + $0x20] sm:$0xff] }
 0x3fd   : > { %1575 = vpow2.f32 %v807_v34 }
 0x400   : > { %v867_v35 = vpop.permute.xlu2 %866 }
 0x401   : > { %1413 = vmatpush.xpose.msk.msra.mxu0 %vm682_vm1, %v867_v35  ;;  %v1105_v35 = vld [vmem:[%s2380_s8 + $0x18] sm:$0xff] }
 0x403   : > { %v1576_v36 = vpop.eup %1575 }
 0x404   : > { %1414 = vmatmul.msk.f32.vlgmr.msra.gmra.mxu0 %vm682_vm1, %v865_v37  ;;  %v809_v38 = vsel %vm682_vm1, %v1576_v36, 0.0  ;;  %v1103_v37 = vld [vmem:[%s2380_s8 + $0x8] sm:$0xff] }
 0x405   : > { %810 = vadd.xlane.f32.xlu1 %v809_v38  ;;  %v1102_v38 = vld [vmem:[%s2380_s8] sm:$0xff] }
 0x41e   : > { %957 = vrot.lane.b32.xlu1 %v2249_v7, %s1973_s21 }
 0x478   : > { %v811_v40 = vpop.xlane.xlu1 %810 }
 0x479   : > { %1577 = vrcp.f32 %v811_v40 }
 0x47f   : > { %v1578_v41 = vpop.eup %1577 }
 0x480   : > { %v813_v42 = vmul.f32 %v1578_v41, %v1576_v36  ;;  %v1104_v36 = vld [vmem:[%s2380_s8 + $0x10] sm:$0xff] }
 0x481   : > { %v889_v43 = vpop.f32.mrf.mxu0 }
 0x482   : > { %v892_v44 = vmul.f32 0.35355338, %v889_v43  ;;  %1411 = vmatmul.msk.f32.vlgmr.msrb.gmra.mxu3 %vm682_vm1, %v813_v42 }
 0x483   : > { %1134 = vmatpush.msrb.mxu3 %v1105_v35 }
 0x484   : > { %v893_v45 = vadd.f32 %v2259_v9, %v892_v44 }
 0x485   : > { %1135 = vmatpush.msrb.mxu3 %v1104_v36 }
 0x486   : > { %v894_v46 = vsel %vm682_vm1, %v893_v45, -inf }
 0x487   : > { %895 = vmax.xlane.f32.xlu2 %v894_v46  ;;  %1136 = vmatpush.msrb.mxu3 %v1103_v37  ;;  %v1113_v46 = vld [vmem:[%s2408_s12 + $0x30] sm:$0xff] }
 0x489   : > { %1137 = vmatpush.msrb.mxu3 %v1102_v38 }
 0x490   : > { %v958_v47 = vpop.permute.xlu1 %957 }
 0x491   : > { %1417 = vmatpush.xpose.msk.msrb.mxu1 %vm682_vm1, %v958_v47 }
 0x4fa   : > { %v896_v48 = vpop.xlane.xlu2 %895 }
 0x4fb   : > { %v897_v49 = vsub.f32 %v893_v45, %v896_v48  ;;  %v1114_v45 = vld [vmem:[%s2408_s12 + $0x38] sm:$0xff]  ;;  %v1112_v48 = vld [vmem:[%s2408_s12 + $0x28] sm:$0xff] }
 0x4fd   : > { %v898_v51 = vmul.f32 1.442695, %v897_v49 }
 0x4ff   : > { %1579 = vpow2.f32 %v898_v51 }
 0x505   : > { %v1580_v52 = vpop.eup %1579  ;;  %v837_v53 = vpop.f32.mrf.mxu3 }
 0x506   : > { %1412 = vmatmul.msk.f32.vlgmr.msra.gmra.mxu1 %vm682_vm1, %v837_v53  ;;  %v900_v54 = vsel %vm682_vm1, %v1580_v52, 0.0  ;;  %v1110_v53 = vld [vmem:[%s2408_s12 + $0x18] sm:$0xff] }
 0x507   : > { %901 = vadd.xlane.f32.xlu1 %v900_v54  ;;  %1158 = vmatpush.msra.mxu1 %v1114_v45 }
 0x509   : > { %1159 = vmatpush.msra.mxu1 %v1113_v46 }
 0x50b   : > { %1160 = vmatpush.msra.mxu1 %v1112_v48  ;;  %v1570_v48 = vld [vmem:[#allocation16] ss:$0 sm:$0xff] }
 0x50d   : > { %1161 = vmatpush.msra.mxu1 %v1111_v50 }
 0x50e   : > { %1418 = vmatmul.msk.f32.vlgmr.msrb.gmra.mxu1 %vm682_vm1, %v956_v55 }
 0x50f   : > { %1162 = vmatpush.msra.mxu1 %v1110_v53 }
 0x57a   : > { %v902_v0 = vpop.xlane.xlu1 %901 }
 0x583   : > { %v860_v56 = vpop.f32.mrf.mxu1 }
 0x584   : > { %v863_v18 = vadd.f32 %v860_v56, %v772_v16  ;;  %v1568_v16 = vld [vmem:[#allocation13] ss:$0 sm:$0xff] }
 0x58b   : > { %v980_v57 = vpop.f32.mrf.mxu1 }
 0x58c   : > { %v983_v58 = vmul.f32 0.35355338, %v980_v57 }
 0x58e   : > { %v984_v59 = vadd.f32 %v2259_v9, %v983_v58 }
 0x590   : > { %v985_v60 = vsel %vm682_vm1, %v984_v59, -inf }
 0x591   : > { %986 = vmax.xlane.f32.xlu0 %v985_v60 }
 0x5a5   : > { %905 = vrot.lane.b32.xlu0 %v2249_v7, %s1974_s17 }
 0x604   : > { %v987_v61 = vpop.xlane.xlu0 %986 }
 0x605   : > { %v988_v62 = vsub.f32 %v984_v59, %v987_v61  ;;  %v1565_v61 = vld [vmem:[#allocation9] ss:$0 sm:$0xff] }
 0x607   : > { %v989_v63 = vmul.f32 1.442695, %v988_v62 }
 0x609   : > { %1581 = vpow2.f32 %v989_v63 }
 0x60a   : > { %1583 = vrcp.f32 %v902_v0 }
 0x60f   : > { %v1582_v1 = vpop.eup %1581 }
 0x610   : > { %v991_v2 = vsel %vm682_vm1, %v1582_v1, 0.0  ;;  %v1584_v3 = vpop.eup %1583 }
 0x611   : > { %992 = vadd.xlane.f32.xlu2 %v991_v2  ;;  %v904_v5 = vmul.f32 %v1584_v3, %v1580_v52 }
 0x617   : > { %v906_v6 = vpop.permute.xlu0 %905 }
 0x618   : > { %926 = vmatpush.msra.mxu2 %v906_v6 }
 0x619   : > { %1415 = vmatmul.msk.f32.vlgmr.msra.gmra.mxu2 %vm682_vm1, %v904_v5  ;;  %v1566_v5 = vld [vmem:[#allocation10] ss:$0 sm:$0xff] }
 0x629   : > { %996 = vrot.lane.b32.xlu2 %v2249_v7, %s1975_s19  ;;  %v673_v7 = vld [vmem:[%s2376_s4 + $0x18] sm:$0xff] }
 0x62a   : > { %1040 = vmatpush.msrb.mxu2 %v673_v7 }
 0x684   : > { %v993_v9 = vpop.xlane.xlu2 %992 }
 0x685   : > { %1585 = vrcp.f32 %v993_v9 }
 0x686   : > { %1587 = vrcp.f32 %v1976_v24 }
 0x68b   : > { %v1586_v10 = vpop.eup %1585 }
 0x68c   : > { %v995_v11 = vmul.f32 %v1586_v10, %v1582_v1  ;;  %v997_v12 = vpop.permute.xlu2 %996  ;;  %v1588_v25 = vpop.eup %1587  ;;  %v1109_v10 = vld [vmem:[%s2408_s12 + $0x10] sm:$0xff] }
 0x68d   : > { %1017 = vmatpush.msrb.mxu0 %v997_v12  ;;  %v1053_v26 = vmul.f32 32.0, %v1588_v25  ;;  %vm1057_vm2 = vweird.f32 %v1588_v25  ;;  %1163 = vmatpush.msra.mxu1 %v1109_v10  ;;  %v1107_v12 = vld [vmem:[%s2408_s12] sm:$0xff] }
 0x68e   : > { %1419 = vmatmul.msk.f32.vlgmr.msrb.gmra.mxu0 %vm682_vm1, %v995_v11  ;;  %v1108_v11 = vld [vmem:[%s2408_s12 + $0x8] sm:$0xff] }
 0x68f   : > { %v1054_v27 = vsub.f32 1.0, %v1053_v26  ;;  %1164 = vmatpush.msra.mxu1 %v1108_v11 }
 0x691   : > { %v1055_v28 = vmul.f32 %v1588_v25, %v1054_v27  ;;  %1165 = vmatpush.msra.mxu1 %v1107_v12 }
 0x693   : > { %v1056_v29 = vadd.f32 %v1588_v25, %v1055_v28 }
 0x695   : > { %v2309_v30 = vsel %vm1057_vm2, %v1588_v25, %v1056_v29 }
 0x69c   : > { %v928_v13 = vpop.f32.mrf.mxu2 }
 0x69d   : > { %1416 = vmatmul.msk.f32.vlgmr.msra.gmra.mxu3 %vm682_vm1, %v928_v13  ;;  %v1567_v13 = vld [vmem:[#allocation12] ss:$0 sm:$0xff] }
 0x70b   : > { %v1019_v14 = vpop.f32.mrf.mxu0 }
 0x70c   : > { %1420 = vmatmul.msk.f32.vlgmr.msrb.gmra.mxu2 %vm682_vm1, %v1019_v14 }
 0x720   : > { %v951_v17 = vpop.f32.mrf.mxu3 }
 0x721   : > { %v954_v19 = vadd.f32 %v951_v17, %v863_v18 }
 0x78f   : > { %v1042_v20 = vpop.f32.mrf.mxu2 }
 0x790   : > { %v1045_v21 = vadd.f32 %v1042_v20, %v954_v19 }
 0x792   : > { %v1046_v22 = vadd.f32 %v1045_v21, %v2245_v4 }
 0x794   : > { %v1049_v23 = vsel %vm646_vm0, %v1046_v22, 0.0 }
 0x795   : > { %1050 = vadd.xlane.f32.xlu1 %v1049_v23 }
 0x808   : > { %v1051_v31 = vpop.xlane.xlu1 %1050 }
 0x809   : > { %v1059_v32 = vmul.f32 %v2309_v30, %v1051_v31 }
 0x80b   : > { %v1060_v33 = vsub.f32 %v1046_v22, %v1059_v32 }
 0x80d   : > { %v1061_v34 = vmul.f32 %v1060_v33, %v1060_v33  ;;  %v1081_v2 = vmul.f32 %v1565_v61, %v1060_v33 }
 0x80f   : > { %v1062_v4 = vsel %vm646_vm0, %v1061_v34, 0.0 }
 0x810   : > { %1063 = vadd.xlane.f32.xlu0 %v1062_v4 }
 0x883   : > { %v1064_v39 = vpop.xlane.xlu0 %1063 }
 0x884   : > { %v1065_v40 = vmul.f32 0.032258064, %v1064_v39 }
 0x886   : > { %1589 = vrsqrt.f32 %v1065_v40  ;;  %vm1073_vm3 = vcmp.eq.f32.partialorder %v1065_v40, inf  ;;  %v1076_v52 = vand.u32 2147483648, %v1065_v40  ;;  %vm1075_vm4 = vcmp.eq.f32.partialorder %v1065_v40, 0.0 }
 0x88c   : > { %v1590_v41 = vpop.eup %1589 }
 0x88d   : > { %v1067_v42 = vmul.f32 %v1590_v41, %v1065_v40 }
 0x88f   : > { %v1068_v43 = vmul.f32 %v1590_v41, %v1067_v42  ;;  %v1569_v42 = vld [vmem:[#allocation15] ss:$0 sm:$0xff] }
 0x891   : > { %v1069_v44 = vmul.f32 0.5, %v1068_v43 }
 0x893   : > { %v1070_v47 = vsub.f32 1.5, %v1069_v44 }
 0x895   : > { %v1071_v49 = vmul.f32 %v1590_v41, %v1070_v47 }
 0x897   : > { %v1072_v51 = vmul.f32 %v1071_v49, %v1065_v40 }
 0x899   : > { %v1074_v54 = vsel %vm1073_vm3, %v1065_v40, %v1072_v51 }
 0x89a   : > { %v1077_v55 = vsel %vm1075_vm4, %v1076_v52, %v1074_v54 }
 0x89b   : > { %v1082_v56 = vadd.f32 1e-06, %v1077_v55 }
 0x89d   : > { %1591 = vrcp.f32 %v1082_v56  ;;  %v1094_v60 = vand.u32 2147483648, %v1082_v56  ;;  %v1092_v63 = vand.u32 2147483647, %v1082_v56  ;;  %vm1088_vm6 = vweird.f32 %v1082_v56 }
 0x89f   : > { %v1095_v1 = vor.u32 1.1754944e-38, %v1094_v60  ;;  %vm1093_vm8 = vcmp.eq.f32.partialorder %v1092_v63, 8.507059e+37 }
 0x8a3   : > { %v1592_v57 = vpop.eup %1591 }
 0x8a4   : > { %v1084_v58 = vmul.f32 %v1592_v57, %v1082_v56  ;;  %vm1089_vm5 = vweird.f32 %v1592_v57 }
 0x8a5   : > { %vm1090_vm7 = vmor %vm1088_vm6, %vm1089_vm5 }
 0x8a6   : > { %v1085_v59 = vsub.f32 1.0, %v1084_v58 }
 0x8a8   : > { %v1086_v62 = vmul.f32 %v1592_v57, %v1085_v59 }
 0x8aa   : > { %v1087_v0 = vadd.f32 %v1592_v57, %v1086_v62 }
 0x8ac   : > { %v1091_v3 = vsel %vm1090_vm7, %v1592_v57, %v1087_v0 }
 0x8ad   : > { %v1096_v6 = vsel %vm1093_vm8, %v1095_v1, %v1091_v3 }
 0x8ae   : > { %v1097_v8 = vmul.f32 %v1096_v6, %v1081_v2 }
 0x8b0   : > { %v1101_v9 = vadd.f32 %v1566_v5, %v1097_v8 }
 0x8b2   : > { %1421 = vmatmul.msk.f32.vlgmr.msrb.gmra.mxu3 %vm646_vm0, %v1101_v9 }
 0x935   : > { %v1139_v7 = vpop.f32.mrf.mxu3 }
 0x936   : > { %v1140_v14 = vadd.f32 %v1567_v13, %v1139_v7 }
 0x938   : > { %v1142_v15 = vmax.f32 %v1140_v14, 0.0 }
 0x93a   : > { %1422 = vmatmul.msk.f32.vlgmr.msra.gmra.mxu1 %vm1146_vm9, %v1142_v15 }
 0x9b7   : > { %v1167_v17 = vpop.f32.mrf.mxu1 }
 0x9b8   : > { %v1168_v18 = vadd.f32 %v1568_v16, %v1167_v17 }
 0x9ba   : > { %v1170_v19 = vadd.f32 %v1168_v18, %v1101_v9 }
 0x9bc   : > { %v1173_v20 = vsel %vm646_vm0, %v1170_v19, 0.0 }
 0x9bd   : > { %1174 = vadd.xlane.f32.xlu1 %v1173_v20 }
 0xa30   : > { %v1175_v21 = vpop.xlane.xlu1 %1174 }
 0xa31   : > { %v1176_v22 = vmul.f32 %v1175_v21, %v2309_v30 }
 0xa33   : > { %v1177_v23 = vsub.f32 %v1170_v19, %v1176_v22 }
 0xa35   : > { %v1178_v24 = vmul.f32 %v1177_v23, %v1177_v23  ;;  %v1198_v47 = vmul.f32 %v1569_v42, %v1177_v23 }
 0xa37   : > { %v1179_v25 = vsel %vm646_vm0, %v1178_v24, 0.0 }
 0xa38   : > { %1180 = vadd.xlane.f32.xlu2 %v1179_v25 }
 0xaab   : > { %v1181_v26 = vpop.xlane.xlu2 %1180 }
 0xaac   : > { %v1182_v27 = vmul.f32 0.032258064, %v1181_v26 }
 0xaae   : > { %1593 = vrsqrt.f32 %v1182_v27  ;;  %vm1190_vm10 = vcmp.eq.f32.partialorder %v1182_v27, inf  ;;  %v1193_v35 = vand.u32 2147483648, %v1182_v27  ;;  %vm1192_vm11 = vcmp.eq.f32.partialorder %v1182_v27, 0.0 }
 0xab4   : > { %v1594_v28 = vpop.eup %1593 }
 0xab5   : > { %v1184_v29 = vmul.f32 %v1594_v28, %v1182_v27 }
 0xab7   : > { %v1185_v31 = vmul.f32 %v1594_v28, %v1184_v29 }
 0xab9   : > { %v1186_v32 = vmul.f32 0.5, %v1185_v31 }
 0xabb   : > { %v1187_v33 = vsub.f32 1.5, %v1186_v32 }
 0xabd   : > { %v1188_v34 = vmul.f32 %v1594_v28, %v1187_v33 }
 0xabf   : > { %v1189_v4 = vmul.f32 %v1188_v34, %v1182_v27 }
 0xac1   : > { %v1191_v30 = vsel %vm1190_vm10, %v1182_v27, %v1189_v4 }
 0xac2   : > { %v1194_v36 = vsel %vm1192_vm11, %v1193_v35, %v1191_v30 }
 0xac3   : > { %v1199_v37 = vadd.f32 1e-06, %v1194_v36 }
 0xac5   : > { %1595 = vrcp.f32 %v1199_v37  ;;  %v1211_v41 = vand.u32 2147483648, %v1199_v37  ;;  %v1209_v44 = vand.u32 2147483647, %v1199_v37  ;;  %vm1205_vm13 = vweird.f32 %v1199_v37 }
 0xac7   : > { %v1212_v46 = vor.u32 1.1754944e-38, %v1211_v41  ;;  %vm1210_vm15 = vcmp.eq.f32.partialorder %v1209_v44, 8.507059e+37 }
 0xacb   : > { %v1596_v38 = vpop.eup %1595 }
 0xacc   : > { %v1201_v39 = vmul.f32 %v1596_v38, %v1199_v37  ;;  %vm1206_vm12 = vweird.f32 %v1596_v38 }
 0xacd   : > { %vm1207_vm14 = vmor %vm1205_vm13, %vm1206_vm12 }
 0xace   : > { %v1202_v40 = vsub.f32 1.0, %v1201_v39 }
 0xad0   : > { %v1203_v43 = vmul.f32 %v1596_v38, %v1202_v40 }
 0xad2   : > { %v1204_v45 = vadd.f32 %v1596_v38, %v1203_v43 }
 0xad4   : > { %v1208_v49 = vsel %vm1207_vm14, %v1596_v38, %v1204_v45 }
 0xad5   : > { %v1213_v50 = vsel %vm1210_vm15, %v1212_v46, %v1208_v49 }
 0xad6   : > { %v1214_v51 = vmul.f32 %v1213_v50, %v1198_v47 }
 0xad8   : > { %v1218_v52 = vadd.f32 %v1570_v48, %v1214_v51 }
 0xada   : > { %1219 = vst.msk [vmem:[%s635_s23] sm:$0xff] %vm646_vm0, %v1218_v52 }
 0xadb PF: > { %p31_p3 = scmp.ge.s32.totalorder %s2131_s14, 4   ;;  %s2410_s29 = smov %s1947_s30 }
 0xadc   : > { %s2411_s30 = smov %s1951_s15  ;;  %s2412_s15 = smov %s2143_s7 }
 0xadd   : > { %s2413_s16 = smov %s2131_s14  ;;  %33 = sbr.rel (!%p31_p3) target bundleno = 19 (0x13), region = 161 }
 0xae2   :  { %1239 = vsyncpa [#allocation3], 1 }
 0xae3   :  { %1241 = vsyncpa [#allocation3 + $0x1], 1 }
 0xae4   :  { %1242 = vsyncpa [#allocation5], 1 }
 0xae5   :  { %1244 = vsyncpa [#allocation5 + $0x1], 1 }
 0xae6   :  { %1245 = vsyncpa [#allocation8], 1 }
 0xae7   :  { %1246 = vsyncpa [#allocation11], 1 }
 0xae8   :  { %1247 = vsyncpa [#allocation14], 1 }
 0xae9   :  { %1248 = vsyncpa [#allocation17], 1 }

// kernel: cme_forward.5
= control target key start
LH: loop header
LB: loop body
LE: loop exit
PB: predicated region body
PF: predicated region fallthrough
CT: control target
= control target key end

     0   :  { %s2619_s0 = inlined_call_operand.vmem [shape: f32[2,12,32], index: 0, kind: input, shape index: {}]   ;;  %s2620_s1 = inlined_call_operand.hbm [shape: f32[2,1,12], index: 1, kind: input, shape index: {}]   ;;  %s2621_s2 = inlined_call_operand.vmem [shape: f32[32,96], index: 2, kind: input, shape index: {}]   ;;  %s2622_s3 = inlined_call_operand.vmem [shape: f32[1,96], index: 3, kind: input, shape index: {}]   ;;  %s2623_s4 = inlined_call_operand.vmem [shape: f32[32,32], index: 4, kind: input, shape index: {}]   ;;  %s2624_s5 = inlined_call_operand.hbm [shape: f32[1,32], index: 5, kind: input, shape index: {}]   ;;  %s2625_s6 = inlined_call_operand.hbm [shape: f32[1,32], index: 6, kind: input, shape index: {}]   ;;  %s2626_s7 = inlined_call_operand.hbm [shape: f32[1,32], index: 7, kind: input, shape index: {}]   ;;  %s2627_s8 = inlined_call_operand.vmem [shape: f32[32,64], index: 8, kind: input, shape index: {}]   ;;  %s2628_s9 = inlined_call_operand.hbm [shape: f32[1,64], index: 9, kind: input, shape index: {}]   ;;  %s2629_s10 = inlined_call_operand.vmem [shape: f32[64,32], index: 10, kind: input, shape index: {}]   ;;  %s2630_s11 = inlined_call_operand.hbm [shape: f32[1,32], index: 11, kind: input, shape index: {}]   ;;  %s2631_s12 = inlined_call_operand.hbm [shape: f32[1,32], index: 12, kind: input, shape index: {}]   ;;  %s2632_s13 = inlined_call_operand.hbm [shape: f32[1,32], index: 13, kind: input, shape index: {}]   ;;  %s2633_s14 = inlined_call_operand.vmem [shape: f32[2,12,32], index: 14, kind: output, shape index: {}]  }
   0x1   :  { %2635 = sst [smem:[#allocation20_spill]] %s2624_s5 }
   0x2   :  { %2636 = sst [smem:[#allocation21_spill]] %s2626_s7 }
   0x3   :  { %2637 = sst [smem:[#allocation22_spill]] %s2629_s10 }
   0x4   :  { %2638 = sst [smem:[#allocation23_spill]] %s2630_s11 }
   0x5   :  { %2639 = sst [smem:[#allocation24_spill]] %s2633_s14 }
   0x6   :  { %19 = vsyncpa [#allocation3], 0 }
   0x7   :  { %21 = vsyncpa [#allocation3 + $0x1], 0 }
   0x8   :  { %22 = vsyncpa [#allocation5], 0 }
   0x9   :  { %23 = vsyncpa [#allocation8], 0 }
   0xa   :  { %24 = vsyncpa [#allocation11], 0 }
   0xb   :  { %25 = vsyncpa [#allocation14], 0  ;;  %s2240_s29 = smov 0   ;;  %s2242_s30 = smov 0  }
   0xc   :  { %s2244_s15 = smov 0   ;;  %s2246_s16 = smov 0  }
   0xd LB: > { %s2640_s5 = sld [smem:[#allocation20_spill]]  ;;  %s2264_s20 = sadd.s32 4294967295, %s2144_s16   ;;  %s2144_s16 = sphi %s2246_s16, %s2652_s16   ;;  %s2140_s15 = sphi %s2244_s15, %s2651_s15   ;;  %s2136_s30 = sphi %s2242_s30, %s2650_s30   ;;  %s2132_s29 = sphi %s2240_s29, %s2649_s29  }
   0xe   : > { %p1602_p0 = scmp.ge.s32.totalorder %s2144_s16, 1  ;;  %p78_p1 = scmp.eq.s32.totalorder %s2264_s20, 0 }
   0xf   : > { %p366_p2 = scmp.lt.s32.totalorder %s2144_s16, 3  ;;  %s2146_s22 = smov [#allocation4]  }
  0x10   : > { %s389_s23 = sshll.u32 %s2146_s22, 4  ;;  %s2642_s7 = sld [smem:[#allocation21_spill]]  ;;  %s390_s23 = int_to_ptr.vmem [resolvable:$true] %s389_s23 }
  0x11   : > { %p2269_p3 = pnand %p1602_p0, %p366_p2  ;;  %s2147_s28 = smov [#allocation7]  }
  0x12   : > { %s413_s17 = sshll.u32 %s2147_s28, 4  ;;  %s2644_s11 = sld [smem:[#allocation23_spill]]  ;;  %s414_s17 = int_to_ptr.vmem [resolvable:$true] %s413_s17 }
  0x13   : > { %s387_s19 = sshll.u32 %s2640_s5, 4  ;;  %p1703_p4 = pneg %p2269_p3  ;;  %s388_s19 = int_to_ptr.hbm [resolvable:$true] %s387_s19 }
  0x14   : > { %s2148_s14 = smov [#allocation10]   ;;  %s2149_s28 = smov [#allocation6]  }
  0x15   : > { %p2280_p5 = pnand %p1703_p4, %p78_p1  ;;  %s443_s10 = sshll.u32 %s2148_s14, 4  ;;  %s444_s10 = int_to_ptr.vmem [resolvable:$true] %s443_s10 }
  0x16   : > { %s411_s26 = sshll.u32 %s2642_s7, 4  ;;  %s399_s7 = sshll.u32 %s2625_s6, 4  ;;  %s412_s26 = int_to_ptr.hbm [resolvable:$true] %s411_s26  ;;  %s400_s7 = int_to_ptr.hbm [resolvable:$true] %s399_s7 }
  0x17   : > { %1706 = dma.hbm_to_vmem [thread:$0]  (!%p2280_p5), %s388_s19, 16, %s390_s23, [#allocation5]  }
  0x18   : > { %s441_s5 = sshll.u32 %s2644_s11, 4  ;;  %s401_s18 = sshll.u32 %s2149_s28, 4  ;;  %s442_s5 = int_to_ptr.hbm [resolvable:$true] %s441_s5  ;;  %s402_s18 = int_to_ptr.vmem [resolvable:$true] %s401_s18 }
  0x19   : > { %1712 = dma.hbm_to_vmem [thread:$0]  (!%p2280_p5), %s412_s26, 16, %s414_s17, [#allocation8]  }
  0x1a   : > { %1718 = dma.hbm_to_vmem [thread:$0]  (!%p2280_p5), %s442_s5, 16, %s444_s10, [#allocation11]  }
  0x1b   : > { %s426_s19 = sshll.u32 %s2628_s9, 4  ;;  %s453_s14 = sshll.u32 %s2631_s12, 4  ;;  %s427_s19 = int_to_ptr.hbm [resolvable:$true] %s426_s19  ;;  %s454_s14 = int_to_ptr.hbm [resolvable:$true] %s453_s14 }
  0x1c   : > { %1709 = dma.hbm_to_vmem [thread:$0]  (!%p2280_p5), %s400_s7, 16, %s402_s18, [#allocation5]  }
  0x1d   : > { %s2150_s17 = smov [#allocation9]   ;;  %s2151_s10 = smov [#allocation12]  }
  0x1e   : > { %s428_s5 = sshll.u32 %s2150_s17, 4  ;;  %s455_s7 = sshll.u32 %s2151_s10, 4  ;;  %s429_s5 = int_to_ptr.vmem [resolvable:$true] %s428_s5  ;;  %s456_s7 = int_to_ptr.vmem [resolvable:$true] %s455_s7 }
  0x1f   : > { %1715 = dma.hbm_to_vmem [thread:$0]  (!%p2280_p5), %s427_s19, 16, %s429_s5, [#allocation8]  }
  0x20   : > { %s465_s25 = sshll.u32 %s2632_s13, 4  ;;  %s2152_s28 = smov [#allocation13]   ;;  %s466_s25 = int_to_ptr.hbm [resolvable:$true] %s465_s25 }
  0x21   : > { %1721 = dma.hbm_to_vmem [thread:$0]  (!%p2280_p5), %s454_s14, 16, %s456_s7, [#allocation11]  }
  0x22   : > { %s467_s18 = sshll.u32 %s2152_s28, 4  ;;  %s2314_s22 = sadd.s32 1, %s2144_s16   ;;  %s468_s18 = int_to_ptr.vmem [resolvable:$true] %s467_s18 }
  0x23   : > { %1724 = dma.hbm_to_vmem [thread:$0]  (!%p2280_p5), %s466_s25, 16, %s468_s18, [#allocation14]  }
  0x24   : > { %s61_s19 = ssub.s32 %s2144_s16, %s2314_s22  ;;  %s64_s23 = sadd.s32 1, %s2140_s15 }
  0x25   : > { %p62_p6 = scmp.eq.s32.totalorder %s61_s19, 0  ;;  %p71_p7 = scmp.ne.s32.totalorder %s2140_s15, %s2136_s30 }
  0x26   : > { %p72_p8 = scmp.eq.s32.totalorder %s2144_s16, 0  ;;  %p77_p9 = scmp.ne.s32.totalorder %s2136_s30, %s2132_s29 }
  0x27   : > { %s2325_s26 = scalar_select %p62_p6, %s2140_s15, %s64_s23  }
  0x28   : > { %p73_p10 = por %p72_p8, %p71_p7  ;;  %p2329_p11 = por %p78_p1, %p77_p9 }
  0x29   : > { %p1736_p12 = scmp.lt.s32.totalorder %s2144_s16, 2  ;;  %s486_s27 = sand.u32 1, %s2140_s15  }
  0x2a   : > { %s492_s10 = scalar_lea.hbm %s2620_s1, %s2144_s16  ;;  %s489_s7 = scalar_lea.vmem [#allocation2], %s486_s27 }
  0x2b   : > { %s496_s11 = sshll.u32 %s489_s7, 4  ;;  %s494_s24 = sshll.u32 %s492_s10, 4  ;;  %s497_s11 = int_to_ptr.vmem [resolvable:$true] %s496_s11  ;;  %s495_s24 = int_to_ptr.hbm [resolvable:$true] %s494_s24 }
  0x2c   : > { %p2339_p13 = pnand %p1736_p12, %p73_p10  ;;  %s487_s25 = scalar_lea.sflag [#allocation3], %s486_s27 }
  0x2d   : > { %s2064_s28 = sshra.s32 %s495_s24, 4  ;;  %s2071_s23 = scalar_lea.hbm %s2620_s1, 2  ;;  %s2065_s28 = int_to_ptr.hbm [resolvable:$true] %s2064_s28 }
  0x2e   : > { %s2066_s18 = scalar_lea.hbm %s2065_s28, 1  ;;  %p2068_p2 = pneg %p2339_p13 }
  0x2f   : > { %p2067_p0 = scmp.ne.s32.totalorder %s2065_s28, %s2066_s18  ;;  %p2072_p6 = scmp.lt.s32.totalorder %s2065_s28, %s2620_s1 }
  0x30   : > { %p2073_p7 = scmp.lt.s32.totalorder %s2071_s23, %s2066_s18 }
  0x31   : > { %p2069_p4 = pnand %p2068_p2, %p2067_p0 }
  0x32   : > { %p2074_p8 = por %p2073_p7, %p2072_p6 }
  0x33   : > { %p2070_p5 = pneg %p2069_p4 }
  0x35   : > { %p2075_p9 = pnand %p2074_p8, %p2070_p5 }
  0x37   : > { %2078 = shalt.err (!%p2075_p9)
}
  0x38   : > { %1728 = dma.hbm_to_vmem [thread:$0]  (!%p2339_p13), %s495_s24, 16, %s497_s11, %s487_s25  }
  0x39   : > { %505 = sbr.rel (%p2269_p3) target bundleno = 2900 (0xb54), region = 76  ;;  %s507_s27 = sand.u32 (!%p2269_p3), 1, %s2136_s30  }
  0x3a   : > { %s508_s10 = scalar_lea.sflag (!%p2269_p3), [#allocation3], %s507_s27  ;;  %s2356_s7 = scalar_lea.vmem (!%p2269_p3), [#allocation2], %s507_s27 }
  0x3e   : > { %2111 = dma.done.wait (%p2329_p11), %s508_s10, 16  }
  0x3f   : > { %2113 = vsyncadd (%p2329_p11), %s508_s10, 4294967280 }
  0x40   : > { %2115 = dma.done.wait (%p78_p1), [#allocation5], 32  }
  0x41   : > { %2117 = vsyncadd (%p78_p1), [#allocation5], 4294967264 }
  0x42   : > { %2119 = dma.done.wait (%p78_p1), [#allocation8], 32  }
  0x43   : > { %2121 = vsyncadd (%p78_p1), [#allocation8], 4294967264 }
  0x44   : > { %2123 = dma.done.wait (%p78_p1), [#allocation11], 32  }
  0x45   : > { %2125 = vsyncadd (%p78_p1), [#allocation11], 4294967264 }
  0x46   : > { %2127 = dma.done.wait (%p78_p1), [#allocation14], 16  }
  0x47   : > { %2129 = vsyncadd (%p78_p1), [#allocation14], 4294967280  ;;  %p595_p3 = scmp.lt.s32.totalorder %s2264_s20, 1  ;;  %v611_v0 = vld [vmem:[%s2621_s2 + $0x18] sm:$0xff]  ;;  %v610_v1 = vld [vmem:[%s2621_s2 + $0x10] sm:$0xff]  ;;  %vm616_vm0 = vcmask 261120  }
  0x48   : > { %1669 = vmatpush.msra.mxu1 %v611_v0  ;;  %v609_v2 = vld [vmem:[%s2621_s2 + $0x8] sm:$0xff]  ;;  %635 = vmatpush.msra.mxu0 %v611_v0  ;;  %v608_v3 = vld [vmem:[%s2621_s2] sm:$0xff]  ;;  %s2153_s10 = smov 96   ;;  %vm661_vm1 = vcmask 64512   ;;  %vm700_vm2 = vcmask 97280   ;;  %vm704_vm3 = vcmask 93184  }
  0x49   : > { %s2654_s20 = smov (!%p595_p3, %s2264_s20), 1  ;;  %v1795_v6 = vld [vmem:[%s2622_s3] ss:$0 sm:$0xff]  ;;  %s2154_s14 = smov 64   ;;  %vm735_vm4 = vcmask 1043456   ;;  %v647_v61 = vld [vmem:[%s2623_s4 + $0x8] sm:$0xff] }
  0x4a   : > { %s1667_s21 = sshll.u32 %s2654_s20, 4  ;;  %1670 = vmatpush.msra.mxu1 %v610_v1  ;;  %636 = vmatpush.msra.mxu0 %v610_v1  ;;  %v2424_v13 = vld [vmem:[%s2356_s7] ss:$0 sm:$0xff]  ;;  %s2155_s7 = smov 120   ;;  %vm1195_vm5 = vcmask 257024  }
  0x4b   : > { %s599_s17 = scalar_lea.vmem %s2619_s0, %s1667_s21  ;;  %s2156_s11 = smov 56   ;;  %v646_v32 = vld [vmem:[%s2623_s4] sm:$0xff] }
  0x4c   : > { %1671 = vmatpush.msra.mxu1 %v609_v2  ;;  %v2400_v4 = vld [vmem:[%s599_s17 + $0x8] sm:$0xf]  ;;  %637 = vmatpush.msra.mxu0 %v609_v2  ;;  %v2402_v5 = vld [vmem:[%s599_s17] sm:$0xff]  ;;  %s2157_s24 = smov 88   ;;  %s2158_s28 = smov 80  }
  0x4d   : > { %782 = vmatpush.msra.mxu3 %v646_v32  ;;  %s2159_s18 = smov 112   ;;  %s2160_s16 = smov 72  }
  0x4e   : > { %1672 = vmatpush.msra.mxu1 %v608_v3  ;;  %638 = vmatpush.msra.mxu0 %v608_v3  ;;  %s2161_s19 = smov 104   ;;  %s2162_s5 = smov 48  }
  0x4f   : > { %1624 = vmatmul.msk.f32.vlgmr.msra.gmra.mxu1 %vm616_vm0, %v2400_v4  ;;  %1623 = vmatmul.msk.f32.vlgmr.msra.gmra.mxu0 %vm616_vm0, %v2402_v5  ;;  %s2163_s27 = smov 40  }
  0x50   : > { %914 = vmatpush.msrb.mxu0 %v647_v61 }
  0xcc   : > { %v643_v7 = vpop.f32.mrf.mxu1  ;;  %v640_v9 = vpop.f32.mrf.mxu0 }
  0xcd   : > { %v2411_v8 = vadd.f32 %v1795_v6, %v643_v7  ;;  %v2414_v10 = vadd.f32 %v1795_v6, %v640_v9 }
  0xcf   : > { %659 = vrot.lane.b32.xlu0 %v2411_v8, %s2153_s10 }
  0xd7   : > { %657 = vrot.lane.b32.xlu0 %v2414_v10, %s2153_s10 }
 0x141   : > { %v660_v11 = vpop.permute.xlu0 %659 }
 0x142   : > { %1625 = vmatpush.xpose.msk.msrb.mxu1 %vm661_vm1, %v660_v11 }
 0x149   : > { %v658_v12 = vpop.permute.xlu0 %657 }
 0x14a   : > { %1626 = vmatpush.xpose.msk.msrb.mxu1 %vm661_vm1, %v658_v12 }
 0x14d   : > { %1627 = vmatmul.msk.f32.vlgmr.msrb.gmra.mxu1 %vm661_vm1, %v2414_v10 }
 0x155   : > { %1628 = vmatmul.msk.f32.gmra.mxu1 %vm661_vm1, %v2411_v8 }
 0x1ca   : > { %v687_v14 = vpop.f32.mrf.mxu1 }
 0x1cb   : > { %v693_v15 = vmul.f32 0.35355338, %v687_v14 }
 0x1cd   : > { %v698_v16 = vadd.f32 %v2424_v13, %v693_v15 }
 0x1cf   : > { %v701_v17 = vsel %vm700_vm2, %v698_v16, -inf }
 0x1d0   : > { %702 = vmax.xlane.f32.xlu1 %v701_v17 }
 0x1d2   : > { %v690_v18 = vpop.f32.mrf.mxu1 }
 0x1d3   : > { %v694_v19 = vmul.f32 0.35355338, %v690_v18 }
 0x1d5   : > { %v699_v20 = vadd.f32 %v2424_v13, %v694_v19 }
 0x1d7   : > { %v705_v21 = vsel %vm704_vm3, %v699_v20, -inf }
 0x1d8   : > { %706 = vmax.xlane.f32.xlu1 %v705_v21 }
 0x1f1   : > { %724 = vrot.lane.b32.xlu1 %v2414_v10, %s2154_s14 }
 0x1f9   : > { %792 = vrot.lane.b32.xlu1 %v2414_v10, %s2155_s7 }
 0x243   : > { %v703_v22 = vpop.xlane.xlu1 %702 }
 0x244   : > { %v708_v23 = vsub.f32 %v698_v16, %v703_v22 }
 0x246   : > { %v710_v24 = vmul.f32 1.442695, %v708_v23 }
 0x248   : > { %1804 = vpow2.f32 %v710_v24 }
 0x24b   : > { %v707_v25 = vpop.xlane.xlu1 %706 }
 0x24c   : > { %v709_v26 = vsub.f32 %v699_v20, %v707_v25 }
 0x24e   : > { %v1805_v27 = vpop.eup %1804  ;;  %v712_v28 = vmul.f32 1.442695, %v709_v26 }
 0x24f   : > { %v714_v29 = vsel %vm700_vm2, %v1805_v27, 0.0 }
 0x250   : > { %1806 = vpow2.f32 %v712_v28  ;;  %715 = vadd.xlane.f32.xlu2 %v714_v29 }
 0x256   : > { %v1807_v30 = vpop.eup %1806 }
 0x257   : > { %v717_v31 = vsel %vm704_vm3, %v1807_v30, 0.0 }
 0x258   : > { %718 = vadd.xlane.f32.xlu0 %v717_v31 }
 0x263   : > { %v725_v37 = vpop.permute.xlu1 %724 }
 0x268   : > { %726 = vrot.lane.b32.xlu2 %v2411_v8, %s2154_s14 }
 0x26b   : > { %v793_v46 = vpop.permute.xlu1 %792 }
 0x26c   : > { %859 = vrot.lane.b32.xlu0 %v2411_v8, %s2156_s11 }
 0x270   : > { %798 = vrot.lane.b32.xlu2 %v2411_v8, %s2157_s24 }
 0x278   : > { %796 = vrot.lane.b32.xlu2 %v2414_v10, %s2157_s24 }
 0x280   : > { %794 = vrot.lane.b32.xlu2 %v2411_v8, %s2155_s7  ;;  %s2648_s7 = sld [smem:[#allocation24_spill]] }
 0x2c3   : > { %v716_v33 = vpop.xlane.xlu2 %715 }
 0x2c4   : > { %1808 = vrcp.f32 %v716_v33 }
 0x2ca   : > { %v1809_v34 = vpop.eup %1808 }
 0x2cb   : > { %v727_v35 = vpop.permute.xlu2 %726  ;;  %v719_v36 = vpop.xlane.xlu0 %718  ;;  %v722_v38 = vmul.f32 %v1809_v34, %v1805_v27 }
 0x2cc   : > { %1810 = vrcp.f32 %v719_v36  ;;  %1629 = vmatpush.msk.msra.mxu2 %vm735_vm4, %v727_v35 }
 0x2ce   : > { %753 = vmatpush.msra.mxu2 %v725_v37 }
 0x2cf   : > { %1630 = vmatmul.msk.f32.vlgmr.msra.gmra.mxu2 %vm700_vm2, %v722_v38 }
 0x2d2   : > { %v1811_v39 = vpop.eup %1810 }
 0x2d3   : > { %v799_v40 = vpop.permute.xlu2 %798  ;;  %v723_v41 = vmul.f32 %v1811_v39, %v1807_v30 }
 0x2d4   : > { %1634 = vmatpush.xpose.msk.msrb.mxu3 %vm661_vm1, %v799_v40  ;;  %v1797_v40 = vld [vmem:[#allocation4] ss:$0 sm:$0xff] }
 0x2d7   : > { %1631 = vmatmul.msk.f32.gmra.mxu2 %vm700_vm2, %v723_v41 }
 0x2db   : > { %v797_v42 = vpop.permute.xlu2 %796 }
 0x2dc   : > { %1635 = vmatpush.xpose.msk.msrb.mxu3 %vm661_vm1, %v797_v42 }
 0x2de   : > { %v860_v43 = vpop.permute.xlu0 %859 }
 0x2df   : > { %1638 = vmatpush.msk.msrb.mxu2 %vm735_vm4, %v860_v43 }
 0x2e3   : > { %v795_v47 = vpop.permute.xlu2 %794 }
 0x352   : > { %v755_v44 = vpop.f32.mrf.mxu2 }
 0x353   : > { %1632 = vmatmul.msk.f32.vlgmr.msra.gmra.mxu3 %vm661_vm1, %v755_v44 }
 0x35a   : > { %v758_v45 = vpop.f32.mrf.mxu2 }
 0x35b   : > { %1633 = vmatmul.msk.f32.gmra.mxu3 %vm661_vm1, %v758_v45 }
 0x363   : > { %1636 = vmatmul.msk.f32.vlgmr.msrb.gmra.mxu3 %vm661_vm1, %v793_v46 }
 0x36b   : > { %1637 = vmatmul.msk.f32.gmra.mxu3 %vm661_vm1, %v795_v47 }
 0x3d6   : > { %v2453_v48 = vpop.f32.mrf.mxu3 }
 0x3d7   : > { %v790_v41 = vadd.f32 %v1797_v40, %v2453_v48 }
 0x3de   : > { %v2455_v49 = vpop.f32.mrf.mxu3 }
 0x3df   : > { %v791_v44 = vadd.f32 %v1797_v40, %v2455_v49 }
 0x3e6   : > { %v825_v50 = vpop.f32.mrf.mxu3 }
 0x3e7   : > { %v831_v51 = vmul.f32 0.35355338, %v825_v50 }
 0x3e9   : > { %v833_v52 = vadd.f32 %v2424_v13, %v831_v51 }
 0x3eb   : > { %v835_v53 = vsel %vm700_vm2, %v833_v52, -inf }
 0x3ec   : > { %836 = vmax.xlane.f32.xlu1 %v835_v53 }
 0x3ee   : > { %v828_v54 = vpop.f32.mrf.mxu3 }
 0x3ef   : > { %v832_v55 = vmul.f32 0.35355338, %v828_v54 }
 0x3f1   : > { %v834_v56 = vadd.f32 %v2424_v13, %v832_v55 }
 0x3f3   : > { %v838_v57 = vsel %vm704_vm3, %v834_v56, -inf }
 0x3f4   : > { %839 = vmax.xlane.f32.xlu2 %v838_v57 }
 0x405   : > { %857 = vrot.lane.b32.xlu1 %v2414_v10, %s2156_s11  ;;  %s604_s11 = scalar_lea.vmem %s2648_s7, %s1667_s21 }
 0x40c   : > { %930 = vrot.lane.b32.xlu2 %v2411_v8, %s2158_s28 }
 0x40d   : > { %928 = vrot.lane.b32.xlu1 %v2414_v10, %s2158_s28 }
 0x414   : > { %924 = vrot.lane.b32.xlu2 %v2414_v10, %s2159_s18 }
 0x415   : > { %1062 = vrot.lane.b32.xlu1 %v2411_v8, %s2160_s16 }
 0x41c   : > { %926 = vrot.lane.b32.xlu2 %v2411_v8, %s2159_s18 }
 0x41d   : > { %1056 = vrot.lane.b32.xlu1 %v2414_v10, %s2161_s19 }
 0x424   : > { %1058 = vrot.lane.b32.xlu2 %v2411_v8, %s2161_s19 }
 0x45f   : > { %v837_v58 = vpop.xlane.xlu1 %836 }
 0x460   : > { %v841_v59 = vsub.f32 %v833_v52, %v837_v58 }
 0x462   : > { %v843_v60 = vmul.f32 1.442695, %v841_v59 }
 0x464   : > { %1812 = vpow2.f32 %v843_v60 }
 0x467   : > { %v840_v62 = vpop.xlane.xlu2 %839 }
 0x468   : > { %v842_v63 = vsub.f32 %v834_v56, %v840_v62 }
 0x46a   : > { %v1813_v0 = vpop.eup %1812  ;;  %v845_v1 = vmul.f32 1.442695, %v842_v63 }
 0x46b   : > { %v847_v2 = vsel %vm700_vm2, %v1813_v0, 0.0 }
 0x46c   : > { %1814 = vpow2.f32 %v845_v1  ;;  %848 = vadd.xlane.f32.xlu0 %v847_v2 }
 0x46f   : > { %v931_v3 = vpop.permute.xlu2 %930 }
 0x470   : > { %1643 = vmatpush.xpose.msk.msra.mxu1 %vm661_vm1, %v931_v3 }
 0x472   : > { %v1815_v6 = vpop.eup %1814 }
 0x473   : > { %v850_v7 = vsel %vm704_vm3, %v1815_v6, 0.0 }
 0x474   : > { %851 = vadd.xlane.f32.xlu0 %v850_v7 }
 0x477   : > { %v858_v9 = vpop.permute.xlu1 %857  ;;  %v925_v12 = vpop.permute.xlu2 %924 }
 0x478   : > { %885 = vmatpush.msrb.mxu2 %v858_v9 }
 0x47f   : > { %v929_v11 = vpop.permute.xlu1 %928  ;;  %v927_v15 = vpop.permute.xlu2 %926 }
 0x480   : > { %1644 = vmatpush.xpose.msk.msra.mxu1 %vm661_vm1, %v929_v11 }
 0x483   : > { %1645 = vmatmul.msk.f32.vlgmr.msra.gmra.mxu1 %vm661_vm1, %v925_v12 }
 0x487   : > { %v1063_v14 = vpop.permute.xlu1 %1062  ;;  %v1059_v38 = vpop.permute.xlu2 %1058 }
 0x488   : > { %1652 = vmatpush.xpose.msk.msra.mxu0 %vm661_vm1, %v1063_v14  ;;  %1060 = vrot.lane.b32.xlu0 %v2414_v10, %s2160_s16 }
 0x48b   : > { %1646 = vmatmul.msk.f32.gmra.mxu1 %vm661_vm1, %v927_v15 }
 0x48f   : > { %v1057_v32 = vpop.permute.xlu1 %1056 }
 0x4df   : > { %v849_v16 = vpop.xlane.xlu0 %848 }
 0x4e0   : > { %1816 = vrcp.f32 %v849_v16 }
 0x4e6   : > { %v1817_v17 = vpop.eup %1816 }
 0x4e7   : > { %v852_v18 = vpop.xlane.xlu0 %851  ;;  %v855_v19 = vmul.f32 %v1817_v17, %v1813_v0 }
 0x4e8   : > { %1818 = vrcp.f32 %v852_v18 }
 0x4e9   : > { %1639 = vmatmul.msk.f32.vlgmr.msrb.gmra.mxu2 %vm700_vm2, %v855_v19 }
 0x4ee   : > { %v1819_v20 = vpop.eup %1818 }
 0x4ef   : > { %v856_v21 = vmul.f32 %v1819_v20, %v1815_v6 }
 0x4f1   : > { %1640 = vmatmul.msk.f32.gmra.mxu2 %vm700_vm2, %v856_v21 }
 0x4fa   : > { %v1061_v22 = vpop.permute.xlu0 %1060 }
 0x4fb   : > { %1653 = vmatpush.xpose.msk.msra.mxu0 %vm661_vm1, %v1061_v22  ;;  %v648_v22 = vld [vmem:[%s2623_s4 + $0x10] sm:$0xff] }
 0x4fc   : > { %1046 = vmatpush.msra.mxu2 %v648_v22 }
 0x500   : > { %v957_v23 = vpop.f32.mrf.mxu1 }
 0x501   : > { %v963_v24 = vmul.f32 0.35355338, %v957_v23 }
 0x503   : > { %v965_v25 = vadd.f32 %v2424_v13, %v963_v24 }
 0x505   : > { %v967_v26 = vsel %vm700_vm2, %v965_v25, -inf }
 0x506   : > { %968 = vmax.xlane.f32.xlu1 %v967_v26 }
 0x508   : > { %v960_v27 = vpop.f32.mrf.mxu1 }
 0x509   : > { %v964_v28 = vmul.f32 0.35355338, %v960_v27 }
 0x50b   : > { %v966_v29 = vadd.f32 %v2424_v13, %v964_v28 }
 0x50d   : > { %v970_v30 = vsel %vm704_vm3, %v966_v29, -inf }
 0x50e   : > { %971 = vmax.xlane.f32.xlu2 %v970_v30 }
 0x56c   : > { %v887_v31 = vpop.f32.mrf.mxu2 }
 0x56d   : > { %1641 = vmatmul.msk.f32.vlgmr.msrb.gmra.mxu0 %vm661_vm1, %v887_v31 }
 0x574   : > { %v890_v33 = vpop.f32.mrf.mxu2 }
 0x575   : > { %1642 = vmatmul.msk.f32.gmra.mxu0 %vm661_vm1, %v890_v33 }
 0x579   : > { %v969_v34 = vpop.xlane.xlu1 %968 }
 0x57a   : > { %v973_v35 = vsub.f32 %v965_v25, %v969_v34  ;;  %v649_v25 = vld [vmem:[%s2623_s4 + $0x18] sm:$0xff] }
 0x57c   : > { %v975_v36 = vmul.f32 1.442695, %v973_v35 }
 0x57d   : > { %1654 = vmatmul.msk.f32.vlgmr.msra.gmra.mxu0 %vm661_vm1, %v1057_v32 }
 0x57e   : > { %1820 = vpow2.f32 %v975_v36 }
 0x581   : > { %v972_v50 = vpop.xlane.xlu2 %971 }
 0x582   : > { %v974_v53 = vsub.f32 %v966_v29, %v972_v50 }
 0x584   : > { %v1821_v37 = vpop.eup %1820  ;;  %v977_v55 = vmul.f32 1.442695, %v974_v53 }
 0x585   : > { %1655 = vmatmul.msk.f32.gmra.mxu0 %vm661_vm1, %v1059_v38  ;;  %v979_v39 = vsel %vm700_vm2, %v1821_v37, 0.0 }
 0x586   : > { %980 = vadd.xlane.f32.xlu2 %v979_v39  ;;  %1822 = vpow2.f32 %v977_v55 }
 0x58c   : > { %v1823_v58 = vpop.eup %1822 }
 0x58d   : > { %v982_v59 = vsel %vm704_vm3, %v1823_v58, 0.0 }
 0x5ea   : > { %v916_v42 = vpop.f32.mrf.mxu0 }
 0x5eb   : > { %v2496_v43 = vadd.f32 %v916_v42, %v790_v41  ;;  %v2164_v42 = vmov 32.0  }
 0x5f2   : > { %v919_v45 = vpop.f32.mrf.mxu0 }
 0x5f3   : > { %v2499_v46 = vadd.f32 %v919_v45, %v791_v44 }
 0x5fa   : > { %v1089_v47 = vpop.f32.mrf.mxu0 }
 0x5fb   : > { %v1095_v51 = vmul.f32 0.35355338, %v1089_v47 }
 0x5fd   : > { %v1097_v52 = vadd.f32 %v2424_v13, %v1095_v51 }
 0x5ff   : > { %v1099_v54 = vsel %vm700_vm2, %v1097_v52, -inf }
 0x600   : > { %1100 = vmax.xlane.f32.xlu0 %v1099_v54 }
 0x602   : > { %v1092_v56 = vpop.f32.mrf.mxu0 }
 0x603   : > { %v1096_v48 = vmul.f32 0.35355338, %v1092_v56 }
 0x605   : > { %v1098_v57 = vadd.f32 %v2424_v13, %v1096_v48 }
 0x607   : > { %v1102_v49 = vsel %vm704_vm3, %v1098_v57, -inf }
 0x608   : > { %1103 = vmax.xlane.f32.xlu1 %v1102_v49  ;;  %v1289_v49 = vld [vmem:[%s2627_s8 + $0x18] sm:$0xff] }
 0x609   : > { %1321 = vmatpush.msrb.mxu2 %v1289_v49 }
 0x610   : > { %983 = vadd.xlane.f32.xlu1 %v982_v59  ;;  %v1287_v59 = vld [vmem:[%s2627_s8 + $0x8] sm:$0xff] }
 0x614   : > { %991 = vrot.lane.b32.xlu0 %v2411_v8, %s2162_s5 }
 0x629   : > { %989 = vrot.lane.b32.xlu1 %v2414_v10, %s2162_s5 }
 0x631   : > { %1121 = vrot.lane.b32.xlu1 %v2414_v10, %s2163_s27  ;;  %v981_v10 = vpop.xlane.xlu2 %980 }
 0x673   : > { %v1101_v60 = vpop.xlane.xlu0 %1100 }
 0x674   : > { %v1105_v61 = vsub.f32 %v1097_v52, %v1101_v60 }
 0x676   : > { %v1107_v62 = vmul.f32 1.442695, %v1105_v61  ;;  %v1286_v61 = vld [vmem:[%s2627_s8] sm:$0xff] }
 0x678   : > { %1824 = vpow2.f32 %v1107_v62 }
 0x67b   : > { %v1104_v13 = vpop.xlane.xlu1 %1103 }
 0x67c   : > { %v1106_v63 = vsub.f32 %v1098_v57, %v1104_v13 }
 0x67e   : > { %v1825_v0 = vpop.eup %1824  ;;  %v1109_v1 = vmul.f32 1.442695, %v1106_v63 }
 0x67f   : > { %v1111_v2 = vsel %vm700_vm2, %v1825_v0, 0.0 }
 0x680   : > { %1826 = vpow2.f32 %v1109_v1  ;;  %1112 = vadd.xlane.f32.xlu2 %v1111_v2 }
 0x681   : > { %1828 = vrcp.f32 %v981_v10 }
 0x683   : > { %v984_v9 = vpop.xlane.xlu1 %983 }
 0x684   : > { %1830 = vrcp.f32 %v984_v9 }
 0x686   : > { %v1827_v3 = vpop.eup %1826  ;;  %v992_v6 = vpop.permute.xlu0 %991 }
 0x687   : > { %1647 = vmatpush.msk.msra.mxu3 %vm735_vm4, %v992_v6  ;;  %v1114_v7 = vsel %vm704_vm3, %v1827_v3, 0.0  ;;  %v1829_v11 = vpop.eup %1828 }
 0x688   : > { %1115 = vadd.xlane.f32.xlu0 %v1114_v7  ;;  %v987_v12 = vmul.f32 %v1829_v11, %v1821_v37 }
 0x68a   : > { %v1831_v15 = vpop.eup %1830 }
 0x68b   : > { %v988_v16 = vmul.f32 %v1831_v15, %v1823_v58  ;;  %v1288_v58 = vld [vmem:[%s2627_s8 + $0x10] sm:$0xff] }
 0x68c   : > { %1322 = vmatpush.msrb.mxu2 %v1288_v58 }
 0x68e   : > { %1323 = vmatpush.msrb.mxu2 %v1287_v59 }
 0x690   : > { %1324 = vmatpush.msrb.mxu2 %v1286_v61 }
 0x698   : > { %1123 = vrot.lane.b32.xlu2 %v2411_v8, %s2163_s27  ;;  %s2647_s27 = sld [smem:[#allocation22_spill]] }
 0x69b   : > { %v990_v14 = vpop.permute.xlu1 %989 }
 0x69c   : > { %1017 = vmatpush.msra.mxu3 %v990_v14 }
 0x69d   : > { %1648 = vmatmul.msk.f32.vlgmr.msra.gmra.mxu3 %vm700_vm2, %v987_v12 }
 0x69e   : > { %1178 = vmatpush.msrb.mxu3 %v649_v25  ;;  %v1293_v58 = vld [vmem:[%s2647_s27 + $0x10] sm:$0xff]  ;;  %v1292_v59 = vld [vmem:[%s2647_s27 + $0x8] sm:$0xff] }
 0x6a3   : > { %v1122_v21 = vpop.permute.xlu1 %1121 }
 0x6a5   : > { %1649 = vmatmul.msk.f32.gmra.mxu3 %vm700_vm2, %v988_v16 }
 0x6f3   : > { %v1113_v17 = vpop.xlane.xlu2 %1112 }
 0x6f4   : > { %1832 = vrcp.f32 %v1113_v17 }
 0x6fa   : > { %v1833_v18 = vpop.eup %1832 }
 0x6fb   : > { %v1116_v19 = vpop.xlane.xlu0 %1115  ;;  %v1124_v20 = vpop.permute.xlu2 %1123  ;;  %v1119_v8 = vmul.f32 %v1833_v18, %v1825_v0  ;;  %v1298_v18 = vld [vmem:[%s2647_s27 + $0x38] sm:$0xff] }
 0x6fc   : > { %1834 = vrcp.f32 %v1116_v19  ;;  %1656 = vmatpush.msk.msrb.mxu1 %vm735_vm4, %v1124_v20  ;;  %v1297_v19 = vld [vmem:[%s2647_s27 + $0x30] sm:$0xff]  ;;  %1352 = vmatpush.msrb.mxu0 %v1298_v18  ;;  %vm1337_vm4 = vcmask 523264  }
 0x6fd   : > { %1836 = vrcp.f32 %v2164_v42  ;;  %v1799_v42 = vld [vmem:[#allocation7] ss:$0 sm:$0xff] }
 0x6fe   : > { %1149 = vmatpush.msrb.mxu1 %v1122_v21  ;;  %1353 = vmatpush.msrb.mxu0 %v1297_v19 }
 0x6ff   : > { %1657 = vmatmul.msk.f32.vlgmr.msrb.gmra.mxu1 %vm700_vm2, %v1119_v8  ;;  %v1296_v8 = vld [vmem:[%s2647_s27 + $0x28] sm:$0xff] }
 0x700   : > { %1354 = vmatpush.msrb.mxu0 %v1296_v8 }
 0x702   : > { %v1835_v23 = vpop.eup %1834 }
 0x703   : > { %v1120_v24 = vmul.f32 %v1835_v23, %v1827_v3  ;;  %v1295_v23 = vld [vmem:[%s2647_s27 + $0x20] sm:$0xff] }
 0x704   : > { %1355 = vmatpush.msrb.mxu0 %v1295_v23 }
 0x707   : > { %1658 = vmatmul.msk.f32.gmra.mxu1 %vm700_vm2, %v1120_v24 }
 0x720   : > { %v1019_v26 = vpop.f32.mrf.mxu3 }
 0x721   : > { %1650 = vmatmul.msk.f32.vlgmr.msra.gmra.mxu2 %vm661_vm1, %v1019_v26  ;;  %v1294_v26 = vld [vmem:[%s2647_s27 + $0x18] sm:$0xff] }
 0x722   : > { %1356 = vmatpush.msrb.mxu0 %v1294_v26 }
 0x724   : > { %1357 = vmatpush.msrb.mxu0 %v1293_v58 }
 0x726   : > { %1358 = vmatpush.msrb.mxu0 %v1292_v59 }
 0x728   : > { %v1022_v27 = vpop.f32.mrf.mxu3 }
 0x729   : > { %1651 = vmatmul.msk.f32.gmra.mxu2 %vm661_vm1, %v1022_v27 }
 0x77c   : > { %v1151_v28 = vpop.f32.mrf.mxu1 }
 0x77d   : > { %1659 = vmatmul.msk.f32.vlgmr.msrb.gmra.mxu3 %vm661_vm1, %v1151_v28 }
 0x784   : > { %v1154_v29 = vpop.f32.mrf.mxu1 }
 0x785   : > { %1660 = vmatmul.msk.f32.gmra.mxu3 %vm661_vm1, %v1154_v29 }
 0x7a4   : > { %v1048_v30 = vpop.f32.mrf.mxu2 }
 0x7a5   : > { %v1054_v31 = vadd.f32 %v1048_v30, %v2496_v43  ;;  %v1837_v43 = vpop.eup %1836 }
 0x7a6   : > { %v1200_v44 = vmul.f32 32.0, %v1837_v43  ;;  %vm1204_vm6 = vweird.f32 %v1837_v43 }
 0x7a8   : > { %v1201_v45 = vsub.f32 1.0, %v1200_v44 }
 0x7ac   : > { %v1051_v35 = vpop.f32.mrf.mxu2 }
 0x7ad   : > { %v1055_v37 = vadd.f32 %v1051_v35, %v2499_v46 }
 0x800   : > { %v1180_v32 = vpop.f32.mrf.mxu3 }
 0x801   : > { %v1186_v33 = vadd.f32 %v1180_v32, %v1054_v31 }
 0x803   : > { %v1188_v34 = vadd.f32 %v1186_v33, %v2402_v5  ;;  %v1202_v5 = vmul.f32 %v1837_v43, %v1201_v45 }
 0x805   : > { %v1192_v36 = vsel %vm616_vm0, %v1188_v34, 0.0  ;;  %v1203_v47 = vadd.f32 %v1837_v43, %v1202_v5 }
 0x806   : > { %1193 = vadd.xlane.f32.xlu2 %v1192_v36 }
 0x807   : > { %v2534_v50 = vsel %vm1204_vm6, %v1837_v43, %v1203_v47 }
 0x808   : > { %v1183_v38 = vpop.f32.mrf.mxu3 }
 0x809   : > { %v1187_v39 = vadd.f32 %v1183_v38, %v1055_v37 }
 0x80b   : > { %v1189_v40 = vadd.f32 %v1187_v39, %v2400_v4 }
 0x80d   : > { %v1196_v41 = vsel %vm1195_vm5, %v1189_v40, 0.0 }
 0x80e   : > { %1197 = vadd.xlane.f32.xlu1 %v1196_v41 }
 0x879   : > { %v1194_v51 = vpop.xlane.xlu2 %1193 }
 0x87a   : > { %v1206_v46 = vmul.f32 %v2534_v50, %v1194_v51 }
 0x87c   : > { %v2537_v52 = vsub.f32 %v1188_v34, %v1206_v46  ;;  %v1798_v34 = vld [vmem:[#allocation6] ss:$0 sm:$0xff] }
 0x87e   : > { %v1210_v4 = vmul.f32 %v2537_v52, %v2537_v52 }
 0x880   : > { %v1212_v53 = vsel %vm616_vm0, %v1210_v4, 0.0 }
 0x881   : > { %1213 = vadd.xlane.f32.xlu0 %v1212_v53  ;;  %v1198_v54 = vpop.xlane.xlu1 %1197 }
 0x882   : > { %v1207_v55 = vmul.f32 %v2534_v50, %v1198_v54 }
 0x884   : > { %v2543_v56 = vsub.f32 %v1189_v40, %v1207_v55  ;;  %v1247_v40 = vmul.f32 %v1798_v34, %v2537_v52 }
 0x886   : > { %v1211_v48 = vmul.f32 %v2543_v56, %v2543_v56  ;;  %v1248_v52 = vmul.f32 %v1798_v34, %v2543_v56  ;;  %v1291_v56 = vld [vmem:[%s2647_s27] sm:$0xff] }
 0x887   : > { %1359 = vmatpush.msrb.mxu0 %v1291_v56  ;;  %v1803_v56 = vld [vmem:[#allocation13] ss:$0 sm:$0xff] }
 0x888   : > { %v1215_v57 = vsel %vm1195_vm5, %v1211_v48, 0.0 }
 0x889   : > { %1216 = vadd.xlane.f32.xlu0 %v1215_v57 }
 0x8f4   : > { %v1214_v60 = vpop.xlane.xlu0 %1213 }
 0x8f5   : > { %v1218_v62 = vmul.f32 0.032258064, %v1214_v60  ;;  %v1800_v60 = vld [vmem:[#allocation9] ss:$0 sm:$0xff] }
 0x8f7   : > { %1838 = vrsqrt.f32 %v1218_v62  ;;  %vm1227_vm7 = vcmp.eq.f32.partialorder %v1218_v62, inf  ;;  %v1230_v14 = vand.u32 2147483648, %v1218_v62  ;;  %vm1229_vm8 = vcmp.eq.f32.partialorder %v1218_v62, 0.0 }
 0x8fc   : > { %v1217_v13 = vpop.xlane.xlu0 %1216 }
 0x8fd   : > { %v1839_v63 = vpop.eup %1838  ;;  %v1219_v0 = vmul.f32 0.032258064, %v1217_v13 }
 0x8fe   : > { %v1221_v1 = vmul.f32 %v1839_v63, %v1218_v62 }
 0x8ff   : > { %1840 = vrsqrt.f32 %v1219_v0  ;;  %vm1239_vm9 = vcmp.eq.f32.partialorder %v1219_v0, inf  ;;  %v1242_v25 = vand.u32 2147483648, %v1219_v0  ;;  %vm1241_vm10 = vcmp.eq.f32.partialorder %v1219_v0, 0.0 }
 0x900   : > { %v1222_v2 = vmul.f32 %v1839_v63, %v1221_v1 }
 0x902   : > { %v1223_v3 = vmul.f32 0.5, %v1222_v2  ;;  %v1801_v2 = vld [vmem:[#allocation10] ss:$0 sm:$0xff] }
 0x904   : > { %v1224_v6 = vsub.f32 1.5, %v1223_v3 }
 0x905   : > { %v1841_v7 = vpop.eup %1840 }
 0x906   : > { %v1225_v10 = vmul.f32 %v1839_v63, %v1224_v6  ;;  %v1233_v9 = vmul.f32 %v1841_v7, %v1219_v0 }
 0x908   : > { %v1226_v11 = vmul.f32 %v1225_v10, %v1218_v62  ;;  %v1234_v12 = vmul.f32 %v1841_v7, %v1233_v9 }
 0x90a   : > { %v1228_v15 = vsel %vm1227_vm7, %v1218_v62, %v1226_v11  ;;  %v1235_v16 = vmul.f32 0.5, %v1234_v12 }
 0x90b   : > { %v1231_v17 = vsel %vm1229_vm8, %v1230_v14, %v1228_v15 }
 0x90c   : > { %v1249_v20 = vadd.f32 1e-06, %v1231_v17  ;;  %v1236_v21 = vsub.f32 1.5, %v1235_v16 }
 0x90e   : > { %1842 = vrcp.f32 %v1249_v20  ;;  %v1237_v22 = vmul.f32 %v1841_v7, %v1236_v21  ;;  %v1262_v33 = vand.u32 2147483648, %v1249_v20  ;;  %v1260_v36 = vand.u32 2147483647, %v1249_v20 }
 0x90f   : > { %vm1256_vm12 = vweird.f32 %v1249_v20 }
 0x910   : > { %v1238_v24 = vmul.f32 %v1237_v22, %v1219_v0  ;;  %v1263_v39 = vor.u32 1.1754944e-38, %v1262_v33  ;;  %vm1261_vm14 = vcmp.eq.f32.partialorder %v1260_v36, 8.507059e+37 }
 0x912   : > { %v1240_v27 = vsel %vm1239_vm9, %v1219_v0, %v1238_v24 }
 0x913   : > { %v1243_v28 = vsel %vm1241_vm10, %v1242_v25, %v1240_v27 }
 0x914   : > { %v1843_v29 = vpop.eup %1842  ;;  %v1250_v30 = vadd.f32 1e-06, %v1243_v28 }
 0x915   : > { %v1252_v31 = vmul.f32 %v1843_v29, %v1249_v20  ;;  %vm1257_vm11 = vweird.f32 %v1843_v29 }
 0x916   : > { %1844 = vrcp.f32 %v1250_v30  ;;  %vm1258_vm13 = vmor %vm1256_vm12, %vm1257_vm11  ;;  %v1277_v47 = vand.u32 2147483648, %v1250_v30  ;;  %v1275_v4 = vand.u32 2147483647, %v1250_v30  ;;  %vm1271_vm1 = vweird.f32 %v1250_v30 }
 0x917   : > { %v1253_v32 = vsub.f32 1.0, %v1252_v31 }
 0x918   : > { %v1278_v54 = vor.u32 1.1754944e-38, %v1277_v47  ;;  %vm1276_vm3 = vcmp.eq.f32.partialorder %v1275_v4, 8.507059e+37 }
 0x919   : > { %v1254_v35 = vmul.f32 %v1843_v29, %v1253_v32 }
 0x91b   : > { %v1255_v37 = vadd.f32 %v1843_v29, %v1254_v35 }
 0x91c   : > { %v1845_v38 = vpop.eup %1844 }
 0x91d   : > { %v1259_v41 = vsel %vm1258_vm13, %v1843_v29, %v1255_v37  ;;  %v1267_v43 = vmul.f32 %v1845_v38, %v1250_v30  ;;  %vm1272_vm15 = vweird.f32 %v1845_v38 }
 0x91e   : > { %v1264_v44 = vsel %vm1261_vm14, %v1263_v39, %v1259_v41  ;;  %vm1273_vm2 = vmor %vm1271_vm1, %vm1272_vm15 }
 0x91f   : > { %v1265_v45 = vmul.f32 %v1264_v44, %v1247_v40  ;;  %v1268_v5 = vsub.f32 1.0, %v1267_v43 }
 0x921   : > { %v1284_v51 = vadd.f32 %v1799_v42, %v1265_v45  ;;  %v1269_v46 = vmul.f32 %v1845_v38, %v1268_v5 }
 0x923   : > { %1661 = vmatmul.msk.f32.vlgmr.msrb.gmra.mxu2 %vm616_vm0, %v1284_v51  ;;  %v1270_v53 = vadd.f32 %v1845_v38, %v1269_v46 }
 0x925   : > { %v1274_v55 = vsel %vm1273_vm2, %v1845_v38, %v1270_v53 }
 0x926   : > { %v1279_v48 = vsel %vm1276_vm3, %v1278_v54, %v1274_v55 }
 0x927   : > { %v1280_v57 = vmul.f32 %v1279_v48, %v1248_v52  ;;  %v1802_v52 = vld [vmem:[#allocation12] ss:$0 sm:$0xff] }
 0x929   : > { %v1285_v49 = vadd.f32 %v1799_v42, %v1280_v57 }
 0x92b   : > { %1662 = vmatmul.msk.f32.gmra.mxu2 %vm616_vm0, %v1285_v49 }
 0x9a6   : > { %v1326_v61 = vpop.f32.mrf.mxu2 }
 0x9a7   : > { %v1327_v62 = vadd.f32 %v1800_v60, %v1326_v61 }
 0x9a9   : > { %v1332_v13 = vmax.f32 %v1327_v62, 0.0 }
 0x9ab   : > { %1663 = vmatmul.msk.f32.vlgmr.msrb.gmra.mxu0 %vm1337_vm4, %v1332_v13 }
 0x9ae   : > { %v1329_v63 = vpop.f32.mrf.mxu2 }
 0x9af   : > { %v1330_v0 = vadd.f32 %v1800_v60, %v1329_v63 }
 0x9b1   : > { %v1333_v1 = vmax.f32 %v1330_v0, 0.0 }
 0x9b3   : > { %1664 = vmatmul.msk.f32.gmra.mxu0 %vm1337_vm4, %v1333_v1 }
 0xa28   : > { %v1361_v3 = vpop.f32.mrf.mxu0 }
 0xa29   : > { %v1362_v6 = vadd.f32 %v1801_v2, %v1361_v3 }
 0xa2b   : > { %v1367_v7 = vadd.f32 %v1362_v6, %v1284_v51 }
 0xa2d   : > { %v1371_v10 = vsel %vm616_vm0, %v1367_v7, 0.0 }
 0xa2e   : > { %1372 = vadd.xlane.f32.xlu2 %v1371_v10 }
 0xa30   : > { %v1364_v9 = vpop.f32.mrf.mxu0 }
 0xa31   : > { %v1365_v11 = vadd.f32 %v1801_v2, %v1364_v9 }
 0xa33   : > { %v1368_v12 = vadd.f32 %v1365_v11, %v1285_v49 }
 0xa35   : > { %v1374_v14 = vsel %vm1195_vm5, %v1368_v12, 0.0 }
 0xa36   : > { %1375 = vadd.xlane.f32.xlu0 %v1374_v14 }
 0xaa1   : > { %v1373_v15 = vpop.xlane.xlu2 %1372 }
 0xaa2   : > { %v1377_v16 = vmul.f32 %v1373_v15, %v2534_v50 }
 0xaa4   : > { %v1379_v17 = vsub.f32 %v1367_v7, %v1377_v16 }
 0xaa6   : > { %v1381_v18 = vmul.f32 %v1379_v17, %v1379_v17  ;;  %v1418_v59 = vmul.f32 %v1802_v52, %v1379_v17 }
 0xaa8   : > { %v1383_v19 = vsel %vm616_vm0, %v1381_v18, 0.0 }
 0xaa9   : > { %1384 = vadd.xlane.f32.xlu1 %v1383_v19  ;;  %v1376_v20 = vpop.xlane.xlu0 %1375 }
 0xaaa   : > { %v1378_v21 = vmul.f32 %v1376_v20, %v2534_v50 }
 0xaac   : > { %v2593_v8 = vsub.f32 %v1368_v12, %v1378_v21 }
 0xaae   : > { %v1382_v22 = vmul.f32 %v2593_v8, %v2593_v8  ;;  %v1419_v10 = vmul.f32 %v1802_v52, %v2593_v8 }
 0xab0   : > { %v1386_v23 = vsel %vm1195_vm5, %v1382_v22, 0.0 }
 0xab1   : > { %1387 = vadd.xlane.f32.xlu2 %v1386_v23 }
 0xb1c   : > { %v1385_v24 = vpop.xlane.xlu1 %1384 }
 0xb1d   : > { %v1389_v25 = vmul.f32 0.032258064, %v1385_v24 }
 0xb1f   : > { %1846 = vrsqrt.f32 %v1389_v25  ;;  %vm1398_vm6 = vcmp.eq.f32.partialorder %v1389_v25, inf  ;;  %v1401_v37 = vand.u32 2147483648, %v1389_v25  ;;  %vm1400_vm7 = vcmp.eq.f32.partialorder %v1389_v25, 0.0 }
 0xb24   : > { %v1388_v26 = vpop.xlane.xlu2 %1387 }
 0xb25   : > { %v1847_v27 = vpop.eup %1846  ;;  %v1390_v28 = vmul.f32 0.032258064, %v1388_v26 }
 0xb26   : > { %v1392_v29 = vmul.f32 %v1847_v27, %v1389_v25 }
 0xb27   : > { %1848 = vrsqrt.f32 %v1390_v28  ;;  %vm1410_vm8 = vcmp.eq.f32.partialorder %v1390_v28, inf  ;;  %v1413_v45 = vand.u32 2147483648, %v1390_v28  ;;  %vm1412_vm9 = vcmp.eq.f32.partialorder %v1390_v28, 0.0 }
 0xb28   : > { %v1393_v30 = vmul.f32 %v1847_v27, %v1392_v29 }
 0xb2a   : > { %v1394_v31 = vmul.f32 0.5, %v1393_v30 }
 0xb2c   : > { %v1395_v32 = vsub.f32 1.5, %v1394_v31 }
 0xb2d   : > { %v1849_v50 = vpop.eup %1848 }
 0xb2e   : > { %v1396_v33 = vmul.f32 %v1847_v27, %v1395_v32  ;;  %v1404_v34 = vmul.f32 %v1849_v50, %v1390_v28 }
 0xb30   : > { %v1397_v35 = vmul.f32 %v1396_v33, %v1389_v25  ;;  %v1405_v36 = vmul.f32 %v1849_v50, %v1404_v34 }
 0xb32   : > { %v1399_v38 = vsel %vm1398_vm6, %v1389_v25, %v1397_v35  ;;  %v1406_v39 = vmul.f32 0.5, %v1405_v36 }
 0xb33   : > { %v1402_v40 = vsel %vm1400_vm7, %v1401_v37, %v1399_v38 }
 0xb34   : > { %v1420_v41 = vadd.f32 1e-06, %v1402_v40  ;;  %v1407_v42 = vsub.f32 1.5, %v1406_v39 }
 0xb36   : > { %1850 = vrcp.f32 %v1420_v41  ;;  %v1408_v43 = vmul.f32 %v1849_v50, %v1407_v42  ;;  %v1433_v54 = vand.u32 2147483648, %v1420_v41  ;;  %v1431_v48 = vand.u32 2147483647, %v1420_v41 }
 0xb37   : > { %vm1427_vm11 = vweird.f32 %v1420_v41 }
 0xb38   : > { %v1409_v44 = vmul.f32 %v1408_v43, %v1390_v28  ;;  %v1434_v49 = vor.u32 1.1754944e-38, %v1433_v54  ;;  %vm1432_vm13 = vcmp.eq.f32.partialorder %v1431_v48, 8.507059e+37 }
 0xb3a   : > { %v1411_v5 = vsel %vm1410_vm8, %v1390_v28, %v1409_v44 }
 0xb3b   : > { %v1414_v51 = vsel %vm1412_vm9, %v1413_v45, %v1411_v5 }
 0xb3c   : > { %v1851_v47 = vpop.eup %1850  ;;  %v1421_v4 = vadd.f32 1e-06, %v1414_v51 }
 0xb3d   : > { %v1423_v46 = vmul.f32 %v1851_v47, %v1420_v41  ;;  %vm1428_vm10 = vweird.f32 %v1851_v47 }
 0xb3e   : > { %1852 = vrcp.f32 %v1421_v4  ;;  %vm1429_vm12 = vmor %vm1427_vm11, %vm1428_vm10  ;;  %v1448_v1 = vand.u32 2147483648, %v1421_v4  ;;  %v1446_v3 = vand.u32 2147483647, %v1421_v4  ;;  %vm1442_vm15 = vweird.f32 %v1421_v4 }
 0xb3f   : > { %v1424_v53 = vsub.f32 1.0, %v1423_v46 }
 0xb40   : > { %v1449_v7 = vor.u32 1.1754944e-38, %v1448_v1  ;;  %vm1447_vm2 = vcmp.eq.f32.partialorder %v1446_v3, 8.507059e+37 }
 0xb41   : > { %v1425_v55 = vmul.f32 %v1851_v47, %v1424_v53 }
 0xb43   : > { %v1426_v57 = vadd.f32 %v1851_v47, %v1425_v55 }
 0xb44   : > { %v1853_v58 = vpop.eup %1852 }
 0xb45   : > { %v1430_v60 = vsel %vm1429_vm12, %v1851_v47, %v1426_v57  ;;  %v1438_v62 = vmul.f32 %v1853_v58, %v1421_v4  ;;  %vm1443_vm14 = vweird.f32 %v1853_v58 }
 0xb46   : > { %v1435_v61 = vsel %vm1432_vm13, %v1434_v49, %v1430_v60  ;;  %vm1444_vm1 = vmor %vm1442_vm15, %vm1443_vm14 }
 0xb47   : > { %v1436_v13 = vmul.f32 %v1435_v61, %v1418_v59  ;;  %v1439_v63 = vsub.f32 1.0, %v1438_v62 }
 0xb49   : > { %v1455_v0 = vadd.f32 %v1803_v56, %v1436_v13  ;;  %v1440_v2 = vmul.f32 %v1853_v58, %v1439_v63 }
 0xb4b   : > { %1457 = vst.msk [vmem:[%s604_s11] sm:$0xff] %vm616_vm0, %v1455_v0  ;;  %v1441_v6 = vadd.f32 %v1853_v58, %v1440_v2 }
 0xb4d   : > { %v1445_v9 = vsel %vm1444_vm1, %v1853_v58, %v1441_v6 }
 0xb4e   : > { %v1450_v11 = vsel %vm1447_vm2, %v1449_v7, %v1445_v9 }
 0xb4f   : > { %v1451_v12 = vmul.f32 %v1450_v11, %v1419_v10 }
 0xb51   : > { %v1456_v14 = vadd.f32 %v1803_v56, %v1451_v12 }
 0xb53   : > { %1458 = vst.msk [vmem:[%s604_s11 + $0x8] sm:$0xf] %vm1195_vm5, %v1456_v14 }
 0xb54 PF: > { %p28_p1 = scmp.ge.s32.totalorder %s2314_s22, 4   ;;  %s2649_s29 = smov %s2136_s30 }
 0xb55   : > { %s2650_s30 = smov %s2140_s15  ;;  %s2651_s15 = smov %s2325_s26 }
 0xb56   : > { %s2652_s16 = smov %s2314_s22  ;;  %30 = sbr.rel (!%p28_p1) target bundleno = 13 (0xd), region = 147 }
 0xb5b   :  { %1480 = vsyncpa [#allocation3], 1 }
 0xb5c   :  { %1482 = vsyncpa [#allocation3 + $0x1], 1 }
 0xb5d   :  { %1483 = vsyncpa [#allocation5], 1 }
 0xb5e   :  { %1484 = vsyncpa [#allocation8], 1 }
 0xb5f   :  { %1485 = vsyncpa [#allocation11], 1 }
 0xb60   :  { %1486 = vsyncpa [#allocation14], 1 }

// kernel: cme_forward.7
= control target key start
LH: loop header
LB: loop body
LE: loop exit
PB: predicated region body
PF: predicated region fallthrough
CT: control target
= control target key end

     0   :  { %s4657_s0 = inlined_call_operand.vmem [shape: f32[2,12,32], index: 0, kind: input, shape index: {}]   ;;  %s4658_s1 = inlined_call_operand.vmem [shape: f32[2,8,32], index: 1, kind: input, shape index: {}]   ;;  %s4659_s2 = inlined_call_operand.hbm [shape: f32[2,1,12], index: 2, kind: input, shape index: {}]   ;;  %s4660_s3 = inlined_call_operand.hbm [shape: f32[2,1,8], index: 3, kind: input, shape index: {}]   ;;  %s4661_s4 = inlined_call_operand.vmem [shape: f32[32,96], index: 4, kind: input, shape index: {}]   ;;  %s4662_s5 = inlined_call_operand.hbm [shape: f32[1,96], index: 5, kind: input, shape index: {}]   ;;  %s4663_s6 = inlined_call_operand.vmem [shape: f32[32,32], index: 6, kind: input, shape index: {}]   ;;  %s4664_s7 = inlined_call_operand.hbm [shape: f32[1,32], index: 7, kind: input, shape index: {}]   ;;  %s4665_s8 = inlined_call_operand.hbm [shape: f32[1,32], index: 8, kind: input, shape index: {}]   ;;  %s4666_s9 = inlined_call_operand.hbm [shape: f32[1,32], index: 9, kind: input, shape index: {}]   ;;  %s4667_s10 = inlined_call_operand.vmem [shape: f32[32,32], index: 10, kind: input, shape index: {}]   ;;  %s4668_s11 = inlined_call_operand.hbm [shape: f32[1,32], index: 11, kind: input, shape index: {}]   ;;  %s4669_s12 = inlined_call_operand.hbm [shape: f32[32,64], index: 12, kind: input, shape index: {}]   ;;  %s4670_s13 = inlined_call_operand.hbm [shape: f32[1,64], index: 13, kind: input, shape index: {}]   ;;  %s4671_s14 = inlined_call_operand.hbm [shape: f32[32,32], index: 14, kind: input, shape index: {}]   ;;  %s4672_s15 = inlined_call_operand.hbm [shape: f32[1,32], index: 15, kind: input, shape index: {}]   ;;  %s4673_s16 = inlined_call_operand.hbm [shape: f32[1,32], index: 16, kind: input, shape index: {}]   ;;  %s4674_s17 = inlined_call_operand.hbm [shape: f32[1,32], index: 17, kind: input, shape index: {}]   ;;  %s4675_s18 = inlined_call_operand.hbm [shape: f32[32,64], index: 18, kind: input, shape index: {}]   ;;  %s4676_s19 = inlined_call_operand.hbm [shape: f32[1,64], index: 19, kind: input, shape index: {}]   ;;  %s4677_s20 = inlined_call_operand.vmem [shape: f32[64,32], index: 20, kind: input, shape index: {}]   ;;  %s4678_s21 = inlined_call_operand.hbm [shape: f32[1,32], index: 21, kind: input, shape index: {}]   ;;  %s4679_s22 = inlined_call_operand.hbm [shape: f32[1,32], index: 22, kind: input, shape index: {}]   ;;  %s4680_s23 = inlined_call_operand.hbm [shape: f32[1,32], index: 23, kind: input, shape index: {}]   ;;  %s4681_s24 = inlined_call_operand.vmem [shape: f32[2,12,32], index: 24, kind: output, shape index: {}]  }
   0x1   :  { %4694 = sst [smem:[#allocation43_spill]] %s4657_s0 }
   0x2   :  { %4695 = sst [smem:[#allocation44_spill]] %s4658_s1 }
   0x3   :  { %4696 = sst [smem:[#allocation45_spill]] %s4659_s2 }
   0x4   :  { %4697 = sst [smem:[#allocation46_spill]] %s4660_s3 }
   0x5   :  { %4698 = sst [smem:[#allocation47_spill]] %s4661_s4 }
   0x6   :  { %4699 = sst [smem:[#allocation48_spill]] %s4662_s5 }
   0x7   :  { %4700 = sst [smem:[#allocation49_spill]] %s4663_s6 }
   0x8   :  { %4701 = sst [smem:[#allocation50_spill]] %s4664_s7 }
   0x9   :  { %4702 = sst [smem:[#allocation51_spill]] %s4665_s8 }
   0xa   :  { %4703 = sst [smem:[#allocation52_spill]] %s4666_s9 }
   0xb   :  { %4704 = sst [smem:[#allocation53_spill]] %s4667_s10 }
   0xc   :  { %4705 = sst [smem:[#allocation54_spill]] %s4668_s11 }
   0xd   :  { %4706 = sst [smem:[#allocation55_spill]] %s4669_s12 }
   0xe   :  { %4707 = sst [smem:[#allocation56_spill]] %s4670_s13 }
   0xf   :  { %4708 = sst [smem:[#allocation57_spill]] %s4671_s14 }
  0x10   :  { %4709 = sst [smem:[#allocation58_spill]] %s4672_s15 }
  0x11   :  { %4710 = sst [smem:[#allocation59_spill]] %s4673_s16 }
  0x12   :  { %4711 = sst [smem:[#allocation60_spill]] %s4677_s20 }
  0x13   :  { %4712 = sst [smem:[#allocation61_spill]] %s4681_s24 }
  0x14   :  { %29 = vsyncpa [#allocation3], 0 }
  0x15   :  { %31 = vsyncpa [#allocation3 + $0x1], 0 }
  0x16   :  { %32 = vsyncpa [#allocation5], 0 }
  0x17   :  { %34 = vsyncpa [#allocation5 + $0x1], 0 }
  0x18   :  { %35 = vsyncpa [#allocation8], 0 }
  0x19   :  { %36 = vsyncpa [#allocation11], 0 }
  0x1a   :  { %37 = vsyncpa [#allocation14], 0 }
  0x1b   :  { %38 = vsyncpa [#allocation17], 0 }
  0x1c   :  { %39 = vsyncpa [#allocation20], 0 }
  0x1d   :  { %40 = vsyncpa [#allocation23], 0 }
  0x1e   :  { %41 = vsyncpa [#allocation26], 0 }
  0x1f   :  { %42 = vsyncpa [#allocation29], 0  ;;  %s4055_s5 = smov 0   ;;  %s4057_s26 = smov 0  }
  0x20   :  { %s4059_s27 = smov 0   ;;  %s4061_s28 = smov 0  }
  0x21 LB: > { %s4713_s29 = sld [smem:[#allocation48_spill]]  ;;  %s4079_s7 = sadd.s32 4294967295, %s3898_s28   ;;  %s3898_s28 = sphi %s4061_s28, %s4747_s28   ;;  %s3894_s27 = sphi %s4059_s27, %s4746_s27   ;;  %s3890_s26 = sphi %s4057_s26, %s4745_s26   ;;  %s3886_s5 = sphi %s4055_s5, %s4744_s5  }
  0x22   : > { %4714 = sst [smem:[#allocation41_spill]] %s4079_s7  ;;  %p2842_p0 = scmp.ge.s32.totalorder %s3898_s28, 1 }
  0x23   : > { %p121_p1 = scmp.eq.s32.totalorder %s4079_s7, 0  ;;  %p603_p2 = scmp.lt.s32.totalorder %s3898_s28, 3 }
  0x24   : > { %s3900_s3 = smov [#allocation6]   ;;  %s4717_s1 = sld [smem:[#allocation50_spill]] }
  0x25   : > { %p4084_p3 = pnand %p2842_p0, %p603_p2  ;;  %s620_s25 = sshll.u32 %s3900_s3, 4  ;;  %s621_s25 = int_to_ptr.vmem [resolvable:$true] %s620_s25 }
  0x26   : > { %s4719_s9 = sld [smem:[#allocation52_spill]]  ;;  %s3904_s3 = smov 128  }
  0x27   : > { %s618_s0 = sshll.u32 %s4713_s29, 4  ;;  %p3028_p4 = pneg %p4084_p3  ;;  %s619_s0 = int_to_ptr.hbm [resolvable:$true] %s618_s0 }
  0x28   : > { %s4715_s30 = scalar_select %p4084_p3, 1, 0 }
  0x29   : > { %p4095_p5 = pnand %p3028_p4, %p121_p1  ;;  %s3901_s29 = smov [#allocation7]  }
  0x2a   : > { %4716 = sst [smem:[#allocation42_spill]] %s4715_s30  ;;  %s633_s6 = sshll.u32 %s4717_s1, 4  ;;  %s634_s6 = int_to_ptr.hbm [resolvable:$true] %s633_s6 }
  0x2b   : > { %s635_s24 = sshll.u32 %s3901_s29, 4  ;;  %s4720_s12 = sld [smem:[#allocation55_spill]]  ;;  %s636_s24 = int_to_ptr.vmem [resolvable:$true] %s635_s24 }
  0x2c   : > { %s657_s10 = sshll.u32 %s4719_s9, 4  ;;  %s3902_s30 = smov [#allocation10]   ;;  %s658_s10 = int_to_ptr.hbm [resolvable:$true] %s657_s10 }
  0x2d   : > { %3031 = dma.hbm_to_vmem [thread:$0]  (!%p4095_p5), %s619_s0, 16, %s621_s25, [#allocation5]  }
  0x2e   : > { %3034 = dma.hbm_to_vmem [thread:$0]  (!%p4095_p5), %s634_s6, 16, %s636_s24, [#allocation8]  }
  0x2f   : > { %s659_s7 = sshll.u32 %s3902_s30, 4  ;;  %s3903_s29 = smov [#allocation13]   ;;  %s660_s7 = int_to_ptr.vmem [resolvable:$true] %s659_s7 }
  0x30   : > { %3040 = dma.hbm_to_vmem [thread:$0]  (!%p4095_p5), %s658_s10, 16, %s660_s7, [#allocation11]  }
  0x31   : > { %s683_s1 = sshll.u32 %s4720_s12, 4  ;;  %s685_s20 = sshll.u32 %s3903_s29, 4  ;;  %s684_s1 = int_to_ptr.hbm [resolvable:$true] %s683_s1  ;;  %s686_s20 = int_to_ptr.vmem [resolvable:$true] %s685_s20 }
  0x32   : > { %s3905_s9 = smov 8   ;;  %s4721_s14 = sld [smem:[#allocation57_spill]] }
  0x33   : > { %3046 = dma.hbm_to_vmem [thread:$0]  (!%p4095_p5), %s684_s1, 512, %s686_s20, [#allocation14], %s3904_s3, %s3904_s3, %s3905_s9  }
  0x34   : > { %s3906_s6 = smov [#allocation16]   ;;  %s4722_s16 = sld [smem:[#allocation59_spill]] }
  0x35   : > { %s711_s30 = sshll.u32 %s3906_s6, 4  ;;  %s3907_s7 = smov [#allocation19]   ;;  %s712_s30 = int_to_ptr.vmem [resolvable:$true] %s711_s30 }
  0x36   : > { %s738_s29 = sshll.u32 %s3907_s7, 4  ;;  %s759_s20 = sshll.u32 %s4675_s18, 4  ;;  %s739_s29 = int_to_ptr.vmem [resolvable:$true] %s738_s29  ;;  %s760_s20 = int_to_ptr.hbm [resolvable:$true] %s759_s20 }
  0x37   : > { %s789_s6 = sshll.u32 %s4678_s21, 4  ;;  %s3908_s8 = smov [#allocation22]   ;;  %s790_s6 = int_to_ptr.hbm [resolvable:$true] %s789_s6 }
  0x38   : > { %s709_s25 = sshll.u32 %s4721_s14, 4  ;;  %s761_s4 = sshll.u32 %s3908_s8, 4  ;;  %s710_s25 = int_to_ptr.hbm [resolvable:$true] %s709_s25  ;;  %s762_s4 = int_to_ptr.vmem [resolvable:$true] %s761_s4 }
  0x39   : > { %3052 = dma.hbm_to_vmem [thread:$0]  (!%p4095_p5), %s710_s25, 512, %s712_s30, [#allocation17], %s3904_s3, %s3904_s3, %s3905_s9  }
  0x3a   : > { %s736_s10 = sshll.u32 %s4722_s16, 4  ;;  %s3909_s25 = smov [#allocation25]   ;;  %s737_s10 = int_to_ptr.hbm [resolvable:$true] %s736_s10 }
  0x3b   : > { %3058 = dma.hbm_to_vmem [thread:$0]  (!%p4095_p5), %s737_s10, 16, %s739_s29, [#allocation20]  }
  0x3c   : > { %3064 = dma.hbm_to_vmem [thread:$0]  (!%p4095_p5), %s760_s20, 512, %s762_s4, [#allocation23], %s3904_s3, %s3904_s3, %s3905_s9  }
  0x3d   : > { %s791_s30 = sshll.u32 %s3909_s25, 4  ;;  %s4723_s1 = sld [smem:[#allocation51_spill]]  ;;  %s792_s30 = int_to_ptr.vmem [resolvable:$true] %s791_s30 }
  0x3e   : > { %3070 = dma.hbm_to_vmem [thread:$0]  (!%p4095_p5), %s790_s6, 16, %s792_s30, [#allocation26]  }
  0x3f   : > { %s4724_s11 = sld [smem:[#allocation54_spill]]  ;;  %s3910_s0 = smov [#allocation9]  }
  0x40   : > { %s647_s8 = sshll.u32 %s3910_s0, 4  ;;  %s3911_s9 = smov [#allocation12]   ;;  %s648_s8 = int_to_ptr.vmem [resolvable:$true] %s647_s8 }
  0x41   : > { %s674_s3 = sshll.u32 %s3911_s9, 4  ;;  %s4725_s13 = sld [smem:[#allocation56_spill]]  ;;  %s675_s3 = int_to_ptr.vmem [resolvable:$true] %s674_s3 }
  0x42   : > { %s4726_s15 = sld [smem:[#allocation58_spill]]  ;;  %s3912_s7 = smov [#allocation15]  }
  0x43   : > { %s645_s14 = sshll.u32 %s4723_s1, 4  ;;  %s700_s1 = sshll.u32 %s3912_s7, 4  ;;  %s646_s14 = int_to_ptr.hbm [resolvable:$true] %s645_s14  ;;  %s701_s1 = int_to_ptr.vmem [resolvable:$true] %s700_s1 }
  0x44   : > { %3037 = dma.hbm_to_vmem [thread:$0]  (!%p4095_p5), %s646_s14, 16, %s648_s8, [#allocation8]  }
  0x45   : > { %s672_s24 = sshll.u32 %s4724_s11, 4  ;;  %s3913_s14 = smov [#allocation18]   ;;  %s673_s24 = int_to_ptr.hbm [resolvable:$true] %s672_s24 }
  0x46   : > { %3043 = dma.hbm_to_vmem [thread:$0]  (!%p4095_p5), %s673_s24, 16, %s675_s3, [#allocation11]  }
  0x47   : > { %s698_s25 = sshll.u32 %s4725_s13, 4  ;;  %s726_s10 = sshll.u32 %s3913_s14, 4  ;;  %s699_s25 = int_to_ptr.hbm [resolvable:$true] %s698_s25  ;;  %s727_s10 = int_to_ptr.vmem [resolvable:$true] %s726_s10 }
  0x48   : > { %s724_s12 = sshll.u32 %s4726_s15, 4  ;;  %s748_s8 = sshll.u32 %s4674_s17, 4  ;;  %s725_s12 = int_to_ptr.hbm [resolvable:$true] %s724_s12  ;;  %s749_s8 = int_to_ptr.hbm [resolvable:$true] %s748_s8 }
  0x49   : > { %3049 = dma.hbm_to_vmem [thread:$0]  (!%p4095_p5), %s699_s25, 16, %s701_s1, [#allocation14]  }
  0x4a   : > { %3055 = dma.hbm_to_vmem [thread:$0]  (!%p4095_p5), %s725_s12, 16, %s727_s10, [#allocation17]  }
  0x4b   : > { %s774_s3 = sshll.u32 %s4676_s19, 4  ;;  %s3914_s20 = smov [#allocation21]   ;;  %s775_s3 = int_to_ptr.hbm [resolvable:$true] %s774_s3 }
  0x4c   : > { %s750_s4 = sshll.u32 %s3914_s20, 4  ;;  %s3915_s25 = smov [#allocation24]   ;;  %s751_s4 = int_to_ptr.vmem [resolvable:$true] %s750_s4 }
  0x4d   : > { %3061 = dma.hbm_to_vmem [thread:$0]  (!%p4095_p5), %s749_s8, 16, %s751_s4, [#allocation20]  }
  0x4e   : > { %s776_s6 = sshll.u32 %s3915_s25, 4  ;;  %s801_s12 = sshll.u32 %s4679_s22, 4  ;;  %s777_s6 = int_to_ptr.vmem [resolvable:$true] %s776_s6  ;;  %s802_s12 = int_to_ptr.hbm [resolvable:$true] %s801_s12 }
  0x4f   : > { %3067 = dma.hbm_to_vmem [thread:$0]  (!%p4095_p5), %s775_s3, 16, %s777_s6, [#allocation23]  }
  0x50   : > { %s813_s10 = sshll.u32 %s4680_s23, 4  ;;  %s3916_s29 = smov [#allocation27]   ;;  %s814_s10 = int_to_ptr.hbm [resolvable:$true] %s813_s10 }
  0x51   : > { %s803_s0 = sshll.u32 %s3916_s29, 4  ;;  %s3917_s24 = smov [#allocation28]   ;;  %s804_s0 = int_to_ptr.vmem [resolvable:$true] %s803_s0 }
  0x52   : > { %3073 = dma.hbm_to_vmem [thread:$0]  (!%p4095_p5), %s802_s12, 16, %s804_s0, [#allocation26]  }
  0x53   : > { %s815_s9 = sshll.u32 %s3917_s24, 4  ;;  %s4174_s3 = sadd.s32 1, %s3898_s28   ;;  %s816_s9 = int_to_ptr.vmem [resolvable:$true] %s815_s9 }
  0x54   : > { %3076 = dma.hbm_to_vmem [thread:$0]  (!%p4095_p5), %s814_s10, 16, %s816_s9, [#allocation29]  }
  0x55   : > { %s107_s20 = sadd.s32 1, %s3894_s27  ;;  %s104_s4 = ssub.s32 %s3898_s28, %s4174_s3 }
  0x56   : > { %p114_p6 = scmp.ne.s32.totalorder %s3894_s27, %s3890_s26  ;;  %p105_p7 = scmp.eq.s32.totalorder %s104_s4, 0 }
  0x57   : > { %p115_p8 = scmp.eq.s32.totalorder %s3898_s28, 0  ;;  %p120_p9 = scmp.ne.s32.totalorder %s3890_s26, %s3886_s5 }
  0x58   : > { %p3100_p10 = scmp.lt.s32.totalorder %s3898_s28, 2  ;;  %s841_s2 = sand.u32 1, %s3894_s27  }
  0x59   : > { %s4186_s25 = scalar_select %p105_p7, %s3894_s27, %s107_s20  }
  0x5a   : > { %p116_p11 = por %p115_p8, %p114_p6  ;;  %p4190_p12 = por %p121_p1, %p120_p9 }
  0x5b   : > { %s4729_s12 = sld [smem:[#allocation45_spill]]  ;;  %s844_s10 = scalar_lea.vmem [#allocation2], %s841_s2 }
  0x5c   : > { %s851_s29 = sshll.u32 %s844_s10, 4  ;;  %p4199_p13 = pnand %p3100_p10, %p116_p11  ;;  %s852_s29 = int_to_ptr.vmem [resolvable:$true] %s851_s29 }
  0x5d   : > { %s858_s0 = sand.u32 1, %s3898_s28   ;;  %s4731_s9 = sld [smem:[#allocation46_spill]] }
  0x5e   : > { %s842_s4 = scalar_lea.sflag [#allocation3], %s841_s2  ;;  %p3768_p2 = pneg %p4199_p13 }
  0x61   : > { %s847_s1 = scalar_lea.hbm %s4729_s12, %s3898_s28  ;;  %s3771_s10 = scalar_lea.hbm %s4729_s12, 2 }
  0x62   : > { %s849_s14 = sshll.u32 %s847_s1, 4  ;;  %s850_s14 = int_to_ptr.hbm [resolvable:$true] %s849_s14 }
  0x63   : > { %s864_s20 = scalar_lea.hbm %s4731_s9, %s3898_s28  ;;  %s3764_s11 = sshra.s32 %s850_s14, 4  ;;  %s3765_s11 = int_to_ptr.hbm [resolvable:$true] %s3764_s11 }
  0x64   : > { %s3766_s30 = scalar_lea.hbm %s3765_s11, 1  ;;  %p3772_p6 = scmp.lt.s32.totalorder %s3765_s11, %s4729_s12 }
  0x65   : > { %p3767_p0 = scmp.ne.s32.totalorder %s3765_s11, %s3766_s30  ;;  %p3773_p7 = scmp.lt.s32.totalorder %s3771_s10, %s3766_s30 }
  0x67   : > { %p3769_p4 = pnand %p3768_p2, %p3767_p0  ;;  %p3774_p8 = por %p3773_p7, %p3772_p6 }
  0x69   : > { %p3770_p5 = pneg %p3769_p4 }
  0x6b   : > { %p3775_p9 = pnand %p3774_p8, %p3770_p5 }
  0x6d   : > { %3778 = shalt.err (!%p3775_p9)
}
  0x6e   : > { %3080 = dma.hbm_to_vmem [thread:$0]  (!%p4199_p13), %s850_s14, 16, %s852_s29, %s842_s4  }
  0x6f   : > { %s866_s28 = sshll.u32 %s864_s20, 4  ;;  %s861_s8 = scalar_lea.vmem [#allocation4], %s841_s2  ;;  %s867_s28 = int_to_ptr.hbm [resolvable:$true] %s866_s28 }
  0x70   : > { %s868_s24 = sshll.u32 %s861_s8, 4  ;;  %s859_s16 = scalar_lea.sflag [#allocation5], %s858_s0  ;;  %s869_s24 = int_to_ptr.vmem [resolvable:$true] %s868_s24 }
  0x71   : > { %s3794_s7 = sshra.s32 %s867_s28, 4  ;;  %s3801_s15 = scalar_lea.hbm %s4731_s9, 2  ;;  %s3795_s7 = int_to_ptr.hbm [resolvable:$true] %s3794_s7 }
  0x72   : > { %s3796_s1 = scalar_lea.hbm %s3795_s7, 1  ;;  %p3802_p4 = scmp.lt.s32.totalorder %s3795_s7, %s4731_s9 }
  0x73   : > { %p3797_p10 = scmp.ne.s32.totalorder %s3795_s7, %s3796_s1  ;;  %p3803_p5 = scmp.lt.s32.totalorder %s3801_s15, %s3796_s1 }
  0x75   : > { %p3799_p11 = pnand %p3797_p10, %p3768_p2  ;;  %p3804_p6 = por %p3803_p5, %p3802_p4 }
  0x77   : > { %p3800_p0 = pneg %p3799_p11 }
  0x79   : > { %p3805_p7 = pnand %p3804_p6, %p3800_p0 }
  0x7b   : > { %3808 = shalt.err (!%p3805_p7)
}
  0x7c   : > { %3083 = dma.hbm_to_vmem [thread:$0]  (!%p4199_p13), %s867_s28, 16, %s869_s24, %s859_s16  }
  0x7d   : > { %877 = sbr.rel (%p4084_p3) target bundleno = 4727 (0x1277), region = 116  ;;  %s4235_s29 = sand.u32 (!%p4084_p3), 1, %s3890_s26  }
  0x7e   : > { %s880_s0 = scalar_lea.sflag (!%p4084_p3), [#allocation3], %s4235_s29  ;;  %s882_s20 = scalar_lea.vmem (!%p4084_p3), [#allocation2], %s4235_s29 }
  0x82   : > { %3841 = dma.done.wait (%p4190_p12), %s880_s0, 16  }
  0x83   : > { %3843 = vsyncadd (%p4190_p12), %s880_s0, 4294967280  ;;  %s4733_s4 = sld [smem:[#allocation41_spill]]  ;;  %s891_s10 = scalar_lea.vmem [#allocation4], %s4235_s29 }
  0x89   : > { %s888_s16 = sand.u32 1, %s4733_s4  }
  0x8a   : > { %s889_s5 = scalar_lea.sflag [#allocation5], %s888_s16 }
  0x8b   : > { %3845 = dma.done.wait (%p4190_p12), %s889_s5, 16  }
  0x8c   : > { %3847 = vsyncadd (%p4190_p12), %s889_s5, 4294967280 }
  0x8d   : > { %3849 = dma.done.wait (%p121_p1), [#allocation5], 16  }
  0x8e   : > { %3851 = vsyncadd (%p121_p1), [#allocation5], 4294967280 }
  0x8f   : > { %3853 = dma.done.wait (%p121_p1), [#allocation8], 32  }
  0x90   : > { %3855 = vsyncadd (%p121_p1), [#allocation8], 4294967264 }
  0x91   : > { %3857 = dma.done.wait (%p121_p1), [#allocation11], 32  }
  0x92   : > { %3859 = vsyncadd (%p121_p1), [#allocation11], 4294967264 }
  0x93   : > { %3861 = dma.done.wait (%p121_p1), [#allocation14], 528  }
  0x94   : > { %3863 = vsyncadd (%p121_p1), [#allocation14], 4294966768 }
  0x95   : > { %3865 = dma.done.wait (%p121_p1), [#allocation17], 528  }
  0x96   : > { %3867 = vsyncadd (%p121_p1), [#allocation17], 4294966768 }
  0x97   : > { %3869 = dma.done.wait (%p121_p1), [#allocation20], 32  }
  0x98   : > { %3871 = vsyncadd (%p121_p1), [#allocation20], 4294967264 }
  0x99   : > { %3873 = dma.done.wait (%p121_p1), [#allocation23], 528  }
  0x9a   : > { %3875 = vsyncadd (%p121_p1), [#allocation23], 4294966768 }
  0x9b   : > { %3877 = dma.done.wait (%p121_p1), [#allocation26], 32  }
  0x9c   : > { %3879 = vsyncadd (%p121_p1), [#allocation26], 4294967264 }
  0x9d   : > { %3881 = dma.done.wait (%p121_p1), [#allocation29], 16  }
  0x9e   : > { %3883 = vsyncadd (%p121_p1), [#allocation29], 4294967280  ;;  %p1049_p3 = scmp.lt.s32.totalorder %s4733_s4, 1  ;;  %s4734_s24 = sld [smem:[#allocation47_spill]]  ;;  %vm1076_vm0 = vcmask 261120   ;;  %vm1121_vm1 = vcmask 64512  }
  0x9f   : > { %s4735_s15 = sld [smem:[#allocation43_spill]]  ;;  %v3179_v7 = vld [vmem:[#allocation6] ss:$0 sm:$0xff]  ;;  %s3918_s5 = smov 96   ;;  %v4331_v13 = vld [vmem:[%s882_s20] ss:$0 sm:$0xff] }
  0xa0   : > { %s4749_s4 = smov (!%p1049_p3, %s4733_s4), 1  ;;  %vm1160_vm2 = vcmask 97280   ;;  %vm1164_vm3 = vcmask 93184   ;;  %s3919_s28 = smov 64   ;;  %vm1195_vm4 = vcmask 1043456   ;;  %vm1655_vm5 = vcmask 257024  }
  0xa1   : > { %s4691_s6 = sshll.u32 %s4749_s4, 4  ;;  %s3920_s20 = smov 120  }
  0xa2   : > { %s3921_s8 = smov 56   ;;  %s3922_s7 = smov 88  }
  0xa3   : > { %s4692_s1 = smov 80   ;;  %s3924_s11 = smov 112  }
  0xa4   : > { %v1071_v0 = vld [vmem:[%s4734_s24 + $0x18] sm:$0xff]  ;;  %v1070_v1 = vld [vmem:[%s4734_s24 + $0x10] sm:$0xff]  ;;  %v1069_v2 = vld [vmem:[%s4734_s24 + $0x8] sm:$0xff]  ;;  %s4693_s13 = smov 72   ;;  %s4736_s2 = sld [smem:[#allocation49_spill]] }
  0xa5   : > { %s1053_s30 = scalar_lea.vmem %s4735_s15, %s4691_s6  ;;  %1095 = vmatpush.msra.mxu0 %v1071_v0  ;;  %v1068_v3 = vld [vmem:[%s4734_s24] sm:$0xff]  ;;  %s3926_s15 = smov 104  }
  0xa6   : > { %v4307_v4 = vld [vmem:[%s1053_s30] sm:$0xff]  ;;  %v4311_v5 = vld [vmem:[%s1053_s30 + $0x8] sm:$0xf]  ;;  %s4737_s30 = sld [smem:[#allocation53_spill]]  ;;  %s4739_s29 = smov 72  }
  0xa7   : > { %1096 = vmatpush.msra.mxu0 %v1070_v1  ;;  %s4738_s14 = sld [smem:[#allocation44_spill]] }
  0xa9   : > { %1097 = vmatpush.msra.mxu0 %v1069_v2 }
  0xaa   : > { %v1106_v32 = vld [vmem:[%s4736_s2] sm:$0xff] }
  0xab   : > { %1098 = vmatpush.msra.mxu0 %v1068_v3  ;;  %1242 = vmatpush.msra.mxu3 %v1106_v32 }
  0xac   : > { %2882 = vmatmul.msk.f32.vlgmr.msra.gmra.mxu0 %vm1076_vm0, %v4307_v4 }
  0xb4   : > { %2883 = vmatmul.msk.f32.gmra.mxu0 %vm1076_vm0, %v4311_v5 }
 0x129   : > { %v1100_v6 = vpop.f32.mrf.mxu0 }
 0x12a   : > { %v4319_v10 = vadd.f32 %v3179_v7, %v1100_v6 }
 0x131   : > { %v1103_v8 = vpop.f32.mrf.mxu0 }
 0x132   : > { %v4315_v9 = vadd.f32 %v3179_v7, %v1103_v8 }
 0x134   : > { %1119 = vrot.lane.b32.xlu0 %v4315_v9, %s3918_s5 }
 0x13c   : > { %1117 = vrot.lane.b32.xlu0 %v4319_v10, %s3918_s5 }
 0x1a6   : > { %v1120_v11 = vpop.permute.xlu0 %1119 }
 0x1a7   : > { %2884 = vmatpush.xpose.msk.msra.mxu1 %vm1121_vm1, %v1120_v11 }
 0x1ae   : > { %v1118_v12 = vpop.permute.xlu0 %1117 }
 0x1af   : > { %2885 = vmatpush.xpose.msk.msra.mxu1 %vm1121_vm1, %v1118_v12 }
 0x1b2   : > { %2886 = vmatmul.msk.f32.vlgmr.msra.gmra.mxu1 %vm1121_vm1, %v4319_v10 }
 0x1ba   : > { %2887 = vmatmul.msk.f32.gmra.mxu1 %vm1121_vm1, %v4315_v9 }
 0x22f   : > { %v1147_v14 = vpop.f32.mrf.mxu1 }
 0x230   : > { %v1153_v15 = vmul.f32 0.35355338, %v1147_v14 }
 0x232   : > { %v1158_v16 = vadd.f32 %v4331_v13, %v1153_v15 }
 0x234   : > { %v1161_v17 = vsel %vm1160_vm2, %v1158_v16, -inf }
 0x235   : > { %1162 = vmax.xlane.f32.xlu1 %v1161_v17 }
 0x237   : > { %v1150_v18 = vpop.f32.mrf.mxu1 }
 0x238   : > { %v1154_v19 = vmul.f32 0.35355338, %v1150_v18 }
 0x23a   : > { %v1159_v20 = vadd.f32 %v4331_v13, %v1154_v19 }
 0x23c   : > { %v1165_v21 = vsel %vm1164_vm3, %v1159_v20, -inf }
 0x23d   : > { %1166 = vmax.xlane.f32.xlu1 %v1165_v21 }
 0x256   : > { %1184 = vrot.lane.b32.xlu1 %v4319_v10, %s3919_s28 }
 0x25e   : > { %1252 = vrot.lane.b32.xlu1 %v4319_v10, %s3920_s20 }
 0x266   : > { %1254 = vrot.lane.b32.xlu1 %v4315_v9, %s3920_s20 }
 0x2a8   : > { %v1163_v22 = vpop.xlane.xlu1 %1162 }
 0x2a9   : > { %v1168_v23 = vsub.f32 %v1158_v16, %v1163_v22  ;;  %v1107_v16 = vld [vmem:[%s4736_s2 + $0x8] sm:$0xff] }
 0x2aa   : > { %1374 = vmatpush.msrb.mxu0 %v1107_v16 }
 0x2ab   : > { %v1170_v24 = vmul.f32 1.442695, %v1168_v23 }
 0x2ad   : > { %3194 = vpow2.f32 %v1170_v24 }
 0x2b0   : > { %v1167_v25 = vpop.xlane.xlu1 %1166 }
 0x2b1   : > { %v1169_v26 = vsub.f32 %v1159_v20, %v1167_v25 }
 0x2b3   : > { %v3195_v27 = vpop.eup %3194  ;;  %v1172_v28 = vmul.f32 1.442695, %v1169_v26 }
 0x2b4   : > { %v1174_v29 = vsel %vm1160_vm2, %v3195_v27, 0.0 }
 0x2b5   : > { %3196 = vpow2.f32 %v1172_v28  ;;  %1175 = vadd.xlane.f32.xlu2 %v1174_v29 }
 0x2bb   : > { %v3197_v30 = vpop.eup %3196 }
 0x2bc   : > { %v1177_v31 = vsel %vm1164_vm3, %v3197_v30, 0.0 }
 0x2bd   : > { %1178 = vadd.xlane.f32.xlu0 %v1177_v31 }
 0x2c8   : > { %v1185_v37 = vpop.permute.xlu1 %1184 }
 0x2cd   : > { %1186 = vrot.lane.b32.xlu2 %v4315_v9, %s3919_s28  ;;  %s3927_s28 = smov 48  }
 0x2d0   : > { %v1253_v48 = vpop.permute.xlu1 %1252 }
 0x2d1   : > { %1319 = vrot.lane.b32.xlu0 %v4315_v9, %s3921_s8 }
 0x2d5   : > { %1258 = vrot.lane.b32.xlu2 %v4315_v9, %s3922_s7 }
 0x2d8   : > { %v1255_v49 = vpop.permute.xlu1 %1254 }
 0x2d9   : > { %1317 = vrot.lane.b32.xlu0 %v4319_v10, %s3921_s8  ;;  %s3928_s8 = smov 40  }
 0x2dd   : > { %1256 = vrot.lane.b32.xlu2 %v4319_v10, %s3922_s7 }
 0x2e1   : > { %1390 = vrot.lane.b32.xlu0 %v4315_v9, %s4692_s1 }
 0x2e9   : > { %1384 = vrot.lane.b32.xlu0 %v4319_v10, %s3924_s11 }
 0x2f1   : > { %1520 = vrot.lane.b32.xlu0 %v4319_v10, %s4693_s13 }
 0x2f9   : > { %1386 = vrot.lane.b32.xlu0 %v4315_v9, %s3924_s11 }
 0x301   : > { %1518 = vrot.lane.b32.xlu0 %v4315_v9, %s3926_s15 }
 0x328   : > { %v1176_v33 = vpop.xlane.xlu2 %1175 }
 0x329   : > { %3198 = vrcp.f32 %v1176_v33 }
 0x32f   : > { %v3199_v34 = vpop.eup %3198 }
 0x330   : > { %v1187_v35 = vpop.permute.xlu2 %1186  ;;  %v1179_v36 = vpop.xlane.xlu0 %1178  ;;  %v1182_v38 = vmul.f32 %v3199_v34, %v3195_v27 }
 0x331   : > { %3200 = vrcp.f32 %v1179_v36  ;;  %2888 = vmatpush.msk.msra.mxu2 %vm1195_vm4, %v1187_v35 }
 0x333   : > { %1213 = vmatpush.msra.mxu2 %v1185_v37 }
 0x334   : > { %2889 = vmatmul.msk.f32.vlgmr.msra.gmra.mxu2 %vm1160_vm2, %v1182_v38 }
 0x337   : > { %v3201_v39 = vpop.eup %3200 }
 0x338   : > { %v1259_v40 = vpop.permute.xlu2 %1258  ;;  %v1183_v41 = vmul.f32 %v3201_v39, %v3197_v30 }
 0x339   : > { %2893 = vmatpush.xpose.msk.msrb.mxu3 %vm1121_vm1, %v1259_v40  ;;  %v4410_v40 = vld [vmem:[#allocation7] ss:$0 sm:$0xff] }
 0x33c   : > { %2890 = vmatmul.msk.f32.gmra.mxu2 %vm1160_vm2, %v1183_v41 }
 0x340   : > { %v1257_v42 = vpop.permute.xlu2 %1256 }
 0x341   : > { %2894 = vmatpush.xpose.msk.msrb.mxu3 %vm1121_vm1, %v1257_v42 }
 0x343   : > { %v1320_v43 = vpop.permute.xlu0 %1319 }
 0x344   : > { %2897 = vmatpush.msk.msrb.mxu2 %vm1195_vm4, %v1320_v43 }
 0x34b   : > { %v1318_v44 = vpop.permute.xlu0 %1317 }
 0x34c   : > { %1345 = vmatpush.msrb.mxu2 %v1318_v44 }
 0x353   : > { %v1391_v45 = vpop.permute.xlu0 %1390 }
 0x354   : > { %2902 = vmatpush.xpose.msk.msrb.mxu1 %vm1121_vm1, %v1391_v45 }
 0x35b   : > { %v1385_v60 = vpop.permute.xlu0 %1384 }
 0x363   : > { %v1521_v1 = vpop.permute.xlu0 %1520 }
 0x36b   : > { %v1387_v6 = vpop.permute.xlu0 %1386 }
 0x373   : > { %v1519_v32 = vpop.permute.xlu0 %1518 }
 0x3b7   : > { %v1215_v46 = vpop.f32.mrf.mxu2 }
 0x3b8   : > { %2891 = vmatmul.msk.f32.vlgmr.msra.gmra.mxu3 %vm1121_vm1, %v1215_v46 }
 0x3b9   : > { %2959 = vmatpush.msra.mxu3 %v1107_v16 }
 0x3bf   : > { %v1218_v47 = vpop.f32.mrf.mxu2 }
 0x3c0   : > { %2892 = vmatmul.msk.f32.gmra.mxu3 %vm1121_vm1, %v1218_v47 }
 0x3c8   : > { %2895 = vmatmul.msk.f32.vlgmr.msrb.gmra.mxu3 %vm1121_vm1, %v1253_v48 }
 0x3d0   : > { %2896 = vmatmul.msk.f32.gmra.mxu3 %vm1121_vm1, %v1255_v49 }
 0x43b   : > { %v4375_v50 = vpop.f32.mrf.mxu3 }
 0x43c   : > { %v1250_v41 = vadd.f32 %v4410_v40, %v4375_v50 }
 0x443   : > { %v4377_v51 = vpop.f32.mrf.mxu3 }
 0x44b   : > { %v1285_v52 = vpop.f32.mrf.mxu3 }
 0x44c   : > { %v1291_v53 = vmul.f32 0.35355338, %v1285_v52 }
 0x44e   : > { %v1293_v54 = vadd.f32 %v4331_v13, %v1291_v53 }
 0x450   : > { %v1295_v55 = vsel %vm1160_vm2, %v1293_v54, -inf }
 0x451   : > { %1296 = vmax.xlane.f32.xlu2 %v1295_v55 }
 0x453   : > { %v1288_v56 = vpop.f32.mrf.mxu3 }
 0x454   : > { %v1292_v57 = vmul.f32 0.35355338, %v1288_v56 }
 0x456   : > { %v1294_v58 = vadd.f32 %v4331_v13, %v1292_v57 }
 0x458   : > { %v1298_v59 = vsel %vm1164_vm3, %v1294_v58, -inf }
 0x469   : > { %1388 = vrot.lane.b32.xlu2 %v4319_v10, %s4692_s1  ;;  %s4742_s1 = sshll.u32 %s4749_s4, 4 }
 0x471   : > { %1516 = vrot.lane.b32.xlu2 %v4319_v10, %s3926_s15 }
 0x49a   : > { %1299 = vmax.xlane.f32.xlu2 %v1298_v59 }
 0x4c4   : > { %v1297_v61 = vpop.xlane.xlu2 %1296 }
 0x4c5   : > { %v1301_v62 = vsub.f32 %v1293_v54, %v1297_v61 }
 0x4c7   : > { %v1303_v63 = vmul.f32 1.442695, %v1301_v62 }
 0x4c9   : > { %3202 = vpow2.f32 %v1303_v63 }
 0x4cc   : > { %v1389_v0 = vpop.permute.xlu2 %1388 }
 0x4cd   : > { %2903 = vmatpush.xpose.msk.msrb.mxu1 %vm1121_vm1, %v1389_v0 }
 0x4cf   : > { %v3203_v2 = vpop.eup %3202 }
 0x4d0   : > { %2904 = vmatmul.msk.f32.vlgmr.msrb.gmra.mxu1 %vm1121_vm1, %v1385_v60  ;;  %v1307_v3 = vsel %vm1160_vm2, %v3203_v2, 0.0 }
 0x4d1   : > { %1308 = vadd.xlane.f32.xlu1 %v1307_v3 }
 0x4d4   : > { %v1517_v7 = vpop.permute.xlu2 %1516 }
 0x4d8   : > { %2905 = vmatmul.msk.f32.gmra.mxu1 %vm1121_vm1, %v1387_v6 }
 0x4ea   : > { %1522 = vrot.lane.b32.xlu1 %v4315_v9, %s4693_s13 }
 0x50d   : > { %v1300_v8 = vpop.xlane.xlu2 %1299 }
 0x50e   : > { %v1302_v11 = vsub.f32 %v1294_v58, %v1300_v8 }
 0x510   : > { %v1305_v12 = vmul.f32 1.442695, %v1302_v11 }
 0x512   : > { %3204 = vpow2.f32 %v1305_v12 }
 0x518   : > { %v3205_v14 = vpop.eup %3204 }
 0x519   : > { %v1310_v15 = vsel %vm1164_vm3, %v3205_v14, 0.0 }
 0x51a   : > { %1311 = vadd.xlane.f32.xlu1 %v1310_v15 }
 0x544   : > { %v1309_v17 = vpop.xlane.xlu1 %1308 }
 0x545   : > { %3206 = vrcp.f32 %v1309_v17  ;;  %v1108_v17 = vld [vmem:[%s4736_s2 + $0x10] sm:$0xff] }
 0x546   : > { %1506 = vmatpush.msra.mxu2 %v1108_v17 }
 0x54b   : > { %v3207_v18 = vpop.eup %3206 }
 0x54c   : > { %v1315_v19 = vmul.f32 %v3207_v18, %v3203_v2 }
 0x54d   : > { %v1417_v20 = vpop.f32.mrf.mxu1 }
 0x54e   : > { %v1423_v21 = vmul.f32 0.35355338, %v1417_v20  ;;  %2898 = vmatmul.msk.f32.vlgmr.msrb.gmra.mxu2 %vm1160_vm2, %v1315_v19 }
 0x550   : > { %v1425_v22 = vadd.f32 %v4331_v13, %v1423_v21 }
 0x552   : > { %v1427_v23 = vsel %vm1160_vm2, %v1425_v22, -inf }
 0x553   : > { %1428 = vmax.xlane.f32.xlu0 %v1427_v23 }
 0x555   : > { %v1420_v24 = vpop.f32.mrf.mxu1 }
 0x556   : > { %v1424_v25 = vmul.f32 0.35355338, %v1420_v24 }
 0x558   : > { %v1426_v26 = vadd.f32 %v4331_v13, %v1424_v25 }
 0x55a   : > { %v1430_v27 = vsel %vm1164_vm3, %v1426_v26, -inf }
 0x55b   : > { %1431 = vmax.xlane.f32.xlu2 %v1430_v27 }
 0x55c   : > { %v1523_v28 = vpop.permute.xlu1 %1522 }
 0x55d   : > { %2911 = vmatpush.xpose.msk.msra.mxu0 %vm1121_vm1, %v1523_v28 }
 0x561   : > { %2912 = vmatpush.xpose.msk.msra.mxu0 %vm1121_vm1, %v1521_v1 }
 0x58d   : > { %v1312_v29 = vpop.xlane.xlu1 %1311 }
 0x58e   : > { %3208 = vrcp.f32 %v1312_v29 }
 0x594   : > { %v3209_v30 = vpop.eup %3208 }
 0x595   : > { %v1316_v31 = vmul.f32 %v3209_v30, %v3205_v14 }
 0x597   : > { %2899 = vmatmul.msk.f32.gmra.mxu2 %vm1160_vm2, %v1316_v31 }
 0x5c6   : > { %v1429_v33 = vpop.xlane.xlu0 %1428 }
 0x5c7   : > { %v1433_v34 = vsub.f32 %v1425_v22, %v1429_v33  ;;  %v1251_v33 = vadd.f32 %v4410_v40, %v4377_v51 }
 0x5c9   : > { %v1435_v35 = vmul.f32 1.442695, %v1433_v34 }
 0x5cb   : > { %3210 = vpow2.f32 %v1435_v35 }
 0x5ce   : > { %v1432_v45 = vpop.xlane.xlu2 %1431 }
 0x5cf   : > { %v1434_v48 = vsub.f32 %v1426_v26, %v1432_v45  ;;  %v1109_v26 = vld [vmem:[%s4736_s2 + $0x18] sm:$0xff] }
 0x5d1   : > { %v3211_v36 = vpop.eup %3210  ;;  %v1347_v37 = vpop.f32.mrf.mxu2  ;;  %v1437_v52 = vmul.f32 1.442695, %v1434_v48 }
 0x5d2   : > { %2900 = vmatmul.msk.f32.vlgmr.msrb.gmra.mxu0 %vm1121_vm1, %v1347_v37  ;;  %v1439_v38 = vsel %vm1160_vm2, %v3211_v36, 0.0 }
 0x5d3   : > { %1440 = vadd.xlane.f32.xlu2 %v1439_v38  ;;  %3212 = vpow2.f32 %v1437_v52 }
 0x5d9   : > { %v3213_v56 = vpop.eup %3212 }
 0x5da   : > { %2913 = vmatmul.msk.f32.vlgmr.msra.gmra.mxu0 %vm1121_vm1, %v1517_v7  ;;  %v1442_v57 = vsel %vm1164_vm3, %v3213_v56, 0.0 }
 0x5e2   : > { %2914 = vmatmul.msk.f32.gmra.mxu0 %vm1121_vm1, %v1519_v32 }
 0x61a   : > { %v1350_v39 = vpop.f32.mrf.mxu2 }
 0x61b   : > { %2901 = vmatmul.msk.f32.vlgmr.msra.gmra.mxu3 %vm1121_vm1, %v1350_v39 }
 0x646   : > { %v1441_v3 = vpop.xlane.xlu2 %1440 }
 0x64f   : > { %v1376_v42 = vpop.f32.mrf.mxu0 }
 0x650   : > { %v4414_v43 = vadd.f32 %v1376_v42, %v1250_v41 }
 0x657   : > { %v1549_v44 = vpop.f32.mrf.mxu0 }
 0x658   : > { %v1555_v46 = vmul.f32 0.35355338, %v1549_v44  ;;  %v3929_v44 = vmov 32.0  }
 0x65a   : > { %v1557_v47 = vadd.f32 %v4331_v13, %v1555_v46 }
 0x65c   : > { %v1559_v49 = vsel %vm1160_vm2, %v1557_v47, -inf }
 0x65d   : > { %1560 = vmax.xlane.f32.xlu1 %v1559_v49 }
 0x65f   : > { %v1552_v53 = vpop.f32.mrf.mxu0 }
 0x660   : > { %v1556_v54 = vmul.f32 0.35355338, %v1552_v53 }
 0x662   : > { %v1558_v55 = vadd.f32 %v4331_v13, %v1556_v54 }
 0x664   : > { %v1562_v50 = vsel %vm1164_vm3, %v1558_v55, -inf }
 0x665   : > { %1563 = vmax.xlane.f32.xlu0 %v1562_v50 }
 0x66d   : > { %1443 = vadd.xlane.f32.xlu0 %v1442_v57 }
 0x676   : > { %1451 = vrot.lane.b32.xlu1 %v4315_v9, %s3927_s28 }
 0x681   : > { %1449 = vrot.lane.b32.xlu0 %v4319_v10, %s3927_s28  ;;  %s2879_s28 = sshll.u32 %s4749_s4, 3 }
 0x682   : > { %s1057_s0 = scalar_lea.vmem %s4738_s14, %s2879_s28 }
 0x689   : > { %1581 = vrot.lane.b32.xlu0 %v4319_v10, %s3928_s8 }
 0x69e   : > { %v1379_v23 = vpop.f32.mrf.mxu3 }
 0x6d0   : > { %v1561_v58 = vpop.xlane.xlu1 %1560 }
 0x6d1   : > { %v1565_v59 = vsub.f32 %v1557_v47, %v1561_v58  ;;  %v1749_v58 = vld [vmem:[%s4737_s30 + $0x18] sm:$0xff] }
 0x6d2   : > { %1772 = vmatpush.msrb.mxu2 %v1749_v58 }
 0x6d3   : > { %v1567_v60 = vmul.f32 1.442695, %v1565_v59  ;;  %v1748_v59 = vld [vmem:[%s4737_s30 + $0x10] sm:$0xff] }
 0x6d4   : > { %1773 = vmatpush.msrb.mxu2 %v1748_v59  ;;  %v3184_v59 = vld [vmem:[#allocation15] ss:$0 sm:$0xff] }
 0x6d5   : > { %3214 = vpow2.f32 %v1567_v60  ;;  %v1786_v60 = vld [vmem:[#allocation13 + $0x18] sm:$0xff] }
 0x6d6   : > { %1806 = vmatpush.msrb.mxu0 %v1786_v60 }
 0x6d8   : > { %v1564_v13 = vpop.xlane.xlu0 %1563 }
 0x6d9   : > { %v1566_v61 = vsub.f32 %v1558_v55, %v1564_v13  ;;  %v1785_v13 = vld [vmem:[#allocation13 + $0x10] sm:$0xff] }
 0x6da   : > { %1807 = vmatpush.msrb.mxu0 %v1785_v13 }
 0x6db   : > { %v3215_v62 = vpop.eup %3214  ;;  %v1569_v63 = vmul.f32 1.442695, %v1566_v61  ;;  %v1747_v61 = vld [vmem:[%s4737_s30 + $0x8] sm:$0xff] }
 0x6dc   : > { %v1571_v0 = vsel %vm1160_vm2, %v3215_v62, 0.0  ;;  %1774 = vmatpush.msrb.mxu2 %v1747_v61 }
 0x6dd   : > { %3216 = vpow2.f32 %v1569_v63  ;;  %1572 = vadd.xlane.f32.xlu2 %v1571_v0  ;;  %v1746_v63 = vld [vmem:[%s4737_s30] sm:$0xff] }
 0x6de   : > { %3218 = vrcp.f32 %v1441_v3  ;;  %1775 = vmatpush.msrb.mxu2 %v1746_v63 }
 0x6e0   : > { %v1444_v10 = vpop.xlane.xlu0 %1443 }
 0x6e1   : > { %3220 = vrcp.f32 %v1444_v10 }
 0x6e3   : > { %v3217_v1 = vpop.eup %3216 }
 0x6e4   : > { %v1574_v2 = vsel %vm1164_vm3, %v3217_v1, 0.0  ;;  %v3219_v7 = vpop.eup %3218 }
 0x6e5   : > { %1575 = vadd.xlane.f32.xlu1 %v1574_v2  ;;  %v1447_v8 = vmul.f32 %v3219_v7, %v3211_v36  ;;  %v1383_v36 = vadd.f32 %v1379_v23, %v1251_v33 }
 0x6e7   : > { %v3221_v12 = vpop.eup %3220 }
 0x6e8   : > { %v1452_v6 = vpop.permute.xlu1 %1451  ;;  %v1448_v14 = vmul.f32 %v3221_v12, %v3213_v56 }
 0x6e9   : > { %2906 = vmatpush.msk.msrb.mxu3 %vm1195_vm4, %v1452_v6 }
 0x6f3   : > { %v1450_v11 = vpop.permute.xlu0 %1449 }
 0x6f4   : > { %1477 = vmatpush.msrb.mxu3 %v1450_v11  ;;  %v1783_v11 = vld [vmem:[#allocation13] sm:$0xff] }
 0x6f5   : > { %1583 = vrot.lane.b32.xlu2 %v4315_v9, %s3928_s8  ;;  %2907 = vmatmul.msk.f32.vlgmr.msrb.gmra.mxu3 %vm1160_vm2, %v1447_v8  ;;  %v1784_v8 = vld [vmem:[#allocation13 + $0x8] sm:$0xff] }
 0x6f6   : > { %1638 = vmatpush.msra.mxu3 %v1109_v26  ;;  %1808 = vmatpush.msrb.mxu0 %v1784_v8 }
 0x6f8   : > { %1809 = vmatpush.msrb.mxu0 %v1783_v11 }
 0x6fb   : > { %v1582_v9 = vpop.permute.xlu0 %1581 }
 0x6fd   : > { %2908 = vmatmul.msk.f32.gmra.mxu3 %vm1160_vm2, %v1448_v14  ;;  %v1065_v14 = vld [vmem:[%s1057_s0] sm:$0xff] }
 0x6fe   : > { %2922 = vmatmul.msk.f32.vlgmr.msrb.gmra.mxu0 %vm1076_vm0, %v1065_v14 }
 0x750   : > { %v1573_v15 = vpop.xlane.xlu2 %1572 }
 0x751   : > { %3222 = vrcp.f32 %v1573_v15 }
 0x757   : > { %v3223_v16 = vpop.eup %3222 }
 0x758   : > { %v1584_v18 = vpop.permute.xlu2 %1583  ;;  %v1576_v19 = vpop.xlane.xlu1 %1575  ;;  %v1579_v20 = vmul.f32 %v3223_v16, %v3215_v62 }
 0x759   : > { %3224 = vrcp.f32 %v1576_v19  ;;  %2915 = vmatpush.msk.msra.mxu1 %vm1195_vm4, %v1584_v18 }
 0x75a   : > { %3226 = vrcp.f32 %v3929_v44  ;;  %v3183_v44 = vld [vmem:[#allocation10] ss:$0 sm:$0xff] }
 0x75b   : > { %1609 = vmatpush.msra.mxu1 %v1582_v9 }
 0x75c   : > { %2916 = vmatmul.msk.f32.vlgmr.msra.gmra.mxu1 %vm1160_vm2, %v1579_v20 }
 0x75f   : > { %v3225_v21 = vpop.eup %3224 }
 0x760   : > { %v1580_v22 = vmul.f32 %v3225_v21, %v3217_v1  ;;  %v3227_v45 = vpop.eup %3226 }
 0x761   : > { %v1660_v51 = vmul.f32 32.0, %v3227_v45  ;;  %vm1664_vm6 = vweird.f32 %v3227_v45 }
 0x763   : > { %v1661_v40 = vsub.f32 1.0, %v1660_v51 }
 0x764   : > { %2917 = vmatmul.msk.f32.gmra.mxu1 %vm1160_vm2, %v1580_v22 }
 0x778   : > { %v1479_v24 = vpop.f32.mrf.mxu3 }
 0x779   : > { %2909 = vmatmul.msk.f32.vlgmr.msra.gmra.mxu2 %vm1121_vm1, %v1479_v24 }
 0x77b   : > { %v1811_v60 = vpop.f32.mrf.mxu0 }
 0x77c   : > { %v4491_v13 = vadd.f32 %v3184_v59, %v1811_v60 }
 0x77e   : > { %2923 = vmatpush.xpose.msk.msrb.mxu1 %vm1121_vm1, %v4491_v13 }
 0x780   : > { %v1482_v25 = vpop.f32.mrf.mxu3 }
 0x781   : > { %2910 = vmatmul.msk.f32.gmra.mxu2 %vm1121_vm1, %v1482_v25 }
 0x7d9   : > { %v1611_v27 = vpop.f32.mrf.mxu1 }
 0x7da   : > { %2918 = vmatmul.msk.f32.vlgmr.msra.gmra.mxu3 %vm1121_vm1, %v1611_v27 }
 0x7e1   : > { %v1614_v28 = vpop.f32.mrf.mxu1 }
 0x7e2   : > { %2919 = vmatmul.msk.f32.gmra.mxu3 %vm1121_vm1, %v1614_v28 }
 0x7fc   : > { %v1508_v29 = vpop.f32.mrf.mxu2 }
 0x7fd   : > { %v1514_v30 = vadd.f32 %v1508_v29, %v4414_v43 }
 0x804   : > { %v1511_v35 = vpop.f32.mrf.mxu2 }
 0x805   : > { %v1515_v38 = vadd.f32 %v1511_v35, %v1383_v36  ;;  %v3182_v35 = vld [vmem:[#allocation9] ss:$0 sm:$0xff] }
 0x85d   : > { %v1640_v31 = vpop.f32.mrf.mxu3 }
 0x85e   : > { %v1646_v32 = vadd.f32 %v1640_v31, %v1514_v30 }
 0x860   : > { %v1648_v34 = vadd.f32 %v1646_v32, %v4307_v4  ;;  %v1662_v4 = vmul.f32 %v3227_v45, %v1661_v40 }
 0x862   : > { %v1652_v37 = vsel %vm1076_vm0, %v1648_v34, 0.0  ;;  %v1663_v46 = vadd.f32 %v3227_v45, %v1662_v4 }
 0x863   : > { %1653 = vadd.xlane.f32.xlu2 %v1652_v37 }
 0x864   : > { %v4450_v47 = vsel %vm1664_vm6, %v3227_v45, %v1663_v46  ;;  %vm1865_vm6 = vcmask 60416  }
 0x865   : > { %v1643_v39 = vpop.f32.mrf.mxu3 }
 0x866   : > { %v1647_v41 = vadd.f32 %v1643_v39, %v1515_v38 }
 0x868   : > { %v1649_v42 = vadd.f32 %v1647_v41, %v4311_v5 }
 0x86a   : > { %v1656_v43 = vsel %vm1655_vm5, %v1649_v42, 0.0 }
 0x86b   : > { %1657 = vadd.xlane.f32.xlu0 %v1656_v43 }
 0x87b   : > { %1952 = vrot.lane.b32.xlu2 %v4491_v13, %s3920_s20 }
 0x8d6   : > { %v1654_v48 = vpop.xlane.xlu2 %1653 }
 0x8d7   : > { %v1666_v49 = vmul.f32 %v4450_v47, %v1654_v48 }
 0x8d9   : > { %v4453_v52 = vsub.f32 %v1648_v34, %v1666_v49 }
 0x8db   : > { %v1670_v5 = vmul.f32 %v4453_v52, %v4453_v52 }
 0x8dd   : > { %v1672_v53 = vsel %vm1076_vm0, %v1670_v5, 0.0 }
 0x8de   : > { %1673 = vadd.xlane.f32.xlu1 %v1672_v53  ;;  %v1658_v54 = vpop.xlane.xlu0 %1657 }
 0x8df   : > { %v1667_v55 = vmul.f32 %v4450_v47, %v1658_v54 }
 0x8e1   : > { %v4459_v50 = vsub.f32 %v1649_v42, %v1667_v55  ;;  %v1707_v42 = vmul.f32 %v3182_v35, %v4453_v52 }
 0x8e3   : > { %v1671_v56 = vmul.f32 %v4459_v50, %v4459_v50  ;;  %v1708_v54 = vmul.f32 %v3182_v35, %v4459_v50  ;;  %v3185_v50 = vld [vmem:[#allocation12] ss:$0 sm:$0xff] }
 0x8e5   : > { %v1675_v57 = vsel %vm1655_vm5, %v1671_v56, 0.0 }
 0x8e6   : > { %1676 = vadd.xlane.f32.xlu1 %v1675_v57 }
 0x951   : > { %v1674_v62 = vpop.xlane.xlu1 %1673 }
 0x952   : > { %v1678_v0 = vmul.f32 0.032258064, %v1674_v62 }
 0x954   : > { %3228 = vrsqrt.f32 %v1678_v0  ;;  %vm1687_vm7 = vcmp.eq.f32.partialorder %v1678_v0, inf  ;;  %v1690_v9 = vand.u32 2147483648, %v1678_v0  ;;  %vm1689_vm8 = vcmp.eq.f32.partialorder %v1678_v0, 0.0 }
 0x959   : > { %v1677_v1 = vpop.xlane.xlu1 %1676 }
 0x95a   : > { %v3229_v2 = vpop.eup %3228  ;;  %v1679_v3 = vmul.f32 0.032258064, %v1677_v1  ;;  %v1953_v1 = vpop.permute.xlu2 %1952 }
 0x95b   : > { %v1681_v6 = vmul.f32 %v3229_v2, %v1678_v0  ;;  %2930 = vmatpush.xpose.msk.msra.mxu2 %vm1121_vm1, %v1953_v1 }
 0x95c   : > { %3230 = vrsqrt.f32 %v1679_v3  ;;  %vm1699_vm9 = vcmp.eq.f32.partialorder %v1679_v3, inf  ;;  %v1702_v27 = vand.u32 2147483648, %v1679_v3  ;;  %vm1701_vm10 = vcmp.eq.f32.partialorder %v1679_v3, 0.0 }
 0x95d   : > { %v1682_v10 = vmul.f32 %v3229_v2, %v1681_v6  ;;  %v4510_v6 = vld [vmem:[%s891_s10] ss:$0 sm:$0xff]  ;;  %s4740_s10 = smov 80  }
 0x95f   : > { %v1683_v7 = vmul.f32 0.5, %v1682_v10 }
 0x961   : > { %v1684_v12 = vsub.f32 1.5, %v1683_v7 }
 0x962   : > { %v3231_v15 = vpop.eup %3230 }
 0x963   : > { %v1685_v16 = vmul.f32 %v3229_v2, %v1684_v12  ;;  %v1693_v17 = vmul.f32 %v3231_v15, %v1679_v3 }
 0x965   : > { %v1686_v18 = vmul.f32 %v1685_v16, %v1678_v0  ;;  %v1694_v19 = vmul.f32 %v3231_v15, %v1693_v17 }
 0x967   : > { %v1688_v20 = vsel %vm1687_vm7, %v1678_v0, %v1686_v18  ;;  %v1695_v21 = vmul.f32 0.5, %v1694_v19 }
 0x968   : > { %v1691_v22 = vsel %vm1689_vm8, %v1690_v9, %v1688_v20 }
 0x969   : > { %v1709_v23 = vadd.f32 1e-06, %v1691_v22  ;;  %v1696_v24 = vsub.f32 1.5, %v1695_v21 }
 0x96b   : > { %3232 = vrcp.f32 %v1709_v23  ;;  %v1697_v25 = vmul.f32 %v3231_v15, %v1696_v24  ;;  %v1722_v34 = vand.u32 2147483648, %v1709_v23  ;;  %v1720_v37 = vand.u32 2147483647, %v1709_v23 }
 0x96c   : > { %vm1716_vm12 = vweird.f32 %v1709_v23 }
 0x96d   : > { %v1698_v26 = vmul.f32 %v1697_v25, %v1679_v3  ;;  %v1723_v41 = vor.u32 1.1754944e-38, %v1722_v34  ;;  %vm1721_vm14 = vcmp.eq.f32.partialorder %v1720_v37, 8.507059e+37 }
 0x96f   : > { %v1700_v28 = vsel %vm1699_vm9, %v1679_v3, %v1698_v26 }
 0x970   : > { %v1703_v29 = vsel %vm1701_vm10, %v1702_v27, %v1700_v28 }
 0x971   : > { %v3233_v30 = vpop.eup %3232  ;;  %v1710_v31 = vadd.f32 1e-06, %v1703_v29 }
 0x972   : > { %v1712_v32 = vmul.f32 %v3233_v30, %v1709_v23  ;;  %vm1717_vm11 = vweird.f32 %v3233_v30 }
 0x973   : > { %3234 = vrcp.f32 %v1710_v31  ;;  %vm1718_vm13 = vmor %vm1716_vm12, %vm1717_vm11  ;;  %v1737_v46 = vand.u32 2147483648, %v1710_v31  ;;  %v1735_v5 = vand.u32 2147483647, %v1710_v31  ;;  %vm1731_vm2 = vweird.f32 %v1710_v31 }
 0x974   : > { %v1713_v33 = vsub.f32 1.0, %v1712_v32 }
 0x975   : > { %v1738_v52 = vor.u32 1.1754944e-38, %v1737_v46  ;;  %vm1736_vm4 = vcmp.eq.f32.partialorder %v1735_v5, 8.507059e+37 }
 0x976   : > { %v1714_v36 = vmul.f32 %v3233_v30, %v1713_v33 }
 0x978   : > { %v1715_v38 = vadd.f32 %v3233_v30, %v1714_v36 }
 0x979   : > { %v3235_v39 = vpop.eup %3234 }
 0x97a   : > { %v1719_v43 = vsel %vm1718_vm13, %v3233_v30, %v1715_v38  ;;  %v1727_v45 = vmul.f32 %v3235_v39, %v1710_v31  ;;  %vm1732_vm15 = vweird.f32 %v3235_v39 }
 0x97b   : > { %v1724_v51 = vsel %vm1721_vm14, %v1723_v41, %v1719_v43  ;;  %vm1733_vm3 = vmor %vm1731_vm2, %vm1732_vm15 }
 0x97c   : > { %v1725_v40 = vmul.f32 %v1724_v51, %v1707_v42  ;;  %v1728_v4 = vsub.f32 1.0, %v1727_v45 }
 0x97e   : > { %v4482_v48 = vadd.f32 %v3183_v44, %v1725_v40  ;;  %v1729_v49 = vmul.f32 %v3235_v39, %v1728_v4  ;;  %v1815_v4 = vld [vmem:[#allocation16 + $0x8] sm:$0xff] }
 0x980   : > { %2920 = vmatmul.msk.f32.vlgmr.msrb.gmra.mxu2 %vm1076_vm0, %v4482_v48  ;;  %v1730_v53 = vadd.f32 %v3235_v39, %v1729_v49 }
 0x982   : > { %v1734_v55 = vsel %vm1733_vm3, %v3235_v39, %v1730_v53 }
 0x983   : > { %v1739_v56 = vsel %vm1736_vm4, %v1738_v52, %v1734_v55  ;;  %v1814_v55 = vld [vmem:[#allocation16] sm:$0xff]  ;;  %vm2461_vm4 = vcmask 523264  }
 0x984   : > { %v1740_v57 = vmul.f32 %v1739_v56, %v1708_v54  ;;  %1938 = vmatpush.msrb.mxu3 %v1814_v55 }
 0x986   : > { %v4487_v58 = vadd.f32 %v3183_v44, %v1740_v57 }
 0x988   : > { %2921 = vmatmul.msk.f32.gmra.mxu2 %vm1076_vm0, %v4487_v58 }
 0xa03   : > { %v1777_v61 = vpop.f32.mrf.mxu2 }
 0xa04   : > { %v1778_v62 = vadd.f32 %v3185_v50, %v1777_v61 }
 0xa06   : > { %1948 = vrot.lane.b32.xlu0 %v1778_v62, %s3920_s20  ;;  %2924 = vmatmul.msk.f32.vlgmr.msrb.gmra.mxu1 %vm1121_vm1, %v1778_v62 }
 0xa0b   : > { %v1780_v63 = vpop.f32.mrf.mxu2 }
 0xa0c   : > { %v4499_v0 = vadd.f32 %v3185_v50, %v1780_v63 }
 0xa0e   : > { %1950 = vrot.lane.b32.xlu1 %v4499_v0, %s3920_s20  ;;  %2925 = vmatmul.msk.f32.gmra.mxu1 %vm1121_vm1, %v4499_v0 }
 0xa78   : > { %v1949_v2 = vpop.permute.xlu0 %1948 }
 0xa79   : > { %2931 = vmatmul.msk.f32.vlgmr.msra.gmra.mxu2 %vm1121_vm1, %v1949_v2 }
 0xa80   : > { %v1951_v3 = vpop.permute.xlu1 %1950 }
 0xa81   : > { %2932 = vmatmul.msk.f32.gmra.mxu2 %vm1121_vm1, %v1951_v3 }
 0xa83   : > { %v1849_v10 = vpop.f32.mrf.mxu1 }
 0xa84   : > { %v1855_v7 = vmul.f32 0.35355338, %v1849_v10 }
 0xa86   : > { %v1860_v8 = vadd.f32 %v4510_v6, %v1855_v7 }
 0xa88   : > { %v1862_v11 = vsel %vm1121_vm1, %v1860_v8, -inf }
 0xa89   : > { %1863 = vmax.xlane.f32.xlu0 %v1862_v11 }
 0xa8b   : > { %v1852_v12 = vpop.f32.mrf.mxu1 }
 0xa8c   : > { %v1856_v14 = vmul.f32 0.35355338, %v1852_v12 }
 0xa8e   : > { %v1861_v15 = vadd.f32 %v4510_v6, %v1856_v14 }
 0xa90   : > { %v1866_v16 = vsel %vm1865_vm6, %v1861_v15, -inf }
 0xa91   : > { %1867 = vmax.xlane.f32.xlu1 %v1866_v16 }
 0xafc   : > { %v1864_v17 = vpop.xlane.xlu0 %1863  ;;  %v1977_v18 = vpop.f32.mrf.mxu2 }
 0xafd   : > { %v1869_v19 = vsub.f32 %v1860_v8, %v1864_v17  ;;  %v1983_v9 = vmul.f32 0.35355338, %v1977_v18  ;;  %v3187_v18 = vld [vmem:[#allocation18] ss:$0 sm:$0xff] }
 0xaff   : > { %v1871_v20 = vmul.f32 1.442695, %v1869_v19  ;;  %v1985_v21 = vadd.f32 %v4510_v6, %v1983_v9 }
 0xb01   : > { %3236 = vpow2.f32 %v1871_v20  ;;  %v1987_v22 = vsel %vm1121_vm1, %v1985_v21, -inf }
 0xb02   : > { %1988 = vmax.xlane.f32.xlu2 %v1987_v22 }
 0xb04   : > { %v1980_v23 = vpop.f32.mrf.mxu2  ;;  %v1868_v24 = vpop.xlane.xlu1 %1867 }
 0xb05   : > { %v1984_v25 = vmul.f32 0.35355338, %v1980_v23  ;;  %v1870_v26 = vsub.f32 %v1861_v15, %v1868_v24 }
 0xb07   : > { %v3237_v27 = vpop.eup %3236  ;;  %v1873_v28 = vmul.f32 1.442695, %v1870_v26  ;;  %v1986_v29 = vadd.f32 %v4510_v6, %v1984_v25 }
 0xb08   : > { %v1875_v30 = vsel %vm1121_vm1, %v3237_v27, 0.0 }
 0xb09   : > { %3238 = vpow2.f32 %v1873_v28  ;;  %v1990_v31 = vsel %vm1865_vm6, %v1986_v29, -inf }
 0xb0a   : > { %1876 = vadd.xlane.f32.xlu2 %v1875_v30  ;;  %1991 = vmax.xlane.f32.xlu0 %v1990_v31 }
 0xb0f   : > { %v3239_v32 = vpop.eup %3238 }
 0xb10   : > { %v1878_v33 = vsel %vm1865_vm6, %v3239_v32, 0.0 }
 0xb11   : > { %1879 = vadd.xlane.f32.xlu1 %v1878_v33 }
 0xb22   : > { %1885 = vrot.lane.b32.xlu2 %v4491_v13, %s3918_s5 }
 0xb2a   : > { %2200 = vrot.lane.b32.xlu2 %v4491_v13, %s3926_s15  ;;  %2009 = vrot.lane.b32.xlu1 %v4491_v13, %s3922_s7  ;;  %s4741_s7 = sld [smem:[#allocation60_spill]] }
 0xb32   : > { %2072 = vrot.lane.b32.xlu2 %v1778_v62, %s3924_s11  ;;  %2196 = vrot.lane.b32.xlu1 %v1778_v62, %s3926_s15 }
 0xb3a   : > { %2198 = vrot.lane.b32.xlu2 %v4499_v0, %s3926_s15  ;;  %s4743_s15 = sld [smem:[#allocation61_spill]] }
 0xb40   : > { %s1062_s16 = scalar_lea.vmem %s4743_s15, %s4742_s1 }
 0xb75   : > { %v1989_v34 = vpop.xlane.xlu2 %1988 }
 0xb76   : > { %v1993_v35 = vsub.f32 %v1985_v21, %v1989_v34 }
 0xb78   : > { %v1995_v36 = vmul.f32 1.442695, %v1993_v35 }
 0xb7a   : > { %3240 = vpow2.f32 %v1995_v36 }
 0xb7d   : > { %v1877_v37 = vpop.xlane.xlu2 %1876  ;;  %v1992_v38 = vpop.xlane.xlu0 %1991 }
 0xb7e   : > { %3242 = vrcp.f32 %v1877_v37  ;;  %v1994_v39 = vsub.f32 %v1986_v29, %v1992_v38 }
 0xb80   : > { %v3241_v41 = vpop.eup %3240  ;;  %v1997_v42 = vmul.f32 1.442695, %v1994_v39 }
 0xb81   : > { %v1999_v43 = vsel %vm1121_vm1, %v3241_v41, 0.0 }
 0xb82   : > { %3244 = vpow2.f32 %v1997_v42  ;;  %2000 = vadd.xlane.f32.xlu0 %v1999_v43 }
 0xb84   : > { %v3243_v44 = vpop.eup %3242  ;;  %v1880_v45 = vpop.xlane.xlu1 %1879 }
 0xb85   : > { %v1883_v51 = vmul.f32 %v3243_v44, %v3237_v27  ;;  %3246 = vrcp.f32 %v1880_v45  ;;  %v1886_v40 = vpop.permute.xlu2 %1885 }
 0xb86   : > { %1909 = vmatpush.msra.mxu0 %v1886_v40 }
 0xb87   : > { %2926 = vmatmul.msk.f32.vlgmr.msra.gmra.mxu0 %vm1121_vm1, %v1883_v51 }
 0xb88   : > { %v3245_v46 = vpop.eup %3244  ;;  %2062 = vmatpush.msrb.mxu0 %v1815_v4 }
 0xb89   : > { %v2002_v49 = vsel %vm1865_vm6, %v3245_v46, 0.0 }
 0xb8a   : > { %2003 = vadd.xlane.f32.xlu0 %v2002_v49 }
 0xb8b   : > { %v3247_v5 = vpop.eup %3246 }
 0xb8c   : > { %v1884_v53 = vmul.f32 %v3247_v5, %v3239_v32 }
 0xb8d   : > { %v2201_v52 = vpop.permute.xlu2 %2200 }
 0xb8e   : > { %2944 = vmatpush.xpose.msk.msra.mxu0 %vm1121_vm1, %v2201_v52 }
 0xb8f   : > { %2927 = vmatmul.msk.f32.gmra.mxu0 %vm1121_vm1, %v1884_v53 }
 0xb95   : > { %v2073_v1 = vpop.permute.xlu2 %2072 }
 0xb9c   : > { %v2010_v54 = vpop.permute.xlu1 %2009 }
 0xb9d   : > { %2033 = vmatpush.msra.mxu1 %v2010_v54  ;;  %v2199_v12 = vpop.permute.xlu2 %2198 }
 0xb9e   : > { %2076 = vrot.lane.b32.xlu0 %v4491_v13, %s3924_s11 }
 0xba4   : > { %v2197_v8 = vpop.permute.xlu1 %2196 }
 0xba6   : > { %2074 = vrot.lane.b32.xlu0 %v4499_v0, %s3924_s11 }
 0xbf5   : > { %v2001_v56 = vpop.xlane.xlu0 %2000 }
 0xbf6   : > { %3248 = vrcp.f32 %v2001_v56 }
 0xbfc   : > { %v3249_v57 = vpop.eup %3248 }
 0xbfd   : > { %v2007_v59 = vmul.f32 %v3249_v57, %v3241_v41  ;;  %v2004_v60 = vpop.xlane.xlu0 %2003 }
 0xbfe   : > { %3250 = vrcp.f32 %v2004_v60 }
 0xbff   : > { %2933 = vmatmul.msk.f32.vlgmr.msra.gmra.mxu1 %vm1121_vm1, %v2007_v59 }
 0xc04   : > { %v3251_v50 = vpop.eup %3250  ;;  %v1911_v61 = vpop.f32.mrf.mxu0 }
 0xc05   : > { %2928 = vmatmul.msk.f32.vlgmr.msrb.gmra.mxu3 %vm1121_vm1, %v1911_v61  ;;  %v2008_v62 = vmul.f32 %v3251_v50, %v3245_v46 }
 0xc07   : > { %2934 = vmatmul.msk.f32.gmra.mxu1 %vm1121_vm1, %v2008_v62 }
 0xc0c   : > { %v1914_v63 = vpop.f32.mrf.mxu0 }
 0xc0d   : > { %2929 = vmatmul.msk.f32.gmra.mxu3 %vm1121_vm1, %v1914_v63 }
 0xc10   : > { %v2077_v0 = vpop.permute.xlu0 %2076 }
 0xc11   : > { %2937 = vmatpush.xpose.msk.msra.mxu3 %vm1121_vm1, %v2077_v0 }
 0xc15   : > { %2938 = vmatmul.msk.f32.vlgmr.msra.gmra.mxu3 %vm1121_vm1, %v2073_v1 }
 0xc18   : > { %v2075_v2 = vpop.permute.xlu0 %2074 }
 0xc1d   : > { %2939 = vmatmul.msk.f32.gmra.mxu3 %vm1121_vm1, %v2075_v2 }
 0xc7c   : > { %v2035_v3 = vpop.f32.mrf.mxu1 }
 0xc7d   : > { %2935 = vmatmul.msk.f32.vlgmr.msrb.gmra.mxu0 %vm1121_vm1, %v2035_v3 }
 0xc84   : > { %v2038_v10 = vpop.f32.mrf.mxu1 }
 0xc85   : > { %2936 = vmatmul.msk.f32.gmra.mxu0 %vm1121_vm1, %v2038_v10 }
 0xc88   : > { %v1940_v7 = vpop.f32.mrf.mxu3 }
 0xc89   : > { %v1946_v19 = vadd.f32 %v3187_v18, %v1940_v7  ;;  %v1817_v7 = vld [vmem:[#allocation16 + $0x18] sm:$0xff] }
 0xc8d   : > { %2945 = vmatmul.msk.f32.vlgmr.msra.gmra.mxu0 %vm1121_vm1, %v2197_v8  ;;  %v1816_v8 = vld [vmem:[#allocation16 + $0x10] sm:$0xff] }
 0xc8e   : > { %2186 = vmatpush.msrb.mxu1 %v1816_v8 }
 0xc90   : > { %v1943_v11 = vpop.f32.mrf.mxu3 }
 0xc91   : > { %v1947_v21 = vadd.f32 %v3187_v18, %v1943_v11 }
 0xc95   : > { %2946 = vmatmul.msk.f32.gmra.mxu0 %vm1121_vm1, %v2199_v12 }
 0xc98   : > { %v2101_v14 = vpop.f32.mrf.mxu3 }
 0xc99   : > { %v2107_v15 = vmul.f32 0.35355338, %v2101_v14 }
 0xc9b   : > { %v2109_v16 = vadd.f32 %v4510_v6, %v2107_v15 }
 0xc9d   : > { %v2111_v17 = vsel %vm1121_vm1, %v2109_v16, -inf }
 0xc9e   : > { %2112 = vmax.xlane.f32.xlu0 %v2111_v17 }
 0xca0   : > { %v2104_v26 = vpop.f32.mrf.mxu3 }
 0xca1   : > { %v2108_v28 = vmul.f32 0.35355338, %v2104_v26 }
 0xca3   : > { %v2110_v34 = vadd.f32 %v4510_v6, %v2108_v28 }
 0xca5   : > { %v2114_v37 = vsel %vm1865_vm6, %v2110_v34, -inf }
 0xcfa   : > { %v2064_v9 = vpop.f32.mrf.mxu0 }
 0xcfb   : > { %v4554_v20 = vadd.f32 %v2064_v9, %v1946_v19 }
 0xd02   : > { %v2067_v22 = vpop.f32.mrf.mxu0 }
 0xd03   : > { %v4556_v23 = vadd.f32 %v2067_v22, %v1947_v21 }
 0xd0a   : > { %v2225_v24 = vpop.f32.mrf.mxu0 }
 0xd0b   : > { %v2231_v25 = vmul.f32 0.35355338, %v2225_v24 }
 0xd0d   : > { %v2233_v27 = vadd.f32 %v4510_v6, %v2231_v25 }
 0xd0f   : > { %v2235_v29 = vsel %vm1121_vm1, %v2233_v27, -inf }
 0xd10   : > { %2236 = vmax.xlane.f32.xlu1 %v2235_v29 }
 0xd11   : > { %v2113_v30 = vpop.xlane.xlu0 %2112 }
 0xd12   : > { %v2117_v31 = vsub.f32 %v2109_v16, %v2113_v30  ;;  %v2228_v32 = vpop.f32.mrf.mxu0 }
 0xd13   : > { %v2232_v33 = vmul.f32 0.35355338, %v2228_v32 }
 0xd14   : > { %v2119_v35 = vmul.f32 1.442695, %v2117_v31 }
 0xd15   : > { %v2234_v36 = vadd.f32 %v4510_v6, %v2232_v33 }
 0xd16   : > { %3252 = vpow2.f32 %v2119_v35  ;;  %v2413_v35 = vld [vmem:[#allocation22 + $0x18] sm:$0xff] }
 0xd17   : > { %v2238_v38 = vsel %vm1865_vm6, %v2234_v36, -inf  ;;  %2445 = vmatpush.msra.mxu1 %v2413_v35 }
 0xd18   : > { %2115 = vmax.xlane.f32.xlu1 %v2114_v37  ;;  %2239 = vmax.xlane.f32.xlu2 %v2238_v38  ;;  %v2411_v37 = vld [vmem:[#allocation22 + $0x8] sm:$0xff] }
 0xd1c   : > { %v3253_v39 = vpop.eup %3252 }
 0xd1d   : > { %v2123_v41 = vsel %vm1121_vm1, %v3253_v39, 0.0 }
 0xd20   : > { %2124 = vadd.xlane.f32.xlu2 %v2123_v41 }
 0xd83   : > { %v2237_v42 = vpop.xlane.xlu1 %2236 }
 0xd84   : > { %v2241_v43 = vsub.f32 %v2233_v27, %v2237_v42 }
 0xd86   : > { %v2243_v44 = vmul.f32 1.442695, %v2241_v43 }
 0xd88   : > { %3254 = vpow2.f32 %v2243_v44 }
 0xd8b   : > { %v2116_v45 = vpop.xlane.xlu1 %2115  ;;  %v2240_v51 = vpop.xlane.xlu2 %2239 }
 0xd8c   : > { %v2118_v40 = vsub.f32 %v2110_v34, %v2116_v45  ;;  %v2242_v4 = vsub.f32 %v2234_v36, %v2240_v51  ;;  %v2412_v36 = vld [vmem:[#allocation22 + $0x10] sm:$0xff] }
 0xd8d   : > { %2446 = vmatpush.msra.mxu1 %v2412_v36  ;;  %v2417_v36 = vld [vmem:[%s4741_s7 + $0x10] sm:$0xff] }
 0xd8e   : > { %v3255_v6 = vpop.eup %3254  ;;  %v2121_v46 = vmul.f32 1.442695, %v2118_v40  ;;  %v2245_v49 = vmul.f32 1.442695, %v2242_v4 }
 0xd8f   : > { %v2247_v5 = vsel %vm1121_vm1, %v3255_v6, 0.0  ;;  %2447 = vmatpush.msra.mxu1 %v2411_v37  ;;  %v2416_v37 = vld [vmem:[%s4741_s7 + $0x8] sm:$0xff] }
 0xd90   : > { %3256 = vpow2.f32 %v2121_v46  ;;  %2248 = vadd.xlane.f32.xlu0 %v2247_v5 }
 0xd91   : > { %3258 = vpow2.f32 %v2245_v49 }
 0xd93   : > { %v2125_v61 = vpop.xlane.xlu2 %2124 }
 0xd96   : > { %v3257_v53 = vpop.eup %3256 }
 0xd97   : > { %v3259_v52 = vpop.eup %3258  ;;  %v2126_v54 = vsel %vm1865_vm6, %v3257_v53, 0.0 }
 0xd98   : > { %2127 = vadd.xlane.f32.xlu2 %v2126_v54  ;;  %v2250_v55 = vsel %vm1865_vm6, %v3259_v52, 0.0 }
 0xd99   : > { %2251 = vadd.xlane.f32.xlu1 %v2250_v55 }
 0xda4   : > { %2257 = vrot.lane.b32.xlu0 %v4491_v13, %s4739_s29 }
 0xdb2   : > { %2133 = vrot.lane.b32.xlu1 %v4491_v13, %s4740_s10 }
 0xe03   : > { %v2249_v56 = vpop.xlane.xlu0 %2248 }
 0xe04   : > { %3260 = vrcp.f32 %v2249_v56 }
 0xe0a   : > { %v3261_v59 = vpop.eup %3260 }
 0xe0b   : > { %v2255_v60 = vmul.f32 %v3261_v59, %v3255_v6  ;;  %v2128_v0 = vpop.xlane.xlu2 %2127  ;;  %v2421_v59 = vld [vmem:[%s4741_s7 + $0x30] sm:$0xff] }
 0xe0c   : > { %v2252_v57 = vpop.xlane.xlu1 %2251 }
 0xe0d   : > { %3262 = vrcp.f32 %v2252_v57  ;;  %v2422_v57 = vld [vmem:[%s4741_s7 + $0x38] sm:$0xff] }
 0xe0e   : > { %3264 = vrcp.f32 %v2125_v61  ;;  %2476 = vmatpush.msrb.mxu0 %v2422_v57  ;;  %v2420_v61 = vld [vmem:[%s4741_s7 + $0x28] sm:$0xff] }
 0xe0f   : > { %3266 = vrcp.f32 %v2128_v0 }
 0xe10   : > { %2477 = vmatpush.msrb.mxu0 %v2421_v59 }
 0xe12   : > { %2478 = vmatpush.msrb.mxu0 %v2420_v61 }
 0xe13   : > { %v3263_v62 = vpop.eup %3262 }
 0xe14   : > { %v2256_v63 = vmul.f32 %v3263_v62, %v3259_v52  ;;  %v3265_v1 = vpop.eup %3264 }
 0xe15   : > { %v2131_v13 = vmul.f32 %v3265_v1, %v3253_v39  ;;  %v3267_v3 = vpop.eup %3266  ;;  %v2410_v39 = vld [vmem:[#allocation22] sm:$0xff] }
 0xe16   : > { %v2258_v50 = vpop.permute.xlu0 %2257  ;;  %v2132_v10 = vmul.f32 %v3267_v3, %v3257_v53  ;;  %2448 = vmatpush.msra.mxu1 %v2410_v39 }
 0xe17   : > { %2281 = vmatpush.msrb.mxu3 %v2258_v50 }
 0xe18   : > { %2947 = vmatmul.msk.f32.vlgmr.msrb.gmra.mxu3 %vm1121_vm1, %v2255_v60 }
 0xe20   : > { %2948 = vmatmul.msk.f32.gmra.mxu3 %vm1121_vm1, %v2256_v63  ;;  %v2419_v63 = vld [vmem:[%s4741_s7 + $0x20] sm:$0xff] }
 0xe21   : > { %2479 = vmatpush.msrb.mxu0 %v2419_v63 }
 0xe24   : > { %v2134_v2 = vpop.permute.xlu1 %2133 }
 0xe25   : > { %2157 = vmatpush.msrb.mxu2 %v2134_v2 }
 0xe26   : > { %2940 = vmatmul.msk.f32.vlgmr.msrb.gmra.mxu2 %vm1121_vm1, %v2131_v13  ;;  %v2418_v13 = vld [vmem:[%s4741_s7 + $0x18] sm:$0xff] }
 0xe27   : > { %2310 = vmatpush.msra.mxu2 %v1817_v7  ;;  %2480 = vmatpush.msrb.mxu0 %v2418_v13 }
 0xe29   : > { %2481 = vmatpush.msrb.mxu0 %v2417_v36 }
 0xe2b   : > { %2482 = vmatpush.msrb.mxu0 %v2416_v37 }
 0xe2e   : > { %2941 = vmatmul.msk.f32.gmra.mxu2 %vm1121_vm1, %v2132_v10 }
 0xe9b   : > { %v2283_v11 = vpop.f32.mrf.mxu3 }
 0xe9c   : > { %2949 = vmatmul.msk.f32.vlgmr.msra.gmra.mxu2 %vm1121_vm1, %v2283_v11 }
 0xea3   : > { %v2286_v12 = vpop.f32.mrf.mxu3 }
 0xea4   : > { %2950 = vmatmul.msk.f32.gmra.mxu2 %vm1121_vm1, %v2286_v12 }
 0xea9   : > { %v2159_v14 = vpop.f32.mrf.mxu2 }
 0xeaa   : > { %2942 = vmatmul.msk.f32.vlgmr.msrb.gmra.mxu1 %vm1121_vm1, %v2159_v14  ;;  %v3188_v14 = vld [vmem:[#allocation19] ss:$0 sm:$0xff] }
 0xeb1   : > { %v2162_v15 = vpop.f32.mrf.mxu2 }
 0xeb2   : > { %2943 = vmatmul.msk.f32.gmra.mxu1 %vm1121_vm1, %v2162_v15 }
 0xf1f   : > { %v2312_v16 = vpop.f32.mrf.mxu2 }
 0xf27   : > { %v2188_v17 = vpop.f32.mrf.mxu1  ;;  %v2315_v25 = vpop.f32.mrf.mxu2 }
 0xf28   : > { %v2194_v18 = vadd.f32 %v2188_v17, %v4554_v20 }
 0xf2a   : > { %v2318_v19 = vadd.f32 %v2312_v16, %v2194_v18 }
 0xf2c   : > { %v2320_v9 = vadd.f32 %v2318_v19, %v4482_v48 }
 0xf2e   : > { %v2324_v21 = vsel %vm1076_vm0, %v2320_v9, 0.0 }
 0xf2f   : > { %2325 = vadd.xlane.f32.xlu2 %v2324_v21  ;;  %v2191_v22 = vpop.f32.mrf.mxu1 }
 0xf30   : > { %v2195_v24 = vadd.f32 %v2191_v22, %v4556_v23  ;;  %v3189_v22 = vld [vmem:[#allocation21] ss:$0 sm:$0xff] }
 0xf32   : > { %v2319_v26 = vadd.f32 %v2315_v25, %v2195_v24 }
 0xf34   : > { %v2321_v27 = vadd.f32 %v2319_v26, %v4487_v58 }
 0xf36   : > { %v2327_v28 = vsel %vm1655_vm5, %v2321_v27, 0.0 }
 0xf37   : > { %2328 = vadd.xlane.f32.xlu2 %v2327_v28 }
 0xfa2   : > { %v2326_v29 = vpop.xlane.xlu2 %2325 }
 0xfa3   : > { %v2330_v30 = vmul.f32 %v2326_v29, %v4450_v47 }
 0xfa5   : > { %v4587_v20 = vsub.f32 %v2320_v9, %v2330_v30 }
 0xfa7   : > { %v2334_v48 = vmul.f32 %v4587_v20, %v4587_v20  ;;  %v2371_v9 = vmul.f32 %v3188_v14, %v4587_v20 }
 0xfa9   : > { %v2336_v31 = vsel %vm1076_vm0, %v2334_v48, 0.0 }
 0xfaa   : > { %2337 = vadd.xlane.f32.xlu0 %v2336_v31  ;;  %v2329_v32 = vpop.xlane.xlu2 %2328 }
 0xfab   : > { %v2331_v23 = vmul.f32 %v2329_v32, %v4450_v47 }
 0xfad   : > { %v4593_v33 = vsub.f32 %v2321_v27, %v2331_v23 }
 0xfaf   : > { %v2335_v58 = vmul.f32 %v4593_v33, %v4593_v33  ;;  %v2372_v20 = vmul.f32 %v3188_v14, %v4593_v33  ;;  %v2415_v33 = vld [vmem:[%s4741_s7] sm:$0xff] }
 0xfb0   : > { %2483 = vmatpush.msrb.mxu0 %v2415_v33  ;;  %v3193_v33 = vld [vmem:[#allocation28] ss:$0 sm:$0xff] }
 0xfb1   : > { %v2339_v34 = vsel %vm1655_vm5, %v2335_v58, 0.0 }
 0xfb2   : > { %2340 = vadd.xlane.f32.xlu2 %v2339_v34 }
0x101d   : > { %v2338_v38 = vpop.xlane.xlu0 %2337 }
0x101e   : > { %v2342_v41 = vmul.f32 0.032258064, %v2338_v38  ;;  %v3190_v38 = vld [vmem:[#allocation24] ss:$0 sm:$0xff] }
0x1020   : > { %3268 = vrsqrt.f32 %v2342_v41  ;;  %vm2351_vm1 = vcmp.eq.f32.partialorder %v2342_v41, inf  ;;  %v2354_v52 = vand.u32 2147483648, %v2342_v41  ;;  %vm2353_vm7 = vcmp.eq.f32.partialorder %v2342_v41, 0.0 }
0x1025   : > { %v2341_v42 = vpop.xlane.xlu2 %2340 }
0x1026   : > { %v3269_v43 = vpop.eup %3268  ;;  %v2343_v44 = vmul.f32 0.032258064, %v2341_v42 }
0x1027   : > { %v2345_v45 = vmul.f32 %v3269_v43, %v2342_v41 }
0x1028   : > { %3270 = vrsqrt.f32 %v2343_v44  ;;  %vm2363_vm8 = vcmp.eq.f32.partialorder %v2343_v44, inf  ;;  %v2366_v1 = vand.u32 2147483648, %v2343_v44  ;;  %vm2365_vm9 = vcmp.eq.f32.partialorder %v2343_v44, 0.0 }
0x1029   : > { %v2346_v51 = vmul.f32 %v3269_v43, %v2345_v45 }
0x102b   : > { %v2347_v40 = vmul.f32 0.5, %v2346_v51  ;;  %v3191_v51 = vld [vmem:[#allocation25] ss:$0 sm:$0xff] }
0x102d   : > { %v2348_v4 = vsub.f32 1.5, %v2347_v40 }
0x102e   : > { %v3271_v6 = vpop.eup %3270 }
0x102f   : > { %v2349_v46 = vmul.f32 %v3269_v43, %v2348_v4  ;;  %v2357_v49 = vmul.f32 %v3271_v6, %v2343_v44 }
0x1031   : > { %v2350_v5 = vmul.f32 %v2349_v46, %v2342_v41  ;;  %v2358_v53 = vmul.f32 %v3271_v6, %v2357_v49 }
0x1033   : > { %v2352_v54 = vsel %vm2351_vm1, %v2342_v41, %v2350_v5  ;;  %v2359_v55 = vmul.f32 0.5, %v2358_v53 }
0x1034   : > { %v2355_v56 = vsel %vm2353_vm7, %v2354_v52, %v2352_v54 }
0x1035   : > { %v2373_v60 = vadd.f32 1e-06, %v2355_v56  ;;  %v2360_v50 = vsub.f32 1.5, %v2359_v55 }
0x1037   : > { %3272 = vrcp.f32 %v2373_v60  ;;  %v2361_v62 = vmul.f32 %v3271_v6, %v2360_v50  ;;  %v2386_v12 = vand.u32 2147483648, %v2373_v60  ;;  %v2384_v16 = vand.u32 2147483647, %v2373_v60 }
0x1038   : > { %vm2380_vm11 = vweird.f32 %v2373_v60 }
0x1039   : > { %v2362_v0 = vmul.f32 %v2361_v62, %v2343_v44  ;;  %v2387_v19 = vor.u32 1.1754944e-38, %v2386_v12  ;;  %vm2385_vm13 = vcmp.eq.f32.partialorder %v2384_v16, 8.507059e+37 }
0x103b   : > { %v2364_v2 = vsel %vm2363_vm8, %v2343_v44, %v2362_v0 }
0x103c   : > { %v2367_v3 = vsel %vm2365_vm9, %v2366_v1, %v2364_v2 }
0x103d   : > { %v3273_v10 = vpop.eup %3272  ;;  %v2374_v7 = vadd.f32 1e-06, %v2367_v3 }
0x103e   : > { %v2376_v8 = vmul.f32 %v3273_v10, %v2373_v60  ;;  %vm2381_vm10 = vweird.f32 %v3273_v10 }
0x103f   : > { %3274 = vrcp.f32 %v2374_v7  ;;  %vm2382_vm12 = vmor %vm2380_vm11, %vm2381_vm10  ;;  %v2401_v28 = vand.u32 2147483648, %v2374_v7  ;;  %v2399_v48 = vand.u32 2147483647, %v2374_v7  ;;  %vm2395_vm15 = vweird.f32 %v2374_v7 }
0x1040   : > { %v2377_v11 = vsub.f32 1.0, %v2376_v8 }
0x1041   : > { %v2402_v32 = vor.u32 1.1754944e-38, %v2401_v28  ;;  %vm2400_vm3 = vcmp.eq.f32.partialorder %v2399_v48, 8.507059e+37 }
0x1042   : > { %v2378_v15 = vmul.f32 %v3273_v10, %v2377_v11 }
0x1044   : > { %v2379_v17 = vadd.f32 %v3273_v10, %v2378_v15 }
0x1045   : > { %v3275_v18 = vpop.eup %3274 }
0x1046   : > { %v2383_v21 = vsel %vm2382_vm12, %v3273_v10, %v2379_v17  ;;  %v2391_v24 = vmul.f32 %v3275_v18, %v2374_v7  ;;  %vm2396_vm14 = vweird.f32 %v3275_v18 }
0x1047   : > { %v2388_v25 = vsel %vm2385_vm13, %v2387_v19, %v2383_v21  ;;  %vm2397_vm2 = vmor %vm2395_vm15, %vm2396_vm14 }
0x1048   : > { %v2389_v26 = vmul.f32 %v2388_v25, %v2371_v9  ;;  %v2392_v27 = vsub.f32 1.0, %v2391_v24 }
0x104a   : > { %v2408_v29 = vadd.f32 %v3189_v22, %v2389_v26  ;;  %v2393_v30 = vmul.f32 %v3275_v18, %v2392_v27 }
0x104c   : > { %2951 = vmatmul.msk.f32.vlgmr.msra.gmra.mxu1 %vm1076_vm0, %v2408_v29  ;;  %v2394_v31 = vadd.f32 %v3275_v18, %v2393_v30 }
0x104e   : > { %v2398_v23 = vsel %vm2397_vm2, %v3275_v18, %v2394_v31 }
0x104f   : > { %v2403_v58 = vsel %vm2400_vm3, %v2402_v32, %v2398_v23 }
0x1050   : > { %v2404_v34 = vmul.f32 %v2403_v58, %v2372_v20  ;;  %v3192_v20 = vld [vmem:[#allocation27] ss:$0 sm:$0xff] }
0x1052   : > { %v2409_v35 = vadd.f32 %v3189_v22, %v2404_v34 }
0x1054   : > { %2952 = vmatmul.msk.f32.gmra.mxu1 %vm1076_vm0, %v2409_v35 }
0x10c9   : > { %v2450_v39 = vpop.f32.mrf.mxu1 }
0x10ca   : > { %v2451_v41 = vadd.f32 %v3190_v38, %v2450_v39 }
0x10cc   : > { %v2456_v42 = vmax.f32 %v2451_v41, 0.0 }
0x10ce   : > { %2953 = vmatmul.msk.f32.vlgmr.msrb.gmra.mxu0 %vm2461_vm4, %v2456_v42 }
0x10d1   : > { %v2453_v43 = vpop.f32.mrf.mxu1 }
0x10d2   : > { %v2454_v44 = vadd.f32 %v3190_v38, %v2453_v43 }
0x10d4   : > { %v2457_v45 = vmax.f32 %v2454_v44, 0.0 }
0x10d6   : > { %2954 = vmatmul.msk.f32.gmra.mxu0 %vm2461_vm4, %v2457_v45 }
0x114b   : > { %v2485_v40 = vpop.f32.mrf.mxu0 }
0x114c   : > { %v2486_v4 = vadd.f32 %v3191_v51, %v2485_v40 }
0x114e   : > { %v2491_v6 = vadd.f32 %v2486_v4, %v2408_v29 }
0x1150   : > { %v2495_v46 = vsel %vm1076_vm0, %v2491_v6, 0.0 }
0x1151   : > { %2496 = vadd.xlane.f32.xlu1 %v2495_v46 }
0x1153   : > { %v2488_v49 = vpop.f32.mrf.mxu0 }
0x1154   : > { %v2489_v5 = vadd.f32 %v3191_v51, %v2488_v49 }
0x1156   : > { %v2492_v53 = vadd.f32 %v2489_v5, %v2409_v35 }
0x1158   : > { %v2498_v52 = vsel %vm1655_vm5, %v2492_v53, 0.0 }
0x1159   : > { %2499 = vadd.xlane.f32.xlu2 %v2498_v52 }
0x11c4   : > { %v2497_v54 = vpop.xlane.xlu1 %2496 }
0x11c5   : > { %v2501_v55 = vmul.f32 %v2497_v54, %v4450_v47 }
0x11c7   : > { %v2503_v56 = vsub.f32 %v2491_v6, %v2501_v55 }
0x11c9   : > { %v2505_v57 = vmul.f32 %v2503_v56, %v2503_v56  ;;  %v2542_v37 = vmul.f32 %v3192_v20, %v2503_v56 }
0x11cb   : > { %v2507_v59 = vsel %vm1076_vm0, %v2505_v57, 0.0 }
0x11cc   : > { %2508 = vadd.xlane.f32.xlu2 %v2507_v59  ;;  %v2500_v60 = vpop.xlane.xlu2 %2499 }
0x11cd   : > { %v2502_v50 = vmul.f32 %v2500_v60, %v4450_v47 }
0x11cf   : > { %v4631_v61 = vsub.f32 %v2492_v53, %v2502_v50 }
0x11d1   : > { %v2506_v62 = vmul.f32 %v4631_v61, %v4631_v61  ;;  %v2543_v46 = vmul.f32 %v3192_v20, %v4631_v61 }
0x11d3   : > { %v2510_v63 = vsel %vm1655_vm5, %v2506_v62, 0.0 }
0x11d4   : > { %2511 = vadd.xlane.f32.xlu2 %v2510_v63 }
0x123f   : > { %v2509_v0 = vpop.xlane.xlu2 %2508 }
0x1240   : > { %v2513_v1 = vmul.f32 0.032258064, %v2509_v0 }
0x1242   : > { %3276 = vrsqrt.f32 %v2513_v1  ;;  %vm2522_vm6 = vcmp.eq.f32.partialorder %v2513_v1, inf  ;;  %v2525_v17 = vand.u32 2147483648, %v2513_v1  ;;  %vm2524_vm1 = vcmp.eq.f32.partialorder %v2513_v1, 0.0 }
0x1247   : > { %v2512_v13 = vpop.xlane.xlu2 %2511 }
0x1248   : > { %v3277_v2 = vpop.eup %3276  ;;  %v2514_v3 = vmul.f32 0.032258064, %v2512_v13 }
0x1249   : > { %v2516_v10 = vmul.f32 %v3277_v2, %v2513_v1 }
0x124a   : > { %3278 = vrsqrt.f32 %v2514_v3  ;;  %vm2534_vm7 = vcmp.eq.f32.partialorder %v2514_v3, inf  ;;  %v2537_v26 = vand.u32 2147483648, %v2514_v3  ;;  %vm2536_vm8 = vcmp.eq.f32.partialorder %v2514_v3, 0.0 }
0x124b   : > { %v2517_v7 = vmul.f32 %v3277_v2, %v2516_v10 }
0x124d   : > { %v2518_v8 = vmul.f32 0.5, %v2517_v7 }
0x124f   : > { %v2519_v11 = vsub.f32 1.5, %v2518_v8 }
0x1250   : > { %v3279_v47 = vpop.eup %3278 }
0x1251   : > { %v2520_v12 = vmul.f32 %v3277_v2, %v2519_v11  ;;  %v2528_v14 = vmul.f32 %v3279_v47, %v2514_v3 }
0x1253   : > { %v2521_v15 = vmul.f32 %v2520_v12, %v2513_v1  ;;  %v2529_v16 = vmul.f32 %v3279_v47, %v2528_v14 }
0x1255   : > { %v2523_v18 = vsel %vm2522_vm6, %v2513_v1, %v2521_v15  ;;  %v2530_v19 = vmul.f32 0.5, %v2529_v16 }
0x1256   : > { %v2526_v9 = vsel %vm2524_vm1, %v2525_v17, %v2523_v18 }
0x1257   : > { %v2544_v21 = vadd.f32 1e-06, %v2526_v9  ;;  %v2531_v22 = vsub.f32 1.5, %v2530_v19 }
0x1259   : > { %3280 = vrcp.f32 %v2544_v21  ;;  %v2532_v24 = vmul.f32 %v3279_v47, %v2531_v22  ;;  %v2557_v32 = vand.u32 2147483648, %v2544_v21  ;;  %v2555_v58 = vand.u32 2147483647, %v2544_v21 }
0x125a   : > { %vm2551_vm10 = vweird.f32 %v2544_v21 }
0x125b   : > { %v2533_v25 = vmul.f32 %v2532_v24, %v2514_v3  ;;  %v2558_v35 = vor.u32 1.1754944e-38, %v2557_v32  ;;  %vm2556_vm12 = vcmp.eq.f32.partialorder %v2555_v58, 8.507059e+37 }
0x125d   : > { %v2535_v27 = vsel %vm2534_vm7, %v2514_v3, %v2533_v25 }
0x125e   : > { %v2538_v29 = vsel %vm2536_vm8, %v2537_v26, %v2535_v27 }
0x125f   : > { %v3281_v28 = vpop.eup %3280  ;;  %v2545_v48 = vadd.f32 1e-06, %v2538_v29 }
0x1260   : > { %v2547_v30 = vmul.f32 %v3281_v28, %v2544_v21  ;;  %vm2552_vm9 = vweird.f32 %v3281_v28 }
0x1261   : > { %3282 = vrcp.f32 %v2545_v48  ;;  %vm2553_vm11 = vmor %vm2551_vm10, %vm2552_vm9  ;;  %v2572_v45 = vand.u32 2147483648, %v2545_v48  ;;  %v2570_v40 = vand.u32 2147483647, %v2545_v48  ;;  %vm2566_vm14 = vweird.f32 %v2545_v48 }
0x1262   : > { %v2548_v31 = vsub.f32 1.0, %v2547_v30 }
0x1263   : > { %v2573_v6 = vor.u32 1.1754944e-38, %v2572_v45  ;;  %vm2571_vm2 = vcmp.eq.f32.partialorder %v2570_v40, 8.507059e+37 }
0x1264   : > { %v2549_v23 = vmul.f32 %v3281_v28, %v2548_v31 }
0x1266   : > { %v2550_v34 = vadd.f32 %v3281_v28, %v2549_v23 }
0x1267   : > { %v3283_v36 = vpop.eup %3282 }
0x1268   : > { %v2554_v38 = vsel %vm2553_vm11, %v3281_v28, %v2550_v34  ;;  %v2562_v41 = vmul.f32 %v3283_v36, %v2545_v48  ;;  %vm2567_vm13 = vweird.f32 %v3283_v36 }
0x1269   : > { %v2559_v39 = vsel %vm2556_vm12, %v2558_v35, %v2554_v38  ;;  %vm2568_vm15 = vmor %vm2566_vm14, %vm2567_vm13 }
0x126a   : > { %v2560_v42 = vmul.f32 %v2559_v39, %v2542_v37  ;;  %v2563_v43 = vsub.f32 1.0, %v2562_v41 }
0x126c   : > { %v2579_v44 = vadd.f32 %v3193_v33, %v2560_v42  ;;  %v2564_v51 = vmul.f32 %v3283_v36, %v2563_v43 }
0x126e   : > { %2581 = vst.msk [vmem:[%s1062_s16] sm:$0xff] %vm1076_vm0, %v2579_v44  ;;  %v2565_v4 = vadd.f32 %v3283_v36, %v2564_v51 }
0x1270   : > { %v2569_v49 = vsel %vm2568_vm15, %v3283_v36, %v2565_v4 }
0x1271   : > { %v2574_v5 = vsel %vm2571_vm2, %v2573_v6, %v2569_v49 }
0x1272   : > { %v2575_v53 = vmul.f32 %v2574_v5, %v2543_v46 }
0x1274   : > { %v2580_v52 = vadd.f32 %v3193_v33, %v2575_v53 }
0x1276   : > { %2582 = vst.msk [vmem:[%s1062_s16 + $0x8] sm:$0xf] %vm1655_vm5, %v2580_v52 }
0x1277 PF: > { %p45_p1 = scmp.ge.s32.totalorder %s4174_s3, 4   ;;  %s4744_s5 = smov %s3890_s26 }
0x1278   : > { %s4745_s26 = smov %s3894_s27  ;;  %s4746_s27 = smov %s4186_s25 }
0x1279   : > { %s4747_s28 = smov %s4174_s3  ;;  %47 = sbr.rel (!%p45_p1) target bundleno = 33 (0x21), region = 239 }
0x127e   :  { %2604 = vsyncpa [#allocation3], 1 }
0x127f   :  { %2606 = vsyncpa [#allocation3 + $0x1], 1 }
0x1280   :  { %2607 = vsyncpa [#allocation5], 1 }
0x1281   :  { %2609 = vsyncpa [#allocation5 + $0x1], 1 }
0x1282   :  { %2610 = vsyncpa [#allocation8], 1 }
0x1283   :  { %2611 = vsyncpa [#allocation11], 1 }
0x1284   :  { %2612 = vsyncpa [#allocation14], 1 }
0x1285   :  { %2613 = vsyncpa [#allocation17], 1 }
0x1286   :  { %2614 = vsyncpa [#allocation20], 1 }
0x1287   :  { %2615 = vsyncpa [#allocation23], 1 }
0x1288   :  { %2616 = vsyncpa [#allocation26], 1 }
0x1289   :  { %2617 = vsyncpa [#allocation29], 1 }

// kernel: cme_forward.6
= control target key start
LH: loop header
LB: loop body
LE: loop exit
PB: predicated region body
PF: predicated region fallthrough
CT: control target
= control target key end

     0   :  { %s2980_s0 = inlined_call_operand.vmem [shape: f32[2,8,32], index: 0, kind: input, shape index: {}]   ;;  %s2981_s1 = inlined_call_operand.vmem [shape: f32[2,12,32], index: 1, kind: input, shape index: {}]   ;;  %s2982_s2 = inlined_call_operand.vmem [shape: f32[2,1,8], index: 2, kind: input, shape index: {}]   ;;  %s2983_s3 = inlined_call_operand.vmem [shape: f32[2,1,12], index: 3, kind: input, shape index: {}]   ;;  %s2984_s4 = inlined_call_operand.vmem [shape: f32[32,96], index: 4, kind: input, shape index: {}]   ;;  %s2985_s5 = inlined_call_operand.vmem [shape: f32[1,96], index: 5, kind: input, shape index: {}]   ;;  %s2986_s6 = inlined_call_operand.vmem [shape: f32[32,32], index: 6, kind: input, shape index: {}]   ;;  %s2987_s7 = inlined_call_operand.vmem [shape: f32[1,32], index: 7, kind: input, shape index: {}]   ;;  %s2988_s8 = inlined_call_operand.vmem [shape: f32[1,32], index: 8, kind: input, shape index: {}]   ;;  %s2989_s9 = inlined_call_operand.vmem [shape: f32[1,32], index: 9, kind: input, shape index: {}]   ;;  %s2990_s10 = inlined_call_operand.vmem [shape: f32[32,32], index: 10, kind: input, shape index: {}]   ;;  %s2991_s11 = inlined_call_operand.vmem [shape: f32[1,32], index: 11, kind: input, shape index: {}]   ;;  %s2992_s12 = inlined_call_operand.hbm [shape: f32[32,64], index: 12, kind: input, shape index: {}]   ;;  %s2993_s13 = inlined_call_operand.vmem [shape: f32[1,64], index: 13, kind: input, shape index: {}]   ;;  %s2994_s14 = inlined_call_operand.hbm [shape: f32[32,32], index: 14, kind: input, shape index: {}]   ;;  %s2995_s15 = inlined_call_operand.vmem [shape: f32[1,32], index: 15, kind: input, shape index: {}]   ;;  %s2996_s16 = inlined_call_operand.vmem [shape: f32[1,32], index: 16, kind: input, shape index: {}]   ;;  %s2997_s17 = inlined_call_operand.vmem [shape: f32[1,32], index: 17, kind: input, shape index: {}]   ;;  %s2998_s18 = inlined_call_operand.hbm [shape: f32[32,64], index: 18, kind: input, shape index: {}]   ;;  %s2999_s19 = inlined_call_operand.vmem [shape: f32[1,64], index: 19, kind: input, shape index: {}]   ;;  %s3000_s20 = inlined_call_operand.vmem [shape: f32[64,32], index: 20, kind: input, shape index: {}]   ;;  %s3001_s21 = inlined_call_operand.vmem [shape: f32[1,32], index: 21, kind: input, shape index: {}]   ;;  %s3002_s22 = inlined_call_operand.vmem [shape: f32[1,32], index: 22, kind: input, shape index: {}]   ;;  %s3003_s23 = inlined_call_operand.vmem [shape: f32[1,32], index: 23, kind: input, shape index: {}]   ;;  %s3004_s24 = inlined_call_operand.hbm [shape: f32[2,8,32], index: 24, kind: output, shape index: {}]  }
   0x1   :  { %3019 = sst [smem:[#allocation19_spill]] %s2980_s0 }
   0x2   :  { %3020 = sst [smem:[#allocation20_spill]] %s2981_s1 }
   0x3   :  { %3021 = sst [smem:[#allocation21_spill]] %s2982_s2 }
   0x4   :  { %3022 = sst [smem:[#allocation22_spill]] %s2983_s3 }
   0x5   :  { %3023 = sst [smem:[#allocation23_spill]] %s2984_s4 }
   0x6   :  { %3024 = sst [smem:[#allocation24_spill]] %s2985_s5 }
   0x7   :  { %3025 = sst [smem:[#allocation25_spill]] %s2986_s6 }
   0x8   :  { %3026 = sst [smem:[#allocation26_spill]] %s2987_s7 }
   0x9   :  { %3027 = sst [smem:[#allocation27_spill]] %s2988_s8 }
   0xa   :  { %3028 = sst [smem:[#allocation28_spill]] %s2992_s12 }
   0xb   :  { %3029 = sst [smem:[#allocation29_spill]] %s2994_s14 }
   0xc   :  { %3030 = sst [smem:[#allocation30_spill]] %s2998_s18 }
   0xd   :  { %29 = vsyncpa [#allocation3], 0 }
   0xe   :  { %30 = vsyncpa [#allocation6], 0 }
   0xf   :  { %31 = vsyncpa [#allocation4], 0 }
  0x10   :  { %33 = vsyncpa [#allocation4 + $0x1], 0  ;;  %s2592_s5 = smov 0   ;;  %s2594_s26 = smov 0  }
  0x11   :  { %s2596_s27 = smov 0   ;;  %s2598_s28 = smov 0  }
  0x12 LB: > { %3031 = sst [smem:[#allocation12_spill]] %s2436_s5  ;;  %s2613_s6 = sadd.s32 4294967295, %s2448_s28   ;;  %s2448_s28 = sphi %s2598_s28, %s3062_s28   ;;  %s2444_s27 = sphi %s2596_s27, %s3064_s27   ;;  %s2440_s26 = sphi %s2594_s26, %s3066_s26   ;;  %s2436_s5 = sphi %s2592_s5, %s3065_s5  }
  0x13   : > { %3032 = sst [smem:[#allocation13_spill]] %s2444_s27  ;;  %s2078_s2 = sadd.s32 4294967294, %s2448_s28  }
  0x14   : > { %3033 = sst [smem:[#allocation14_spill]] %s2448_s28  ;;  %s2617_s29 = sadd.s32 1, %s2448_s28  }
  0x15   : > { %3034 = sst [smem:[#allocation15_spill]] %s2617_s29  ;;  %s570_s0 = sadd.s32 1, %s2444_s27 }
  0x16   : > { %s567_s7 = ssub.s32 %s2448_s28, %s2617_s29  ;;  %p580_p0 = scmp.ne.s32.totalorder %s2444_s27, %s2440_s26 }
  0x17   : > { %p568_p1 = scmp.eq.s32.totalorder %s567_s7, 0  ;;  %p581_p2 = scmp.eq.s32.totalorder %s2613_s6, 1 }
  0x18   : > { %p586_p3 = scmp.ne.s32.totalorder %s2440_s26, %s2436_s5  ;;  %p587_p4 = scmp.eq.s32.totalorder %s2078_s2, 1 }
  0x19   : > { %s2628_s30 = scalar_select %p568_p1, %s2444_s27, %s570_s0  }
  0x1a   : > { %p2630_p5 = por %p581_p2, %p580_p0  ;;  %p2634_p6 = por %p587_p4, %p586_p3 }
  0x1b   : > { %3035 = sst [smem:[#allocation16_spill]] %s2628_s30  ;;  %p2079_p7 = scmp.ge.s32.totalorder %s2448_s28, 1 }
  0x1c   : > { %s3036_s3 = scalar_select %p2630_p5, 1, 0 }
  0x1d   : > { %s3038_s25 = scalar_select %p2634_p6, 1, 0 }
  0x1e   : > { %3037 = sst [smem:[#allocation17_spill]] %s3036_s3  ;;  %p594_p8 = scmp.lt.s32.totalorder %s2448_s28, 3 }
  0x1f   : > { %3039 = sst [smem:[#allocation18_spill]] %s3038_s25  ;;  %p2171_p9 = scmp.eq.s32.totalorder %s2613_s6, 0 }
  0x20   : > { %p2641_p10 = pnand %p2079_p7, %p594_p8  ;;  %s3041_s14 = sld [smem:[#allocation29_spill]] }
  0x21   : > { %s3042_s12 = sld [smem:[#allocation28_spill]]  ;;  %s2450_s29 = smov [#allocation5]  }
  0x22   : > { %p2157_p11 = pneg %p2641_p10  ;;  %s648_s25 = sshll.u32 %s2450_s29, 4  ;;  %s649_s25 = int_to_ptr.vmem [resolvable:$true] %s648_s25 }
  0x23   : > { %s2451_s4 = smov 128   ;;  %s2452_s1 = smov 8  }
  0x24   : > { %p2655_p12 = pnand %p2171_p9, %p2157_p11  ;;  %s3044_s18 = sld [smem:[#allocation30_spill]] }
  0x25   : > { %s2454_s28 = smov [#allocation7]  }
  0x26   : > { %s646_s2 = sshll.u32 %s3041_s14, 4  ;;  %s2453_s14 = smov [#allocation2]   ;;  %s647_s2 = int_to_ptr.hbm [resolvable:$true] %s646_s2 }
  0x27   : > { %s629_s30 = sshll.u32 %s3042_s12, 4  ;;  %s631_s5 = sshll.u32 %s2453_s14, 4  ;;  %s630_s30 = int_to_ptr.hbm [resolvable:$true] %s629_s30  ;;  %s632_s5 = int_to_ptr.vmem [resolvable:$true] %s631_s5 }
  0x28   : > { %2163 = dma.hbm_to_vmem [thread:$0]  (!%p2655_p12), %s647_s2, 512, %s649_s25, [#allocation6], %s2451_s4, %s2451_s4, %s2452_s1  }
  0x29   : > { %2160 = dma.hbm_to_vmem [thread:$0]  (!%p2655_p12), %s630_s30, 512, %s632_s5, [#allocation3], %s2451_s4, %s2451_s4, %s2452_s1  }
  0x2a   : > { %s669_s12 = sshll.u32 %s3044_s18, 4  ;;  %s671_s3 = sshll.u32 %s2454_s28, 4  ;;  %s670_s12 = int_to_ptr.hbm [resolvable:$true] %s669_s12  ;;  %s672_s3 = int_to_ptr.vmem [resolvable:$true] %s671_s3 }
  0x2b   : > { %2166 = dma.hbm_to_vmem [thread:$0]  (!%p2655_p12), %s670_s12, 512, %s672_s3, [#allocation6], %s2451_s4, %s2451_s4, %s2452_s1  }
  0x2c   : > { %729 = sbr.rel (%p2641_p10) target bundleno = 4426 (0x114a), region = 116 }
  0x31   : > { %2423 = dma.done.wait (%p2171_p9), [#allocation3], 512  }
  0x32   : > { %2425 = vsyncadd (%p2171_p9), [#allocation3], 4294966784 }
  0x33   : > { %2427 = dma.done.wait (%p2171_p9), [#allocation6], 1024  }
  0x34   : > { %2429 = vsyncadd (%p2171_p9), [#allocation6], 4294966272  ;;  %p816_p13 = scmp.lt.s32.totalorder %s2613_s6, 1  ;;  %s3045_s28 = sld [smem:[#allocation23_spill]]  ;;  %vm844_vm0 = vcmask 261120   ;;  %vm880_vm1 = vcmask 64512  }
  0x35   : > { %s3047_s2 = sld [smem:[#allocation19_spill]]  ;;  %s2456_s18 = smov 96   ;;  %vm1431_vm9 = vcmask 1043456   ;;  %vm1411_vm10 = vcmask 97280  }
  0x36   : > { %s2680_s14 = scalar_select %p816_p13, %s2613_s6, 1 }
  0x37   : > { %s3048_s27 = sld [smem:[#allocation24_spill]]  ;;  %s2457_s30 = smov 120  }
  0x38   : > { %s2089_s12 = sshll.u32 %s2680_s14, 3  ;;  %s3049_s8 = sld [smem:[#allocation21_spill]] }
  0x39   : > { %s2459_s1 = smov 112   ;;  %s2460_s0 = smov 104  }
  0x3a   : > { %s3046_s29 = smov %s3045_s28  ;;  %v839_v0 = vld [vmem:[%s3045_s28 + $0x18] sm:$0xff]  ;;  %s2455_s28 = smov 88  }
  0x3b   : > { %v838_v1 = vld [vmem:[%s3046_s29 + $0x10] sm:$0xff]  ;;  %s819_s4 = scalar_lea.vmem %s3047_s2, %s2089_s12  ;;  %860 = vmatpush.msra.mxu0 %v839_v0  ;;  %v837_v2 = vld [vmem:[%s3046_s29 + $0x8] sm:$0xff]  ;;  %v836_v3 = vld [vmem:[%s3046_s29] sm:$0xff]  ;;  %s2461_s7 = smov 64  }
  0x3c   : > { %v2698_v4 = vld [vmem:[%s819_s4] sm:$0xff]  ;;  %s2458_s4 = smov 56   ;;  %s3017_s25 = smov 80  }
  0x3d   : > { %861 = vmatpush.msra.mxu0 %v838_v1  ;;  %v2227_v5 = vld [vmem:[%s3048_s27] ss:$0 sm:$0xff]  ;;  %s3050_s27 = sld [smem:[#allocation25_spill]]  ;;  %s2465_s12 = smov 40  }
  0x3e   : > { %s827_s2 = scalar_lea.vmem %s3049_s8, %s2680_s14  ;;  %s3015_s8 = smov 72  }
  0x3f   : > { %862 = vmatpush.msra.mxu0 %v837_v2  ;;  %v2720_v9 = vld [vmem:[%s827_s2] ss:$0 sm:$0xff]  ;;  %s3052_s5 = sld [smem:[#allocation26_spill]] }
  0x40   : > { %s3054_s2 = sld [smem:[#allocation27_spill]] }
  0x41   : > { %863 = vmatpush.msra.mxu0 %v836_v3 }
  0x42   : > { %2092 = vmatmul.msk.f32.vlgmr.msra.gmra.mxu0 %vm844_vm0, %v2698_v4 }
  0x43   : > { %s3051_s3 = smov %s3050_s27  ;;  %v868_v26 = vld [vmem:[%s3050_s27] sm:$0xff]  ;;  %s2142_s27 = sshll.u32 %s2680_s14, 4 }
  0x44   : > { %v869_v39 = vld [vmem:[%s3051_s3 + $0x8] sm:$0xff] }
  0xbf   : > { %v865_v6 = vpop.f32.mrf.mxu0 }
  0xc0   : > { %v2705_v7 = vadd.f32 %v2227_v5, %v865_v6 }
  0xc2   : > { %973 = vrot.lane.b32.xlu2 %v2705_v7, %s2455_s28  ;;  %878 = vrot.lane.b32.xlu0 %v2705_v7, %s2456_s18 }
  0xca   : > { %971 = vrot.lane.b32.xlu2 %v2705_v7, %s2457_s30 }
 0x11c   : > { %v974_v22 = vpop.permute.xlu2 %973 }
 0x124   : > { %v972_v25 = vpop.permute.xlu2 %971 }
 0x134   : > { %v879_v8 = vpop.permute.xlu0 %878 }
 0x135   : > { %2093 = vmatpush.xpose.msk.msra.mxu1 %vm880_vm1, %v879_v8  ;;  %v870_v8 = vld [vmem:[%s3051_s3 + $0x10] sm:$0xff] }
 0x138   : > { %2094 = vmatmul.msk.f32.vlgmr.msra.gmra.mxu1 %vm880_vm1, %v2705_v7 }
 0x139   : > { %965 = vmatpush.msrb.mxu1 %v868_v26  ;;  %v1333_v26 = vld [vmem:[#allocation2 + $0x10] sm:$0xff] }
 0x13b   : > { %1056 = vmatpush.msra.mxu1 %v869_v39 }
 0x1b5   : > { %v902_v10 = vpop.f32.mrf.mxu1 }
 0x1b6   : > { %v905_v11 = vmul.f32 0.35355338, %v902_v10 }
 0x1b8   : > { %v909_v12 = vadd.f32 %v2720_v9, %v905_v11 }
 0x1ba   : > { %v910_v13 = vsel %vm880_vm1, %v909_v12, -inf }
 0x1bb   : > { %911 = vmax.xlane.f32.xlu0 %v910_v13 }
 0x1cf   : > { %1012 = vrot.lane.b32.xlu0 %v2705_v7, %s2458_s4 }
 0x1d7   : > { %1062 = vrot.lane.b32.xlu0 %v2705_v7, %s2459_s1 }
 0x1df   : > { %1153 = vrot.lane.b32.xlu0 %v2705_v7, %s2460_s0 }
 0x22e   : > { %v912_v14 = vpop.xlane.xlu0 %911 }
 0x22f   : > { %v913_v15 = vsub.f32 %v909_v12, %v912_v14 }
 0x231   : > { %v914_v16 = vmul.f32 1.442695, %v913_v15  ;;  %v2229_v15 = vld [vmem:[%s3052_s5] ss:$0 sm:$0xff] }
 0x233   : > { %2242 = vpow2.f32 %v914_v16 }
 0x239   : > { %v2243_v17 = vpop.eup %2242 }
 0x23a   : > { %v916_v18 = vsel %vm880_vm1, %v2243_v17, 0.0 }
 0x23b   : > { %917 = vadd.xlane.f32.xlu1 %v916_v18 }
 0x241   : > { %v1013_v19 = vpop.permute.xlu0 %1012 }
 0x242   : > { %1033 = vmatpush.msra.mxu3 %v1013_v19 }
 0x244   : > { %1147 = vmatpush.msrb.mxu3 %v870_v8 }
 0x249   : > { %v1063_v37 = vpop.permute.xlu0 %1062 }
 0x251   : > { %v1154_v54 = vpop.permute.xlu0 %1153 }
 0x254   : > { %921 = vrot.lane.b32.xlu1 %v2705_v7, %s2461_s7  ;;  %s2464_s7 = smov 48  }
 0x2ae   : > { %v918_v20 = vpop.xlane.xlu1 %917 }
 0x2af   : > { %2244 = vrcp.f32 %v918_v20 }
 0x2b5   : > { %v2245_v21 = vpop.eup %2244 }
 0x2b6   : > { %v920_v24 = vmul.f32 %v2245_v21, %v2243_v17 }
 0x2c6   : > { %v922_v23 = vpop.permute.xlu1 %921 }
 0x2c7   : > { %942 = vmatpush.msra.mxu2 %v922_v23 }
 0x2c8   : > { %2095 = vmatmul.msk.f32.vlgmr.msra.gmra.mxu2 %vm880_vm1, %v920_v24  ;;  %v2466_v24 = vmov 32.0  }
 0x2c9   : > { %2097 = vmatpush.xpose.msk.msrb.mxu2 %vm880_vm1, %v974_v22 }
 0x2d0   : > { %2098 = vmatmul.msk.f32.vlgmr.msrb.gmra.mxu2 %vm880_vm1, %v972_v25  ;;  %v1334_v25 = vld [vmem:[#allocation2 + $0x18] sm:$0xff] }
 0x34b   : > { %v944_v27 = vpop.f32.mrf.mxu2 }
 0x34c   : > { %2096 = vmatmul.msk.f32.vlgmr.msrb.gmra.mxu1 %vm880_vm1, %v944_v27  ;;  %v1332_v27 = vld [vmem:[#allocation2 + $0x8] sm:$0xff] }
 0x353   : > { %v996_v28 = vpop.f32.mrf.mxu2 }
 0x354   : > { %v999_v29 = vmul.f32 0.35355338, %v996_v28 }
 0x356   : > { %v1000_v30 = vadd.f32 %v2720_v9, %v999_v29  ;;  %v1331_v29 = vld [vmem:[#allocation2] sm:$0xff] }
 0x358   : > { %v1001_v31 = vsel %vm880_vm1, %v1000_v30, -inf }
 0x359   : > { %1002 = vmax.xlane.f32.xlu2 %v1001_v31 }
 0x371   : > { %1064 = vrot.lane.b32.xlu2 %v2705_v7, %s3017_s25 }
 0x3c9   : > { %v967_v55 = vpop.f32.mrf.mxu1 }
 0x3ca   : > { %v970_v16 = vadd.f32 %v2229_v15, %v967_v55 }
 0x3cc   : > { %v1003_v32 = vpop.xlane.xlu2 %1002 }
 0x3cd   : > { %v1004_v33 = vsub.f32 %v1000_v30, %v1003_v32 }
 0x3cf   : > { %v1005_v34 = vmul.f32 1.442695, %v1004_v33 }
 0x3d1   : > { %2246 = vpow2.f32 %v1005_v34 }
 0x3d4   : > { %v1065_v35 = vpop.permute.xlu2 %1064 }
 0x3d5   : > { %2101 = vmatpush.xpose.msk.msrb.mxu0 %vm880_vm1, %v1065_v35 }
 0x3d7   : > { %v2247_v36 = vpop.eup %2246 }
 0x3d8   : > { %2102 = vmatmul.msk.f32.vlgmr.msrb.gmra.mxu0 %vm880_vm1, %v1063_v37  ;;  %v1007_v38 = vsel %vm880_vm1, %v2247_v36, 0.0 }
 0x3d9   : > { %1008 = vadd.xlane.f32.xlu1 %v1007_v38 }
 0x3f2   : > { %1155 = vrot.lane.b32.xlu1 %v2705_v7, %s3015_s8  ;;  %s3055_s8 = sld [smem:[#allocation22_spill]] }
 0x44c   : > { %v1009_v40 = vpop.xlane.xlu1 %1008 }
 0x44d   : > { %2248 = vrcp.f32 %v1009_v40 }
 0x453   : > { %v2249_v41 = vpop.eup %2248 }
 0x454   : > { %v1011_v42 = vmul.f32 %v2249_v41, %v2247_v36  ;;  %v1303_v41 = vld [vmem:[%s2990_s10 + $0x18] sm:$0xff] }
 0x455   : > { %v1087_v43 = vpop.f32.mrf.mxu0 }
 0x456   : > { %v1090_v44 = vmul.f32 0.35355338, %v1087_v43  ;;  %2099 = vmatmul.msk.f32.vlgmr.msra.gmra.mxu3 %vm880_vm1, %v1011_v42  ;;  %v1302_v42 = vld [vmem:[%s2990_s10 + $0x10] sm:$0xff]  ;;  %v1301_v43 = vld [vmem:[%s2990_s10 + $0x8] sm:$0xff] }
 0x457   : > { %1323 = vmatpush.msra.mxu3 %v1303_v41 }
 0x458   : > { %v1091_v45 = vadd.f32 %v2720_v9, %v1090_v44  ;;  %v1300_v44 = vld [vmem:[%s2990_s10] sm:$0xff] }
 0x459   : > { %1324 = vmatpush.msra.mxu3 %v1302_v42 }
 0x45a   : > { %v1092_v46 = vsel %vm880_vm1, %v1091_v45, -inf }
 0x45b   : > { %1093 = vmax.xlane.f32.xlu2 %v1092_v46  ;;  %1325 = vmatpush.msra.mxu3 %v1301_v43 }
 0x45d   : > { %1326 = vmatpush.msra.mxu3 %v1300_v44 }
 0x464   : > { %v1156_v47 = vpop.permute.xlu1 %1155 }
 0x465   : > { %2105 = vmatpush.xpose.msk.msrb.mxu1 %vm880_vm1, %v1156_v47 }
 0x4ce   : > { %v1094_v48 = vpop.xlane.xlu2 %1093 }
 0x4cf   : > { %v1095_v49 = vsub.f32 %v1091_v45, %v1094_v48 }
 0x4d1   : > { %v1096_v50 = vmul.f32 1.442695, %v1095_v49 }
 0x4d3   : > { %2250 = vpow2.f32 %v1096_v50 }
 0x4d9   : > { %v2251_v51 = vpop.eup %2250  ;;  %v1035_v52 = vpop.f32.mrf.mxu3 }
 0x4da   : > { %2100 = vmatmul.msk.f32.vlgmr.msra.gmra.mxu1 %vm880_vm1, %v1035_v52  ;;  %v1098_v53 = vsel %vm880_vm1, %v2251_v51, 0.0 }
 0x4db   : > { %1099 = vadd.xlane.f32.xlu1 %v1098_v53  ;;  %1357 = vmatpush.msra.mxu1 %v1334_v25 }
 0x4dd   : > { %1358 = vmatpush.msra.mxu1 %v1333_v26 }
 0x4df   : > { %1359 = vmatpush.msra.mxu1 %v1332_v27 }
 0x4e1   : > { %1360 = vmatpush.msra.mxu1 %v1331_v29 }
 0x4e2   : > { %2106 = vmatmul.msk.f32.vlgmr.msrb.gmra.mxu1 %vm880_vm1, %v1154_v54 }
 0x54e   : > { %v1100_v0 = vpop.xlane.xlu1 %1099 }
 0x557   : > { %v1058_v56 = vpop.f32.mrf.mxu1 }
 0x558   : > { %v1061_v18 = vadd.f32 %v1058_v56, %v970_v16 }
 0x55f   : > { %v1178_v57 = vpop.f32.mrf.mxu1 }
 0x560   : > { %v1181_v58 = vmul.f32 0.35355338, %v1178_v57 }
 0x562   : > { %v1182_v59 = vadd.f32 %v2720_v9, %v1181_v58 }
 0x564   : > { %v1183_v60 = vsel %vm880_vm1, %v1182_v59, -inf }
 0x565   : > { %1184 = vmax.xlane.f32.xlu0 %v1183_v60 }
 0x579   : > { %1103 = vrot.lane.b32.xlu0 %v2705_v7, %s2464_s7  ;;  %s3053_s7 = sld [smem:[#allocation20_spill]] }
 0x5d8   : > { %v1185_v61 = vpop.xlane.xlu0 %1184 }
 0x5d9   : > { %v1186_v62 = vsub.f32 %v1182_v59, %v1185_v61 }
 0x5db   : > { %v1187_v63 = vmul.f32 1.442695, %v1186_v62 }
 0x5dd   : > { %2252 = vpow2.f32 %v1187_v63 }
 0x5de   : > { %2254 = vrcp.f32 %v1100_v0 }
 0x5e3   : > { %v2253_v1 = vpop.eup %2252 }
 0x5e4   : > { %v1189_v2 = vsel %vm880_vm1, %v2253_v1, 0.0  ;;  %v2255_v3 = vpop.eup %2254 }
 0x5e5   : > { %1190 = vadd.xlane.f32.xlu2 %v1189_v2  ;;  %v1102_v5 = vmul.f32 %v2255_v3, %v2251_v51  ;;  %v2232_v51 = vld [vmem:[%s2993_s13] ss:$0 sm:$0xff] }
 0x5e6   : > { %v2230_v3 = vld [vmem:[%s3054_s2] ss:$0 sm:$0xff]  ;;  %s830_s2 = scalar_lea.vmem %s3055_s8, %s2680_s14  ;;  %s3056_s14 = smov 80  }
 0x5eb   : > { %v1104_v6 = vpop.permute.xlu0 %1103 }
 0x5ec   : > { %1124 = vmatpush.msra.mxu2 %v1104_v6 }
 0x5ed   : > { %2103 = vmatmul.msk.f32.vlgmr.msra.gmra.mxu2 %vm880_vm1, %v1102_v5 }
 0x5fd   : > { %1194 = vrot.lane.b32.xlu2 %v2705_v7, %s2465_s12  ;;  %v871_v7 = vld [vmem:[%s3051_s3 + $0x18] sm:$0xff]  ;;  %s824_s12 = scalar_lea.vmem %s3053_s7, %s2142_s27 }
 0x5fe   : > { %1238 = vmatpush.msrb.mxu2 %v871_v7  ;;  %v832_v30 = vld [vmem:[%s824_s12] sm:$0xff]  ;;  %v833_v32 = vld [vmem:[%s824_s12 + $0x8] sm:$0xf] }
 0x5ff   : > { %2110 = vmatmul.msk.f32.vlgmr.msra.gmra.mxu1 %vm844_vm0, %v832_v30 }
 0x607   : > { %2111 = vmatmul.msk.f32.gmra.mxu1 %vm844_vm0, %v833_v32 }
 0x658   : > { %v1191_v9 = vpop.xlane.xlu2 %1190 }
 0x659   : > { %2256 = vrcp.f32 %v1191_v9 }
 0x65a   : > { %2258 = vrcp.f32 %v2466_v24 }
 0x65f   : > { %v2257_v10 = vpop.eup %2256 }
 0x660   : > { %v1193_v11 = vmul.f32 %v2257_v10, %v2253_v1  ;;  %v1195_v12 = vpop.permute.xlu2 %1194  ;;  %v2259_v28 = vpop.eup %2258 }
 0x661   : > { %1215 = vmatpush.msra.mxu0 %v1195_v12  ;;  %vm1255_vm2 = vweird.f32 %v2259_v28  ;;  %v2231_v12 = vld [vmem:[%s2989_s9] ss:$0 sm:$0xff] }
 0x662   : > { %2107 = vmatmul.msk.f32.vlgmr.msra.gmra.mxu0 %vm880_vm1, %v1193_v11 }
 0x670   : > { %v1126_v13 = vpop.f32.mrf.mxu2 }
 0x671   : > { %2104 = vmatmul.msk.f32.vlgmr.msrb.gmra.mxu3 %vm880_vm1, %v1126_v13 }
 0x67c   : > { %v1362_v52 = vpop.f32.mrf.mxu1 }
 0x67d   : > { %v2802_v54 = vadd.f32 %v2232_v51, %v1362_v52 }
 0x67f   : > { %1480 = vrot.lane.b32.xlu2 %v2802_v54, %s2457_s30 }
 0x684   : > { %v1365_v60 = vpop.f32.mrf.mxu1 }
 0x685   : > { %v2806_v62 = vadd.f32 %v2232_v51, %v1365_v60 }
 0x687   : > { %2112 = vmatpush.xpose.msk.msrb.mxu0 %vm880_vm1, %v2806_v62 }
 0x68b   : > { %2113 = vmatpush.xpose.msk.msrb.mxu0 %vm880_vm1, %v2802_v54 }
 0x6df   : > { %v1217_v14 = vpop.f32.mrf.mxu0 }
 0x6e0   : > { %2108 = vmatmul.msk.f32.vlgmr.msrb.gmra.mxu2 %vm880_vm1, %v1217_v14 }
 0x6f4   : > { %v1149_v17 = vpop.f32.mrf.mxu3 }
 0x6f5   : > { %v1152_v19 = vadd.f32 %v1149_v17, %v1061_v18  ;;  %v1481_v17 = vpop.permute.xlu2 %1480  ;;  %v2233_v18 = vld [vmem:[%s2991_s11] ss:$0 sm:$0xff] }
 0x763   : > { %v1240_v20 = vpop.f32.mrf.mxu2 }
 0x764   : > { %v1243_v21 = vadd.f32 %v1240_v20, %v1152_v19 }
 0x766   : > { %v1244_v22 = vadd.f32 %v1243_v21, %v2698_v4  ;;  %v1251_v4 = vmul.f32 32.0, %v2259_v28 }
 0x768   : > { %v1247_v23 = vsel %vm844_vm0, %v1244_v22, 0.0  ;;  %v1252_v31 = vsub.f32 1.0, %v1251_v4 }
 0x769   : > { %1248 = vadd.xlane.f32.xlu1 %v1247_v23 }
 0x76a   : > { %v1253_v33 = vmul.f32 %v2259_v28, %v1252_v31 }
 0x76c   : > { %v1254_v34 = vadd.f32 %v2259_v28, %v1253_v33 }
 0x76e   : > { %v2783_v35 = vsel %vm1255_vm2, %v2259_v28, %v1254_v34  ;;  %vm1868_vm2 = vcmask 523264  }
 0x782   : > { %1482 = vrot.lane.b32.xlu1 %v2806_v62, %s2457_s30 }
 0x7dc   : > { %v1249_v36 = vpop.xlane.xlu1 %1248 }
 0x7dd   : > { %v1257_v37 = vmul.f32 %v2783_v35, %v1249_v36 }
 0x7df   : > { %v1258_v38 = vsub.f32 %v1244_v22, %v1257_v37  ;;  %v2839_v22 = vld [vmem:[%s830_s2] ss:$0 sm:$0xff] }
 0x7e1   : > { %v1259_v39 = vmul.f32 %v1258_v38, %v1258_v38  ;;  %v1279_v10 = vmul.f32 %v2230_v3, %v1258_v38 }
 0x7e3   : > { %v1260_v40 = vsel %vm844_vm0, %v1259_v39, 0.0 }
 0x7e4   : > { %1261 = vadd.xlane.f32.xlu0 %v1260_v40 }
 0x7f4   : > { %v1483_v15 = vpop.permute.xlu1 %1482 }
 0x7f5   : > { %2118 = vmatpush.xpose.msk.msra.mxu0 %vm880_vm1, %v1483_v15 }
 0x7f8   : > { %1425 = vrot.lane.b32.xlu0 %v2806_v62, %s2456_s18 }
 0x7f9   : > { %2119 = vmatpush.xpose.msk.msra.mxu0 %vm880_vm1, %v1481_v17 }
 0x857   : > { %v1262_v45 = vpop.xlane.xlu0 %1261 }
 0x858   : > { %v1263_v46 = vmul.f32 0.032258064, %v1262_v45 }
 0x85a   : > { %2260 = vrsqrt.f32 %v1263_v46  ;;  %vm1271_vm3 = vcmp.eq.f32.partialorder %v1263_v46, inf  ;;  %v1274_v57 = vand.u32 2147483648, %v1263_v46  ;;  %vm1273_vm4 = vcmp.eq.f32.partialorder %v1263_v46, 0.0 }
 0x860   : > { %v2261_v47 = vpop.eup %2260 }
 0x861   : > { %v1265_v48 = vmul.f32 %v2261_v47, %v1263_v46 }
 0x863   : > { %v1266_v49 = vmul.f32 %v2261_v47, %v1265_v48 }
 0x865   : > { %v1267_v50 = vmul.f32 0.5, %v1266_v49  ;;  %v1368_v49 = vld [vmem:[#allocation5] sm:$0xff] }
 0x866   : > { %1472 = vmatpush.msrb.mxu3 %v1368_v49  ;;  %v1824_v49 = vld [vmem:[#allocation7] sm:$0xff] }
 0x867   : > { %v1268_v53 = vsub.f32 1.5, %v1267_v50 }
 0x869   : > { %v1269_v55 = vmul.f32 %v2261_v47, %v1268_v53 }
 0x86a   : > { %v1426_v16 = vpop.permute.xlu0 %1425 }
 0x86b   : > { %v1270_v56 = vmul.f32 %v1269_v55, %v1263_v46  ;;  %2115 = vmatpush.msk.msra.mxu2 %vm1431_vm9, %v1426_v16 }
 0x86d   : > { %v1272_v58 = vsel %vm1271_vm3, %v1263_v46, %v1270_v56  ;;  %v1369_v56 = vld [vmem:[#allocation5 + $0x8] sm:$0xff] }
 0x86e   : > { %v1275_v59 = vsel %vm1273_vm4, %v1274_v57, %v1272_v58 }
 0x86f   : > { %v1280_v61 = vadd.f32 1e-06, %v1275_v59 }
 0x871   : > { %2262 = vrcp.f32 %v1280_v61  ;;  %v1292_v2 = vand.u32 2147483648, %v1280_v61  ;;  %v1290_v6 = vand.u32 2147483647, %v1280_v61  ;;  %vm1286_vm6 = vweird.f32 %v1280_v61 }
 0x873   : > { %v1293_v9 = vor.u32 1.1754944e-38, %v1292_v2  ;;  %vm1291_vm8 = vcmp.eq.f32.partialorder %v1290_v6, 8.507059e+37 }
 0x877   : > { %v2263_v63 = vpop.eup %2262 }
 0x878   : > { %v1282_v0 = vmul.f32 %v2263_v63, %v1280_v61  ;;  %vm1287_vm5 = vweird.f32 %v2263_v63 }
 0x879   : > { %vm1288_vm7 = vmor %vm1286_vm6, %vm1287_vm5 }
 0x87a   : > { %v1283_v1 = vsub.f32 1.0, %v1282_v0 }
 0x87c   : > { %v1284_v5 = vmul.f32 %v2263_v63, %v1283_v1 }
 0x87e   : > { %v1285_v8 = vadd.f32 %v2263_v63, %v1284_v5 }
 0x880   : > { %v1289_v11 = vsel %vm1288_vm7, %v2263_v63, %v1285_v8 }
 0x881   : > { %v1294_v13 = vsel %vm1291_vm8, %v1293_v9, %v1289_v11 }
 0x882   : > { %v1295_v7 = vmul.f32 %v1294_v13, %v1279_v10 }
 0x884   : > { %v2822_v14 = vadd.f32 %v2231_v12, %v1295_v7 }
 0x886   : > { %2109 = vmatmul.msk.f32.vlgmr.msra.gmra.mxu3 %vm844_vm0, %v2822_v14 }
 0x887   : > { %1571 = vmatpush.msra.mxu3 %v1369_v56  ;;  %v1836_v56 = vld [vmem:[%s3000_s20 + $0x38] sm:$0xff] }
 0x909   : > { %v1328_v19 = vpop.f32.mrf.mxu3 }
 0x90a   : > { %v1329_v20 = vadd.f32 %v2233_v18, %v1328_v19 }
 0x90c   : > { %1478 = vrot.lane.b32.xlu2 %v1329_v20, %s2457_s30  ;;  %2114 = vmatmul.msk.f32.vlgmr.msrb.gmra.mxu0 %vm880_vm1, %v1329_v20 }
 0x966   : > { %v1479_v21 = vpop.permute.xlu2 %1478 }
 0x967   : > { %2120 = vmatmul.msk.f32.vlgmr.msra.gmra.mxu0 %vm880_vm1, %v1479_v21 }
 0x989   : > { %v1403_v23 = vpop.f32.mrf.mxu0 }
 0x98a   : > { %v1406_v24 = vmul.f32 0.35355338, %v1403_v23 }
 0x98c   : > { %v1410_v25 = vadd.f32 %v2839_v22, %v1406_v24 }
 0x98e   : > { %v1412_v26 = vsel %vm1411_vm10, %v1410_v25, -inf }
 0x98f   : > { %1413 = vmax.xlane.f32.xlu2 %v1412_v26 }
 0x9e4   : > { %v1507_v27 = vpop.f32.mrf.mxu0 }
 0x9e5   : > { %v1510_v28 = vmul.f32 0.35355338, %v1507_v27 }
 0x9e7   : > { %v1511_v29 = vadd.f32 %v2839_v22, %v1510_v28 }
 0x9e9   : > { %v1512_v30 = vsel %vm1411_vm10, %v1511_v29, -inf }
 0x9ea   : > { %1513 = vmax.xlane.f32.xlu1 %v1512_v30 }
 0xa02   : > { %v1414_v4 = vpop.xlane.xlu2 %1413 }
 0xa03   : > { %v1415_v31 = vsub.f32 %v1410_v25, %v1414_v4  ;;  %1423 = vrot.lane.b32.xlu1 %v2802_v54, %s2456_s18  ;;  %v1371_v4 = vld [vmem:[#allocation5 + $0x18] sm:$0xff]  ;;  %s2139_s18 = sshll.u32 %s2613_s6, 3 }
 0xa04   : > { %s1953_s7 = scalar_lea.hbm %s3004_s24, %s2139_s18 }
 0xa05   : > { %v1416_v32 = vmul.f32 1.442695, %v1415_v31  ;;  %s1957_s8 = sshll.u32 %s1953_s7, 4  ;;  %s1958_s8 = int_to_ptr.hbm [resolvable:$true] %s1957_s8 }
 0xa06   : > { %s2392_s18 = sshra.s32 %s1958_s8, 4  ;;  %s2393_s18 = int_to_ptr.hbm [resolvable:$true] %s2392_s18 }
 0xa07   : > { %2264 = vpow2.f32 %v1416_v32  ;;  %s2394_s30 = scalar_lea.hbm %s2393_s18, 8  ;;  %p2399_p3 = scmp.lt.s32.totalorder %s2393_s18, %s3004_s24 }
 0xa08   : > { %p2395_p0 = scmp.ne.s32.totalorder %s2393_s18, %s2394_s30 }
 0xa0a   : > { %p2396_p1 = pnand %p2395_p0, %p2630_p5 }
 0xa0b   : > { %1678 = vrot.lane.b32.xlu1 %v2802_v54, %s2460_s0 }
 0xa0c   : > { %p2397_p2 = pneg %p2396_p1 }
 0xa0d   : > { %v2265_v33 = vpop.eup %2264 }
 0xa0e   : > { %v1418_v34 = vsel %vm1411_vm10, %v2265_v33, 0.0 }
 0xa0f   : > { %1419 = vadd.xlane.f32.xlu0 %v1418_v34 }
 0xa23   : > { %1525 = vrot.lane.b32.xlu0 %v2806_v62, %s2455_s28 }
 0xa2b   : > { %1581 = vrot.lane.b32.xlu0 %v2806_v62, %s2459_s1 }
 0xa33   : > { %1680 = vrot.lane.b32.xlu0 %v2806_v62, %s2460_s0 }
 0xa3b   : > { %1579 = vrot.lane.b32.xlu0 %v2802_v54, %s2459_s1 }
 0xa43   : > { %1676 = vrot.lane.b32.xlu0 %v1329_v20, %s2460_s0 }
 0xa5d   : > { %v1514_v36 = vpop.xlane.xlu1 %1513 }
 0xa5e   : > { %v1515_v37 = vsub.f32 %v1511_v29, %v1514_v36 }
 0xa60   : > { %v1516_v38 = vmul.f32 1.442695, %v1515_v37 }
 0xa62   : > { %2266 = vpow2.f32 %v1516_v38 }
 0xa68   : > { %v2267_v39 = vpop.eup %2266 }
 0xa69   : > { %v1518_v40 = vsel %vm1411_vm10, %v2267_v39, 0.0 }
 0xa6a   : > { %1519 = vadd.xlane.f32.xlu2 %v1518_v40 }
 0xa75   : > { %v1424_v41 = vpop.permute.xlu1 %1423 }
 0xa76   : > { %1449 = vmatpush.msra.mxu2 %v1424_v41 }
 0xa7d   : > { %v1679_v58 = vpop.permute.xlu1 %1678 }
 0xa82   : > { %v1420_v42 = vpop.xlane.xlu0 %1419  ;;  %1523 = vrot.lane.b32.xlu2 %v2802_v54, %s2455_s28  ;;  %s3057_s28 = smov 72  }
 0xa83   : > { %2268 = vrcp.f32 %v1420_v42 }
 0xa89   : > { %v2269_v43 = vpop.eup %2268 }
 0xa8a   : > { %v1422_v44 = vmul.f32 %v2269_v43, %v2265_v33  ;;  %1577 = vrot.lane.b32.xlu2 %v1329_v20, %s2459_s1 }
 0xa8c   : > { %2116 = vmatmul.msk.f32.vlgmr.msra.gmra.mxu2 %vm1411_vm10, %v1422_v44 }
 0xa95   : > { %v1526_v45 = vpop.permute.xlu0 %1525 }
 0xa96   : > { %2121 = vmatpush.msk.msrb.mxu2 %vm1431_vm9, %v1526_v45 }
 0xa9d   : > { %v1582_v46 = vpop.permute.xlu0 %1581 }
 0xa9e   : > { %2124 = vmatpush.xpose.msk.msrb.mxu1 %vm880_vm1, %v1582_v46  ;;  %v1827_v46 = vld [vmem:[#allocation7 + $0x18] sm:$0xff] }
 0xaa5   : > { %v1681_v47 = vpop.permute.xlu0 %1680 }
 0xaad   : > { %v1580_v48 = vpop.permute.xlu0 %1579 }
 0xaae   : > { %2125 = vmatpush.xpose.msk.msrb.mxu1 %vm880_vm1, %v1580_v48  ;;  %v1825_v48 = vld [vmem:[#allocation7 + $0x8] sm:$0xff] }
 0xab5   : > { %v1677_v1 = vpop.permute.xlu0 %1676 }
 0xadd   : > { %v1520_v50 = vpop.xlane.xlu2 %1519 }
 0xade   : > { %2270 = vrcp.f32 %v1520_v50 }
 0xae4   : > { %v2271_v51 = vpop.eup %2270 }
 0xae5   : > { %v1522_v52 = vmul.f32 %v2271_v51, %v2267_v39  ;;  %v1524_v53 = vpop.permute.xlu2 %1523 }
 0xae6   : > { %1548 = vmatpush.msrb.mxu2 %v1524_v53 }
 0xae7   : > { %2122 = vmatmul.msk.f32.vlgmr.msrb.gmra.mxu2 %vm1411_vm10, %v1522_v52 }
 0xaed   : > { %v1578_v55 = vpop.permute.xlu2 %1577 }
 0xaee   : > { %2126 = vmatmul.msk.f32.vlgmr.msrb.gmra.mxu1 %vm880_vm1, %v1578_v55 }
 0xb0f   : > { %v1451_v57 = vpop.f32.mrf.mxu2 }
 0xb10   : > { %2117 = vmatmul.msk.f32.vlgmr.msrb.gmra.mxu3 %vm880_vm1, %v1451_v57  ;;  %v1835_v57 = vld [vmem:[%s3000_s20 + $0x30] sm:$0xff] }
 0xb11   : > { %2130 = vmatpush.xpose.msk.msrb.mxu3 %vm880_vm1, %v1681_v47  ;;  %v1826_v47 = vld [vmem:[#allocation7 + $0x10] sm:$0xff] }
 0xb15   : > { %2131 = vmatpush.xpose.msk.msrb.mxu3 %vm880_vm1, %v1679_v58 }
 0xb6a   : > { %v1550_v59 = vpop.f32.mrf.mxu2 }
 0xb6b   : > { %2123 = vmatmul.msk.f32.vlgmr.msra.gmra.mxu3 %vm880_vm1, %v1550_v59  ;;  %v1606_v60 = vpop.f32.mrf.mxu1  ;;  %v1834_v59 = vld [vmem:[%s3000_s20 + $0x28] sm:$0xff] }
 0xb6c   : > { %v1609_v61 = vmul.f32 0.35355338, %v1606_v60  ;;  %1880 = vmatpush.msra.mxu3 %v1836_v56 }
 0xb6e   : > { %v1610_v63 = vadd.f32 %v2839_v22, %v1609_v61  ;;  %1881 = vmatpush.msra.mxu3 %v1835_v57  ;;  %v1833_v61 = vld [vmem:[%s3000_s20 + $0x20] sm:$0xff] }
 0xb70   : > { %v1611_v0 = vsel %vm1411_vm10, %v1610_v63, -inf  ;;  %1882 = vmatpush.msra.mxu3 %v1834_v59 }
 0xb71   : > { %1612 = vmax.xlane.f32.xlu1 %v1611_v0 }
 0xb72   : > { %1883 = vmatpush.msra.mxu3 %v1833_v61 }
 0xb73   : > { %2132 = vmatmul.msk.f32.vlgmr.msrb.gmra.mxu3 %vm880_vm1, %v1677_v1  ;;  %v1832_v1 = vld [vmem:[%s3000_s20 + $0x18] sm:$0xff] }
 0xb74   : > { %1884 = vmatpush.msra.mxu3 %v1832_v1 }
 0xb8a   : > { %1624 = vrot.lane.b32.xlu1 %v2806_v62, %s3056_s14 }
 0xb92   : > { %1721 = vrot.lane.b32.xlu1 %v2802_v54, %s3057_s28 }
 0xb93   : > { %v1474_v5 = vpop.f32.mrf.mxu3 }
 0xbe4   : > { %v1613_v2 = vpop.xlane.xlu1 %1612 }
 0xbe5   : > { %v1614_v3 = vsub.f32 %v1610_v63, %v1613_v2 }
 0xbe7   : > { %v1615_v6 = vmul.f32 1.442695, %v1614_v3 }
 0xbe9   : > { %2272 = vpow2.f32 %v1615_v6 }
 0xbee   : > { %v1573_v8 = vpop.f32.mrf.mxu3 }
 0xbef   : > { %v2273_v9 = vpop.eup %2272 }
 0xbf0   : > { %v1617_v10 = vsel %vm1411_vm10, %v2273_v9, 0.0 }
 0xbf1   : > { %1618 = vadd.xlane.f32.xlu0 %v1617_v10 }
 0xbf6   : > { %v1705_v11 = vpop.f32.mrf.mxu3 }
 0xbf7   : > { %v1708_v12 = vmul.f32 0.35355338, %v1705_v11  ;;  %v2236_v11 = vld [vmem:[%s2996_s16] ss:$0 sm:$0xff] }
 0xbf9   : > { %v1709_v13 = vadd.f32 %v2839_v22, %v1708_v12 }
 0xbfb   : > { %v1710_v7 = vsel %vm1411_vm10, %v1709_v13, -inf }
 0xbfc   : > { %1711 = vmax.xlane.f32.xlu2 %v1710_v7  ;;  %v1625_v15 = vpop.permute.xlu1 %1624 }
 0xbfd   : > { %2127 = vmatpush.msk.msrb.mxu0 %vm1431_vm9, %v1625_v15 }
 0xc04   : > { %v1722_v29 = vpop.permute.xlu1 %1721 }
 0xc05   : > { %1622 = vrot.lane.b32.xlu0 %v2802_v54, %s3056_s14  ;;  %v1370_v54 = vld [vmem:[#allocation5 + $0x10] sm:$0xff]  ;;  %s813_s14 = sand.u32 1, %s2440_s26  }
 0xc06   : > { %1670 = vmatpush.msra.mxu2 %v1370_v54  ;;  %v2238_v54 = vld [vmem:[%s2999_s19] ss:$0 sm:$0xff]  ;;  %s1943_s2 = scalar_lea.sflag [#allocation4], %s813_s14 }
 0xc08   : > { %1856 = vmatpush.msrb.mxu2 %v1827_v46 }
 0xc0a   : > { %1857 = vmatpush.msrb.mxu2 %v1826_v47 }
 0xc0c   : > { %1858 = vmatpush.msrb.mxu2 %v1825_v48 }
 0xc0e   : > { %1859 = vmatpush.msrb.mxu2 %v1824_v49 }
 0xc64   : > { %v1619_v16 = vpop.xlane.xlu0 %1618 }
 0xc65   : > { %2274 = vrcp.f32 %v1619_v16 }
 0xc6b   : > { %v2275_v20 = vpop.eup %2274 }
 0xc6c   : > { %v1621_v21 = vmul.f32 %v2275_v20, %v2273_v9 }
 0xc6f   : > { %v1712_v17 = vpop.xlane.xlu2 %1711 }
 0xc70   : > { %v1713_v18 = vsub.f32 %v1709_v13, %v1712_v17 }
 0xc72   : > { %v1714_v19 = vmul.f32 1.442695, %v1713_v18  ;;  %v2237_v18 = vld [vmem:[%s2997_s17] ss:$0 sm:$0xff] }
 0xc74   : > { %2276 = vpow2.f32 %v1714_v19 }
 0xc77   : > { %v1623_v23 = vpop.permute.xlu0 %1622 }
 0xc78   : > { %1647 = vmatpush.msrb.mxu0 %v1623_v23  ;;  %v1831_v23 = vld [vmem:[%s3000_s20 + $0x10] sm:$0xff] }
 0xc79   : > { %2128 = vmatmul.msk.f32.vlgmr.msrb.gmra.mxu0 %vm1411_vm10, %v1621_v21  ;;  %1885 = vmatpush.msra.mxu3 %v1831_v23 }
 0xc7a   : > { %v2277_v22 = vpop.eup %2276  ;;  %1769 = vmatpush.msra.mxu0 %v1371_v4 }
 0xc7b   : > { %v1716_v24 = vsel %vm1411_vm10, %v2277_v22, 0.0 }
 0xc7c   : > { %1717 = vadd.xlane.f32.xlu2 %v1716_v24  ;;  %v1829_v24 = vld [vmem:[%s3000_s20] sm:$0xff] }
 0xc94   : > { %1723 = vrot.lane.b32.xlu2 %v2806_v62, %s3057_s28  ;;  %v2235_v62 = vld [vmem:[%s2995_s15] ss:$0 sm:$0xff]  ;;  %s2088_s28 = sshll.u32 %s813_s14, 3 }
 0xc95   : > { %v1477_v32 = vadd.f32 %v2235_v62, %v1474_v5  ;;  %s815_s27 = scalar_lea.vmem [#allocation8], %s2088_s28  ;;  %s2398_s28 = scalar_lea.hbm %s3004_s24, 16 }
 0xc96   : > { %s1955_s25 = sshll.u32 %s815_s27, 4  ;;  %p2400_p4 = scmp.lt.s32.totalorder %s2398_s28, %s2394_s30  ;;  %s1956_s25 = int_to_ptr.vmem [resolvable:$true] %s1955_s25 }
 0xc97   : > { %v1576_v34 = vadd.f32 %v1573_v8, %v1477_v32 }
 0xc98   : > { %p2401_p7 = por %p2400_p4, %p2399_p3 }
 0xc9a   : > { %p2402_p8 = pnand %p2401_p7, %p2397_p2 }
 0xcef   : > { %v1718_v25 = vpop.xlane.xlu2 %1717 }
 0xcf0   : > { %2278 = vrcp.f32 %v1718_v25 }
 0xcf6   : > { %v2279_v26 = vpop.eup %2278  ;;  %v1649_v27 = vpop.f32.mrf.mxu0 }
 0xcf7   : > { %v1724_v28 = vpop.permute.xlu2 %1723  ;;  %2129 = vmatmul.msk.f32.vlgmr.msra.gmra.mxu2 %vm880_vm1, %v1649_v27  ;;  %v1720_v30 = vmul.f32 %v2279_v26, %v2277_v22  ;;  %v1830_v22 = vld [vmem:[%s3000_s20 + $0x8] sm:$0xff] }
 0xcf8   : > { %2133 = vmatpush.msk.msra.mxu1 %vm1431_vm9, %v1724_v28  ;;  %1886 = vmatpush.msra.mxu3 %v1830_v22  ;;  %v2239_v28 = vld [vmem:[%s3001_s21] ss:$0 sm:$0xff] }
 0xcfa   : > { %1746 = vmatpush.msra.mxu1 %v1722_v29  ;;  %1887 = vmatpush.msra.mxu3 %v1829_v24 }
 0xcfb   : > { %2134 = vmatmul.msk.f32.vlgmr.msra.gmra.mxu1 %vm1411_vm10, %v1720_v30 }
 0xd78   : > { %v1748_v31 = vpop.f32.mrf.mxu1 }
 0xd79   : > { %2135 = vmatmul.msk.f32.vlgmr.msra.gmra.mxu0 %vm880_vm1, %v1748_v31 }
 0xd7a   : > { %v1672_v33 = vpop.f32.mrf.mxu2 }
 0xd7b   : > { %v1675_v36 = vadd.f32 %v1672_v33, %v1576_v34 }
 0xdf6   : > { %v1771_v37 = vpop.f32.mrf.mxu0 }
 0xdf7   : > { %v1774_v38 = vadd.f32 %v1771_v37, %v1675_v36 }
 0xdf9   : > { %v1775_v39 = vadd.f32 %v1774_v38, %v2822_v14 }
 0xdfb   : > { %v1778_v40 = vsel %vm844_vm0, %v1775_v39, 0.0 }
 0xdfc   : > { %1779 = vadd.xlane.f32.xlu0 %v1778_v40 }
 0xe6f   : > { %v1780_v41 = vpop.xlane.xlu0 %1779 }
 0xe70   : > { %v1781_v42 = vmul.f32 %v1780_v41, %v2783_v35 }
 0xe72   : > { %v1782_v43 = vsub.f32 %v1775_v39, %v1781_v42 }
 0xe74   : > { %v1783_v44 = vmul.f32 %v1782_v43, %v1782_v43  ;;  %v1803_v16 = vmul.f32 %v2236_v11, %v1782_v43 }
 0xe76   : > { %v1784_v45 = vsel %vm844_vm0, %v1783_v44, 0.0 }
 0xe77   : > { %1785 = vadd.xlane.f32.xlu2 %v1784_v45 }
 0xeea   : > { %v1786_v50 = vpop.xlane.xlu2 %1785 }
 0xeeb   : > { %v1787_v14 = vmul.f32 0.032258064, %v1786_v50 }
 0xeed   : > { %2280 = vrsqrt.f32 %v1787_v14  ;;  %vm1795_vm11 = vcmp.eq.f32.partialorder %v1787_v14, inf  ;;  %v1798_v0 = vand.u32 2147483648, %v1787_v14  ;;  %vm1797_vm12 = vcmp.eq.f32.partialorder %v1787_v14, 0.0 }
 0xef3   : > { %v2281_v51 = vpop.eup %2280 }
 0xef4   : > { %v1789_v52 = vmul.f32 %v2281_v51, %v1787_v14 }
 0xef6   : > { %v1790_v53 = vmul.f32 %v2281_v51, %v1789_v52  ;;  %v2240_v52 = vld [vmem:[%s3002_s22] ss:$0 sm:$0xff] }
 0xef8   : > { %v1791_v55 = vmul.f32 0.5, %v1790_v53 }
 0xefa   : > { %v1792_v58 = vsub.f32 1.5, %v1791_v55 }
 0xefc   : > { %v1793_v60 = vmul.f32 %v2281_v51, %v1792_v58 }
 0xefe   : > { %v1794_v63 = vmul.f32 %v1793_v60, %v1787_v14  ;;  %v2241_v60 = vld [vmem:[%s3003_s23] ss:$0 sm:$0xff] }
 0xf00   : > { %v1796_v2 = vsel %vm1795_vm11, %v1787_v14, %v1794_v63 }
 0xf01   : > { %v1799_v3 = vsel %vm1797_vm12, %v1798_v0, %v1796_v2 }
 0xf02   : > { %v1804_v5 = vadd.f32 1e-06, %v1799_v3 }
 0xf04   : > { %2282 = vrcp.f32 %v1804_v5  ;;  %v1816_v10 = vand.u32 2147483648, %v1804_v5  ;;  %v1814_v13 = vand.u32 2147483647, %v1804_v5  ;;  %vm1810_vm14 = vweird.f32 %v1804_v5 }
 0xf06   : > { %v1817_v15 = vor.u32 1.1754944e-38, %v1816_v10  ;;  %vm1815_vm1 = vcmp.eq.f32.partialorder %v1814_v13, 8.507059e+37 }
 0xf0a   : > { %v2283_v6 = vpop.eup %2282 }
 0xf0b   : > { %v1806_v8 = vmul.f32 %v2283_v6, %v1804_v5  ;;  %vm1811_vm13 = vweird.f32 %v2283_v6 }
 0xf0c   : > { %vm1812_vm15 = vmor %vm1810_vm14, %vm1811_vm13 }
 0xf0d   : > { %v1807_v9 = vsub.f32 1.0, %v1806_v8 }
 0xf0f   : > { %v1808_v12 = vmul.f32 %v2283_v6, %v1807_v9 }
 0xf11   : > { %v1809_v7 = vadd.f32 %v2283_v6, %v1808_v12 }
 0xf13   : > { %v1813_v17 = vsel %vm1812_vm15, %v2283_v6, %v1809_v7 }
 0xf14   : > { %v1818_v19 = vsel %vm1815_vm1, %v1817_v15, %v1813_v17 }
 0xf15   : > { %v1819_v20 = vmul.f32 %v1818_v19, %v1803_v16 }
 0xf17   : > { %v1823_v21 = vadd.f32 %v2237_v18, %v1819_v20 }
 0xf19   : > { %2136 = vmatmul.msk.f32.vlgmr.msrb.gmra.mxu2 %vm844_vm0, %v1823_v21 }
 0xf9c   : > { %v1861_v25 = vpop.f32.mrf.mxu2 }
 0xf9d   : > { %v1862_v26 = vadd.f32 %v2238_v54, %v1861_v25 }
 0xf9f   : > { %v1864_v27 = vmax.f32 %v1862_v26, 0.0 }
 0xfa1   : > { %2137 = vmatmul.msk.f32.vlgmr.msra.gmra.mxu3 %vm1868_vm2, %v1864_v27 }
0x1024   : > { %v1889_v29 = vpop.f32.mrf.mxu3 }
0x1025   : > { %v1890_v30 = vadd.f32 %v2239_v28, %v1889_v29 }
0x1027   : > { %v1892_v4 = vadd.f32 %v1890_v30, %v1823_v21 }
0x1029   : > { %v1895_v31 = vsel %vm844_vm0, %v1892_v4, 0.0 }
0x102a   : > { %1896 = vadd.xlane.f32.xlu1 %v1895_v31 }
0x109d   : > { %v1897_v62 = vpop.xlane.xlu1 %1896 }
0x109e   : > { %v1898_v32 = vmul.f32 %v1897_v62, %v2783_v35 }
0x10a0   : > { %v1899_v33 = vsub.f32 %v1892_v4, %v1898_v32 }
0x10a2   : > { %v1900_v34 = vmul.f32 %v1899_v33, %v1899_v33  ;;  %v1920_v58 = vmul.f32 %v2240_v52, %v1899_v33 }
0x10a4   : > { %v1901_v36 = vsel %vm844_vm0, %v1900_v34, 0.0 }
0x10a5   : > { %1902 = vadd.xlane.f32.xlu0 %v1901_v36 }
0x1118   : > { %v1903_v37 = vpop.xlane.xlu0 %1902 }
0x1119   : > { %v1904_v38 = vmul.f32 0.032258064, %v1903_v37 }
0x111b   : > { %2284 = vrsqrt.f32 %v1904_v38  ;;  %vm1912_vm3 = vcmp.eq.f32.partialorder %v1904_v38, inf  ;;  %v1915_v46 = vand.u32 2147483648, %v1904_v38  ;;  %vm1914_vm4 = vcmp.eq.f32.partialorder %v1904_v38, 0.0 }
0x1121   : > { %v2285_v39 = vpop.eup %2284 }
0x1122   : > { %v1906_v40 = vmul.f32 %v2285_v39, %v1904_v38 }
0x1124   : > { %v1907_v41 = vmul.f32 %v2285_v39, %v1906_v40 }
0x1126   : > { %v1908_v42 = vmul.f32 0.5, %v1907_v41 }
0x1128   : > { %v1909_v43 = vsub.f32 1.5, %v1908_v42 }
0x112a   : > { %v1910_v44 = vmul.f32 %v2285_v39, %v1909_v43 }
0x112c   : > { %v1911_v45 = vmul.f32 %v1910_v44, %v1904_v38 }
0x112e   : > { %v1913_v35 = vsel %vm1912_vm3, %v1904_v38, %v1911_v45 }
0x112f   : > { %v1916_v47 = vsel %vm1914_vm4, %v1915_v46, %v1913_v35 }
0x1130   : > { %v1921_v48 = vadd.f32 1e-06, %v1916_v47 }
0x1132   : > { %2286 = vrcp.f32 %v1921_v48  ;;  %v1933_v51 = vand.u32 2147483648, %v1921_v48  ;;  %v1931_v55 = vand.u32 2147483647, %v1921_v48  ;;  %vm1927_vm6 = vweird.f32 %v1921_v48 }
0x1134   : > { %v1934_v57 = vor.u32 1.1754944e-38, %v1933_v51  ;;  %vm1932_vm8 = vcmp.eq.f32.partialorder %v1931_v55, 8.507059e+37 }
0x1138   : > { %v2287_v49 = vpop.eup %2286 }
0x1139   : > { %v1923_v50 = vmul.f32 %v2287_v49, %v1921_v48  ;;  %vm1928_vm5 = vweird.f32 %v2287_v49 }
0x113a   : > { %vm1929_vm7 = vmor %vm1927_vm6, %vm1928_vm5 }
0x113b   : > { %v1924_v14 = vsub.f32 1.0, %v1923_v50 }
0x113d   : > { %v1925_v53 = vmul.f32 %v2287_v49, %v1924_v14 }
0x113f   : > { %v1926_v56 = vadd.f32 %v2287_v49, %v1925_v53 }
0x1141   : > { %v1930_v59 = vsel %vm1929_vm7, %v2287_v49, %v1926_v56 }
0x1142   : > { %v1935_v61 = vsel %vm1932_vm8, %v1934_v57, %v1930_v59 }
0x1143   : > { %v1936_v63 = vmul.f32 %v1935_v61, %v1920_v58 }
0x1145   : > { %v1940_v0 = vadd.f32 %v2241_v60, %v1936_v63 }
0x1147   : > { %1941 = vst.msk [vmem:[%s815_s27] sm:$0xff] %vm844_vm0, %v1940_v0 }
0x1148   : > { %2405 = shalt.err (!%p2402_p8)
}
0x1149   : > { %2155 = dma.vmem_to_hbm [thread:$0]  (%p2630_p5), %s1956_s25, 128, %s1958_s8, %s1943_s2  }
0x114a PF: > { %s3059_s14 = sld [smem:[#allocation14_spill]] }
0x114b   : > { %s3060_s12 = sld [smem:[#allocation12_spill]] }
0x1150   : > { %p2177_p9 = scmp.ge.s32.totalorder %s3059_s14, 2 }
0x1151   : > { %s1969_s27 = sand.u32 1, %s3060_s12  }
0x1152   : > { %p2168_p10 = pnand %p2177_p9, %p2634_p6  ;;  %s1970_s1 = scalar_lea.sflag [#allocation4], %s1969_s27 }
0x1154   : > { %p2169_p11 = pneg %p2168_p10 }
0x1156   : > { %2431 = dma.done.wait (%p2169_p11), %s1970_s1, 128  }
0x1157   : > { %2433 = vsyncadd (%p2169_p11), %s1970_s1, 4294967168  ;;  %s3062_s28 = sld [smem:[#allocation15_spill]]  ;;  %s3065_s5 = smov %s2440_s26 }
0x1158   : > { %s3063_s18 = sld [smem:[#allocation13_spill]] }
0x1159   : > { %s3064_s27 = sld [smem:[#allocation16_spill]] }
0x115d   : > { %p36_p12 = scmp.ge.s32.totalorder %s3062_s28, 4  }
0x115e   : > { %s3066_s26 = smov %s3063_s18 }
0x115f   :  { %38 = sbr.rel (!%p36_p12) target bundleno = 18 (0x12), region = 173 }
0x1164   :  { %1976 = vsyncpa [#allocation3], 1 }
0x1165   :  { %1978 = vsyncpa [#allocation3 + $0x1], 1 }
0x1166   :  { %1979 = vsyncpa [#allocation6], 1 }
0x1167   :  { %1980 = vsyncpa [#allocation4], 1 }
0x1168   :  { %1982 = vsyncpa [#allocation4 + $0x1], 1 }

</bundles_post_ra>
